<compile_context>
chip_gen: v7x
topology: tpu7x:2x2x1
jax: 0.10.0
libtpu: 0.0.40
codegen_flags: <defaults>
</compile_context>

<pallas_src>
import functools

import numpy as np

import jax
import jax.numpy as jnp
from jax import lax
from jax.experimental import pallas as pl
from jax.experimental.pallas import tpu as pltpu

BN_EPS = 1e-5
LANES = 128


def _round_up(x, m):
    return (x + m - 1) // m * m


# ----------------------------------------------------------------------------
# One-time parameter packing (hoisted out of the forward pass)
# ----------------------------------------------------------------------------
def _pack_conv(w, b, gamma, beta, stride):
    """Conv2d weight (cout,cin,k,k) -> (taps, scal) for the fused conv kernel.

    The stride is folded into channels (space-to-depth): tap (th,tw) contracts
    over the densely packed (ph, pw, c) channel order, padded to 128 lanes.
    """
    w = np.asarray(w, np.float32)
    cout, cin, k, _ = w.shape
    s = max(stride, 1)
    assert k % s == 0, "stride folding requires s | K"
    ks = k // s
    cf = _round_up(s * s * cin, LANES)
    co = _round_up(cout, LANES)
    taps = np.zeros((ks * ks, cf, co), np.float32)
    for th in range(ks):
        for tw in range(ks):
            blk = w[:, :, th * s:(th + 1) * s, tw * s:(tw + 1) * s]  # (cout,cin,s,s)
            blk = np.transpose(blk, (2, 3, 1, 0)).reshape(s * s * cin, cout)
            taps[th * ks + tw, :s * s * cin, :cout] = blk
    scal = np.zeros((3, co), np.float32)
    scal[0, :cout] = np.asarray(b, np.float32)
    scal[1, :cout] = np.asarray(gamma, np.float32)
    scal[2, :cout] = np.asarray(beta, np.float32)
    return jnp.asarray(taps, jnp.bfloat16), jnp.asarray(scal)


def _pack_tconv_stride1(w, b, gamma, beta):
    """ConvTranspose2d (cin,cout,k,k), stride 1 == conv with flipped kernel."""
    w = np.asarray(w, np.float32)
    w_conv = np.transpose(w[:, :, ::-1, ::-1], (1, 0, 2, 3))
    return _pack_conv(w_conv, b, gamma, beta, stride=1)


def _pack_tconv_subpixel(w, b, gamma, beta, stride, pad):
    """ConvTranspose2d (cin,cout,k,k), stride>1 -> sub-pixel conv tap matrices.

    Output lanes are (r_h, r_w, co) phase groups; tap a (resp. bb) corresponds
    to input offset dk_h = dk_max - a (dk_w = dk_max - bb).
    """
    w = np.asarray(w, np.float32)
    cin, cout, k, _ = w.shape
    s, p = stride, pad
    dk_min = -((s - 1 + p) // s)
    dk_max = (k - 1 - p) // s
    ndk = dk_max - dk_min + 1
    cf = _round_up(cin, LANES)
    ctot = s * s * cout
    co = _round_up(ctot, LANES)
    taps = np.zeros((ndk * ndk, cf, co), np.float32)
    for a in range(ndk):
        dk_h = dk_max - a
        for bb in range(ndk):
            dk_w = dk_max - bb
            for rh in range(s):
                kh = rh + p + dk_h * s
                if not (0 <= kh < k):
                    continue
                for rw in range(s):
                    kw = rw + p + dk_w * s
                    if not (0 <= kw < k):
                        continue
                    lane0 = (rh * s + rw) * cout
                    taps[a * ndk + bb, :cin, lane0:lane0 + cout] = w[:, :, kh, kw]
    bias = np.zeros((1, co), np.float32)
    bias[0, :ctot] = np.tile(np.asarray(b, np.float32), s * s)
    bn = np.zeros((2, LANES), np.float32)
    bn[0, :cout] = np.asarray(gamma, np.float32)
    bn[1, :cout] = np.asarray(beta, np.float32)
    return jnp.asarray(taps, jnp.bfloat16), jnp.asarray(bias), jnp.asarray(bn)


# ----------------------------------------------------------------------------
# Fused conv kernel:
#   acc = sum_taps X[off_t : off_t + M, :] @ W_t     (MXU, f32 accumulation)
#   y   = acc + bias ; [BatchNorm(batch stats via MXU row-sums)] ; ReLU/Sigmoid
# ----------------------------------------------------------------------------
def _make_conv_kernel(offsets, m_full, use_bn, act):
    def kernel(*refs):
        if use_bn:
            x_ref, w_ref, s_ref, msk_ref, o_ref = refs
        else:
            x_ref, w_ref, s_ref, o_ref = refs
        off0 = offsets[0]
        acc = jnp.dot(x_ref[off0:off0 + m_full, :], w_ref[0],
                      preferred_element_type=jnp.float32)
        for t in range(1, len(offsets)):
            off = offsets[t]
            acc = acc + jnp.dot(x_ref[off:off + m_full, :], w_ref[t],
                                preferred_element_type=jnp.float32)
        y = acc + s_ref[0:1, :]                       # bias row, (1, C) broadcast
        if use_bn:
            # training-mode BatchNorm2d over the true output rows only; the
            # (1, M) mask row already carries the 1/count scaling, and the two
            # row-sums go through the MXU (no extra VALU passes over y).
            m = msk_ref[...]
            mean = jnp.dot(m, y, preferred_element_type=jnp.float32)
            ex2 = jnp.dot(m, y * y, preferred_element_type=jnp.float32)
            var = jnp.maximum(ex2 - mean * mean, 0.0)
            y = (y - mean) * lax.rsqrt(var + BN_EPS) * s_ref[1:2, :] + s_ref[2:3, :]
        if act == "relu":
            y = jnp.maximum(y, 0.0)
        elif act == "sigmoid":
            y = 1.0 / (1.0 + jnp.exp(-y))             # exact sigmoid
        o_ref[...] = y.astype(o_ref.dtype)
    return kernel


def _fused_conv_call(x_flat, w_taps, scal, mrow, *, offsets, m_full, use_bn, act):
    mp, cf = x_flat.shape
    t, _, co = w_taps.shape
    in_specs = [pl.BlockSpec((mp, cf), lambda i: (0, 0)),
                pl.BlockSpec((t, cf, co), lambda i: (0, 0, 0)),
                pl.BlockSpec((scal.shape[0], co), lambda i: (0, 0))]
    args = [x_flat, w_taps, scal]
    if use_bn:
        in_specs.append(pl.BlockSpec((1, m_full), lambda i: (0, 0)))
        args.append(mrow)
    return pl.pallas_call(
        _make_conv_kernel(offsets, m_full, use_bn, act),
        out_shape=jax.ShapeDtypeStruct((m_full, co), jnp.bfloat16),
        grid=(1,),
        in_specs=in_specs,
        out_specs=pl.BlockSpec((m_full, co), lambda i: (0, 0)),
        compiler_params=pltpu.CompilerParams(dimension_semantics=("arbitrary",)),
    )(*args)


# ----------------------------------------------------------------------------
# Small BatchNorm(+act) kernel (used after the sub-pixel transposed convs)
# ----------------------------------------------------------------------------
def _make_bn_kernel(inv_rows, act):
    def kernel(x_ref, s_ref, o_ref):
        y = x_ref[...].astype(jnp.float32)
        mean = jnp.sum(y, axis=0, keepdims=True) * inv_rows
        ex2 = jnp.sum(y * y, axis=0, keepdims=True) * inv_rows
        var = jnp.maximum(ex2 - mean * mean, 0.0)
        y = (y - mean) * lax.rsqrt(var + BN_EPS) * s_ref[0:1, :] + s_ref[1:2, :]
        if act == "relu":
            y = jnp.maximum(y, 0.0)
        o_ref[...] = y.astype(o_ref.dtype)
    return kernel


def _bn_act_call(x2d, scal, act):
    r, c = x2d.shape
    return pl.pallas_call(
        _make_bn_kernel(1.0 / float(r), act),
        out_shape=jax.ShapeDtypeStruct((r, c), jnp.bfloat16),
        grid=(1,),
        in_specs=[pl.BlockSpec((r, c), lambda i: (0, 0)),
                  pl.BlockSpec((2, c), lambda i: (0, 0))],
        out_specs=pl.BlockSpec((r, c), lambda i: (0, 0)),
        compiler_params=pltpu.CompilerParams(dimension_semantics=("arbitrary",)),
    )(x2d, scal)


# ----------------------------------------------------------------------------
# Layer wrappers (layout plumbing only; all compute happens in the kernels)
# ----------------------------------------------------------------------------
def _space_to_depth(x, s):
    """(N,H,W,C) -> (N,H//s,W//s,s*s*C), dense channel order (ph, pw, c)."""
    n, h, w, c = x.shape
    x = x.reshape(n, h // s, s, w // s, s, c)
    x = jnp.transpose(x, (0, 1, 3, 2, 4, 5))
    return x.reshape(n, h // s, w // s, s * s * c)


def conv_layer(x, w_taps, scal, *, cin, cout, k, stride, pad, use_bn, act):
    """Fused Conv2d (+BatchNorm)(+act).  x: (N,H,W,Ccarry) bf16, true channels
    in the leading lanes.  Returns (N,OH,OW,128) bf16 (true cout leading)."""
    n, h, w_sp, c_carry = x.shape
    s = stride
    oh = (h + 2 * pad - k) // s + 1
    ow = (w_sp + 2 * pad - k) // s + 1
    cf = w_taps.shape[1]
    if s > 1:
        xs = x[..., :cin]                               # true channels only
        hp, wp = h + 2 * pad, w_sp + 2 * pad
        eh, ew = (-hp) % s, (-wp) % s
        xs = jnp.pad(xs, ((0, 0), (pad, pad + eh), (pad, pad + ew), (0, 0)))
        xs = _space_to_depth(xs, s)                     # dense (ph,pw,c) packing
        ct = s * s * cin
        if cf > ct:
            xs = jnp.pad(xs, ((0, 0), (0, 0), (0, 0), (0, cf - ct)))
    else:
        xs = x
        if c_carry < cf:
            xs = jnp.pad(xs, ((0, 0), (0, 0), (0, 0), (0, cf - c_carry)))
        xs = jnp.pad(xs, ((0, 0), (pad, pad), (pad, pad), (0, 0)))
    _, hs, ws, _ = xs.shape
    ks = k // s
    m_full = n * hs * ws
    x_flat = xs.reshape(m_full, cf).astype(jnp.bfloat16)
    max_off = (ks - 1) * ws + (ks - 1)
    if max_off > 0:
        x_flat = jnp.pad(x_flat, ((0, max_off), (0, 0)))
    offsets = tuple(th * ws + tw for th in range(ks) for tw in range(ks))

    mrow = None
    if use_bn:
        ok = (np.arange(hs)[:, None] < oh) & (np.arange(ws)[None, :] < ow)
        m2 = ok.astype(np.float32) / float(n * oh * ow)
        mrow = jnp.asarray(np.tile(m2[None], (n, 1, 1)).reshape(1, m_full))

    out = _fused_conv_call(x_flat, w_taps, scal, mrow,
                           offsets=offsets, m_full=m_full, use_bn=use_bn, act=act)
    return out.reshape(n, hs, ws, -1)[:, :oh, :ow, :]


def tconv_subpixel_layer(x, w_taps, bias_scal, bn_scal, *, cin, cout, k, stride,
                         pad, act):
    """ConvTranspose2d(stride>1) as a sub-pixel conv at native input resolution
    (+bias), wrapper depth-to-space/crop, then BatchNorm(+act) kernel."""
    n, h, w_sp, c_carry = x.shape
    s, p = stride, pad
    oh = (h - 1) * s - 2 * p + k
    ow = (w_sp - 1) * s - 2 * p + k
    qh, qw = -(-oh // s), -(-ow // s)
    dk_min = -((s - 1 + p) // s)
    dk_max = (k - 1 - p) // s
    ndk = dk_max - dk_min + 1
    pad_lo = dk_max
    pad_hi_h = max(qh - dk_min - h, 0)
    pad_hi_w = max(qw - dk_min - w_sp, 0)
    cf = w_taps.shape[1]
    xs = x
    if c_carry < cf:
        xs = jnp.pad(xs, ((0, 0), (0, 0), (0, 0), (0, cf - c_carry)))
    xs = jnp.pad(xs, ((0, 0), (pad_lo, pad_hi_h), (pad_lo, pad_hi_w), (0, 0)))
    _, hs, ws, _ = xs.shape
    m_full = n * hs * ws
    x_flat = xs.reshape(m_full, cf).astype(jnp.bfloat16)
    max_off = (ndk - 1) * ws + (ndk - 1)
    if max_off > 0:
        x_flat = jnp.pad(x_flat, ((0, max_off), (0, 0)))
    offsets = tuple(a * ws + b for a in range(ndk) for b in range(ndk))

    out = _fused_conv_call(x_flat, w_taps, bias_scal, None,
                           offsets=offsets, m_full=m_full, use_bn=False, act=None)
    ctot = s * s * cout
    out = out.reshape(n, hs, ws, -1)[:, :qh, :qw, :ctot]
    out = out.reshape(n, qh, qw, s, s, cout)
    out = jnp.transpose(out, (0, 1, 3, 2, 4, 5)).reshape(n, qh * s, qw * s, cout)
    out = out[:, :oh, :ow, :]
    out = jnp.pad(out, ((0, 0), (0, 0), (0, 0), (0, LANES - cout)))
    y = _bn_act_call(out.reshape(n * oh * ow, LANES), bn_scal, act)
    return y.reshape(n, oh, ow, LANES)


# ----------------------------------------------------------------------------
# MaxPool2d(2,2, return_indices) / MaxUnpool2d(2,2)  (single channel)
# ----------------------------------------------------------------------------
def _flat2d(x):
    l = x.size
    if l % LANES == 0:
        return x.reshape(l // LANES, LANES)
    return x.reshape(x.shape[0], -1)


def _maxpool_kernel(x00_ref, x01_ref, x10_ref, x11_ref, y_ref, idx_ref):
    a, b, c, d = x00_ref[...], x01_ref[...], x10_ref[...], x11_ref[...]
    best = a
    code = jnp.zeros(a.shape, jnp.int32)
    for k, v in ((1, b), (2, c), (3, d)):            # row-major window scan order
        upd = v > best                               # strict '>' keeps first max
        best = jnp.where(upd, v, best)
        code = jnp.where(upd, k, code)
    y_ref[...] = best
    idx_ref[...] = code


def maxpool2x2(x):
    n, h, w = x.shape
    hh, wh = h // 2, w // 2
    subs = [_flat2d(x[:, a::2, b::2]) for a in (0, 1) for b in (0, 1)]
    r, c = subs[0].shape
    spec = pl.BlockSpec((r, c), lambda i: (0, 0))
    y, code = pl.pallas_call(
        _maxpool_kernel,
        out_shape=(jax.ShapeDtypeStruct((r, c), x.dtype),
                   jax.ShapeDtypeStruct((r, c), jnp.int32)),
        grid=(1,),
        in_specs=[spec, spec, spec, spec],
        out_specs=(spec, spec),
    )(*subs)
    return y.reshape(n, hh, wh), code.reshape(n, hh, wh)


def _maxunpool_kernel(y_ref, code_ref, o_ref):
    y = y_ref[...]
    c = code_ref[...]
    zero = jnp.zeros_like(y)
    for k in range(4):
        o_ref[k] = jnp.where(c == k, y, zero)


def maxunpool2x2(y, code):
    n, hh, wh = y.shape
    y2 = _flat2d(y)
    c2 = _flat2d(code)
    r, c = y2.shape
    spec = pl.BlockSpec((r, c), lambda i: (0, 0))
    planes = pl.pallas_call(
        _maxunpool_kernel,
        out_shape=jax.ShapeDtypeStruct((4, r, c), y.dtype),
        grid=(1,),
        in_specs=[spec, spec],
        out_specs=pl.BlockSpec((4, r, c), lambda i: (0, 0, 0)),
    )(y2, c2)
    p = planes.reshape(2, 2, n, hh, wh)
    return jnp.transpose(p, (2, 3, 0, 4, 1)).reshape(n, 2 * hh, 2 * wh)


# ----------------------------------------------------------------------------
# Parameters (deterministic init; shapes follow CNNAutoEncoder.__init__)
# ----------------------------------------------------------------------------
def init_params(key):
    keys = jax.random.split(key, 8)
    p = {}

    def mk(k, wshape, cout):
        kw, kb = jax.random.split(k)
        w = jax.random.normal(kw, wshape, jnp.float32) * 0.1
        b = jax.random.normal(kb, (cout,), jnp.float32) * 0.05
        return w, b

    # Conv2d weights: (Cout, Cin, K, K)
    p["l1_w"], p["l1_b"] = mk(keys[0], (20, 1, 6, 6), 20)
    p["l2_w"], p["l2_b"] = mk(keys[1], (40, 20, 6, 6), 40)
    p["p2_w"], p["p2_b"] = mk(keys[2], (10, 40, 3, 3), 10)
    p["l3_w"], p["l3_b"] = mk(keys[3], (1, 10, 3, 3), 1)
    p["l4_w"], p["l4_b"] = mk(keys[4], (10, 1, 3, 3), 10)
    # ConvTranspose2d weights: (Cin, Cout, K, K)
    p["u2_w"], p["u2_b"] = mk(keys[5], (10, 40, 3, 3), 40)
    p["l5_w"], p["l5_b"] = mk(keys[6], (40, 20, 6, 6), 20)
    p["l6_w"], p["l6_b"] = mk(keys[7], (20, 1, 6, 6), 1)
    for name, c in (("l1", 20), ("l2", 40), ("p2", 10), ("l4", 10),
                    ("u2", 40), ("l5", 20), ("l6", 1)):
        p[name + "_g"] = jnp.ones((c,), jnp.float32)
        p[name + "_be"] = jnp.zeros((c,), jnp.float32)
    return p


def pack_params(p):
    """One-time repack of PyTorch-layout params into dense lane-padded taps."""
    pk = {}
    pk["l1"] = _pack_conv(p["l1_w"], p["l1_b"], p["l1_g"], p["l1_be"], stride=2)
    pk["l2"] = _pack_conv(p["l2_w"], p["l2_b"], p["l2_g"], p["l2_be"], stride=6)
    pk["p2"] = _pack_conv(p["p2_w"], p["p2_b"], p["p2_g"], p["p2_be"], stride=1)
    ones1 = np.ones((1,), np.float32)
    zeros1 = np.zeros((1,), np.float32)
    pk["l3"] = _pack_conv(p["l3_w"], p["l3_b"], ones1, zeros1, stride=1)
    pk["l4"] = _pack_conv(p["l4_w"], p["l4_b"], p["l4_g"], p["l4_be"], stride=1)
    pk["u2"] = _pack_tconv_stride1(p["u2_w"], p["u2_b"], p["u2_g"], p["u2_be"])
    pk["l5"] = _pack_tconv_subpixel(p["l5_w"], p["l5_b"], p["l5_g"], p["l5_be"],
                                    stride=6, pad=1)
    pk["l6"] = _pack_tconv_subpixel(p["l6_w"], p["l6_b"], p["l6_g"], p["l6_be"],
                                    stride=2, pad=2)
    return pk


# ----------------------------------------------------------------------------
# Full forward pass
# ----------------------------------------------------------------------------
def cnn_autoencoder_forward(x_nchw, packed):
    x = x_nchw[:, 0, :, :].astype(jnp.float32)                # (N,H,W), Cin = 1

    pooled, code = maxpool2x2(x)                              # pool1 (+ indices)
    h = pooled[..., None].astype(jnp.bfloat16)                # (N,H/2,W/2,1)

    h = conv_layer(h, *packed["l1"], cin=1, cout=20, k=6, stride=2, pad=2,
                   use_bn=True, act="relu")                   # layer1
    h = conv_layer(h, *packed["l2"], cin=20, cout=40, k=6, stride=6, pad=1,
                   use_bn=True, act="relu")                   # layer2
    h = conv_layer(h, *packed["p2"], cin=40, cout=10, k=3, stride=1, pad=1,
                   use_bn=True, act="relu")                   # pool2
    h = conv_layer(h, *packed["l3"], cin=10, cout=1, k=3, stride=1, pad=1,
                   use_bn=False, act="sigmoid")               # layer3
    h = conv_layer(h, *packed["l4"], cin=1, cout=10, k=3, stride=1, pad=1,
                   use_bn=True, act="relu")                   # layer4
    # unpool2: stride-1 ConvTranspose == conv with flipped kernel, pad = K-1-p
    h = conv_layer(h, *packed["u2"], cin=10, cout=40, k=3, stride=1, pad=1,
                   use_bn=True, act="relu")
    h = tconv_subpixel_layer(h, *packed["l5"], cin=40, cout=20, k=6, stride=6,
                             pad=1, act="relu")               # layer5
    h = tconv_subpixel_layer(h, *packed["l6"], cin=20, cout=1, k=6, stride=2,
                             pad=2, act="relu")               # layer6

    y = maxunpool2x2(h[..., 0].astype(jnp.float32), code)     # unpool1 (indices1)
    return y[:, None, :, :]                                   # back to NCHW


if __name__ == "__main__":
    key = jax.random.PRNGKey(0)
    pkey, xkey = jax.random.split(key)
    params = init_params(pkey)
    packed = pack_params(params)        # one-time weight repack (not per-forward)

    # Spatial size must survive the module's down/up path (16x16 works).
    x = jax.random.normal(xkey, (2, 1, 16, 16), jnp.float32)

    fwd = jax.jit(functools.partial(cnn_autoencoder_forward, packed=packed))
    y = fwd(x)
    jax.block_until_ready(y)
    assert y.shape == (2, 1, 16, 16) and y.dtype == jnp.float32
    assert bool(jnp.all(jnp.isfinite(y)))
    print("KERNEL_OK")
</pallas_src>

<mosaic_0001>
module attributes {stable_mosaic.version = 11 : i64} {
  func.func @_maxpool_kernel(%arg0: i32, %arg1: memref<1x128xf32, #tpu.memory_space<vmem>>, %arg2: memref<1x128xf32, #tpu.memory_space<vmem>>, %arg3: memref<1x128xf32, #tpu.memory_space<vmem>>, %arg4: memref<1x128xf32, #tpu.memory_space<vmem>>, %arg5: memref<1x128xf32, #tpu.memory_space<vmem>>, %arg6: memref<1x128xi32, #tpu.memory_space<vmem>>) attributes {dimension_semantics = [#tpu.dimension_semantics<arbitrary>], iteration_bounds = array<i64: 1>, scalar_prefetch = 0 : i64, scratch_operands = 0 : i64, tpu.core_type = #tpu.core_type<tc>, window_params = [{pipeline_mode = #tpu.pipeline_mode<synchronous>, transform_indices = @transform_0, window_bounds = array<i64: 1, 128>}, {pipeline_mode = #tpu.pipeline_mode<synchronous>, transform_indices = @transform_1, window_bounds = array<i64: 1, 128>}, {pipeline_mode = #tpu.pipeline_mode<synchronous>, transform_indices = @transform_2, window_bounds = array<i64: 1, 128>}, {pipeline_mode = #tpu.pipeline_mode<synchronous>, transform_indices = @transform_3, window_bounds = array<i64: 1, 128>}, {pipeline_mode = #tpu.pipeline_mode<synchronous>, transform_indices = @transform_4, window_bounds = array<i64: 1, 128>}, {pipeline_mode = #tpu.pipeline_mode<synchronous>, transform_indices = @transform_5, window_bounds = array<i64: 1, 128>}]} {
    %c0 = arith.constant 0 : index
    %c0_0 = arith.constant 0 : index
    %0 = vector.load %arg1[%c0, %c0_0] : memref<1x128xf32, #tpu.memory_space<vmem>>, vector<1x128xf32>
    %c0_1 = arith.constant 0 : index
    %c0_2 = arith.constant 0 : index
    %1 = vector.load %arg2[%c0_1, %c0_2] : memref<1x128xf32, #tpu.memory_space<vmem>>, vector<1x128xf32>
    %c0_3 = arith.constant 0 : index
    %c0_4 = arith.constant 0 : index
    %2 = vector.load %arg3[%c0_3, %c0_4] : memref<1x128xf32, #tpu.memory_space<vmem>>, vector<1x128xf32>
    %c0_5 = arith.constant 0 : index
    %c0_6 = arith.constant 0 : index
    %3 = vector.load %arg4[%c0_5, %c0_6] : memref<1x128xf32, #tpu.memory_space<vmem>>, vector<1x128xf32>
    %c0_i32 = arith.constant 0 : i32
    %4 = vector.broadcast %c0_i32 : i32 to vector<1x128xi32>
    %5 = arith.cmpf ogt, %1, %0 : vector<1x128xf32>
    %6 = arith.select %5, %1, %0 : vector<1x128xi1>, vector<1x128xf32>
    %c1_i32 = arith.constant 1 : i32
    %7 = vector.broadcast %c1_i32 : i32 to vector<1x128xi32>
    %8 = arith.select %5, %7, %4 : vector<1x128xi1>, vector<1x128xi32>
    %9 = arith.cmpf ogt, %2, %6 : vector<1x128xf32>
    %10 = arith.select %9, %2, %6 : vector<1x128xi1>, vector<1x128xf32>
    %c2_i32 = arith.constant 2 : i32
    %11 = vector.broadcast %c2_i32 : i32 to vector<1x128xi32>
    %12 = arith.select %9, %11, %8 : vector<1x128xi1>, vector<1x128xi32>
    %13 = arith.cmpf ogt, %3, %10 : vector<1x128xf32>
    %14 = arith.select %13, %3, %10 : vector<1x128xi1>, vector<1x128xf32>
    %c3_i32 = arith.constant 3 : i32
    %15 = vector.broadcast %c3_i32 : i32 to vector<1x128xi32>
    %16 = arith.select %13, %15, %12 : vector<1x128xi1>, vector<1x128xi32>
    %c0_7 = arith.constant 0 : index
    %c0_8 = arith.constant 0 : index
    %17 = vector.load %arg5[%c0_7, %c0_8] : memref<1x128xf32, #tpu.memory_space<vmem>>, vector<1x128xf32>
    tpu.vector_store %arg5[%c0_7, %c0_8], %14 {strides = array<i32>} : memref<1x128xf32, #tpu.memory_space<vmem>>, vector<1x128xf32>,
    %c0_9 = arith.constant 0 : index
    %c0_10 = arith.constant 0 : index
    %18 = vector.load %arg6[%c0_9, %c0_10] : memref<1x128xi32, #tpu.memory_space<vmem>>, vector<1x128xi32>
    tpu.vector_store %arg6[%c0_9, %c0_10], %16 {strides = array<i32>} : memref<1x128xi32, #tpu.memory_space<vmem>>, vector<1x128xi32>,
    return
  }
  func.func @transform_0(%arg0: i32) -> (i32, i32) {
    %c0_i32 = arith.constant 0 : i32
    %c0_i32_0 = arith.constant 0 : i32
    %c0_i32_1 = arith.constant 0 : i32
    return %c0_i32, %c0_i32_0 : i32, i32
  }
  func.func @transform_1(%arg0: i32) -> (i32, i32) {
    %c0_i32 = arith.constant 0 : i32
    %c0_i32_0 = arith.constant 0 : i32
    %c0_i32_1 = arith.constant 0 : i32
    return %c0_i32, %c0_i32_0 : i32, i32
  }
  func.func @transform_2(%arg0: i32) -> (i32, i32) {
    %c0_i32 = arith.constant 0 : i32
    %c0_i32_0 = arith.constant 0 : i32
    %c0_i32_1 = arith.constant 0 : i32
    return %c0_i32, %c0_i32_0 : i32, i32
  }
  func.func @transform_3(%arg0: i32) -> (i32, i32) {
    %c0_i32 = arith.constant 0 : i32
    %c0_i32_0 = arith.constant 0 : i32
    %c0_i32_1 = arith.constant 0 : i32
    return %c0_i32, %c0_i32_0 : i32, i32
  }
  func.func @transform_4(%arg0: i32) -> (i32, i32) {
    %c0_i32 = arith.constant 0 : i32
    %c0_i32_0 = arith.constant 0 : i32
    %c0_i32_1 = arith.constant 0 : i32
    return %c0_i32, %c0_i32_0 : i32, i32
  }
  func.func @transform_5(%arg0: i32) -> (i32, i32) {
    %c0_i32 = arith.constant 0 : i32
    %c0_i32_0 = arith.constant 0 : i32
    %c0_i32_1 = arith.constant 0 : i32
    return %c0_i32, %c0_i32_0 : i32, i32
  }
}

module attributes {stable_mosaic.version = 11 : i64} {
  func.func @kernel(%arg0: i32, %arg1: memref<86x128xbf16, #tpu.memory_space<vmem>>, %arg2: memref<9x128x128xbf16, #tpu.memory_space<vmem>>, %arg3: memref<3x128xf32, #tpu.memory_space<vmem>>, %arg4: memref<1x72xf32, #tpu.memory_space<vmem>>, %arg5: memref<72x128xbf16, #tpu.memory_space<vmem>>) attributes {dimension_semantics = [#tpu.dimension_semantics<arbitrary>], iteration_bounds = array<i64: 1>, scalar_prefetch = 0 : i64, scratch_operands = 0 : i64, tpu.core_type = #tpu.core_type<tc>, window_params = [{pipeline_mode = #tpu.pipeline_mode<synchronous>, transform_indices = @transform_0, window_bounds = array<i64: 86, 128>}, {pipeline_mode = #tpu.pipeline_mode<synchronous>, transform_indices = @transform_1, window_bounds = array<i64: 9, 128, 128>}, {pipeline_mode = #tpu.pipeline_mode<synchronous>, transform_indices = @transform_2, window_bounds = array<i64: 3, 128>}, {pipeline_mode = #tpu.pipeline_mode<synchronous>, transform_indices = @transform_3, window_bounds = array<i64: 1, 72>}, {pipeline_mode = #tpu.pipeline_mode<synchronous>, transform_indices = @transform_4, window_bounds = array<i64: 72, 128>}]} {
    %c0 = arith.constant 0 : index
    %c0_0 = arith.constant 0 : index
    %0 = vector.load %arg1[%c0, %c0_0] : memref<86x128xbf16, #tpu.memory_space<vmem>>, vector<72x128xbf16>
    %c0_1 = arith.constant 0 : index
    %c0_2 = arith.constant 0 : index
    %c0_3 = arith.constant 0 : index
    %1 = vector.load %arg2[%c0_1, %c0_2, %c0_3] : memref<9x128x128xbf16, #tpu.memory_space<vmem>>, vector<1x128x128xbf16>
    %2 = vector.shape_cast %1 : vector<1x128x128xbf16> to vector<128x128xbf16>
    %cst = arith.constant dense<0.000000e+00> : vector<72x128xf32>
    %3 = tpu.matmul %0, %2, %cst {dimension_numbers = #tpu.dot_dimension_numbers<[1], [0], [0], [1], [0, 0, 1, 1], [], []>} : vector<72x128xbf16>, vector<128x128xbf16>, vector<72x128xf32> -> vector<72x128xf32>
    %c1 = arith.constant 1 : index
    %c0_4 = arith.constant 0 : index
    %4 = vector.load %arg1[%c1, %c0_4] : memref<86x128xbf16, #tpu.memory_space<vmem>>, vector<72x128xbf16>
    %c1_5 = arith.constant 1 : index
    %c0_6 = arith.constant 0 : index
    %c0_7 = arith.constant 0 : index
    %5 = vector.load %arg2[%c1_5, %c0_6, %c0_7] : memref<9x128x128xbf16, #tpu.memory_space<vmem>>, vector<1x128x128xbf16>
    %6 = vector.shape_cast %5 : vector<1x128x128xbf16> to vector<128x128xbf16>
    %cst_8 = arith.constant dense<0.000000e+00> : vector<72x128xf32>
    %7 = tpu.matmul %4, %6, %cst_8 {dimension_numbers = #tpu.dot_dimension_numbers<[1], [0], [0], [1], [0, 0, 1, 1], [], []>} : vector<72x128xbf16>, vector<128x128xbf16>, vector<72x128xf32> -> vector<72x128xf32>
    %8 = arith.addf %3, %7 : vector<72x128xf32>
    %c2 = arith.constant 2 : index
    %c0_9 = arith.constant 0 : index
    %9 = vector.load %arg1[%c2, %c0_9] : memref<86x128xbf16, #tpu.memory_space<vmem>>, vector<72x128xbf16>
    %c2_10 = arith.constant 2 : index
    %c0_11 = arith.constant 0 : index
    %c0_12 = arith.constant 0 : index
    %10 = vector.load %arg2[%c2_10, %c0_11, %c0_12] : memref<9x128x128xbf16, #tpu.memory_space<vmem>>, vector<1x128x128xbf16>
    %11 = vector.shape_cast %10 : vector<1x128x128xbf16> to vector<128x128xbf16>
    %cst_13 = arith.constant dense<0.000000e+00> : vector<72x128xf32>
    %12 = tpu.matmul %9, %11, %cst_13 {dimension_numbers = #tpu.dot_dimension_numbers<[1], [0], [0], [1], [0, 0, 1, 1], [], []>} : vector<72x128xbf16>, vector<128x128xbf16>, vector<72x128xf32> -> vector<72x128xf32>
    %13 = arith.addf %8, %12 : vector<72x128xf32>
    %c6 = arith.constant 6 : index
    %c0_14 = arith.constant 0 : index
    %14 = vector.load %arg1[%c6, %c0_14] : memref<86x128xbf16, #tpu.memory_space<vmem>>, vector<72x128xbf16>
    %c3 = arith.constant 3 : index
    %c0_15 = arith.constant 0 : index
    %c0_16 = arith.constant 0 : index
    %15 = vector.load %arg2[%c3, %c0_15, %c0_16] : memref<9x128x128xbf16, #tpu.memory_space<vmem>>, vector<1x128x128xbf16>
    %16 = vector.shape_cast %15 : vector<1x128x128xbf16> to vector<128x128xbf16>
    %cst_17 = arith.constant dense<0.000000e+00> : vector<72x128xf32>
    %17 = tpu.matmul %14, %16, %cst_17 {dimension_numbers = #tpu.dot_dimension_numbers<[1], [0], [0], [1], [0, 0, 1, 1], [], []>} : vector<72x128xbf16>, vector<128x128xbf16>, vector<72x128xf32> -> vector<72x128xf32>
    %18 = arith.addf %13, %17 : vector<72x128xf32>
    %c7 = arith.constant 7 : index
    %c0_18 = arith.constant 0 : index
    %19 = vector.load %arg1[%c7, %c0_18] : memref<86x128xbf16, #tpu.memory_space<vmem>>, vector<72x128xbf16>
    %c4 = arith.constant 4 : index
    %c0_19 = arith.constant 0 : index
    %c0_20 = arith.constant 0 : index
    %20 = vector.load %arg2[%c4, %c0_19, %c0_20] : memref<9x128x128xbf16, #tpu.memory_space<vmem>>, vector<1x128x128xbf16>
    %21 = vector.shape_cast %20 : vector<1x128x128xbf16> to vector<128x128xbf16>
    %cst_21 = arith.constant dense<0.000000e+00> : vector<72x128xf32>
    %22 = tpu.matmul %19, %21, %cst_21 {dimension_numbers = #tpu.dot_dimension_numbers<[1], [0], [0], [1], [0, 0, 1, 1], [], []>} : vector<72x128xbf16>, vector<128x128xbf16>, vector<72x128xf32> -> vector<72x128xf32>
    %23 = arith.addf %18, %22 : vector<72x128xf32>
    %c8 = arith.constant 8 : index
    %c0_22 = arith.constant 0 : index
    %24 = vector.load %arg1[%c8, %c0_22] : memref<86x128xbf16, #tpu.memory_space<vmem>>, vector<72x128xbf16>
    %c5 = arith.constant 5 : index
    %c0_23 = arith.constant 0 : index
    %c0_24 = arith.constant 0 : index
    %25 = vector.load %arg2[%c5, %c0_23, %c0_24] : memref<9x128x128xbf16, #tpu.memory_space<vmem>>, vector<1x128x128xbf16>
    %26 = vector.shape_cast %25 : vector<1x128x128xbf16> to vector<128x128xbf16>
    %cst_25 = arith.constant dense<0.000000e+00> : vector<72x128xf32>
    %27 = tpu.matmul %24, %26, %cst_25 {dimension_numbers = #tpu.dot_dimension_numbers<[1], [0], [0], [1], [0, 0, 1, 1], [], []>} : vector<72x128xbf16>, vector<128x128xbf16>, vector<72x128xf32> -> vector<72x128xf32>
    %28 = arith.addf %23, %27 : vector<72x128xf32>
    %c12 = arith.constant 12 : index
    %c0_26 = arith.constant 0 : index
    %29 = vector.load %arg1[%c12, %c0_26] : memref<86x128xbf16, #tpu.memory_space<vmem>>, vector<72x128xbf16>
    %c6_27 = arith.constant 6 : index
    %c0_28 = arith.constant 0 : index
    %c0_29 = arith.constant 0 : index
    %30 = vector.load %arg2[%c6_27, %c0_28, %c0_29] : memref<9x128x128xbf16, #tpu.memory_space<vmem>>, vector<1x128x128xbf16>
    %31 = vector.shape_cast %30 : vector<1x128x128xbf16> to vector<128x128xbf16>
    %cst_30 = arith.constant dense<0.000000e+00> : vector<72x128xf32>
    %32 = tpu.matmul %29, %31, %cst_30 {dimension_numbers = #tpu.dot_dimension_numbers<[1], [0], [0], [1], [0, 0, 1, 1], [], []>} : vector<72x128xbf16>, vector<128x128xbf16>, vector<72x128xf32> -> vector<72x128xf32>
    %33 = arith.addf %28, %32 : vector<72x128xf32>
    %c13 = arith.constant 13 : index
    %c0_31 = arith.constant 0 : index
    %34 = vector.load %arg1[%c13, %c0_31] : memref<86x128xbf16, #tpu.memory_space<vmem>>, vector<72x128xbf16>
    %c7_32 = arith.constant 7 : index
    %c0_33 = arith.constant 0 : index
    %c0_34 = arith.constant 0 : index
    %35 = vector.load %arg2[%c7_32, %c0_33, %c0_34] : memref<9x128x128xbf16, #tpu.memory_space<vmem>>, vector<1x128x128xbf16>
    %36 = vector.shape_cast %35 : vector<1x128x128xbf16> to vector<128x128xbf16>
    %cst_35 = arith.constant dense<0.000000e+00> : vector<72x128xf32>
    %37 = tpu.matmul %34, %36, %cst_35 {dimension_numbers = #tpu.dot_dimension_numbers<[1], [0], [0], [1], [0, 0, 1, 1], [], []>} : vector<72x128xbf16>, vector<128x128xbf16>, vector<72x128xf32> -> vector<72x128xf32>
    %38 = arith.addf %33, %37 : vector<72x128xf32>
    %c14 = arith.constant 14 : index
    %c0_36 = arith.constant 0 : index
    %39 = vector.load %arg1[%c14, %c0_36] : memref<86x128xbf16, #tpu.memory_space<vmem>>, vector<72x128xbf16>
    %c8_37 = arith.constant 8 : index
    %c0_38 = arith.constant 0 : index
    %c0_39 = arith.constant 0 : index
    %40 = vector.load %arg2[%c8_37, %c0_38, %c0_39] : memref<9x128x128xbf16, #tpu.memory_space<vmem>>, vector<1x128x128xbf16>
    %41 = vector.shape_cast %40 : vector<1x128x128xbf16> to vector<128x128xbf16>
    %cst_40 = arith.constant dense<0.000000e+00> : vector<72x128xf32>
    %42 = tpu.matmul %39, %41, %cst_40 {dimension_numbers = #tpu.dot_dimension_numbers<[1], [0], [0], [1], [0, 0, 1, 1], [], []>} : vector<72x128xbf16>, vector<128x128xbf16>, vector<72x128xf32> -> vector<72x128xf32>
    %43 = arith.addf %38, %42 : vector<72x128xf32>
    %c0_41 = arith.constant 0 : index
    %c0_42 = arith.constant 0 : index
    %44 = vector.load %arg3[%c0_41, %c0_42] : memref<3x128xf32, #tpu.memory_space<vmem>>, vector<1x128xf32>
    %45 = vector.broadcast %44 : vector<1x128xf32> to vector<72x128xf32>
    %46 = arith.addf %43, %45 : vector<72x128xf32>
    %c0_43 = arith.constant 0 : index
    %c0_44 = arith.constant 0 : index
    %47 = vector.load %arg4[%c0_43, %c0_44] : memref<1x72xf32, #tpu.memory_space<vmem>>, vector<1x72xf32>
    %cst_45 = arith.constant dense<0.000000e+00> : vector<1x128xf32>
    %48 = tpu.matmul %47, %46, %cst_45 {dimension_numbers = #tpu.dot_dimension_numbers<[1], [0], [0], [1], [0, 0, 1, 1], [], []>} : vector<1x72xf32>, vector<72x128xf32>, vector<1x128xf32> -> vector<1x128xf32>
    %49 = arith.mulf %46, %46 : vector<72x128xf32>
    %cst_46 = arith.constant dense<0.000000e+00> : vector<1x128xf32>
    %50 = tpu.matmul %47, %49, %cst_46 {dimension_numbers = #tpu.dot_dimension_numbers<[1], [0], [0], [1], [0, 0, 1, 1], [], []>} : vector<1x72xf32>, vector<72x128xf32>, vector<1x128xf32> -> vector<1x128xf32>
    %51 = arith.mulf %48, %48 : vector<1x128xf32>
    %52 = arith.subf %50, %51 : vector<1x128xf32>
    %cst_47 = arith.constant 0.000000e+00 : f32
    %53 = vector.broadcast %cst_47 : f32 to vector<1x128xf32>
    %54 = arith.maximumf %52, %53 : vector<1x128xf32>
    %55 = vector.broadcast %48 : vector<1x128xf32> to vector<72x128xf32>
    %56 = arith.subf %46, %55 : vector<72x128xf32>
    %cst_48 = arith.constant 9.99999974E-6 : f32
    %57 = vector.broadcast %cst_48 : f32 to vector<1x128xf32>
    %58 = arith.addf %54, %57 : vector<1x128xf32>
    %59 = math.rsqrt %58 : vector<1x128xf32>
    %60 = vector.broadcast %59 : vector<1x128xf32> to vector<72x128xf32>
    %61 = arith.mulf %56, %60 : vector<72x128xf32>
    %c1_49 = arith.constant 1 : index
    %c0_50 = arith.constant 0 : index
    %62 = vector.load %arg3[%c1_49, %c0_50] : memref<3x128xf32, #tpu.memory_space<vmem>>, vector<1x128xf32>
    %63 = vector.broadcast %62 : vector<1x128xf32> to vector<72x128xf32>
    %64 = arith.mulf %61, %63 : vector<72x128xf32>
    %c2_51 = arith.constant 2 : index
    %c0_52 = arith.constant 0 : index
    %65 = vector.load %arg3[%c2_51, %c0_52] : memref<3x128xf32, #tpu.memory_space<vmem>>, vector<1x128xf32>
    %66 = vector.broadcast %65 : vector<1x128xf32> to vector<72x128xf32>
    %67 = arith.addf %64, %66 : vector<72x128xf32>
    %cst_53 = arith.constant 0.000000e+00 : f32
    %68 = vector.broadcast %cst_53 : f32 to vector<72x128xf32>
    %69 = arith.maximumf %67, %68 : vector<72x128xf32>
    %70 = arith.truncf %69 : vector<72x128xf32> to vector<72x128xbf16>
    %c0_54 = arith.constant 0 : index
    %c0_55 = arith.constant 0 : index
    %71 = vector.load %arg5[%c0_54, %c0_55] : memref<72x128xbf16, #tpu.memory_space<vmem>>, vector<72x128xbf16>
    tpu.vector_store %arg5[%c0_54, %c0_55], %70 {strides = array<i32>} : memref<72x128xbf16, #tpu.memory_space<vmem>>, vector<72x128xbf16>,
    return
  }
  func.func @transform_0(%arg0: i32) -> (i32, i32) {
    %c0_i32 = arith.constant 0 : i32
    %c0_i32_0 = arith.constant 0 : i32
    %c0_i32_1 = arith.constant 0 : i32
    return %c0_i32, %c0_i32_0 : i32, i32
  }
  func.func @transform_1(%arg0: i32) -> (i32, i32, i32) {
    %c0_i32 = arith.constant 0 : i32
    %c0_i32_0 = arith.constant 0 : i32
    %c0_i32_1 = arith.constant 0 : i32
    %c0_i32_2 = arith.constant 0 : i32
    return %c0_i32, %c0_i32_0, %c0_i32_1 : i32, i32, i32
  }
  func.func @transform_2(%arg0: i32) -> (i32, i32) {
    %c0_i32 = arith.constant 0 : i32
    %c0_i32_0 = arith.constant 0 : i32
    %c0_i32_1 = arith.constant 0 : i32
    return %c0_i32, %c0_i32_0 : i32, i32
  }
  func.func @transform_3(%arg0: i32) -> (i32, i32) {
    %c0_i32 = arith.constant 0 : i32
    %c0_i32_0 = arith.constant 0 : i32
    %c0_i32_1 = arith.constant 0 : i32
    return %c0_i32, %c0_i32_0 : i32, i32
  }
  func.func @transform_4(%arg0: i32) -> (i32, i32) {
    %c0_i32 = arith.constant 0 : i32
    %c0_i32_0 = arith.constant 0 : i32
    %c0_i32_1 = arith.constant 0 : i32
    return %c0_i32, %c0_i32_0 : i32, i32
  }
}

module attributes {stable_mosaic.version = 11 : i64} {
  func.func @kernel(%arg0: i32, %arg1: memref<2x768xbf16, #tpu.memory_space<vmem>>, %arg2: memref<1x768x128xbf16, #tpu.memory_space<vmem>>, %arg3: memref<3x128xf32, #tpu.memory_space<vmem>>, %arg4: memref<1x2xf32, #tpu.memory_space<vmem>>, %arg5: memref<2x128xbf16, #tpu.memory_space<vmem>>) attributes {dimension_semantics = [#tpu.dimension_semantics<arbitrary>], iteration_bounds = array<i64: 1>, scalar_prefetch = 0 : i64, scratch_operands = 0 : i64, tpu.core_type = #tpu.core_type<tc>, window_params = [{pipeline_mode = #tpu.pipeline_mode<synchronous>, transform_indices = @transform_0, window_bounds = array<i64: 2, 768>}, {pipeline_mode = #tpu.pipeline_mode<synchronous>, transform_indices = @transform_1, window_bounds = array<i64: 1, 768, 128>}, {pipeline_mode = #tpu.pipeline_mode<synchronous>, transform_indices = @transform_2, window_bounds = array<i64: 3, 128>}, {pipeline_mode = #tpu.pipeline_mode<synchronous>, transform_indices = @transform_3, window_bounds = array<i64: 1, 2>}, {pipeline_mode = #tpu.pipeline_mode<synchronous>, transform_indices = @transform_4, window_bounds = array<i64: 2, 128>}]} {
    %c0 = arith.constant 0 : index
    %c0_0 = arith.constant 0 : index
    %0 = vector.load %arg1[%c0, %c0_0] : memref<2x768xbf16, #tpu.memory_space<vmem>>, vector<2x768xbf16>
    %c0_1 = arith.constant 0 : index
    %c0_2 = arith.constant 0 : index
    %c0_3 = arith.constant 0 : index
    %1 = vector.load %arg2[%c0_1, %c0_2, %c0_3] : memref<1x768x128xbf16, #tpu.memory_space<vmem>>, vector<1x768x128xbf16>
    %2 = vector.shape_cast %1 : vector<1x768x128xbf16> to vector<768x128xbf16>
    %cst = arith.constant dense<0.000000e+00> : vector<2x128xf32>
    %3 = tpu.matmul %0, %2, %cst {dimension_numbers = #tpu.dot_dimension_numbers<[1], [0], [0], [1], [0, 0, 1, 1], [], []>} : vector<2x768xbf16>, vector<768x128xbf16>, vector<2x128xf32> -> vector<2x128xf32>
    %c0_4 = arith.constant 0 : index
    %c0_5 = arith.constant 0 : index
    %4 = vector.load %arg3[%c0_4, %c0_5] : memref<3x128xf32, #tpu.memory_space<vmem>>, vector<1x128xf32>
    %5 = vector.broadcast %4 : vector<1x128xf32> to vector<2x128xf32>
    %6 = arith.addf %3, %5 : vector<2x128xf32>
    %c0_6 = arith.constant 0 : index
    %c0_7 = arith.constant 0 : index
    %7 = vector.load %arg4[%c0_6, %c0_7] : memref<1x2xf32, #tpu.memory_space<vmem>>, vector<1x2xf32>
    %cst_8 = arith.constant dense<0.000000e+00> : vector<1x128xf32>
    %8 = tpu.matmul %7, %6, %cst_8 {dimension_numbers = #tpu.dot_dimension_numbers<[1], [0], [0], [1], [0, 0, 1, 1], [], []>} : vector<1x2xf32>, vector<2x128xf32>, vector<1x128xf32> -> vector<1x128xf32>
    %9 = arith.mulf %6, %6 : vector<2x128xf32>
    %cst_9 = arith.constant dense<0.000000e+00> : vector<1x128xf32>
    %10 = tpu.matmul %7, %9, %cst_9 {dimension_numbers = #tpu.dot_dimension_numbers<[1], [0], [0], [1], [0, 0, 1, 1], [], []>} : vector<1x2xf32>, vector<2x128xf32>, vector<1x128xf32> -> vector<1x128xf32>
    %11 = arith.mulf %8, %8 : vector<1x128xf32>
    %12 = arith.subf %10, %11 : vector<1x128xf32>
    %cst_10 = arith.constant 0.000000e+00 : f32
    %13 = vector.broadcast %cst_10 : f32 to vector<1x128xf32>
    %14 = arith.maximumf %12, %13 : vector<1x128xf32>
    %15 = vector.broadcast %8 : vector<1x128xf32> to vector<2x128xf32>
    %16 = arith.subf %6, %15 : vector<2x128xf32>
    %cst_11 = arith.constant 9.99999974E-6 : f32
    %17 = vector.broadcast %cst_11 : f32 to vector<1x128xf32>
    %18 = arith.addf %14, %17 : vector<1x128xf32>
    %19 = math.rsqrt %18 : vector<1x128xf32>
    %20 = vector.broadcast %19 : vector<1x128xf32> to vector<2x128xf32>
    %21 = arith.mulf %16, %20 : vector<2x128xf32>
    %c1 = arith.constant 1 : index
    %c0_12 = arith.constant 0 : index
    %22 = vector.load %arg3[%c1, %c0_12] : memref<3x128xf32, #tpu.memory_space<vmem>>, vector<1x128xf32>
    %23 = vector.broadcast %22 : vector<1x128xf32> to vector<2x128xf32>
    %24 = arith.mulf %21, %23 : vector<2x128xf32>
    %c2 = arith.constant 2 : index
    %c0_13 = arith.constant 0 : index
    %25 = vector.load %arg3[%c2, %c0_13] : memref<3x128xf32, #tpu.memory_space<vmem>>, vector<1x128xf32>
    %26 = vector.broadcast %25 : vector<1x128xf32> to vector<2x128xf32>
    %27 = arith.addf %24, %26 : vector<2x128xf32>
    %cst_14 = arith.constant 0.000000e+00 : f32
    %28 = vector.broadcast %cst_14 : f32 to vector<2x128xf32>
    %29 = arith.maximumf %27, %28 : vector<2x128xf32>
    %30 = arith.truncf %29 : vector<2x128xf32> to vector<2x128xbf16>
    %c0_15 = arith.constant 0 : index
    %c0_16 = arith.constant 0 : index
    %31 = vector.load %arg5[%c0_15, %c0_16] : memref<2x128xbf16, #tpu.memory_space<vmem>>, vector<2x128xbf16>
    tpu.vector_store %arg5[%c0_15, %c0_16], %30 {strides = array<i32>} : memref<2x128xbf16, #tpu.memory_space<vmem>>, vector<2x128xbf16>,
    return
  }
  func.func @transform_0(%arg0: i32) -> (i32, i32) {
    %c0_i32 = arith.constant 0 : i32
    %c0_i32_0 = arith.constant 0 : i32
    %c0_i32_1 = arith.constant 0 : i32
    return %c0_i32, %c0_i32_0 : i32, i32
  }
  func.func @transform_1(%arg0: i32) -> (i32, i32, i32) {
    %c0_i32 = arith.constant 0 : i32
    %c0_i32_0 = arith.constant 0 : i32
    %c0_i32_1 = arith.constant 0 : i32
    %c0_i32_2 = arith.constant 0 : i32
    return %c0_i32, %c0_i32_0, %c0_i32_1 : i32, i32, i32
  }
  func.func @transform_2(%arg0: i32) -> (i32, i32) {
    %c0_i32 = arith.constant 0 : i32
    %c0_i32_0 = arith.constant 0 : i32
    %c0_i32_1 = arith.constant 0 : i32
    return %c0_i32, %c0_i32_0 : i32, i32
  }
  func.func @transform_3(%arg0: i32) -> (i32, i32) {
    %c0_i32 = arith.constant 0 : i32
    %c0_i32_0 = arith.constant 0 : i32
    %c0_i32_1 = arith.constant 0 : i32
    return %c0_i32, %c0_i32_0 : i32, i32
  }
  func.func @transform_4(%arg0: i32) -> (i32, i32) {
    %c0_i32 = arith.constant 0 : i32
    %c0_i32_0 = arith.constant 0 : i32
    %c0_i32_1 = arith.constant 0 : i32
    return %c0_i32, %c0_i32_0 : i32, i32
  }
}

module attributes {stable_mosaic.version = 11 : i64} {
  func.func @kernel(%arg0: i32, %arg1: memref<26x128xbf16, #tpu.memory_space<vmem>>, %arg2: memref<9x128x128xbf16, #tpu.memory_space<vmem>>, %arg3: memref<3x128xf32, #tpu.memory_space<vmem>>, %arg4: memref<1x18xf32, #tpu.memory_space<vmem>>, %arg5: memref<18x128xbf16, #tpu.memory_space<vmem>>) attributes {dimension_semantics = [#tpu.dimension_semantics<arbitrary>], iteration_bounds = array<i64: 1>, scalar_prefetch = 0 : i64, scratch_operands = 0 : i64, tpu.core_type = #tpu.core_type<tc>, window_params = [{pipeline_mode = #tpu.pipeline_mode<synchronous>, transform_indices = @transform_0, window_bounds = array<i64: 26, 128>}, {pipeline_mode = #tpu.pipeline_mode<synchronous>, transform_indices = @transform_1, window_bounds = array<i64: 9, 128, 128>}, {pipeline_mode = #tpu.pipeline_mode<synchronous>, transform_indices = @transform_2, window_bounds = array<i64: 3, 128>}, {pipeline_mode = #tpu.pipeline_mode<synchronous>, transform_indices = @transform_3, window_bounds = array<i64: 1, 18>}, {pipeline_mode = #tpu.pipeline_mode<synchronous>, transform_indices = @transform_4, window_bounds = array<i64: 18, 128>}]} {
    %c0 = arith.constant 0 : index
    %c0_0 = arith.constant 0 : index
    %0 = vector.load %arg1[%c0, %c0_0] : memref<26x128xbf16, #tpu.memory_space<vmem>>, vector<18x128xbf16>
    %c0_1 = arith.constant 0 : index
    %c0_2 = arith.constant 0 : index
    %c0_3 = arith.constant 0 : index
    %1 = vector.load %arg2[%c0_1, %c0_2, %c0_3] : memref<9x128x128xbf16, #tpu.memory_space<vmem>>, vector<1x128x128xbf16>
    %2 = vector.shape_cast %1 : vector<1x128x128xbf16> to vector<128x128xbf16>
    %cst = arith.constant dense<0.000000e+00> : vector<18x128xf32>
    %3 = tpu.matmul %0, %2, %cst {dimension_numbers = #tpu.dot_dimension_numbers<[1], [0], [0], [1], [0, 0, 1, 1], [], []>} : vector<18x128xbf16>, vector<128x128xbf16>, vector<18x128xf32> -> vector<18x128xf32>
    %c1 = arith.constant 1 : index
    %c0_4 = arith.constant 0 : index
    %4 = vector.load %arg1[%c1, %c0_4] : memref<26x128xbf16, #tpu.memory_space<vmem>>, vector<18x128xbf16>
    %c1_5 = arith.constant 1 : index
    %c0_6 = arith.constant 0 : index
    %c0_7 = arith.constant 0 : index
    %5 = vector.load %arg2[%c1_5, %c0_6, %c0_7] : memref<9x128x128xbf16, #tpu.memory_space<vmem>>, vector<1x128x128xbf16>
    %6 = vector.shape_cast %5 : vector<1x128x128xbf16> to vector<128x128xbf16>
    %cst_8 = arith.constant dense<0.000000e+00> : vector<18x128xf32>
    %7 = tpu.matmul %4, %6, %cst_8 {dimension_numbers = #tpu.dot_dimension_numbers<[1], [0], [0], [1], [0, 0, 1, 1], [], []>} : vector<18x128xbf16>, vector<128x128xbf16>, vector<18x128xf32> -> vector<18x128xf32>
    %8 = arith.addf %3, %7 : vector<18x128xf32>
    %c2 = arith.constant 2 : index
    %c0_9 = arith.constant 0 : index
    %9 = vector.load %arg1[%c2, %c0_9] : memref<26x128xbf16, #tpu.memory_space<vmem>>, vector<18x128xbf16>
    %c2_10 = arith.constant 2 : index
    %c0_11 = arith.constant 0 : index
    %c0_12 = arith.constant 0 : index
    %10 = vector.load %arg2[%c2_10, %c0_11, %c0_12] : memref<9x128x128xbf16, #tpu.memory_space<vmem>>, vector<1x128x128xbf16>
    %11 = vector.shape_cast %10 : vector<1x128x128xbf16> to vector<128x128xbf16>
    %cst_13 = arith.constant dense<0.000000e+00> : vector<18x128xf32>
    %12 = tpu.matmul %9, %11, %cst_13 {dimension_numbers = #tpu.dot_dimension_numbers<[1], [0], [0], [1], [0, 0, 1, 1], [], []>} : vector<18x128xbf16>, vector<128x128xbf16>, vector<18x128xf32> -> vector<18x128xf32>
    %13 = arith.addf %8, %12 : vector<18x128xf32>
    %c3 = arith.constant 3 : index
    %c0_14 = arith.constant 0 : index
    %14 = vector.load %arg1[%c3, %c0_14] : memref<26x128xbf16, #tpu.memory_space<vmem>>, vector<18x128xbf16>
    %c3_15 = arith.constant 3 : index
    %c0_16 = arith.constant 0 : index
    %c0_17 = arith.constant 0 : index
    %15 = vector.load %arg2[%c3_15, %c0_16, %c0_17] : memref<9x128x128xbf16, #tpu.memory_space<vmem>>, vector<1x128x128xbf16>
    %16 = vector.shape_cast %15 : vector<1x128x128xbf16> to vector<128x128xbf16>
    %cst_18 = arith.constant dense<0.000000e+00> : vector<18x128xf32>
    %17 = tpu.matmul %14, %16, %cst_18 {dimension_numbers = #tpu.dot_dimension_numbers<[1], [0], [0], [1], [0, 0, 1, 1], [], []>} : vector<18x128xbf16>, vector<128x128xbf16>, vector<18x128xf32> -> vector<18x128xf32>
    %18 = arith.addf %13, %17 : vector<18x128xf32>
    %c4 = arith.constant 4 : index
    %c0_19 = arith.constant 0 : index
    %19 = vector.load %arg1[%c4, %c0_19] : memref<26x128xbf16, #tpu.memory_space<vmem>>, vector<18x128xbf16>
    %c4_20 = arith.constant 4 : index
    %c0_21 = arith.constant 0 : index
    %c0_22 = arith.constant 0 : index
    %20 = vector.load %arg2[%c4_20, %c0_21, %c0_22] : memref<9x128x128xbf16, #tpu.memory_space<vmem>>, vector<1x128x128xbf16>
    %21 = vector.shape_cast %20 : vector<1x128x128xbf16> to vector<128x128xbf16>
    %cst_23 = arith.constant dense<0.000000e+00> : vector<18x128xf32>
    %22 = tpu.matmul %19, %21, %cst_23 {dimension_numbers = #tpu.dot_dimension_numbers<[1], [0], [0], [1], [0, 0, 1, 1], [], []>} : vector<18x128xbf16>, vector<128x128xbf16>, vector<18x128xf32> -> vector<18x128xf32>
    %23 = arith.addf %18, %22 : vector<18x128xf32>
    %c5 = arith.constant 5 : index
    %c0_24 = arith.constant 0 : index
    %24 = vector.load %arg1[%c5, %c0_24] : memref<26x128xbf16, #tpu.memory_space<vmem>>, vector<18x128xbf16>
    %c5_25 = arith.constant 5 : index
    %c0_26 = arith.constant 0 : index
    %c0_27 = arith.constant 0 : index
    %25 = vector.load %arg2[%c5_25, %c0_26, %c0_27] : memref<9x128x128xbf16, #tpu.memory_space<vmem>>, vector<1x128x128xbf16>
    %26 = vector.shape_cast %25 : vector<1x128x128xbf16> to vector<128x128xbf16>
    %cst_28 = arith.constant dense<0.000000e+00> : vector<18x128xf32>
    %27 = tpu.matmul %24, %26, %cst_28 {dimension_numbers = #tpu.dot_dimension_numbers<[1], [0], [0], [1], [0, 0, 1, 1], [], []>} : vector<18x128xbf16>, vector<128x128xbf16>, vector<18x128xf32> -> vector<18x128xf32>
    %28 = arith.addf %23, %27 : vector<18x128xf32>
    %c6 = arith.constant 6 : index
    %c0_29 = arith.constant 0 : index
    %29 = vector.load %arg1[%c6, %c0_29] : memref<26x128xbf16, #tpu.memory_space<vmem>>, vector<18x128xbf16>
    %c6_30 = arith.constant 6 : index
    %c0_31 = arith.constant 0 : index
    %c0_32 = arith.constant 0 : index
    %30 = vector.load %arg2[%c6_30, %c0_31, %c0_32] : memref<9x128x128xbf16, #tpu.memory_space<vmem>>, vector<1x128x128xbf16>
    %31 = vector.shape_cast %30 : vector<1x128x128xbf16> to vector<128x128xbf16>
    %cst_33 = arith.constant dense<0.000000e+00> : vector<18x128xf32>
    %32 = tpu.matmul %29, %31, %cst_33 {dimension_numbers = #tpu.dot_dimension_numbers<[1], [0], [0], [1], [0, 0, 1, 1], [], []>} : vector<18x128xbf16>, vector<128x128xbf16>, vector<18x128xf32> -> vector<18x128xf32>
    %33 = arith.addf %28, %32 : vector<18x128xf32>
    %c7 = arith.constant 7 : index
    %c0_34 = arith.constant 0 : index
    %34 = vector.load %arg1[%c7, %c0_34] : memref<26x128xbf16, #tpu.memory_space<vmem>>, vector<18x128xbf16>
    %c7_35 = arith.constant 7 : index
    %c0_36 = arith.constant 0 : index
    %c0_37 = arith.constant 0 : index
    %35 = vector.load %arg2[%c7_35, %c0_36, %c0_37] : memref<9x128x128xbf16, #tpu.memory_space<vmem>>, vector<1x128x128xbf16>
    %36 = vector.shape_cast %35 : vector<1x128x128xbf16> to vector<128x128xbf16>
    %cst_38 = arith.constant dense<0.000000e+00> : vector<18x128xf32>
    %37 = tpu.matmul %34, %36, %cst_38 {dimension_numbers = #tpu.dot_dimension_numbers<[1], [0], [0], [1], [0, 0, 1, 1], [], []>} : vector<18x128xbf16>, vector<128x128xbf16>, vector<18x128xf32> -> vector<18x128xf32>
    %38 = arith.addf %33, %37 : vector<18x128xf32>
    %c8 = arith.constant 8 : index
    %c0_39 = arith.constant 0 : index
    %39 = vector.load %arg1[%c8, %c0_39] : memref<26x128xbf16, #tpu.memory_space<vmem>>, vector<18x128xbf16>
    %c8_40 = arith.constant 8 : index
    %c0_41 = arith.constant 0 : index
    %c0_42 = arith.constant 0 : index
    %40 = vector.load %arg2[%c8_40, %c0_41, %c0_42] : memref<9x128x128xbf16, #tpu.memory_space<vmem>>, vector<1x128x128xbf16>
    %41 = vector.shape_cast %40 : vector<1x128x128xbf16> to vector<128x128xbf16>
    %cst_43 = arith.constant dense<0.000000e+00> : vector<18x128xf32>
    %42 = tpu.matmul %39, %41, %cst_43 {dimension_numbers = #tpu.dot_dimension_numbers<[1], [0], [0], [1], [0, 0, 1, 1], [], []>} : vector<18x128xbf16>, vector<128x128xbf16>, vector<18x128xf32> -> vector<18x128xf32>
    %43 = arith.addf %38, %42 : vector<18x128xf32>
    %c0_44 = arith.constant 0 : index
    %c0_45 = arith.constant 0 : index
    %44 = vector.load %arg3[%c0_44, %c0_45] : memref<3x128xf32, #tpu.memory_space<vmem>>, vector<1x128xf32>
    %45 = vector.broadcast %44 : vector<1x128xf32> to vector<18x128xf32>
    %46 = arith.addf %43, %45 : vector<18x128xf32>
    %c0_46 = arith.constant 0 : index
    %c0_47 = arith.constant 0 : index
    %47 = vector.load %arg4[%c0_46, %c0_47] : memref<1x18xf32, #tpu.memory_space<vmem>>, vector<1x18xf32>
    %cst_48 = arith.constant dense<0.000000e+00> : vector<1x128xf32>
    %48 = tpu.matmul %47, %46, %cst_48 {dimension_numbers = #tpu.dot_dimension_numbers<[1], [0], [0], [1], [0, 0, 1, 1], [], []>} : vector<1x18xf32>, vector<18x128xf32>, vector<1x128xf32> -> vector<1x128xf32>
    %49 = arith.mulf %46, %46 : vector<18x128xf32>
    %cst_49 = arith.constant dense<0.000000e+00> : vector<1x128xf32>
    %50 = tpu.matmul %47, %49, %cst_49 {dimension_numbers = #tpu.dot_dimension_numbers<[1], [0], [0], [1], [0, 0, 1, 1], [], []>} : vector<1x18xf32>, vector<18x128xf32>, vector<1x128xf32> -> vector<1x128xf32>
    %51 = arith.mulf %48, %48 : vector<1x128xf32>
    %52 = arith.subf %50, %51 : vector<1x128xf32>
    %cst_50 = arith.constant 0.000000e+00 : f32
    %53 = vector.broadcast %cst_50 : f32 to vector<1x128xf32>
    %54 = arith.maximumf %52, %53 : vector<1x128xf32>
    %55 = vector.broadcast %48 : vector<1x128xf32> to vector<18x128xf32>
    %56 = arith.subf %46, %55 : vector<18x128xf32>
    %cst_51 = arith.constant 9.99999974E-6 : f32
    %57 = vector.broadcast %cst_51 : f32 to vector<1x128xf32>
    %58 = arith.addf %54, %57 : vector<1x128xf32>
    %59 = math.rsqrt %58 : vector<1x128xf32>
    %60 = vector.broadcast %59 : vector<1x128xf32> to vector<18x128xf32>
    %61 = arith.mulf %56, %60 : vector<18x128xf32>
    %c1_52 = arith.constant 1 : index
    %c0_53 = arith.constant 0 : index
    %62 = vector.load %arg3[%c1_52, %c0_53] : memref<3x128xf32, #tpu.memory_space<vmem>>, vector<1x128xf32>
    %63 = vector.broadcast %62 : vector<1x128xf32> to vector<18x128xf32>
    %64 = arith.mulf %61, %63 : vector<18x128xf32>
    %c2_54 = arith.constant 2 : index
    %c0_55 = arith.constant 0 : index
    %65 = vector.load %arg3[%c2_54, %c0_55] : memref<3x128xf32, #tpu.memory_space<vmem>>, vector<1x128xf32>
    %66 = vector.broadcast %65 : vector<1x128xf32> to vector<18x128xf32>
    %67 = arith.addf %64, %66 : vector<18x128xf32>
    %cst_56 = arith.constant 0.000000e+00 : f32
    %68 = vector.broadcast %cst_56 : f32 to vector<18x128xf32>
    %69 = arith.maximumf %67, %68 : vector<18x128xf32>
    %70 = arith.truncf %69 : vector<18x128xf32> to vector<18x128xbf16>
    %c0_57 = arith.constant 0 : index
    %c0_58 = arith.constant 0 : index
    %71 = vector.load %arg5[%c0_57, %c0_58] : memref<18x128xbf16, #tpu.memory_space<vmem>>, vector<18x128xbf16>
    tpu.vector_store %arg5[%c0_57, %c0_58], %70 {strides = array<i32>} : memref<18x128xbf16, #tpu.memory_space<vmem>>, vector<18x128xbf16>,
    return
  }
  func.func @transform_0(%arg0: i32) -> (i32, i32) {
    %c0_i32 = arith.constant 0 : i32
    %c0_i32_0 = arith.constant 0 : i32
    %c0_i32_1 = arith.constant 0 : i32
    return %c0_i32, %c0_i32_0 : i32, i32
  }
  func.func @transform_1(%arg0: i32) -> (i32, i32, i32) {
    %c0_i32 = arith.constant 0 : i32
    %c0_i32_0 = arith.constant 0 : i32
    %c0_i32_1 = arith.constant 0 : i32
    %c0_i32_2 = arith.constant 0 : i32
    return %c0_i32, %c0_i32_0, %c0_i32_1 : i32, i32, i32
  }
  func.func @transform_2(%arg0: i32) -> (i32, i32) {
    %c0_i32 = arith.constant 0 : i32
    %c0_i32_0 = arith.constant 0 : i32
    %c0_i32_1 = arith.constant 0 : i32
    return %c0_i32, %c0_i32_0 : i32, i32
  }
  func.func @transform_3(%arg0: i32) -> (i32, i32) {
    %c0_i32 = arith.constant 0 : i32
    %c0_i32_0 = arith.constant 0 : i32
    %c0_i32_1 = arith.constant 0 : i32
    return %c0_i32, %c0_i32_0 : i32, i32
  }
  func.func @transform_4(%arg0: i32) -> (i32, i32) {
    %c0_i32 = arith.constant 0 : i32
    %c0_i32_0 = arith.constant 0 : i32
    %c0_i32_1 = arith.constant 0 : i32
    return %c0_i32, %c0_i32_0 : i32, i32
  }
}

module attributes {stable_mosaic.version = 11 : i64} {
  func.func @kernel(%arg0: i32, %arg1: memref<26x128xbf16, #tpu.memory_space<vmem>>, %arg2: memref<9x128x128xbf16, #tpu.memory_space<vmem>>, %arg3: memref<3x128xf32, #tpu.memory_space<vmem>>, %arg4: memref<18x128xbf16, #tpu.memory_space<vmem>>) attributes {dimension_semantics = [#tpu.dimension_semantics<arbitrary>], iteration_bounds = array<i64: 1>, scalar_prefetch = 0 : i64, scratch_operands = 0 : i64, tpu.core_type = #tpu.core_type<tc>, window_params = [{pipeline_mode = #tpu.pipeline_mode<synchronous>, transform_indices = @transform_0, window_bounds = array<i64: 26, 128>}, {pipeline_mode = #tpu.pipeline_mode<synchronous>, transform_indices = @transform_1, window_bounds = array<i64: 9, 128, 128>}, {pipeline_mode = #tpu.pipeline_mode<synchronous>, transform_indices = @transform_2, window_bounds = array<i64: 3, 128>}, {pipeline_mode = #tpu.pipeline_mode<synchronous>, transform_indices = @transform_3, window_bounds = array<i64: 18, 128>}]} {
    %c0 = arith.constant 0 : index
    %c0_0 = arith.constant 0 : index
    %0 = vector.load %arg1[%c0, %c0_0] : memref<26x128xbf16, #tpu.memory_space<vmem>>, vector<18x128xbf16>
    %c0_1 = arith.constant 0 : index
    %c0_2 = arith.constant 0 : index
    %c0_3 = arith.constant 0 : index
    %1 = vector.load %arg2[%c0_1, %c0_2, %c0_3] : memref<9x128x128xbf16, #tpu.memory_space<vmem>>, vector<1x128x128xbf16>
    %2 = vector.shape_cast %1 : vector<1x128x128xbf16> to vector<128x128xbf16>
    %cst = arith.constant dense<0.000000e+00> : vector<18x128xf32>
    %3 = tpu.matmul %0, %2, %cst {dimension_numbers = #tpu.dot_dimension_numbers<[1], [0], [0], [1], [0, 0, 1, 1], [], []>} : vector<18x128xbf16>, vector<128x128xbf16>, vector<18x128xf32> -> vector<18x128xf32>
    %c1 = arith.constant 1 : index
    %c0_4 = arith.constant 0 : index
    %4 = vector.load %arg1[%c1, %c0_4] : memref<26x128xbf16, #tpu.memory_space<vmem>>, vector<18x128xbf16>
    %c1_5 = arith.constant 1 : index
    %c0_6 = arith.constant 0 : index
    %c0_7 = arith.constant 0 : index
    %5 = vector.load %arg2[%c1_5, %c0_6, %c0_7] : memref<9x128x128xbf16, #tpu.memory_space<vmem>>, vector<1x128x128xbf16>
    %6 = vector.shape_cast %5 : vector<1x128x128xbf16> to vector<128x128xbf16>
    %cst_8 = arith.constant dense<0.000000e+00> : vector<18x128xf32>
    %7 = tpu.matmul %4, %6, %cst_8 {dimension_numbers = #tpu.dot_dimension_numbers<[1], [0], [0], [1], [0, 0, 1, 1], [], []>} : vector<18x128xbf16>, vector<128x128xbf16>, vector<18x128xf32> -> vector<18x128xf32>
    %8 = arith.addf %3, %7 : vector<18x128xf32>
    %c2 = arith.constant 2 : index
    %c0_9 = arith.constant 0 : index
    %9 = vector.load %arg1[%c2, %c0_9] : memref<26x128xbf16, #tpu.memory_space<vmem>>, vector<18x128xbf16>
    %c2_10 = arith.constant 2 : index
    %c0_11 = arith.constant 0 : index
    %c0_12 = arith.constant 0 : index
    %10 = vector.load %arg2[%c2_10, %c0_11, %c0_12] : memref<9x128x128xbf16, #tpu.memory_space<vmem>>, vector<1x128x128xbf16>
    %11 = vector.shape_cast %10 : vector<1x128x128xbf16> to vector<128x128xbf16>
    %cst_13 = arith.constant dense<0.000000e+00> : vector<18x128xf32>
    %12 = tpu.matmul %9, %11, %cst_13 {dimension_numbers = #tpu.dot_dimension_numbers<[1], [0], [0], [1], [0, 0, 1, 1], [], []>} : vector<18x128xbf16>, vector<128x128xbf16>, vector<18x128xf32> -> vector<18x128xf32>
    %13 = arith.addf %8, %12 : vector<18x128xf32>
    %c3 = arith.constant 3 : index
    %c0_14 = arith.constant 0 : index
    %14 = vector.load %arg1[%c3, %c0_14] : memref<26x128xbf16, #tpu.memory_space<vmem>>, vector<18x128xbf16>
    %c3_15 = arith.constant 3 : index
    %c0_16 = arith.constant 0 : index
    %c0_17 = arith.constant 0 : index
    %15 = vector.load %arg2[%c3_15, %c0_16, %c0_17] : memref<9x128x128xbf16, #tpu.memory_space<vmem>>, vector<1x128x128xbf16>
    %16 = vector.shape_cast %15 : vector<1x128x128xbf16> to vector<128x128xbf16>
    %cst_18 = arith.constant dense<0.000000e+00> : vector<18x128xf32>
    %17 = tpu.matmul %14, %16, %cst_18 {dimension_numbers = #tpu.dot_dimension_numbers<[1], [0], [0], [1], [0, 0, 1, 1], [], []>} : vector<18x128xbf16>, vector<128x128xbf16>, vector<18x128xf32> -> vector<18x128xf32>
    %18 = arith.addf %13, %17 : vector<18x128xf32>
    %c4 = arith.constant 4 : index
    %c0_19 = arith.constant 0 : index
    %19 = vector.load %arg1[%c4, %c0_19] : memref<26x128xbf16, #tpu.memory_space<vmem>>, vector<18x128xbf16>
    %c4_20 = arith.constant 4 : index
    %c0_21 = arith.constant 0 : index
    %c0_22 = arith.constant 0 : index
    %20 = vector.load %arg2[%c4_20, %c0_21, %c0_22] : memref<9x128x128xbf16, #tpu.memory_space<vmem>>, vector<1x128x128xbf16>
    %21 = vector.shape_cast %20 : vector<1x128x128xbf16> to vector<128x128xbf16>
    %cst_23 = arith.constant dense<0.000000e+00> : vector<18x128xf32>
    %22 = tpu.matmul %19, %21, %cst_23 {dimension_numbers = #tpu.dot_dimension_numbers<[1], [0], [0], [1], [0, 0, 1, 1], [], []>} : vector<18x128xbf16>, vector<128x128xbf16>, vector<18x128xf32> -> vector<18x128xf32>
    %23 = arith.addf %18, %22 : vector<18x128xf32>
    %c5 = arith.constant 5 : index
    %c0_24 = arith.constant 0 : index
    %24 = vector.load %arg1[%c5, %c0_24] : memref<26x128xbf16, #tpu.memory_space<vmem>>, vector<18x128xbf16>
    %c5_25 = arith.constant 5 : index
    %c0_26 = arith.constant 0 : index
    %c0_27 = arith.constant 0 : index
    %25 = vector.load %arg2[%c5_25, %c0_26, %c0_27] : memref<9x128x128xbf16, #tpu.memory_space<vmem>>, vector<1x128x128xbf16>
    %26 = vector.shape_cast %25 : vector<1x128x128xbf16> to vector<128x128xbf16>
    %cst_28 = arith.constant dense<0.000000e+00> : vector<18x128xf32>
    %27 = tpu.matmul %24, %26, %cst_28 {dimension_numbers = #tpu.dot_dimension_numbers<[1], [0], [0], [1], [0, 0, 1, 1], [], []>} : vector<18x128xbf16>, vector<128x128xbf16>, vector<18x128xf32> -> vector<18x128xf32>
    %28 = arith.addf %23, %27 : vector<18x128xf32>
    %c6 = arith.constant 6 : index
    %c0_29 = arith.constant 0 : index
    %29 = vector.load %arg1[%c6, %c0_29] : memref<26x128xbf16, #tpu.memory_space<vmem>>, vector<18x128xbf16>
    %c6_30 = arith.constant 6 : index
    %c0_31 = arith.constant 0 : index
    %c0_32 = arith.constant 0 : index
    %30 = vector.load %arg2[%c6_30, %c0_31, %c0_32] : memref<9x128x128xbf16, #tpu.memory_space<vmem>>, vector<1x128x128xbf16>
    %31 = vector.shape_cast %30 : vector<1x128x128xbf16> to vector<128x128xbf16>
    %cst_33 = arith.constant dense<0.000000e+00> : vector<18x128xf32>
    %32 = tpu.matmul %29, %31, %cst_33 {dimension_numbers = #tpu.dot_dimension_numbers<[1], [0], [0], [1], [0, 0, 1, 1], [], []>} : vector<18x128xbf16>, vector<128x128xbf16>, vector<18x128xf32> -> vector<18x128xf32>
    %33 = arith.addf %28, %32 : vector<18x128xf32>
    %c7 = arith.constant 7 : index
    %c0_34 = arith.constant 0 : index
    %34 = vector.load %arg1[%c7, %c0_34] : memref<26x128xbf16, #tpu.memory_space<vmem>>, vector<18x128xbf16>
    %c7_35 = arith.constant 7 : index
    %c0_36 = arith.constant 0 : index
    %c0_37 = arith.constant 0 : index
    %35 = vector.load %arg2[%c7_35, %c0_36, %c0_37] : memref<9x128x128xbf16, #tpu.memory_space<vmem>>, vector<1x128x128xbf16>
    %36 = vector.shape_cast %35 : vector<1x128x128xbf16> to vector<128x128xbf16>
    %cst_38 = arith.constant dense<0.000000e+00> : vector<18x128xf32>
    %37 = tpu.matmul %34, %36, %cst_38 {dimension_numbers = #tpu.dot_dimension_numbers<[1], [0], [0], [1], [0, 0, 1, 1], [], []>} : vector<18x128xbf16>, vector<128x128xbf16>, vector<18x128xf32> -> vector<18x128xf32>
    %38 = arith.addf %33, %37 : vector<18x128xf32>
    %c8 = arith.constant 8 : index
    %c0_39 = arith.constant 0 : index
    %39 = vector.load %arg1[%c8, %c0_39] : memref<26x128xbf16, #tpu.memory_space<vmem>>, vector<18x128xbf16>
    %c8_40 = arith.constant 8 : index
    %c0_41 = arith.constant 0 : index
    %c0_42 = arith.constant 0 : index
    %40 = vector.load %arg2[%c8_40, %c0_41, %c0_42] : memref<9x128x128xbf16, #tpu.memory_space<vmem>>, vector<1x128x128xbf16>
    %41 = vector.shape_cast %40 : vector<1x128x128xbf16> to vector<128x128xbf16>
    %cst_43 = arith.constant dense<0.000000e+00> : vector<18x128xf32>
    %42 = tpu.matmul %39, %41, %cst_43 {dimension_numbers = #tpu.dot_dimension_numbers<[1], [0], [0], [1], [0, 0, 1, 1], [], []>} : vector<18x128xbf16>, vector<128x128xbf16>, vector<18x128xf32> -> vector<18x128xf32>
    %43 = arith.addf %38, %42 : vector<18x128xf32>
    %c0_44 = arith.constant 0 : index
    %c0_45 = arith.constant 0 : index
    %44 = vector.load %arg3[%c0_44, %c0_45] : memref<3x128xf32, #tpu.memory_space<vmem>>, vector<1x128xf32>
    %45 = vector.broadcast %44 : vector<1x128xf32> to vector<18x128xf32>
    %46 = arith.addf %43, %45 : vector<18x128xf32>
    %cst_46 = arith.constant 0.000000e+00 : f32
    %47 = vector.broadcast %cst_46 : f32 to vector<18x128xf32>
    %48 = arith.subf %47, %46 : vector<18x128xf32>
    %49 = math.exp %48 : vector<18x128xf32>
    %cst_47 = arith.constant 1.000000e+00 : f32
    %50 = vector.broadcast %cst_47 : f32 to vector<18x128xf32>
    %51 = arith.addf %50, %49 : vector<18x128xf32>
    %cst_48 = arith.constant 1.000000e+00 : f32
    %52 = vector.broadcast %cst_48 : f32 to vector<18x128xf32>
    %53 = arith.divf %52, %51 : vector<18x128xf32>
    %54 = arith.truncf %53 : vector<18x128xf32> to vector<18x128xbf16>
    %c0_49 = arith.constant 0 : index
    %c0_50 = arith.constant 0 : index
    %55 = vector.load %arg4[%c0_49, %c0_50] : memref<18x128xbf16, #tpu.memory_space<vmem>>, vector<18x128xbf16>
    tpu.vector_store %arg4[%c0_49, %c0_50], %54 {strides = array<i32>} : memref<18x128xbf16, #tpu.memory_space<vmem>>, vector<18x128xbf16>,
    return
  }
  func.func @transform_0(%arg0: i32) -> (i32, i32) {
    %c0_i32 = arith.constant 0 : i32
    %c0_i32_0 = arith.constant 0 : i32
    %c0_i32_1 = arith.constant 0 : i32
    return %c0_i32, %c0_i32_0 : i32, i32
  }
  func.func @transform_1(%arg0: i32) -> (i32, i32, i32) {
    %c0_i32 = arith.constant 0 : i32
    %c0_i32_0 = arith.constant 0 : i32
    %c0_i32_1 = arith.constant 0 : i32
    %c0_i32_2 = arith.constant 0 : i32
    return %c0_i32, %c0_i32_0, %c0_i32_1 : i32, i32, i32
  }
  func.func @transform_2(%arg0: i32) -> (i32, i32) {
    %c0_i32 = arith.constant 0 : i32
    %c0_i32_0 = arith.constant 0 : i32
    %c0_i32_1 = arith.constant 0 : i32
    return %c0_i32, %c0_i32_0 : i32, i32
  }
  func.func @transform_3(%arg0: i32) -> (i32, i32) {
    %c0_i32 = arith.constant 0 : i32
    %c0_i32_0 = arith.constant 0 : i32
    %c0_i32_1 = arith.constant 0 : i32
    return %c0_i32, %c0_i32_0 : i32, i32
  }
}

module attributes {stable_mosaic.version = 11 : i64} {
  func.func @kernel(%arg0: i32, %arg1: memref<26x128xbf16, #tpu.memory_space<vmem>>, %arg2: memref<9x128x128xbf16, #tpu.memory_space<vmem>>, %arg3: memref<3x128xf32, #tpu.memory_space<vmem>>, %arg4: memref<1x18xf32, #tpu.memory_space<vmem>>, %arg5: memref<18x128xbf16, #tpu.memory_space<vmem>>) attributes {dimension_semantics = [#tpu.dimension_semantics<arbitrary>], iteration_bounds = array<i64: 1>, scalar_prefetch = 0 : i64, scratch_operands = 0 : i64, tpu.core_type = #tpu.core_type<tc>, window_params = [{pipeline_mode = #tpu.pipeline_mode<synchronous>, transform_indices = @transform_0, window_bounds = array<i64: 26, 128>}, {pipeline_mode = #tpu.pipeline_mode<synchronous>, transform_indices = @transform_1, window_bounds = array<i64: 9, 128, 128>}, {pipeline_mode = #tpu.pipeline_mode<synchronous>, transform_indices = @transform_2, window_bounds = array<i64: 3, 128>}, {pipeline_mode = #tpu.pipeline_mode<synchronous>, transform_indices = @transform_3, window_bounds = array<i64: 1, 18>}, {pipeline_mode = #tpu.pipeline_mode<synchronous>, transform_indices = @transform_4, window_bounds = array<i64: 18, 128>}]} {
    %c0 = arith.constant 0 : index
    %c0_0 = arith.constant 0 : index
    %0 = vector.load %arg1[%c0, %c0_0] : memref<26x128xbf16, #tpu.memory_space<vmem>>, vector<18x128xbf16>
    %c0_1 = arith.constant 0 : index
    %c0_2 = arith.constant 0 : index
    %c0_3 = arith.constant 0 : index
    %1 = vector.load %arg2[%c0_1, %c0_2, %c0_3] : memref<9x128x128xbf16, #tpu.memory_space<vmem>>, vector<1x128x128xbf16>
    %2 = vector.shape_cast %1 : vector<1x128x128xbf16> to vector<128x128xbf16>
    %cst = arith.constant dense<0.000000e+00> : vector<18x128xf32>
    %3 = tpu.matmul %0, %2, %cst {dimension_numbers = #tpu.dot_dimension_numbers<[1], [0], [0], [1], [0, 0, 1, 1], [], []>} : vector<18x128xbf16>, vector<128x128xbf16>, vector<18x128xf32> -> vector<18x128xf32>
    %c1 = arith.constant 1 : index
    %c0_4 = arith.constant 0 : index
    %4 = vector.load %arg1[%c1, %c0_4] : memref<26x128xbf16, #tpu.memory_space<vmem>>, vector<18x128xbf16>
    %c1_5 = arith.constant 1 : index
    %c0_6 = arith.constant 0 : index
    %c0_7 = arith.constant 0 : index
    %5 = vector.load %arg2[%c1_5, %c0_6, %c0_7] : memref<9x128x128xbf16, #tpu.memory_space<vmem>>, vector<1x128x128xbf16>
    %6 = vector.shape_cast %5 : vector<1x128x128xbf16> to vector<128x128xbf16>
    %cst_8 = arith.constant dense<0.000000e+00> : vector<18x128xf32>
    %7 = tpu.matmul %4, %6, %cst_8 {dimension_numbers = #tpu.dot_dimension_numbers<[1], [0], [0], [1], [0, 0, 1, 1], [], []>} : vector<18x128xbf16>, vector<128x128xbf16>, vector<18x128xf32> -> vector<18x128xf32>
    %8 = arith.addf %3, %7 : vector<18x128xf32>
    %c2 = arith.constant 2 : index
    %c0_9 = arith.constant 0 : index
    %9 = vector.load %arg1[%c2, %c0_9] : memref<26x128xbf16, #tpu.memory_space<vmem>>, vector<18x128xbf16>
    %c2_10 = arith.constant 2 : index
    %c0_11 = arith.constant 0 : index
    %c0_12 = arith.constant 0 : index
    %10 = vector.load %arg2[%c2_10, %c0_11, %c0_12] : memref<9x128x128xbf16, #tpu.memory_space<vmem>>, vector<1x128x128xbf16>
    %11 = vector.shape_cast %10 : vector<1x128x128xbf16> to vector<128x128xbf16>
    %cst_13 = arith.constant dense<0.000000e+00> : vector<18x128xf32>
    %12 = tpu.matmul %9, %11, %cst_13 {dimension_numbers = #tpu.dot_dimension_numbers<[1], [0], [0], [1], [0, 0, 1, 1], [], []>} : vector<18x128xbf16>, vector<128x128xbf16>, vector<18x128xf32> -> vector<18x128xf32>
    %13 = arith.addf %8, %12 : vector<18x128xf32>
    %c3 = arith.constant 3 : index
    %c0_14 = arith.constant 0 : index
    %14 = vector.load %arg1[%c3, %c0_14] : memref<26x128xbf16, #tpu.memory_space<vmem>>, vector<18x128xbf16>
    %c3_15 = arith.constant 3 : index
    %c0_16 = arith.constant 0 : index
    %c0_17 = arith.constant 0 : index
    %15 = vector.load %arg2[%c3_15, %c0_16, %c0_17] : memref<9x128x128xbf16, #tpu.memory_space<vmem>>, vector<1x128x128xbf16>
    %16 = vector.shape_cast %15 : vector<1x128x128xbf16> to vector<128x128xbf16>
    %cst_18 = arith.constant dense<0.000000e+00> : vector<18x128xf32>
    %17 = tpu.matmul %14, %16, %cst_18 {dimension_numbers = #tpu.dot_dimension_numbers<[1], [0], [0], [1], [0, 0, 1, 1], [], []>} : vector<18x128xbf16>, vector<128x128xbf16>, vector<18x128xf32> -> vector<18x128xf32>
    %18 = arith.addf %13, %17 : vector<18x128xf32>
    %c4 = arith.constant 4 : index
    %c0_19 = arith.constant 0 : index
    %19 = vector.load %arg1[%c4, %c0_19] : memref<26x128xbf16, #tpu.memory_space<vmem>>, vector<18x128xbf16>
    %c4_20 = arith.constant 4 : index
    %c0_21 = arith.constant 0 : index
    %c0_22 = arith.constant 0 : index
    %20 = vector.load %arg2[%c4_20, %c0_21, %c0_22] : memref<9x128x128xbf16, #tpu.memory_space<vmem>>, vector<1x128x128xbf16>
    %21 = vector.shape_cast %20 : vector<1x128x128xbf16> to vector<128x128xbf16>
    %cst_23 = arith.constant dense<0.000000e+00> : vector<18x128xf32>
    %22 = tpu.matmul %19, %21, %cst_23 {dimension_numbers = #tpu.dot_dimension_numbers<[1], [0], [0], [1], [0, 0, 1, 1], [], []>} : vector<18x128xbf16>, vector<128x128xbf16>, vector<18x128xf32> -> vector<18x128xf32>
    %23 = arith.addf %18, %22 : vector<18x128xf32>
    %c5 = arith.constant 5 : index
    %c0_24 = arith.constant 0 : index
    %24 = vector.load %arg1[%c5, %c0_24] : memref<26x128xbf16, #tpu.memory_space<vmem>>, vector<18x128xbf16>
    %c5_25 = arith.constant 5 : index
    %c0_26 = arith.constant 0 : index
    %c0_27 = arith.constant 0 : index
    %25 = vector.load %arg2[%c5_25, %c0_26, %c0_27] : memref<9x128x128xbf16, #tpu.memory_space<vmem>>, vector<1x128x128xbf16>
    %26 = vector.shape_cast %25 : vector<1x128x128xbf16> to vector<128x128xbf16>
    %cst_28 = arith.constant dense<0.000000e+00> : vector<18x128xf32>
    %27 = tpu.matmul %24, %26, %cst_28 {dimension_numbers = #tpu.dot_dimension_numbers<[1], [0], [0], [1], [0, 0, 1, 1], [], []>} : vector<18x128xbf16>, vector<128x128xbf16>, vector<18x128xf32> -> vector<18x128xf32>
    %28 = arith.addf %23, %27 : vector<18x128xf32>
    %c6 = arith.constant 6 : index
    %c0_29 = arith.constant 0 : index
    %29 = vector.load %arg1[%c6, %c0_29] : memref<26x128xbf16, #tpu.memory_space<vmem>>, vector<18x128xbf16>
    %c6_30 = arith.constant 6 : index
    %c0_31 = arith.constant 0 : index
    %c0_32 = arith.constant 0 : index
    %30 = vector.load %arg2[%c6_30, %c0_31, %c0_32] : memref<9x128x128xbf16, #tpu.memory_space<vmem>>, vector<1x128x128xbf16>
    %31 = vector.shape_cast %30 : vector<1x128x128xbf16> to vector<128x128xbf16>
    %cst_33 = arith.constant dense<0.000000e+00> : vector<18x128xf32>
    %32 = tpu.matmul %29, %31, %cst_33 {dimension_numbers = #tpu.dot_dimension_numbers<[1], [0], [0], [1], [0, 0, 1, 1], [], []>} : vector<18x128xbf16>, vector<128x128xbf16>, vector<18x128xf32> -> vector<18x128xf32>
    %33 = arith.addf %28, %32 : vector<18x128xf32>
    %c7 = arith.constant 7 : index
    %c0_34 = arith.constant 0 : index
    %34 = vector.load %arg1[%c7, %c0_34] : memref<26x128xbf16, #tpu.memory_space<vmem>>, vector<18x128xbf16>
    %c7_35 = arith.constant 7 : index
    %c0_36 = arith.constant 0 : index
    %c0_37 = arith.constant 0 : index
    %35 = vector.load %arg2[%c7_35, %c0_36, %c0_37] : memref<9x128x128xbf16, #tpu.memory_space<vmem>>, vector<1x128x128xbf16>
    %36 = vector.shape_cast %35 : vector<1x128x128xbf16> to vector<128x128xbf16>
    %cst_38 = arith.constant dense<0.000000e+00> : vector<18x128xf32>
    %37 = tpu.matmul %34, %36, %cst_38 {dimension_numbers = #tpu.dot_dimension_numbers<[1], [0], [0], [1], [0, 0, 1, 1], [], []>} : vector<18x128xbf16>, vector<128x128xbf16>, vector<18x128xf32> -> vector<18x128xf32>
    %38 = arith.addf %33, %37 : vector<18x128xf32>
    %c8 = arith.constant 8 : index
    %c0_39 = arith.constant 0 : index
    %39 = vector.load %arg1[%c8, %c0_39] : memref<26x128xbf16, #tpu.memory_space<vmem>>, vector<18x128xbf16>
    %c8_40 = arith.constant 8 : index
    %c0_41 = arith.constant 0 : index
    %c0_42 = arith.constant 0 : index
    %40 = vector.load %arg2[%c8_40, %c0_41, %c0_42] : memref<9x128x128xbf16, #tpu.memory_space<vmem>>, vector<1x128x128xbf16>
    %41 = vector.shape_cast %40 : vector<1x128x128xbf16> to vector<128x128xbf16>
    %cst_43 = arith.constant dense<0.000000e+00> : vector<18x128xf32>
    %42 = tpu.matmul %39, %41, %cst_43 {dimension_numbers = #tpu.dot_dimension_numbers<[1], [0], [0], [1], [0, 0, 1, 1], [], []>} : vector<18x128xbf16>, vector<128x128xbf16>, vector<18x128xf32> -> vector<18x128xf32>
    %43 = arith.addf %38, %42 : vector<18x128xf32>
    %c0_44 = arith.constant 0 : index
    %c0_45 = arith.constant 0 : index
    %44 = vector.load %arg3[%c0_44, %c0_45] : memref<3x128xf32, #tpu.memory_space<vmem>>, vector<1x128xf32>
    %45 = vector.broadcast %44 : vector<1x128xf32> to vector<18x128xf32>
    %46 = arith.addf %43, %45 : vector<18x128xf32>
    %c0_46 = arith.constant 0 : index
    %c0_47 = arith.constant 0 : index
    %47 = vector.load %arg4[%c0_46, %c0_47] : memref<1x18xf32, #tpu.memory_space<vmem>>, vector<1x18xf32>
    %cst_48 = arith.constant dense<0.000000e+00> : vector<1x128xf32>
    %48 = tpu.matmul %47, %46, %cst_48 {dimension_numbers = #tpu.dot_dimension_numbers<[1], [0], [0], [1], [0, 0, 1, 1], [], []>} : vector<1x18xf32>, vector<18x128xf32>, vector<1x128xf32> -> vector<1x128xf32>
    %49 = arith.mulf %46, %46 : vector<18x128xf32>
    %cst_49 = arith.constant dense<0.000000e+00> : vector<1x128xf32>
    %50 = tpu.matmul %47, %49, %cst_49 {dimension_numbers = #tpu.dot_dimension_numbers<[1], [0], [0], [1], [0, 0, 1, 1], [], []>} : vector<1x18xf32>, vector<18x128xf32>, vector<1x128xf32> -> vector<1x128xf32>
    %51 = arith.mulf %48, %48 : vector<1x128xf32>
    %52 = arith.subf %50, %51 : vector<1x128xf32>
    %cst_50 = arith.constant 0.000000e+00 : f32
    %53 = vector.broadcast %cst_50 : f32 to vector<1x128xf32>
    %54 = arith.maximumf %52, %53 : vector<1x128xf32>
    %55 = vector.broadcast %48 : vector<1x128xf32> to vector<18x128xf32>
    %56 = arith.subf %46, %55 : vector<18x128xf32>
    %cst_51 = arith.constant 9.99999974E-6 : f32
    %57 = vector.broadcast %cst_51 : f32 to vector<1x128xf32>
    %58 = arith.addf %54, %57 : vector<1x128xf32>
    %59 = math.rsqrt %58 : vector<1x128xf32>
    %60 = vector.broadcast %59 : vector<1x128xf32> to vector<18x128xf32>
    %61 = arith.mulf %56, %60 : vector<18x128xf32>
    %c1_52 = arith.constant 1 : index
    %c0_53 = arith.constant 0 : index
    %62 = vector.load %arg3[%c1_52, %c0_53] : memref<3x128xf32, #tpu.memory_space<vmem>>, vector<1x128xf32>
    %63 = vector.broadcast %62 : vector<1x128xf32> to vector<18x128xf32>
    %64 = arith.mulf %61, %63 : vector<18x128xf32>
    %c2_54 = arith.constant 2 : index
    %c0_55 = arith.constant 0 : index
    %65 = vector.load %arg3[%c2_54, %c0_55] : memref<3x128xf32, #tpu.memory_space<vmem>>, vector<1x128xf32>
    %66 = vector.broadcast %65 : vector<1x128xf32> to vector<18x128xf32>
    %67 = arith.addf %64, %66 : vector<18x128xf32>
    %cst_56 = arith.constant 0.000000e+00 : f32
    %68 = vector.broadcast %cst_56 : f32 to vector<18x128xf32>
    %69 = arith.maximumf %67, %68 : vector<18x128xf32>
    %70 = arith.truncf %69 : vector<18x128xf32> to vector<18x128xbf16>
    %c0_57 = arith.constant 0 : index
    %c0_58 = arith.constant 0 : index
    %71 = vector.load %arg5[%c0_57, %c0_58] : memref<18x128xbf16, #tpu.memory_space<vmem>>, vector<18x128xbf16>
    tpu.vector_store %arg5[%c0_57, %c0_58], %70 {strides = array<i32>} : memref<18x128xbf16, #tpu.memory_space<vmem>>, vector<18x128xbf16>,
    return
  }
  func.func @transform_0(%arg0: i32) -> (i32, i32) {
    %c0_i32 = arith.constant 0 : i32
    %c0_i32_0 = arith.constant 0 : i32
    %c0_i32_1 = arith.constant 0 : i32
    return %c0_i32, %c0_i32_0 : i32, i32
  }
  func.func @transform_1(%arg0: i32) -> (i32, i32, i32) {
    %c0_i32 = arith.constant 0 : i32
    %c0_i32_0 = arith.constant 0 : i32
    %c0_i32_1 = arith.constant 0 : i32
    %c0_i32_2 = arith.constant 0 : i32
    return %c0_i32, %c0_i32_0, %c0_i32_1 : i32, i32, i32
  }
  func.func @transform_2(%arg0: i32) -> (i32, i32) {
    %c0_i32 = arith.constant 0 : i32
    %c0_i32_0 = arith.constant 0 : i32
    %c0_i32_1 = arith.constant 0 : i32
    return %c0_i32, %c0_i32_0 : i32, i32
  }
  func.func @transform_3(%arg0: i32) -> (i32, i32) {
    %c0_i32 = arith.constant 0 : i32
    %c0_i32_0 = arith.constant 0 : i32
    %c0_i32_1 = arith.constant 0 : i32
    return %c0_i32, %c0_i32_0 : i32, i32
  }
  func.func @transform_4(%arg0: i32) -> (i32, i32) {
    %c0_i32 = arith.constant 0 : i32
    %c0_i32_0 = arith.constant 0 : i32
    %c0_i32_1 = arith.constant 0 : i32
    return %c0_i32, %c0_i32_0 : i32, i32
  }
}

module attributes {stable_mosaic.version = 11 : i64} {
  func.func @kernel(%arg0: i32, %arg1: memref<11x128xbf16, #tpu.memory_space<vmem>>, %arg2: memref<4x128x768xbf16, #tpu.memory_space<vmem>>, %arg3: memref<1x768xf32, #tpu.memory_space<vmem>>, %arg4: memref<8x768xbf16, #tpu.memory_space<vmem>>) attributes {dimension_semantics = [#tpu.dimension_semantics<arbitrary>], iteration_bounds = array<i64: 1>, scalar_prefetch = 0 : i64, scratch_operands = 0 : i64, tpu.core_type = #tpu.core_type<tc>, window_params = [{pipeline_mode = #tpu.pipeline_mode<synchronous>, transform_indices = @transform_0, window_bounds = array<i64: 11, 128>}, {pipeline_mode = #tpu.pipeline_mode<synchronous>, transform_indices = @transform_1, window_bounds = array<i64: 4, 128, 768>}, {pipeline_mode = #tpu.pipeline_mode<synchronous>, transform_indices = @transform_2, window_bounds = array<i64: 1, 768>}, {pipeline_mode = #tpu.pipeline_mode<synchronous>, transform_indices = @transform_3, window_bounds = array<i64: 8, 768>}]} {
    %c0 = arith.constant 0 : index
    %c0_0 = arith.constant 0 : index
    %0 = vector.load %arg1[%c0, %c0_0] : memref<11x128xbf16, #tpu.memory_space<vmem>>, vector<8x128xbf16>
    %c0_1 = arith.constant 0 : index
    %c0_2 = arith.constant 0 : index
    %c0_3 = arith.constant 0 : index
    %1 = vector.load %arg2[%c0_1, %c0_2, %c0_3] : memref<4x128x768xbf16, #tpu.memory_space<vmem>>, vector<1x128x768xbf16>
    %2 = vector.shape_cast %1 : vector<1x128x768xbf16> to vector<128x768xbf16>
    %cst = arith.constant dense<0.000000e+00> : vector<8x768xf32>
    %3 = tpu.matmul %0, %2, %cst {dimension_numbers = #tpu.dot_dimension_numbers<[1], [0], [0], [1], [0, 0, 1, 1], [], []>} : vector<8x128xbf16>, vector<128x768xbf16>, vector<8x768xf32> -> vector<8x768xf32>
    %c1 = arith.constant 1 : index
    %c0_4 = arith.constant 0 : index
    %4 = vector.load %arg1[%c1, %c0_4] : memref<11x128xbf16, #tpu.memory_space<vmem>>, vector<8x128xbf16>
    %c1_5 = arith.constant 1 : index
    %c0_6 = arith.constant 0 : index
    %c0_7 = arith.constant 0 : index
    %5 = vector.load %arg2[%c1_5, %c0_6, %c0_7] : memref<4x128x768xbf16, #tpu.memory_space<vmem>>, vector<1x128x768xbf16>
    %6 = vector.shape_cast %5 : vector<1x128x768xbf16> to vector<128x768xbf16>
    %cst_8 = arith.constant dense<0.000000e+00> : vector<8x768xf32>
    %7 = tpu.matmul %4, %6, %cst_8 {dimension_numbers = #tpu.dot_dimension_numbers<[1], [0], [0], [1], [0, 0, 1, 1], [], []>} : vector<8x128xbf16>, vector<128x768xbf16>, vector<8x768xf32> -> vector<8x768xf32>
    %8 = arith.addf %3, %7 : vector<8x768xf32>
    %c2 = arith.constant 2 : index
    %c0_9 = arith.constant 0 : index
    %9 = vector.load %arg1[%c2, %c0_9] : memref<11x128xbf16, #tpu.memory_space<vmem>>, vector<8x128xbf16>
    %c2_10 = arith.constant 2 : index
    %c0_11 = arith.constant 0 : index
    %c0_12 = arith.constant 0 : index
    %10 = vector.load %arg2[%c2_10, %c0_11, %c0_12] : memref<4x128x768xbf16, #tpu.memory_space<vmem>>, vector<1x128x768xbf16>
    %11 = vector.shape_cast %10 : vector<1x128x768xbf16> to vector<128x768xbf16>
    %cst_13 = arith.constant dense<0.000000e+00> : vector<8x768xf32>
    %12 = tpu.matmul %9, %11, %cst_13 {dimension_numbers = #tpu.dot_dimension_numbers<[1], [0], [0], [1], [0, 0, 1, 1], [], []>} : vector<8x128xbf16>, vector<128x768xbf16>, vector<8x768xf32> -> vector<8x768xf32>
    %13 = arith.addf %8, %12 : vector<8x768xf32>
    %c3 = arith.constant 3 : index
    %c0_14 = arith.constant 0 : index
    %14 = vector.load %arg1[%c3, %c0_14] : memref<11x128xbf16, #tpu.memory_space<vmem>>, vector<8x128xbf16>
    %c3_15 = arith.constant 3 : index
    %c0_16 = arith.constant 0 : index
    %c0_17 = arith.constant 0 : index
    %15 = vector.load %arg2[%c3_15, %c0_16, %c0_17] : memref<4x128x768xbf16, #tpu.memory_space<vmem>>, vector<1x128x768xbf16>
    %16 = vector.shape_cast %15 : vector<1x128x768xbf16> to vector<128x768xbf16>
    %cst_18 = arith.constant dense<0.000000e+00> : vector<8x768xf32>
    %17 = tpu.matmul %14, %16, %cst_18 {dimension_numbers = #tpu.dot_dimension_numbers<[1], [0], [0], [1], [0, 0, 1, 1], [], []>} : vector<8x128xbf16>, vector<128x768xbf16>, vector<8x768xf32> -> vector<8x768xf32>
    %18 = arith.addf %13, %17 : vector<8x768xf32>
    %c0_19 = arith.constant 0 : index
    %c0_20 = arith.constant 0 : index
    %19 = vector.load %arg3[%c0_19, %c0_20] : memref<1x768xf32, #tpu.memory_space<vmem>>, vector<1x768xf32>
    %20 = vector.broadcast %19 : vector<1x768xf32> to vector<8x768xf32>
    %21 = arith.addf %18, %20 : vector<8x768xf32>
    %22 = arith.truncf %21 : vector<8x768xf32> to vector<8x768xbf16>
    %c0_21 = arith.constant 0 : index
    %c0_22 = arith.constant 0 : index
    %23 = vector.load %arg4[%c0_21, %c0_22] : memref<8x768xbf16, #tpu.memory_space<vmem>>, vector<8x768xbf16>
    tpu.vector_store %arg4[%c0_21, %c0_22], %22 {strides = array<i32>} : memref<8x768xbf16, #tpu.memory_space<vmem>>, vector<8x768xbf16>,
    return
  }
  func.func @transform_0(%arg0: i32) -> (i32, i32) {
    %c0_i32 = arith.constant 0 : i32
    %c0_i32_0 = arith.constant 0 : i32
    %c0_i32_1 = arith.constant 0 : i32
    return %c0_i32, %c0_i32_0 : i32, i32
  }
  func.func @transform_1(%arg0: i32) -> (i32, i32, i32) {
    %c0_i32 = arith.constant 0 : i32
    %c0_i32_0 = arith.constant 0 : i32
    %c0_i32_1 = arith.constant 0 : i32
    %c0_i32_2 = arith.constant 0 : i32
    return %c0_i32, %c0_i32_0, %c0_i32_1 : i32, i32, i32
  }
  func.func @transform_2(%arg0: i32) -> (i32, i32) {
    %c0_i32 = arith.constant 0 : i32
    %c0_i32_0 = arith.constant 0 : i32
    %c0_i32_1 = arith.constant 0 : i32
    return %c0_i32, %c0_i32_0 : i32, i32
  }
  func.func @transform_3(%arg0: i32) -> (i32, i32) {
    %c0_i32 = arith.constant 0 : i32
    %c0_i32_0 = arith.constant 0 : i32
    %c0_i32_1 = arith.constant 0 : i32
    return %c0_i32, %c0_i32_0 : i32, i32
  }
}

module attributes {stable_mosaic.version = 11 : i64} {
  func.func @kernel(%arg0: i32, %arg1: memref<86x128xbf16, #tpu.memory_space<vmem>>, %arg2: memref<9x128x128xbf16, #tpu.memory_space<vmem>>, %arg3: memref<1x128xf32, #tpu.memory_space<vmem>>, %arg4: memref<72x128xbf16, #tpu.memory_space<vmem>>) attributes {dimension_semantics = [#tpu.dimension_semantics<arbitrary>], iteration_bounds = array<i64: 1>, scalar_prefetch = 0 : i64, scratch_operands = 0 : i64, tpu.core_type = #tpu.core_type<tc>, window_params = [{pipeline_mode = #tpu.pipeline_mode<synchronous>, transform_indices = @transform_0, window_bounds = array<i64: 86, 128>}, {pipeline_mode = #tpu.pipeline_mode<synchronous>, transform_indices = @transform_1, window_bounds = array<i64: 9, 128, 128>}, {pipeline_mode = #tpu.pipeline_mode<synchronous>, transform_indices = @transform_2, window_bounds = array<i64: 1, 128>}, {pipeline_mode = #tpu.pipeline_mode<synchronous>, transform_indices = @transform_3, window_bounds = array<i64: 72, 128>}]} {
    %c0 = arith.constant 0 : index
    %c0_0 = arith.constant 0 : index
    %0 = vector.load %arg1[%c0, %c0_0] : memref<86x128xbf16, #tpu.memory_space<vmem>>, vector<72x128xbf16>
    %c0_1 = arith.constant 0 : index
    %c0_2 = arith.constant 0 : index
    %c0_3 = arith.constant 0 : index
    %1 = vector.load %arg2[%c0_1, %c0_2, %c0_3] : memref<9x128x128xbf16, #tpu.memory_space<vmem>>, vector<1x128x128xbf16>
    %2 = vector.shape_cast %1 : vector<1x128x128xbf16> to vector<128x128xbf16>
    %cst = arith.constant dense<0.000000e+00> : vector<72x128xf32>
    %3 = tpu.matmul %0, %2, %cst {dimension_numbers = #tpu.dot_dimension_numbers<[1], [0], [0], [1], [0, 0, 1, 1], [], []>} : vector<72x128xbf16>, vector<128x128xbf16>, vector<72x128xf32> -> vector<72x128xf32>
    %c1 = arith.constant 1 : index
    %c0_4 = arith.constant 0 : index
    %4 = vector.load %arg1[%c1, %c0_4] : memref<86x128xbf16, #tpu.memory_space<vmem>>, vector<72x128xbf16>
    %c1_5 = arith.constant 1 : index
    %c0_6 = arith.constant 0 : index
    %c0_7 = arith.constant 0 : index
    %5 = vector.load %arg2[%c1_5, %c0_6, %c0_7] : memref<9x128x128xbf16, #tpu.memory_space<vmem>>, vector<1x128x128xbf16>
    %6 = vector.shape_cast %5 : vector<1x128x128xbf16> to vector<128x128xbf16>
    %cst_8 = arith.constant dense<0.000000e+00> : vector<72x128xf32>
    %7 = tpu.matmul %4, %6, %cst_8 {dimension_numbers = #tpu.dot_dimension_numbers<[1], [0], [0], [1], [0, 0, 1, 1], [], []>} : vector<72x128xbf16>, vector<128x128xbf16>, vector<72x128xf32> -> vector<72x128xf32>
    %8 = arith.addf %3, %7 : vector<72x128xf32>
    %c2 = arith.constant 2 : index
    %c0_9 = arith.constant 0 : index
    %9 = vector.load %arg1[%c2, %c0_9] : memref<86x128xbf16, #tpu.memory_space<vmem>>, vector<72x128xbf16>
    %c2_10 = arith.constant 2 : index
    %c0_11 = arith.constant 0 : index
    %c0_12 = arith.constant 0 : index
    %10 = vector.load %arg2[%c2_10, %c0_11, %c0_12] : memref<9x128x128xbf16, #tpu.memory_space<vmem>>, vector<1x128x128xbf16>
    %11 = vector.shape_cast %10 : vector<1x128x128xbf16> to vector<128x128xbf16>
    %cst_13 = arith.constant dense<0.000000e+00> : vector<72x128xf32>
    %12 = tpu.matmul %9, %11, %cst_13 {dimension_numbers = #tpu.dot_dimension_numbers<[1], [0], [0], [1], [0, 0, 1, 1], [], []>} : vector<72x128xbf16>, vector<128x128xbf16>, vector<72x128xf32> -> vector<72x128xf32>
    %13 = arith.addf %8, %12 : vector<72x128xf32>
    %c6 = arith.constant 6 : index
    %c0_14 = arith.constant 0 : index
    %14 = vector.load %arg1[%c6, %c0_14] : memref<86x128xbf16, #tpu.memory_space<vmem>>, vector<72x128xbf16>
    %c3 = arith.constant 3 : index
    %c0_15 = arith.constant 0 : index
    %c0_16 = arith.constant 0 : index
    %15 = vector.load %arg2[%c3, %c0_15, %c0_16] : memref<9x128x128xbf16, #tpu.memory_space<vmem>>, vector<1x128x128xbf16>
    %16 = vector.shape_cast %15 : vector<1x128x128xbf16> to vector<128x128xbf16>
    %cst_17 = arith.constant dense<0.000000e+00> : vector<72x128xf32>
    %17 = tpu.matmul %14, %16, %cst_17 {dimension_numbers = #tpu.dot_dimension_numbers<[1], [0], [0], [1], [0, 0, 1, 1], [], []>} : vector<72x128xbf16>, vector<128x128xbf16>, vector<72x128xf32> -> vector<72x128xf32>
    %18 = arith.addf %13, %17 : vector<72x128xf32>
    %c7 = arith.constant 7 : index
    %c0_18 = arith.constant 0 : index
    %19 = vector.load %arg1[%c7, %c0_18] : memref<86x128xbf16, #tpu.memory_space<vmem>>, vector<72x128xbf16>
    %c4 = arith.constant 4 : index
    %c0_19 = arith.constant 0 : index
    %c0_20 = arith.constant 0 : index
    %20 = vector.load %arg2[%c4, %c0_19, %c0_20] : memref<9x128x128xbf16, #tpu.memory_space<vmem>>, vector<1x128x128xbf16>
    %21 = vector.shape_cast %20 : vector<1x128x128xbf16> to vector<128x128xbf16>
    %cst_21 = arith.constant dense<0.000000e+00> : vector<72x128xf32>
    %22 = tpu.matmul %19, %21, %cst_21 {dimension_numbers = #tpu.dot_dimension_numbers<[1], [0], [0], [1], [0, 0, 1, 1], [], []>} : vector<72x128xbf16>, vector<128x128xbf16>, vector<72x128xf32> -> vector<72x128xf32>
    %23 = arith.addf %18, %22 : vector<72x128xf32>
    %c8 = arith.constant 8 : index
    %c0_22 = arith.constant 0 : index
    %24 = vector.load %arg1[%c8, %c0_22] : memref<86x128xbf16, #tpu.memory_space<vmem>>, vector<72x128xbf16>
    %c5 = arith.constant 5 : index
    %c0_23 = arith.constant 0 : index
    %c0_24 = arith.constant 0 : index
    %25 = vector.load %arg2[%c5, %c0_23, %c0_24] : memref<9x128x128xbf16, #tpu.memory_space<vmem>>, vector<1x128x128xbf16>
    %26 = vector.shape_cast %25 : vector<1x128x128xbf16> to vector<128x128xbf16>
    %cst_25 = arith.constant dense<0.000000e+00> : vector<72x128xf32>
    %27 = tpu.matmul %24, %26, %cst_25 {dimension_numbers = #tpu.dot_dimension_numbers<[1], [0], [0], [1], [0, 0, 1, 1], [], []>} : vector<72x128xbf16>, vector<128x128xbf16>, vector<72x128xf32> -> vector<72x128xf32>
    %28 = arith.addf %23, %27 : vector<72x128xf32>
    %c12 = arith.constant 12 : index
    %c0_26 = arith.constant 0 : index
    %29 = vector.load %arg1[%c12, %c0_26] : memref<86x128xbf16, #tpu.memory_space<vmem>>, vector<72x128xbf16>
    %c6_27 = arith.constant 6 : index
    %c0_28 = arith.constant 0 : index
    %c0_29 = arith.constant 0 : index
    %30 = vector.load %arg2[%c6_27, %c0_28, %c0_29] : memref<9x128x128xbf16, #tpu.memory_space<vmem>>, vector<1x128x128xbf16>
    %31 = vector.shape_cast %30 : vector<1x128x128xbf16> to vector<128x128xbf16>
    %cst_30 = arith.constant dense<0.000000e+00> : vector<72x128xf32>
    %32 = tpu.matmul %29, %31, %cst_30 {dimension_numbers = #tpu.dot_dimension_numbers<[1], [0], [0], [1], [0, 0, 1, 1], [], []>} : vector<72x128xbf16>, vector<128x128xbf16>, vector<72x128xf32> -> vector<72x128xf32>
    %33 = arith.addf %28, %32 : vector<72x128xf32>
    %c13 = arith.constant 13 : index
    %c0_31 = arith.constant 0 : index
    %34 = vector.load %arg1[%c13, %c0_31] : memref<86x128xbf16, #tpu.memory_space<vmem>>, vector<72x128xbf16>
    %c7_32 = arith.constant 7 : index
    %c0_33 = arith.constant 0 : index
    %c0_34 = arith.constant 0 : index
    %35 = vector.load %arg2[%c7_32, %c0_33, %c0_34] : memref<9x128x128xbf16, #tpu.memory_space<vmem>>, vector<1x128x128xbf16>
    %36 = vector.shape_cast %35 : vector<1x128x128xbf16> to vector<128x128xbf16>
    %cst_35 = arith.constant dense<0.000000e+00> : vector<72x128xf32>
    %37 = tpu.matmul %34, %36, %cst_35 {dimension_numbers = #tpu.dot_dimension_numbers<[1], [0], [0], [1], [0, 0, 1, 1], [], []>} : vector<72x128xbf16>, vector<128x128xbf16>, vector<72x128xf32> -> vector<72x128xf32>
    %38 = arith.addf %33, %37 : vector<72x128xf32>
    %c14 = arith.constant 14 : index
    %c0_36 = arith.constant 0 : index
    %39 = vector.load %arg1[%c14, %c0_36] : memref<86x128xbf16, #tpu.memory_space<vmem>>, vector<72x128xbf16>
    %c8_37 = arith.constant 8 : index
    %c0_38 = arith.constant 0 : index
    %c0_39 = arith.constant 0 : index
    %40 = vector.load %arg2[%c8_37, %c0_38, %c0_39] : memref<9x128x128xbf16, #tpu.memory_space<vmem>>, vector<1x128x128xbf16>
    %41 = vector.shape_cast %40 : vector<1x128x128xbf16> to vector<128x128xbf16>
    %cst_40 = arith.constant dense<0.000000e+00> : vector<72x128xf32>
    %42 = tpu.matmul %39, %41, %cst_40 {dimension_numbers = #tpu.dot_dimension_numbers<[1], [0], [0], [1], [0, 0, 1, 1], [], []>} : vector<72x128xbf16>, vector<128x128xbf16>, vector<72x128xf32> -> vector<72x128xf32>
    %43 = arith.addf %38, %42 : vector<72x128xf32>
    %c0_41 = arith.constant 0 : index
    %c0_42 = arith.constant 0 : index
    %44 = vector.load %arg3[%c0_41, %c0_42] : memref<1x128xf32, #tpu.memory_space<vmem>>, vector<1x128xf32>
    %45 = vector.broadcast %44 : vector<1x128xf32> to vector<72x128xf32>
    %46 = arith.addf %43, %45 : vector<72x128xf32>
    %47 = arith.truncf %46 : vector<72x128xf32> to vector<72x128xbf16>
    %c0_43 = arith.constant 0 : index
    %c0_44 = arith.constant 0 : index
    %48 = vector.load %arg4[%c0_43, %c0_44] : memref<72x128xbf16, #tpu.memory_space<vmem>>, vector<72x128xbf16>
    tpu.vector_store %arg4[%c0_43, %c0_44], %47 {strides = array<i32>} : memref<72x128xbf16, #tpu.memory_space<vmem>>, vector<72x128xbf16>,
    return
  }
  func.func @transform_0(%arg0: i32) -> (i32, i32) {
    %c0_i32 = arith.constant 0 : i32
    %c0_i32_0 = arith.constant 0 : i32
    %c0_i32_1 = arith.constant 0 : i32
    return %c0_i32, %c0_i32_0 : i32, i32
  }
  func.func @transform_1(%arg0: i32) -> (i32, i32, i32) {
    %c0_i32 = arith.constant 0 : i32
    %c0_i32_0 = arith.constant 0 : i32
    %c0_i32_1 = arith.constant 0 : i32
    %c0_i32_2 = arith.constant 0 : i32
    return %c0_i32, %c0_i32_0, %c0_i32_1 : i32, i32, i32
  }
  func.func @transform_2(%arg0: i32) -> (i32, i32) {
    %c0_i32 = arith.constant 0 : i32
    %c0_i32_0 = arith.constant 0 : i32
    %c0_i32_1 = arith.constant 0 : i32
    return %c0_i32, %c0_i32_0 : i32, i32
  }
  func.func @transform_3(%arg0: i32) -> (i32, i32) {
    %c0_i32 = arith.constant 0 : i32
    %c0_i32_0 = arith.constant 0 : i32
    %c0_i32_1 = arith.constant 0 : i32
    return %c0_i32, %c0_i32_0 : i32, i32
  }
}

module attributes {stable_mosaic.version = 11 : i64} {
  func.func @kernel(%arg0: i32, %arg1: memref<32x128xbf16, #tpu.memory_space<vmem>>, %arg2: memref<2x128xf32, #tpu.memory_space<vmem>>, %arg3: memref<32x128xbf16, #tpu.memory_space<vmem>>) attributes {dimension_semantics = [#tpu.dimension_semantics<arbitrary>], iteration_bounds = array<i64: 1>, scalar_prefetch = 0 : i64, scratch_operands = 0 : i64, tpu.core_type = #tpu.core_type<tc>, window_params = [{pipeline_mode = #tpu.pipeline_mode<synchronous>, transform_indices = @transform_0, window_bounds = array<i64: 32, 128>}, {pipeline_mode = #tpu.pipeline_mode<synchronous>, transform_indices = @transform_1, window_bounds = array<i64: 2, 128>}, {pipeline_mode = #tpu.pipeline_mode<synchronous>, transform_indices = @transform_2, window_bounds = array<i64: 32, 128>}]} {
    %c0 = arith.constant 0 : index
    %c0_0 = arith.constant 0 : index
    %0 = vector.load %arg1[%c0, %c0_0] : memref<32x128xbf16, #tpu.memory_space<vmem>>, vector<32x128xbf16>
    %1 = arith.extf %0 : vector<32x128xbf16> to vector<32x128xf32>
    %cst = arith.constant dense<0.000000e+00> : vector<128xf32>
    %2 = vector.multi_reduction <add>, %1, %cst [0] : vector<32x128xf32> to vector<128xf32>
    %3 = vector.shape_cast %2 : vector<128xf32> to vector<1x128xf32>
    %cst_1 = arith.constant 3.125000e-02 : f32
    %4 = vector.broadcast %cst_1 : f32 to vector<1x128xf32>
    %5 = arith.mulf %3, %4 : vector<1x128xf32>
    %6 = arith.mulf %1, %1 : vector<32x128xf32>
    %cst_2 = arith.constant dense<0.000000e+00> : vector<128xf32>
    %7 = vector.multi_reduction <add>, %6, %cst_2 [0] : vector<32x128xf32> to vector<128xf32>
    %8 = vector.shape_cast %7 : vector<128xf32> to vector<1x128xf32>
    %cst_3 = arith.constant 3.125000e-02 : f32
    %9 = vector.broadcast %cst_3 : f32 to vector<1x128xf32>
    %10 = arith.mulf %8, %9 : vector<1x128xf32>
    %11 = arith.mulf %5, %5 : vector<1x128xf32>
    %12 = arith.subf %10, %11 : vector<1x128xf32>
    %cst_4 = arith.constant 0.000000e+00 : f32
    %13 = vector.broadcast %cst_4 : f32 to vector<1x128xf32>
    %14 = arith.maximumf %12, %13 : vector<1x128xf32>
    %15 = vector.broadcast %5 : vector<1x128xf32> to vector<32x128xf32>
    %16 = arith.subf %1, %15 : vector<32x128xf32>
    %cst_5 = arith.constant 9.99999974E-6 : f32
    %17 = vector.broadcast %cst_5 : f32 to vector<1x128xf32>
    %18 = arith.addf %14, %17 : vector<1x128xf32>
    %19 = math.rsqrt %18 : vector<1x128xf32>
    %20 = vector.broadcast %19 : vector<1x128xf32> to vector<32x128xf32>
    %21 = arith.mulf %16, %20 : vector<32x128xf32>
    %c0_6 = arith.constant 0 : index
    %c0_7 = arith.constant 0 : index
    %22 = vector.load %arg2[%c0_6, %c0_7] : memref<2x128xf32, #tpu.memory_space<vmem>>, vector<1x128xf32>
    %23 = vector.broadcast %22 : vector<1x128xf32> to vector<32x128xf32>
    %24 = arith.mulf %21, %23 : vector<32x128xf32>
    %c1 = arith.constant 1 : index
    %c0_8 = arith.constant 0 : index
    %25 = vector.load %arg2[%c1, %c0_8] : memref<2x128xf32, #tpu.memory_space<vmem>>, vector<1x128xf32>
    %26 = vector.broadcast %25 : vector<1x128xf32> to vector<32x128xf32>
    %27 = arith.addf %24, %26 : vector<32x128xf32>
    %cst_9 = arith.constant 0.000000e+00 : f32
    %28 = vector.broadcast %cst_9 : f32 to vector<32x128xf32>
    %29 = arith.maximumf %27, %28 : vector<32x128xf32>
    %30 = arith.truncf %29 : vector<32x128xf32> to vector<32x128xbf16>
    %c0_10 = arith.constant 0 : index
    %c0_11 = arith.constant 0 : index
    %31 = vector.load %arg3[%c0_10, %c0_11] : memref<32x128xbf16, #tpu.memory_space<vmem>>, vector<32x128xbf16>
    tpu.vector_store %arg3[%c0_10, %c0_11], %30 {strides = array<i32>} : memref<32x128xbf16, #tpu.memory_space<vmem>>, vector<32x128xbf16>,
    return
  }
  func.func @transform_0(%arg0: i32) -> (i32, i32) {
    %c0_i32 = arith.constant 0 : i32
    %c0_i32_0 = arith.constant 0 : i32
    %c0_i32_1 = arith.constant 0 : i32
    return %c0_i32, %c0_i32_0 : i32, i32
  }
  func.func @transform_1(%arg0: i32) -> (i32, i32) {
    %c0_i32 = arith.constant 0 : i32
    %c0_i32_0 = arith.constant 0 : i32
    %c0_i32_1 = arith.constant 0 : i32
    return %c0_i32, %c0_i32_0 : i32, i32
  }
  func.func @transform_2(%arg0: i32) -> (i32, i32) {
    %c0_i32 = arith.constant 0 : i32
    %c0_i32_0 = arith.constant 0 : i32
    %c0_i32_1 = arith.constant 0 : i32
    return %c0_i32, %c0_i32_0 : i32, i32
  }
}

module attributes {stable_mosaic.version = 11 : i64} {
  func.func @kernel(%arg0: i32, %arg1: memref<128x128xbf16, #tpu.memory_space<vmem>>, %arg2: memref<2x128xf32, #tpu.memory_space<vmem>>, %arg3: memref<128x128xbf16, #tpu.memory_space<vmem>>) attributes {dimension_semantics = [#tpu.dimension_semantics<arbitrary>], iteration_bounds = array<i64: 1>, scalar_prefetch = 0 : i64, scratch_operands = 0 : i64, tpu.core_type = #tpu.core_type<tc>, window_params = [{pipeline_mode = #tpu.pipeline_mode<synchronous>, transform_indices = @transform_0, window_bounds = array<i64: 128, 128>}, {pipeline_mode = #tpu.pipeline_mode<synchronous>, transform_indices = @transform_1, window_bounds = array<i64: 2, 128>}, {pipeline_mode = #tpu.pipeline_mode<synchronous>, transform_indices = @transform_2, window_bounds = array<i64: 128, 128>}]} {
    %c0 = arith.constant 0 : index
    %c0_0 = arith.constant 0 : index
    %0 = vector.load %arg1[%c0, %c0_0] : memref<128x128xbf16, #tpu.memory_space<vmem>>, vector<128x128xbf16>
    %1 = arith.extf %0 : vector<128x128xbf16> to vector<128x128xf32>
    %cst = arith.constant dense<0.000000e+00> : vector<128xf32>
    %2 = vector.multi_reduction <add>, %1, %cst [0] : vector<128x128xf32> to vector<128xf32>
    %3 = vector.shape_cast %2 : vector<128xf32> to vector<1x128xf32>
    %cst_1 = arith.constant 7.812500e-03 : f32
    %4 = vector.broadcast %cst_1 : f32 to vector<1x128xf32>
    %5 = arith.mulf %3, %4 : vector<1x128xf32>
    %6 = arith.mulf %1, %1 : vector<128x128xf32>
    %cst_2 = arith.constant dense<0.000000e+00> : vector<128xf32>
    %7 = vector.multi_reduction <add>, %6, %cst_2 [0] : vector<128x128xf32> to vector<128xf32>
    %8 = vector.shape_cast %7 : vector<128xf32> to vector<1x128xf32>
    %cst_3 = arith.constant 7.812500e-03 : f32
    %9 = vector.broadcast %cst_3 : f32 to vector<1x128xf32>
    %10 = arith.mulf %8, %9 : vector<1x128xf32>
    %11 = arith.mulf %5, %5 : vector<1x128xf32>
    %12 = arith.subf %10, %11 : vector<1x128xf32>
    %cst_4 = arith.constant 0.000000e+00 : f32
    %13 = vector.broadcast %cst_4 : f32 to vector<1x128xf32>
    %14 = arith.maximumf %12, %13 : vector<1x128xf32>
    %15 = vector.broadcast %5 : vector<1x128xf32> to vector<128x128xf32>
    %16 = arith.subf %1, %15 : vector<128x128xf32>
    %cst_5 = arith.constant 9.99999974E-6 : f32
    %17 = vector.broadcast %cst_5 : f32 to vector<1x128xf32>
    %18 = arith.addf %14, %17 : vector<1x128xf32>
    %19 = math.rsqrt %18 : vector<1x128xf32>
    %20 = vector.broadcast %19 : vector<1x128xf32> to vector<128x128xf32>
    %21 = arith.mulf %16, %20 : vector<128x128xf32>
    %c0_6 = arith.constant 0 : index
    %c0_7 = arith.constant 0 : index
    %22 = vector.load %arg2[%c0_6, %c0_7] : memref<2x128xf32, #tpu.memory_space<vmem>>, vector<1x128xf32>
    %23 = vector.broadcast %22 : vector<1x128xf32> to vector<128x128xf32>
    %24 = arith.mulf %21, %23 : vector<128x128xf32>
    %c1 = arith.constant 1 : index
    %c0_8 = arith.constant 0 : index
    %25 = vector.load %arg2[%c1, %c0_8] : memref<2x128xf32, #tpu.memory_space<vmem>>, vector<1x128xf32>
    %26 = vector.broadcast %25 : vector<1x128xf32> to vector<128x128xf32>
    %27 = arith.addf %24, %26 : vector<128x128xf32>
    %cst_9 = arith.constant 0.000000e+00 : f32
    %28 = vector.broadcast %cst_9 : f32 to vector<128x128xf32>
    %29 = arith.maximumf %27, %28 : vector<128x128xf32>
    %30 = arith.truncf %29 : vector<128x128xf32> to vector<128x128xbf16>
    %c0_10 = arith.constant 0 : index
    %c0_11 = arith.constant 0 : index
    %31 = vector.load %arg3[%c0_10, %c0_11] : memref<128x128xbf16, #tpu.memory_space<vmem>>, vector<128x128xbf16>
    tpu.vector_store %arg3[%c0_10, %c0_11], %30 {strides = array<i32>} : memref<128x128xbf16, #tpu.memory_space<vmem>>, vector<128x128xbf16>,
    return
  }
  func.func @transform_0(%arg0: i32) -> (i32, i32) {
    %c0_i32 = arith.constant 0 : i32
    %c0_i32_0 = arith.constant 0 : i32
    %c0_i32_1 = arith.constant 0 : i32
    return %c0_i32, %c0_i32_0 : i32, i32
  }
  func.func @transform_1(%arg0: i32) -> (i32, i32) {
    %c0_i32 = arith.constant 0 : i32
    %c0_i32_0 = arith.constant 0 : i32
    %c0_i32_1 = arith.constant 0 : i32
    return %c0_i32, %c0_i32_0 : i32, i32
  }
  func.func @transform_2(%arg0: i32) -> (i32, i32) {
    %c0_i32 = arith.constant 0 : i32
    %c0_i32_0 = arith.constant 0 : i32
    %c0_i32_1 = arith.constant 0 : i32
    return %c0_i32, %c0_i32_0 : i32, i32
  }
}

module attributes {stable_mosaic.version = 11 : i64} {
  func.func @_maxunpool_kernel(%arg0: i32, %arg1: memref<1x128xf32, #tpu.memory_space<vmem>>, %arg2: memref<1x128xi32, #tpu.memory_space<vmem>>, %arg3: memref<4x1x128xf32, #tpu.memory_space<vmem>>) attributes {dimension_semantics = [#tpu.dimension_semantics<arbitrary>], iteration_bounds = array<i64: 1>, scalar_prefetch = 0 : i64, scratch_operands = 0 : i64, tpu.core_type = #tpu.core_type<tc>, window_params = [{pipeline_mode = #tpu.pipeline_mode<synchronous>, transform_indices = @transform_0, window_bounds = array<i64: 1, 128>}, {pipeline_mode = #tpu.pipeline_mode<synchronous>, transform_indices = @transform_1, window_bounds = array<i64: 1, 128>}, {pipeline_mode = #tpu.pipeline_mode<synchronous>, transform_indices = @transform_2, window_bounds = array<i64: 4, 1, 128>}]} {
    %c0 = arith.constant 0 : index
    %c0_0 = arith.constant 0 : index
    %0 = vector.load %arg1[%c0, %c0_0] : memref<1x128xf32, #tpu.memory_space<vmem>>, vector<1x128xf32>
    %c0_1 = arith.constant 0 : index
    %c0_2 = arith.constant 0 : index
    %1 = vector.load %arg2[%c0_1, %c0_2] : memref<1x128xi32, #tpu.memory_space<vmem>>, vector<1x128xi32>
    %cst = arith.constant 0.000000e+00 : f32
    %2 = vector.broadcast %cst : f32 to vector<1x128xf32>
    %c0_i32 = arith.constant 0 : i32
    %3 = vector.broadcast %c0_i32 : i32 to vector<1x128xi32>
    %4 = arith.cmpi eq, %1, %3 : vector<1x128xi32>
    %5 = arith.select %4, %0, %2 : vector<1x128xi1>, vector<1x128xf32>
    %c0_3 = arith.constant 0 : index
    %c0_4 = arith.constant 0 : index
    %c0_5 = arith.constant 0 : index
    %6 = vector.load %arg3[%c0_3, %c0_4, %c0_5] : memref<4x1x128xf32, #tpu.memory_space<vmem>>, vector<1x1x128xf32>
    %7 = vector.shape_cast %6 : vector<1x1x128xf32> to vector<1x128xf32>
    %8 = vector.shape_cast %5 : vector<1x128xf32> to vector<1x1x128xf32>
    tpu.vector_store %arg3[%c0_3, %c0_4, %c0_5], %8 {strides = array<i32>} : memref<4x1x128xf32, #tpu.memory_space<vmem>>, vector<1x1x128xf32>,
    %c1_i32 = arith.constant 1 : i32
    %9 = vector.broadcast %c1_i32 : i32 to vector<1x128xi32>
    %10 = arith.cmpi eq, %1, %9 : vector<1x128xi32>
    %11 = arith.select %10, %0, %2 : vector<1x128xi1>, vector<1x128xf32>
    %c1 = arith.constant 1 : index
    %c0_6 = arith.constant 0 : index
    %c0_7 = arith.constant 0 : index
    %12 = vector.load %arg3[%c1, %c0_6, %c0_7] : memref<4x1x128xf32, #tpu.memory_space<vmem>>, vector<1x1x128xf32>
    %13 = vector.shape_cast %12 : vector<1x1x128xf32> to vector<1x128xf32>
    %14 = vector.shape_cast %11 : vector<1x128xf32> to vector<1x1x128xf32>
    tpu.vector_store %arg3[%c1, %c0_6, %c0_7], %14 {strides = array<i32>} : memref<4x1x128xf32, #tpu.memory_space<vmem>>, vector<1x1x128xf32>,
    %c2_i32 = arith.constant 2 : i32
    %15 = vector.broadcast %c2_i32 : i32 to vector<1x128xi32>
    %16 = arith.cmpi eq, %1, %15 : vector<1x128xi32>
    %17 = arith.select %16, %0, %2 : vector<1x128xi1>, vector<1x128xf32>
    %c2 = arith.constant 2 : index
    %c0_8 = arith.constant 0 : index
    %c0_9 = arith.constant 0 : index
    %18 = vector.load %arg3[%c2, %c0_8, %c0_9] : memref<4x1x128xf32, #tpu.memory_space<vmem>>, vector<1x1x128xf32>
    %19 = vector.shape_cast %18 : vector<1x1x128xf32> to vector<1x128xf32>
    %20 = vector.shape_cast %17 : vector<1x128xf32> to vector<1x1x128xf32>
    tpu.vector_store %arg3[%c2, %c0_8, %c0_9], %20 {strides = array<i32>} : memref<4x1x128xf32, #tpu.memory_space<vmem>>, vector<1x1x128xf32>,
    %c3_i32 = arith.constant 3 : i32
    %21 = vector.broadcast %c3_i32 : i32 to vector<1x128xi32>
    %22 = arith.cmpi eq, %1, %21 : vector<1x128xi32>
    %23 = arith.select %22, %0, %2 : vector<1x128xi1>, vector<1x128xf32>
    %c3 = arith.constant 3 : index
    %c0_10 = arith.constant 0 : index
    %c0_11 = arith.constant 0 : index
    %24 = vector.load %arg3[%c3, %c0_10, %c0_11] : memref<4x1x128xf32, #tpu.memory_space<vmem>>, vector<1x1x128xf32>
    %25 = vector.shape_cast %24 : vector<1x1x128xf32> to vector<1x128xf32>
    %26 = vector.shape_cast %23 : vector<1x128xf32> to vector<1x1x128xf32>
    tpu.vector_store %arg3[%c3, %c0_10, %c0_11], %26 {strides = array<i32>} : memref<4x1x128xf32, #tpu.memory_space<vmem>>, vector<1x1x128xf32>,
    return
  }
  func.func @transform_0(%arg0: i32) -> (i32, i32) {
    %c0_i32 = arith.constant 0 : i32
    %c0_i32_0 = arith.constant 0 : i32
    %c0_i32_1 = arith.constant 0 : i32
    return %c0_i32, %c0_i32_0 : i32, i32
  }
  func.func @transform_1(%arg0: i32) -> (i32, i32) {
    %c0_i32 = arith.constant 0 : i32
    %c0_i32_0 = arith.constant 0 : i32
    %c0_i32_1 = arith.constant 0 : i32
    return %c0_i32, %c0_i32_0 : i32, i32
  }
  func.func @transform_2(%arg0: i32) -> (i32, i32, i32) {
    %c0_i32 = arith.constant 0 : i32
    %c0_i32_0 = arith.constant 0 : i32
    %c0_i32_1 = arith.constant 0 : i32
    %c0_i32_2 = arith.constant 0 : i32
    return %c0_i32, %c0_i32_0, %c0_i32_1 : i32, i32, i32
  }
}

</mosaic_0001>

<bundles_post_ra>
// kernel: cnn_autoencoder_forward.12
= control target key start
LH: loop header
LB: loop body
LE: loop exit
PB: predicated region body
PF: predicated region fallthrough
CT: control target
= control target key end

     0   :  { %v43_v5 = vmov 0   ;;  %s92_s0 = inlined_call_operand.vmem [shape: f32[1,128], index: 0, kind: input, shape index: {}]   ;;  %s93_s1 = inlined_call_operand.vmem [shape: f32[1,128], index: 1, kind: input, shape index: {}]   ;;  %s94_s2 = inlined_call_operand.vmem [shape: f32[1,128], index: 2, kind: input, shape index: {}]   ;;  %s95_s3 = inlined_call_operand.vmem [shape: f32[1,128], index: 3, kind: input, shape index: {}]   ;;  %s96_s4 = inlined_call_operand.vmem [shape: f32[1,128], index: 4, kind: output, shape index: {0}]   ;;  %s97_s5 = inlined_call_operand.vmem [shape: s32[1,128], index: 5, kind: output, shape index: {1}]  }
   0x1   :  { %v19_v0 = vld [vmem:[%s92_s0] sm:$0x1] }
   0x2   :  { %v20_v1 = vld [vmem:[%s93_s1] sm:$0x1] }
   0x3   :  { %v21_v2 = vld [vmem:[%s94_s2] sm:$0x1]  ;;  %vm23_vm0 = vcmp.gt.f32.partialorder %v20_v1, %v19_v0 }
   0x4   :  { %v22_v3 = vld [vmem:[%s95_s3] sm:$0x1]  ;;  %v24_v4 = vsel %vm23_vm0, %v20_v1, %v19_v0  ;;  %v25_v6 = vsel %vm23_vm0, 1, %v43_v5 }
   0x5   :  { %vm26_vm1 = vcmp.gt.f32.partialorder %v21_v2, %v24_v4 }
   0x6   :  { %v27_v7 = vsel %vm26_vm1, %v21_v2, %v24_v4  ;;  %v28_v8 = vsel %vm26_vm1, 2, %v25_v6 }
   0x7   :  { %vm29_vm2 = vcmp.gt.f32.partialorder %v22_v3, %v27_v7 }
   0x8   :  { %v30_v9 = vsel %vm29_vm2, %v22_v3, %v27_v7  ;;  %v31_v10 = vsel %vm29_vm2, 3, %v28_v8 }
   0x9   :  { %32 = vst [vmem:[%s96_s4] sm:$0x1] %v30_v9  ;;  %33 = vst [vmem:[%s97_s5] sm:$0x1] %v31_v10 }

// kernel: cnn_autoencoder_forward.14
= control target key start
LH: loop header
LB: loop body
LE: loop exit
PB: predicated region body
PF: predicated region fallthrough
CT: control target
= control target key end

     0   :  { %9 = vsyncpa [#allocation3], 0  ;;  %s1109_s0 = inlined_call_operand.vmem [shape: bf16[2,768], index: 0, kind: input, shape index: {}]   ;;  %s1110_s1 = inlined_call_operand.hbm [shape: bf16[1,768,128], index: 1, kind: input, shape index: {}]   ;;  %s1111_s2 = inlined_call_operand.hbm [shape: f32[3,128], index: 2, kind: input, shape index: {}]   ;;  %s1112_s3 = inlined_call_operand.vmem [shape: f32[1,2], index: 3, kind: input, shape index: {}]   ;;  %s1113_s4 = inlined_call_operand.vmem [shape: bf16[2,128], index: 4, kind: output, shape index: {}]  }
   0x1   :  { %10 = vsyncpa [#allocation5], 0  ;;  %s1038_s15 = smov [#allocation2]   ;;  %s990_s19 = scalar_lea.hbm %s1110_s1, 6144 }
   0x2   :  { %s18_s16 = sshll.u32 %s1038_s15, 4  ;;  %p991_p0 = scmp.ne.s32.totalorder %s1110_s1, %s990_s19  ;;  %s19_s16 = int_to_ptr.vmem [resolvable:$true] %s18_s16 }
   0x3   :  { %p994_p1 = scmp.lt.u32.totalorder %s990_s19, %s1110_s1 }
   0x5   :  { %p996_p2 = pnand %p994_p1, %p991_p0 }
   0x7   :  { %999 = shalt.err (!%p996_p2)
}
   0x8   :  { %s1000_s24 = scalar_lea.vmem %s19_s16, 6144  ;;  %p1005_p4 = scmp.lt.s32.totalorder %s19_s16, %s19_s16 }
   0x9   :  { %p1001_p3 = scmp.ne.s32.totalorder %s19_s16, %s1000_s24  ;;  %p1006_p5 = scmp.lt.s32.totalorder %s1000_s24, %s1000_s24 }
   0xb   :  { %p1007_p6 = por %p1006_p5, %p1005_p4 }
   0xd   :  { %p1008_p7 = pnand %p1007_p6, %p1001_p3 }
   0xf   :  { %1011 = shalt.err (!%p1008_p7)
}
  0x10   :  { %s1039_s25 = smov 64   ;;  %s1040_s26 = smov 4  }
  0x11   :  { %24 = dma.hbm_to_vmem [thread:$0]  %s1110_s1, 6144, %s19_s16, [#allocation3], %s1039_s25, %s1039_s25, %s1040_s26  }
  0x12   :  { %s1041_s29 = smov [#allocation4]   ;;  %s1012_s7 = scalar_lea.hbm %s1111_s2, 64 }
  0x13   :  { %s31_s30 = sshll.u32 %s1041_s29, 4  ;;  %p1013_p8 = scmp.ne.s32.totalorder %s1111_s2, %s1012_s7  ;;  %s32_s30 = int_to_ptr.vmem [resolvable:$true] %s31_s30 }
  0x14   :  { %p1016_p9 = scmp.lt.u32.totalorder %s1012_s7, %s1111_s2 }
  0x16   :  { %p1018_p10 = pnand %p1016_p9, %p1013_p8 }
  0x18   :  { %1021 = shalt.err (!%p1018_p10)
}
  0x19   :  { %s1022_s12 = scalar_lea.vmem %s32_s30, 64  ;;  %p1027_p12 = scmp.lt.s32.totalorder %s32_s30, %s32_s30 }
  0x1a   :  { %p1023_p11 = scmp.ne.s32.totalorder %s32_s30, %s1022_s12  ;;  %p1028_p13 = scmp.lt.s32.totalorder %s1022_s12, %s1022_s12 }
  0x1c   :  { %p1029_p0 = por %p1028_p13, %p1027_p12 }
  0x1e   :  { %p1030_p1 = pnand %p1029_p0, %p1023_p11 }
  0x20   :  { %1033 = shalt.err (!%p1030_p1)
}
  0x21   :  { %34 = dma.hbm_to_vmem [thread:$0]  %s1111_s2, 64, %s32_s30, [#allocation5]  }
  0x22   :  { %1034 = dma.done.wait [#allocation3], 6144  }
  0x23   :  { %1035 = vsyncadd [#allocation3], 4294961152 }
  0x24   :  { %1036 = dma.done.wait [#allocation5], 64  }
  0x25   :  { %1037 = vsyncadd [#allocation5], 4294967232  ;;  %v939_v0 = vld [vmem:[#allocation2 + $0x40] sm:$0xff]   ;;  %v943_v4 = vld [vmem:[#allocation2 + $0x48] sm:$0xff]   ;;  %v1042_v21 = vmov 1966171168   ;;  %v151_v23 = vlaneseq }
  0x26   :  { %v940_v1 = vld [vmem:[#allocation2] sm:$0xff]   ;;  %852 = vmatprep.subr.bf16.mxu0 %v939_v0  ;;  %v944_v5 = vld [vmem:[#allocation2 + $0x8] sm:$0xff]   ;;  %v947_v8 = vld [vmem:[#allocation2 + $0x50] sm:$0xff]   ;;  %v149_v22 = vunpack.c.l.s4 %v1042_v21  ;;  %vm1044_vm0 = vmmov 0   ;;  %vm613_vm1 = vcmask 1041408   ;;  %vm609_vm2 = vcmask 15360  }
  0x27   :  { %v941_v2 = vld [vmem:[#allocation2 + $0xc0] sm:$0xff]   ;;  %853 = vmatpush3.bf16.msra.mxu0 %v940_v1  ;;  %v945_v6 = vld [vmem:[#allocation2 + $0xc8] sm:$0xff]   ;;  %v948_v9 = vld [vmem:[#allocation2 + $0x10] sm:$0xff]   ;;  %v1094_v29 = vshrl.u32 %v151_v23, 7 }
  0x28   :  { %v942_v3 = vld [vmem:[#allocation2 + $0x80] sm:$0xff]   ;;  %874 = vmatprep.subr.bf16.mxu1 %v941_v2  ;;  %854 = vmatprep.subr.bf16.mxu0 %v943_v4  ;;  %v946_v7 = vld [vmem:[#allocation2 + $0x88] sm:$0xff]   ;;  %v949_v10 = vld [vmem:[#allocation2 + $0xd0] sm:$0xff]   ;;  %v150_v28 = vunpack.c.0.s8 %v149_v22  ;;  %v1043_v2 = vmov 0.0  }
  0x29   :  { %875 = vmatpush3.bf16.msra.mxu1 %v942_v3  ;;  %v950_v11 = vld [vmem:[#allocation2 + $0x90] sm:$0xff]   ;;  %v951_v12 = vld [vmem:[#allocation2 + $0x58] sm:$0xff]   ;;  %v955_v16 = vld [vmem:[#allocation2 + $0x60] sm:$0xff]  }
  0x2a   :  { %876 = vmatprep.subr.bf16.mxu1 %v945_v6  ;;  %v952_v13 = vld [vmem:[#allocation2 + $0x18] sm:$0xff]   ;;  %v956_v17 = vld [vmem:[#allocation2 + $0x20] sm:$0xff]   ;;  %v959_v20 = vld [vmem:[#allocation2 + $0x68] sm:$0xff]   ;;  %v153_v34 = vsub.s32 %v150_v28, %v1094_v29 }
  0x2b   :  { %855 = vmatpush3.bf16.msra.mxu0 %v944_v5  ;;  %v953_v14 = vld [vmem:[#allocation2 + $0xd8] sm:$0xff]   ;;  %v957_v18 = vld [vmem:[#allocation2 + $0xe0] sm:$0xff]   ;;  %v960_v24 = vld [vmem:[#allocation2 + $0x28] sm:$0xff]  }
  0x2c   :  { %856 = vmatprep.subr.bf16.mxu0 %v947_v8  ;;  %v954_v15 = vld [vmem:[#allocation2 + $0x98] sm:$0xff]   ;;  %v958_v19 = vld [vmem:[#allocation2 + $0xa0] sm:$0xff]   ;;  %v961_v25 = vld [vmem:[#allocation2 + $0xe8] sm:$0xff]  }
  0x2d   :  { %877 = vmatpush3.bf16.msra.mxu1 %v946_v7  ;;  %v962_v26 = vld [vmem:[#allocation2 + $0xa8] sm:$0xff]   ;;  %v963_v27 = vld [vmem:[#allocation2 + $0x70] sm:$0xff]   ;;  %v967_v33 = vld [vmem:[#allocation2 + $0x78] sm:$0xff]  }
  0x2e   :  { %878 = vmatprep.subr.bf16.mxu1 %v949_v10  ;;  %v964_v30 = vld [vmem:[#allocation2 + $0x30] sm:$0xff]   ;;  %v968_v35 = vld [vmem:[#allocation2 + $0x38] sm:$0xff]   ;;  %v44_v37 = vld [vmem:[%s1109_s0] sm:$0x3f] }
  0x2f   :  { %857 = vmatpush3.bf16.msra.mxu0 %v948_v9  ;;  %v965_v31 = vld [vmem:[#allocation2 + $0xf0] sm:$0xff]   ;;  %v969_v36 = vld [vmem:[#allocation2 + $0xf8] sm:$0xff]   ;;  %v147_v38 = vcombine.high %v44_v37, %v44_v37  ;;  %v154_v39 = vrot.slane %v44_v37, %v153_v34  ;;  %v972_v41 = vld [vmem:[#allocation2 + $0x140] sm:$0xff]  }
  0x30   :  { %858 = vmatprep.subr.bf16.mxu0 %v951_v12  ;;  %v966_v32 = vld [vmem:[#allocation2 + $0xb0] sm:$0xff]   ;;  %v971_v40 = vld [vmem:[#allocation2 + $0xb8] sm:$0xff]   ;;  %v973_v46 = vld [vmem:[#allocation2 + $0x100] sm:$0xff]  }
  0x31   :  { %879 = vmatpush3.bf16.msra.mxu1 %v950_v11  ;;  %v162_v42 = vcombine.high %v154_v39, %v154_v39  ;;  %v170_v43 = vrot.slane %v154_v39, %v153_v34  ;;  %v161_v44 = vrot.slane %v147_v38, %v153_v34  ;;  %v974_v49 = vld [vmem:[#allocation2 + $0x148] sm:$0xff]   ;;  %v976_v53 = vld [vmem:[#allocation2 + $0x150] sm:$0xff]   ;;  %v978_v55 = vld [vmem:[#allocation2 + $0x158] sm:$0xff]  }
  0x32   :  { %880 = vmatprep.subr.bf16.mxu1 %v953_v14  ;;  %v975_v52 = vld [vmem:[#allocation2 + $0x108] sm:$0xff]   ;;  %v977_v54 = vld [vmem:[#allocation2 + $0x110] sm:$0xff]   ;;  %v979_v56 = vld [vmem:[#allocation2 + $0x118] sm:$0xff]  }
  0x33   :  { %859 = vmatpush3.bf16.msra.mxu0 %v952_v13  ;;  %v184_v45 = vrot.slane %v162_v42, %v153_v34  ;;  %v163_v47 = vcombine.high %v161_v44, %v161_v44  ;;  %v192_v48 = vcombine.high %v170_v43, %v170_v43  ;;  %v980_v57 = vld [vmem:[#allocation2 + $0x160] sm:$0xff]   ;;  %v982_v59 = vld [vmem:[#allocation2 + $0x168] sm:$0xff]   ;;  %v984_v61 = vld [vmem:[#allocation2 + $0x170] sm:$0xff]   ;;  %v177_v1 = vrot.slane %v161_v44, %v153_v34 }
  0x34   :  { %860 = vmatprep.subr.bf16.mxu0 %v955_v16  ;;  %v981_v58 = vld [vmem:[#allocation2 + $0x120] sm:$0xff]   ;;  %v983_v60 = vld [vmem:[#allocation2 + $0x128] sm:$0xff]   ;;  %v985_v62 = vld [vmem:[#allocation2 + $0x130] sm:$0xff]  }
  0x35   :  { %881 = vmatpush3.bf16.msra.mxu1 %v954_v15  ;;  %520 = vmatprep.mubr.bf16.mxu0 %v184_v45  ;;  %v193_v50 = vcombine.high %v184_v45, %v184_v45  ;;  %v191_v51 = vrot.slane %v163_v47, %v153_v34  ;;  %v986_v63 = vld [vmem:[#allocation2 + $0x178] sm:$0xff]   ;;  %v797_v4 = vld [vmem:[#allocation4] ss:$0 sm:$0xff]  ;;  %v850_v38 = vld [vmem:[#allocation4 + $0x1] ss:$0 sm:$0xff] }
  0x36   :  { %882 = vmatprep.subr.bf16.mxu1 %v957_v18  ;;  %v987_v0 = vld [vmem:[#allocation2 + $0x138] sm:$0xff]   ;;  %v608_v22 = vld [vmem:[%s1112_s3] sm:$0x1] }
  0x37   :  { %861 = vmatpush3.bf16.msra.mxu0 %v956_v17  ;;  %560 = vmatprep.mubr.bf16.mxu1 %v193_v50 }
  0x38   :  { %862 = vmatprep.subr.bf16.mxu0 %v959_v20 }
  0x39   :  { %883 = vmatpush3.bf16.msra.mxu1 %v958_v19 }
  0x3a   :  { %884 = vmatprep.subr.bf16.mxu1 %v961_v25 }
  0x3b   :  { %863 = vmatpush3.bf16.msra.mxu0 %v960_v24 }
  0x3c   :  { %864 = vmatprep.subr.bf16.mxu0 %v963_v27 }
  0x3d   :  { %885 = vmatpush3.bf16.msra.mxu1 %v962_v26 }
  0x3e   :  { %886 = vmatprep.subr.bf16.mxu1 %v965_v31 }
  0x3f   :  { %865 = vmatpush3.bf16.msra.mxu0 %v964_v30 }
  0x40   :  { %866 = vmatprep.subr.bf16.mxu0 %v967_v33  ;;  %v766_v33 = vsub.s32 0, %v1094_v29 }
  0x41   :  { %887 = vmatpush3.bf16.msra.mxu1 %v966_v32 }
  0x42   :  { %888 = vmatprep.subr.bf16.mxu1 %v969_v36 }
  0x43   :  { %867 = vmatpush3.bf16.msra.mxu0 %v968_v35 }
  0x44   :  { %896 = vmatprep.subr.bf16.mxu0 %v972_v41 }
  0x45   :  { %889 = vmatpush3.bf16.msra.mxu1 %v971_v40  ;;  %v851_v40 = vld [vmem:[#allocation4 + $0x2] ss:$0 sm:$0xff] }
  0x46   :  { %521 = vmatmul.mubr.bf16.vlgmr.msra.gmra.mrb[0].mxu0 %v170_v43  ;;  %922 = vmatprep.subr.mxu1 %v1043_v2 }
  0x47   :  { %897 = vmatpush3.bf16.msra.mxu0 %v973_v46  ;;  %600 = vmatprep.mubr.bf16.mxu0 %v191_v51 }
  0x48   :  { %561 = vmatmul.mubr.bf16.vlgmr.msra.gmra.mrb[0].mxu1 %v192_v48  ;;  %898 = vmatprep.subr.bf16.mxu0 %v974_v49 }
  0x49   :  { %924 = vmatprep.mubr.msk.f32.mxu1 %vm1044_vm0, %v1043_v2 }
  0x4b   :  { %899 = vmatpush3.bf16.msra.mxu0 %v975_v52 }
  0x4c   :  { %900 = vmatprep.subr.bf16.mxu0 %v976_v53 }
  0x4f   :  { %901 = vmatpush3.bf16.msra.mxu0 %v977_v54 }
  0x50   :  { %902 = vmatprep.subr.bf16.mxu0 %v978_v55 }
  0x53   :  { %903 = vmatpush3.bf16.msra.mxu0 %v979_v56 }
  0x54   :  { %904 = vmatprep.subr.bf16.mxu0 %v980_v57 }
  0x57   :  { %905 = vmatpush3.bf16.msra.mxu0 %v981_v58 }
  0x58   :  { %906 = vmatprep.subr.bf16.mxu0 %v982_v59 }
  0x5b   :  { %907 = vmatpush3.bf16.msra.mxu0 %v983_v60 }
  0x5c   :  { %908 = vmatprep.subr.bf16.mxu0 %v984_v61 }
  0x5f   :  { %909 = vmatpush3.bf16.msra.mxu0 %v985_v62 }
  0x60   :  { %910 = vmatprep.subr.bf16.mxu0 %v986_v63 }
  0x63   :  { %911 = vmatpush3.bf16.msra.mxu0 %v987_v0 }
  0x66   :  { %601 = vmatmul.mubr.bf16.vlgmr.msra.gmra.mrb[4].mxu0 %v177_v1 }
 0x119   :  { %v868_v3 = vpop.f32.mrb[0].mxu0 }
 0x11a   :  { %v869_v5 = vpop.f32.mrb[1].mxu0 }
 0x11b   :  { %v870_v6 = vadd.f32 %v869_v5, %v868_v3  ;;  %v871_v7 = vpop.f32.mrb[2].mxu0  ;;  %v890_v8 = vpop.f32.mrb[0].mxu1 }
 0x11c   :  { %v872_v9 = vpop.f32.mrb[3].mxu0  ;;  %v891_v10 = vpop.f32.mrb[1].mxu1 }
 0x11d   :  { %v523_v11 = vadd.f32 %v870_v6, %v797_v4  ;;  %v892_v12 = vadd.f32 %v891_v10, %v890_v8  ;;  %v893_v13 = vpop.f32.mrb[2].mxu1 }
 0x11e   :  { %v894_v14 = vpop.f32.mrb[3].mxu1 }
 0x11f   :  { %v563_v15 = vadd.f32 %v892_v12, %v523_v11 }
 0x139   :  { %v912_v16 = vpop.f32.mrb[4].mxu0 }
 0x13a   :  { %v913_v17 = vpop.f32.mrb[5].mxu0 }
 0x13b   :  { %v914_v18 = vadd.f32 %v913_v17, %v912_v16  ;;  %v915_v19 = vpop.f32.mrb[6].mxu0 }
 0x13c   :  { %v916_v20 = vpop.f32.mrb[7].mxu0 }
 0x13d   :  { %v603_v21 = vadd.f32 %v914_v18, %v563_v15 }
 0x13f   :  { %v687_v23 = vmul.f32 %v603_v21, %v603_v21  ;;  %923 = vmatpush3.msk.msra.mxu1 %vm613_vm1, %v603_v21 }
 0x140   :  { %925 = vmatmul.mubr.msk.f32.vlgmr.msra.gmra.mrb[4].mxu1 %vm609_vm2, %v608_v22  ;;  %927 = vmatprep.subr.mxu1 %v1043_v2 }
 0x141   :  { %928 = vmatpush3.msk.msra.mxu1 %vm613_vm1, %v687_v23  ;;  %929 = vmatprep.mubr.msk.f32.mxu1 %vm1044_vm0, %v1043_v2 }
 0x144   :  { %930 = vmatmul.mubr.msk.f32.vlgmr.msra.gmra.mrb[6].mxu1 %vm609_vm2, %v608_v22 }
 0x213   :  { %v683_v24 = vpop.f32.mrb[4].mxu1 }
 0x214   :  { %v926_v25 = vpop.f32.mrb[5].mxu1  ;;  %v761_v26 = vmul.f32 %v683_v24, %v683_v24  ;;  %v767_v34 = vrot.slane %v683_v24, %v766_v33 }
 0x216   :  { %v768_v36 = vsub.f32 %v603_v21, %v767_v34 }
 0x217   :  { %v757_v27 = vpop.f32.mrb[6].mxu1 }
 0x218   :  { %v762_v28 = vsub.f32 %v757_v27, %v761_v26  ;;  %v931_v30 = vpop.f32.mrb[7].mxu1 }
 0x21a   :  { %v763_v31 = vmax.f32 %v762_v28, 0.0 }
 0x21c   :  { %v769_v32 = vadd.f32 1e-05, %v763_v31 }
 0x21e   :  { %988 = vrsqrt.f32 %v769_v32 }
 0x228   :  { %v989_v35 = vpop.eup %988 }
 0x229   :  { %v774_v37 = vrot.slane %v989_v35, %v766_v33 }
 0x22b   :  { %v775_v39 = vmul.f32 %v774_v37, %v768_v36 }
 0x22d   :  { %v781_v41 = vmul.f32 %v850_v38, %v775_v39 }
 0x22f   :  { %v787_v42 = vadd.f32 %v851_v40, %v781_v41 }
 0x231   :  { %v788_v43 = vmax.f32 %v787_v42, 0.0 }
 0x233   :  { %v789_v44 = vpack.c.bf16 %v788_v43, %v788_v43 }
 0x235   :  { %790 = vst [vmem:[%s1113_s4] sm:$0x1] %v789_v44 }
 0x236   :  { %795 = vsyncpa [#allocation3], 1 }
 0x237   :  { %796 = vsyncpa [#allocation5], 1 }

// kernel: cnn_autoencoder_forward.13
= control target key start
LH: loop header
LB: loop body
LE: loop exit
PB: predicated region body
PF: predicated region fallthrough
CT: control target
= control target key end

     0   :  { %9 = vsyncpa [#allocation3], 0  ;;  %s2830_s15 = smov [#allocation2]   ;;  %s3564_s0 = inlined_call_operand.vmem [shape: bf16[86,128], index: 0, kind: input, shape index: {}]   ;;  %s3565_s1 = inlined_call_operand.vmem [shape: bf16[9,128,128], index: 1, kind: input, shape index: {}]   ;;  %s3566_s2 = inlined_call_operand.hbm [shape: f32[3,128], index: 2, kind: input, shape index: {}]   ;;  %s3567_s3 = inlined_call_operand.vmem [shape: f32[1,72], index: 3, kind: input, shape index: {}]   ;;  %s3568_s4 = inlined_call_operand.vmem [shape: bf16[72,128], index: 4, kind: output, shape index: {}]  }
   0x1   :  { %s20_s16 = sshll.u32 %s2830_s15, 4  ;;  %s2806_s19 = scalar_lea.hbm %s3566_s2, 64  ;;  %s21_s16 = int_to_ptr.vmem [resolvable:$true] %s20_s16 }
   0x2   :  { %p2807_p0 = scmp.ne.s32.totalorder %s3566_s2, %s2806_s19  ;;  %p2810_p1 = scmp.lt.u32.totalorder %s2806_s19, %s3566_s2 }
   0x4   :  { %p2812_p2 = pnand %p2810_p1, %p2807_p0 }
   0x6   :  { %2815 = shalt.err (!%p2812_p2)
}
   0x7   :  { %s2816_s24 = scalar_lea.vmem %s21_s16, 64  ;;  %p2821_p4 = scmp.lt.s32.totalorder %s21_s16, %s21_s16 }
   0x8   :  { %p2817_p3 = scmp.ne.s32.totalorder %s21_s16, %s2816_s24  ;;  %p2822_p5 = scmp.lt.s32.totalorder %s2816_s24, %s2816_s24 }
   0xa   :  { %p2823_p6 = por %p2822_p5, %p2821_p4 }
   0xc   :  { %p2824_p7 = pnand %p2823_p6, %p2817_p3 }
   0xe   :  { %2827 = shalt.err (!%p2824_p7)
}
   0xf   :  { %23 = dma.hbm_to_vmem [thread:$0]  %s3566_s2, 64, %s21_s16, [#allocation3]  }
  0x10   :  { %2828 = dma.done.wait [#allocation3], 64  }
  0x11   :  { %2829 = vsyncadd [#allocation3], 4294967232  ;;  %v2831_v0 = vmov 0.0   ;;  %vm2832_vm0 = vmmov 0   ;;  %v2710_v1 = vld [vmem:[%s3565_s1 + $0x40] sm:$0xff]   ;;  %v2712_v3 = vld [vmem:[%s3565_s1 + $0x48] sm:$0xff]  }
  0x12   :  { %2316 = vmatprep.subr.bf16.mxu0 %v2831_v0  ;;  %2352 = vmatprep.subr.bf16.mxu1 %v2831_v0  ;;  %v2711_v2 = vld [vmem:[%s3565_s1] sm:$0xff]   ;;  %v2713_v4 = vld [vmem:[%s3565_s1 + $0x8] sm:$0xff]   ;;  %v2714_v5 = vld [vmem:[%s3565_s1 + $0x50] sm:$0xff]   ;;  %vm98_vm1 = vsmask.f32 7424  ;;  %vm410_vm3 = vcmask 1046528  }
  0x13   :  { %2332 = vmatprep.mubr.msk.bf16.mxu0 %vm2832_vm0, %v2831_v0  ;;  %2368 = vmatprep.mubr.msk.bf16.mxu1 %vm2832_vm0, %v2831_v0  ;;  %v2715_v6 = vld [vmem:[%s3565_s1 + $0x10] sm:$0xff]   ;;  %v2716_v7 = vld [vmem:[%s3565_s1 + $0x58] sm:$0xff]   ;;  %v2718_v9 = vld [vmem:[%s3565_s1 + $0x60] sm:$0xff]   ;;  %vm744_vm2 = vsmask.f32 4352  ;;  %vm579_vm4 = vcmask 1044480  }
  0x14   :  { %2317 = vmatpush3.bf16.msra.mxu0 %v2710_v1  ;;  %2353 = vmatpush3.bf16.msra.mxu1 %v2711_v2  ;;  %v2717_v8 = vld [vmem:[%s3565_s1 + $0x18] sm:$0xff]   ;;  %v2719_v10 = vld [vmem:[%s3565_s1 + $0x20] sm:$0xff]   ;;  %v2926_v13 = vld [vmem:[%s3564_s0 + $0x8] sm:$0xf]  ;;  %vm1116_vm5 = vcmask 1045504   ;;  %vm1639_vm7 = vcmask 588800  }
  0x15   :  { %2318 = vmatprep.subr.bf16.mxu0 %v2831_v0  ;;  %2354 = vmatprep.subr.bf16.mxu1 %v2831_v0  ;;  %v30_v11 = vld [vmem:[%s3564_s0] sm:$0xf]  ;;  %v2921_v12 = vld [vmem:[%s3564_s0 + $0x4] sm:$0xf]  ;;  %v2931_v14 = vld [vmem:[%s3564_s0 + $0xc] sm:$0xf] }
  0x16   :  { %v1927_v15 = vcombine.low %v30_v11, %v2921_v12  ;;  %v2937_v16 = vld [vmem:[%s3564_s0 + $0x10] sm:$0xf]  ;;  %v2041_v17 = vcombine.low %v2921_v12, %v2926_v13  ;;  %v2720_v18 = vld [vmem:[%s3565_s1 + $0x68] sm:$0xff]   ;;  %v2946_v19 = vcombine.low %v2926_v13, %v2931_v14  ;;  %v2967_v31 = vld [vmem:[%s3564_s0 + $0x14] sm:$0xf] }
  0x17   :  { %v2042_v20 = vcombine.low %v2931_v14, %v2937_v16  ;;  %v2721_v21 = vld [vmem:[%s3565_s1 + $0x28] sm:$0xff]   ;;  %v2722_v25 = vld [vmem:[%s3565_s1 + $0x70] sm:$0xff]   ;;  %v2973_v32 = vld [vmem:[%s3564_s0 + $0x18] sm:$0xf]  ;;  %v2984_v38 = vcombine.low %v2937_v16, %v2967_v31  ;;  %vm1281_vm6 = vsmask.f32 5376 }
  0x18   :  { %2319 = vmatpush3.bf16.msra.mxu0 %v2712_v3  ;;  %2355 = vmatpush3.bf16.msra.mxu1 %v2713_v4  ;;  %v102_v22 = vshll.u32 %v1927_v15, 16  ;;  %v107_v23 = vshll.u32 %v2946_v19, 16  ;;  %v111_v24 = vshrl.u32 %v2946_v19, 16  ;;  %v100_v26 = vshrl.u32 %v1927_v15, 16  ;;  %v2723_v30 = vld [vmem:[%s3565_s1 + $0x30] sm:$0xff]   ;;  %v2724_v35 = vld [vmem:[%s3565_s1 + $0x78] sm:$0xff]  }
  0x19   :  { %2320 = vmatprep.subr.bf16.mxu0 %v2831_v0  ;;  %2356 = vmatprep.subr.bf16.mxu1 %v2831_v0  ;;  %v2043_v34 = vcombine.low %v2967_v31, %v2973_v32  ;;  %v2725_v39 = vld [vmem:[%s3565_s1 + $0x38] sm:$0xff]   ;;  %v2999_v41 = vld [vmem:[%s3564_s0 + $0x20] sm:$0xf]  ;;  %v115_v44 = vshll.u32 %v2984_v38, 16  ;;  %v2731_v50 = vld [vmem:[%s3565_s1 + $0x88] sm:$0xff]   ;;  %v119_v52 = vshrl.u32 %v2984_v38, 16 }
  0x1a   :  { %v104_v27 = vrot.slane %v102_v22, 1  ;;  %v754_v28 = vrot.slane %v107_v23, 4  ;;  %v753_v29 = vrot.slane %v111_v24, 3  ;;  %v109_v37 = vrot.slane %v107_v23, 1  ;;  %v2994_v40 = vld [vmem:[%s3564_s0 + $0x1c] sm:$0xf] }
  0x1b   :  { %v2044_v42 = vcombine.low %v2994_v40, %v2999_v41  ;;  %v2729_v45 = vld [vmem:[%s3565_s1 + $0x80] sm:$0xff]   ;;  %v117_v48 = vrot.slane %v115_v44, 1  ;;  %v3017_v49 = vcombine.low %v2973_v32, %v2994_v40  ;;  %v2732_v51 = vld [vmem:[%s3565_s1 + $0xc8] sm:$0xff]   ;;  %v2734_v55 = vld [vmem:[%s3565_s1 + $0x90] sm:$0xff]   ;;  %v757_v1 = vrot.slane %v119_v52, 3 }
  0x1c   :  { %2321 = vmatpush3.bf16.msra.mxu0 %v2714_v5  ;;  %2357 = vmatpush3.bf16.msra.mxu1 %v2715_v6  ;;  %v2975_v33 = vor.u32 %v754_v28, %v753_v29  ;;  %v105_v36 = vor.u32 %v104_v27, %v100_v26  ;;  %v2730_v46 = vld [vmem:[%s3565_s1 + $0xc0] sm:$0xff]   ;;  %v113_v47 = vor.u32 %v111_v24, %v109_v37  ;;  %v2735_v57 = vld [vmem:[%s3565_s1 + $0xd0] sm:$0xff]   ;;  %v2736_v61 = vld [vmem:[%s3565_s1 + $0x98] sm:$0xff]   ;;  %v758_v4 = vrot.slane %v115_v44, 4 }
  0x1d   :  { %2322 = vmatprep.subr.bf16.mxu0 %v2831_v0  ;;  %2358 = vmatprep.subr.bf16.mxu1 %v2831_v0  ;;  %v123_v54 = vshll.u32 %v3017_v49, 16  ;;  %v55_v56 = vld [vmem:[%s3564_s0 + $0x24] sm:$0x1]  ;;  %v121_v58 = vor.u32 %v119_v52, %v117_v48  ;;  %v2737_v62 = vld [vmem:[%s3565_s1 + $0xd8] sm:$0xff]   ;;  %v127_v63 = vshrl.u32 %v3017_v49, 16  ;;  %v2742_v22 = vld [vmem:[%s3565_s1 + $0xe8] sm:$0xff]  }
  0x1e   :  { %v110_v43 = vsel %vm98_vm1, %v105_v36, %v109_v37  ;;  %v118_v53 = vsel %vm98_vm1, %v113_v47, %v117_v48  ;;  %v3047_v60 = vcombine.low %v2999_v41, %v55_v56  ;;  %v2739_v5 = vld [vmem:[%s3565_s1 + $0xa0] sm:$0xff]   ;;  %v2745_v26 = vld [vmem:[%s3565_s1 + $0xf0] sm:$0xff]   ;;  %v2746_v28 = vld [vmem:[%s3565_s1 + $0xb8] sm:$0xff]   ;;  %v412_v48 = vrot.slane %v2946_v19, 1 }
  0x1f   :  { %v125_v59 = vrot.slane %v123_v54, 1  ;;  %v761_v6 = vrot.slane %v127_v63, 3  ;;  %v389_v29 = vld [vmem:[%s3564_s0] sm:$0xe]  ;;  %v3122_v37 = vld [vmem:[%s3564_s0 + $0x24] sm:$0xf] }
  0x20   :  { %2323 = vmatpush3.bf16.msra.mxu0 %v2716_v7  ;;  %2359 = vmatpush3.bf16.msra.mxu1 %v2717_v8  ;;  %v131_v3 = vshll.u32 %v3047_v60, 16  ;;  %v2740_v7 = vld [vmem:[%s3565_s1 + $0xe0] sm:$0xff]   ;;  %v759_v8 = vor.u32 %v758_v4, %v757_v1  ;;  %v135_v27 = vshrl.u32 %v3047_v60, 16  ;;  %v2753_v1 = vld [vmem:[%s3565_s1 + $0x148] sm:$0xff]   ;;  %v2755_v4 = vld [vmem:[%s3565_s1 + $0x150] sm:$0xff]  }
  0x21   :  { %2324 = vmatprep.subr.bf16.mxu0 %v2831_v0  ;;  %2360 = vmatprep.subr.bf16.mxu1 %v2831_v0  ;;  %v126_v2 = vsel %vm98_vm1, %v121_v58, %v125_v59  ;;  %v2750_v58 = vld [vmem:[%s3565_s1 + $0x100] sm:$0xff]   ;;  %v2775_v13 = vld [vmem:[%s3565_s1 + $0x1d0] sm:$0xff]   ;;  %v3326_v32 = vld [vmem:[%s3564_s0 + $0x8] sm:$0xf] }
  0x22   :  { %v133_v11 = vrot.slane %v131_v3, 1  ;;  %v2779_v14 = vld [vmem:[%s3565_s1 + $0x1a0] sm:$0xff]   ;;  %v2788_v40 = vld [vmem:[%s3565_s1 + $0x1f8] sm:$0xff]  }
  0x23   :  { %v2781_v16 = vld [vmem:[%s3565_s1 + $0x1e0] sm:$0xff]  }
  0x24   :  { %2325 = vmatpush3.bf16.msra.mxu0 %v2718_v9  ;;  %2361 = vmatpush3.bf16.msra.mxu1 %v2719_v10  ;;  %v762_v9 = vrot.slane %v123_v54, 4  ;;  %v129_v10 = vor.u32 %v127_v63, %v125_v59  ;;  %v137_v36 = vor.u32 %v135_v27, %v133_v11  ;;  %v2751_v59 = vld [vmem:[%s3565_s1 + $0x140] sm:$0xff]   ;;  %v2752_v63 = vld [vmem:[%s3565_s1 + $0x108] sm:$0xff]  }
  0x25   :  { %2326 = vmatprep.subr.bf16.mxu0 %v2831_v0  ;;  %2362 = vmatprep.subr.bf16.mxu1 %v2831_v0  ;;  %v1064_v31 = vld [vmem:[%s3564_s0 + $0x4] sm:$0xc] }
  0x26   :  { %v134_v24 = vsel %vm98_vm1, %v129_v10, %v133_v11  ;;  %v2758_v11 = vld [vmem:[%s3565_s1 + $0x120] sm:$0xff]  }
  0x28   :  { %2327 = vmatpush3.bf16.msra.mxu0 %v2720_v18  ;;  %2363 = vmatpush3.bf16.msra.mxu1 %v2721_v21  ;;  %v763_v18 = vor.u32 %v762_v9, %v761_v6  ;;  %v2741_v21 = vld [vmem:[%s3565_s1 + $0xa8] sm:$0xff]   ;;  %v585_v6 = vrot.slane %v3017_v49, 3  ;;  %v555_v9 = vld [vmem:[%s3564_s0 + $0x24] sm:$0x7] }
  0x29   :  { %2328 = vmatprep.subr.bf16.mxu0 %v2831_v0  ;;  %2364 = vmatprep.subr.bf16.mxu1 %v2831_v0 }
  0x2a   :  { %v3087_v23 = vsel %vm744_vm2, %v759_v8, %v763_v18 }
  0x2c   :  { %2329 = vmatpush3.bf16.msra.mxu0 %v2722_v25  ;;  %2365 = vmatpush3.bf16.msra.mxu1 %v2723_v30  ;;  %v2744_v25 = vld [vmem:[%s3565_s1 + $0xb0] sm:$0xff]   ;;  %v554_v30 = vld [vmem:[%s3564_s0] sm:$0x8] }
  0x2d   :  { %2330 = vmatprep.subr.bf16.mxu0 %v2831_v0  ;;  %2366 = vmatprep.subr.bf16.mxu1 %v2831_v0  ;;  %v3128_v44 = vcombine.low %v554_v30, %v2921_v12 }
  0x2f   :  { %v580_v52 = vrot.slane %v3128_v44, 3  ;;  %v746_v30 = vshrl.u32 %v3128_v44, 16 }
  0x30   :  { %2331 = vmatpush3.bf16.msra.mxu0 %v2724_v35  ;;  %2367 = vmatpush3.bf16.msra.mxu1 %v2725_v39  ;;  %v2747_v35 = vld [vmem:[%s3565_s1 + $0xf8] sm:$0xff]   ;;  %v1940_v39 = vcombine.low %v2999_v41, %v2999_v41 }
  0x31   :  { %2388 = vmatprep.subr.bf16.mxu0 %v2831_v0  ;;  %2424 = vmatprep.subr.bf16.mxu1 %v2831_v0 }
  0x33   :  { %2333 = vmatmul.mubr.bf16.vlgmr.msra.gmra.mrb[0].mxu0 %v110_v43  ;;  %2369 = vmatmul.mubr.bf16.vlgmr.msra.gmra.mrb[0].mxu1 %v1927_v15  ;;  %v3075_v15 = vsel %vm744_vm2, %v2975_v33, %v759_v8  ;;  %v1965_v43 = vcombine.low %v389_v29, %v2921_v12  ;;  %v2757_v8 = vld [vmem:[%s3565_s1 + $0x158] sm:$0xff]   ;;  %v2764_v29 = vld [vmem:[%s3565_s1 + $0x170] sm:$0xff]  }
  0x34   :  { %2336 = vmatprep.mubr.msk.bf16.mxu0 %vm2832_vm0, %v2831_v0  ;;  %2372 = vmatprep.mubr.msk.bf16.mxu1 %vm2832_vm0, %v2831_v0  ;;  %v2773_v12 = vld [vmem:[%s3565_s1 + $0x190] sm:$0xff]  }
  0x35   :  { %2389 = vmatpush3.bf16.msra.mxu0 %v2729_v45  ;;  %2425 = vmatpush3.bf16.msra.mxu1 %v2730_v46  ;;  %v2016_v45 = vcombine.low %v2999_v41, %v3122_v37 }
  0x36   :  { %2390 = vmatprep.subr.bf16.mxu0 %v2831_v0  ;;  %2426 = vmatprep.subr.bf16.mxu1 %v2831_v0 }
  0x37   :  { %v766_v46 = vshrl.u32 %v2016_v45, 16  ;;  %v769_v47 = vshll.u32 %v2016_v45, 16 }
  0x39   :  { %2391 = vmatpush3.bf16.msra.mxu0 %v2731_v50  ;;  %2427 = vmatpush3.bf16.msra.mxu1 %v2732_v51  ;;  %v581_v50 = vrot.slane %v2946_v19, 3  ;;  %v411_v51 = vrot.slane %v1965_v43, 1  ;;  %v771_v54 = vrot.slane %v769_v47, 4  ;;  %v748_v43 = vrot.slane %v746_v30, 3  ;;  %v2768_v47 = vld [vmem:[%s3565_s1 + $0x180] sm:$0xff]  }
  0x3a   :  { %2392 = vmatprep.subr.bf16.mxu0 %v2831_v0  ;;  %2428 = vmatprep.subr.bf16.mxu1 %v2831_v0 }
  0x3b   :  { %2337 = vmatmul.mubr.bf16.gmra.mrb[4].mxu0 %v118_v53  ;;  %2373 = vmatmul.mubr.bf16.gmra.mrb[4].mxu1 %v2946_v19  ;;  %v768_v53 = vrot.slane %v766_v46, 3  ;;  %v413_v56 = vsel %vm410_vm3, %v411_v51, %v412_v48  ;;  %v2070_v51 = vcombine.low %v1064_v31, %v3326_v32 }
  0x3c   :  { %2340 = vmatprep.mubr.msk.bf16.mxu0 %vm2832_vm0, %v2831_v0  ;;  %2376 = vmatprep.mubr.msk.bf16.mxu1 %vm2832_vm0, %v2831_v0 }
  0x3d   :  { %2393 = vmatpush3.bf16.msra.mxu0 %v2734_v55  ;;  %2429 = vmatpush3.bf16.msra.mxu1 %v2735_v57  ;;  %v3141_v55 = vor.u32 %v771_v54, %v768_v53  ;;  %v582_v57 = vsel %vm579_vm4, %v580_v52, %v581_v50  ;;  %v3336_v52 = vld [vmem:[%s3564_s0 + $0xc] sm:$0xff]   ;;  %v2787_v54 = vld [vmem:[%s3565_s1 + $0x1b8] sm:$0xff]  }
  0x3e   :  { %2394 = vmatprep.subr.bf16.mxu0 %v2831_v0  ;;  %2430 = vmatprep.subr.bf16.mxu1 %v2831_v0  ;;  %v2786_v53 = vld [vmem:[%s3565_s1 + $0x1f0] sm:$0xff]  }
  0x3f   :  { %v3146_v19 = vsel %vm744_vm2, %v763_v18, %v3141_v55  ;;  %v1991_v18 = vcombine.low %v2999_v41, %v555_v9  ;;  %v2045_v41 = vcombine.low %v3122_v37, %v3122_v37  ;;  %v1117_v37 = vrot.slane %v2070_v51, 2  ;;  %v3385_v9 = vld [vmem:[%s3564_s0 + $0x1c] sm:$0xff]  }
  0x40   :  { %v1122_v30 = vrot.slane %v3385_v9, 2 }
  0x41   :  { %2395 = vmatpush3.bf16.msra.mxu0 %v2736_v61  ;;  %2431 = vmatpush3.bf16.msra.mxu1 %v2737_v62  ;;  %v414_v61 = vrot.slane %v2984_v38, 1  ;;  %v583_v62 = vrot.slane %v2984_v38, 3 }
  0x42   :  { %2396 = vmatprep.subr.bf16.mxu0 %v2831_v0  ;;  %2432 = vmatprep.subr.bf16.mxu1 %v2831_v0 }
  0x43   :  { %2341 = vmatmul.mubr.bf16.gmra.mrb[8].mxu0 %v126_v2  ;;  %2377 = vmatmul.mubr.bf16.gmra.mrb[8].mxu1 %v2984_v38  ;;  %v415_v2 = vsel %vm410_vm3, %v412_v48, %v414_v61  ;;  %v584_v3 = vsel %vm579_vm4, %v581_v50, %v583_v62  ;;  %v2754_v38 = vld [vmem:[%s3565_s1 + $0x110] sm:$0xff]   ;;  %v2770_v48 = vld [vmem:[%s3565_s1 + $0x1c0] sm:$0xff]   ;;  %v2772_v50 = vld [vmem:[%s3565_s1 + $0x1c8] sm:$0xff]  }
  0x44   :  { %2344 = vmatprep.mubr.msk.bf16.mxu0 %vm2832_vm0, %v2831_v0  ;;  %2380 = vmatprep.mubr.msk.bf16.mxu1 %vm2832_vm0, %v2831_v0 }
  0x45   :  { %2397 = vmatpush3.bf16.msra.mxu0 %v2739_v5  ;;  %2433 = vmatpush3.bf16.msra.mxu1 %v2740_v7  ;;  %v416_v5 = vrot.slane %v3017_v49, 1  ;;  %v2756_v7 = vld [vmem:[%s3565_s1 + $0x118] sm:$0xff]  }
  0x46   :  { %2398 = vmatprep.subr.bf16.mxu0 %v2831_v0  ;;  %2434 = vmatprep.subr.bf16.mxu1 %v2831_v0 }
  0x47   :  { %v417_v10 = vsel %vm410_vm3, %v414_v61, %v416_v5 }
  0x49   :  { %2399 = vmatpush3.bf16.msra.mxu0 %v2741_v21  ;;  %2435 = vmatpush3.bf16.msra.mxu1 %v2742_v22  ;;  %v2760_v21 = vld [vmem:[%s3565_s1 + $0x160] sm:$0xff]   ;;  %v418_v22 = vrot.slane %v3047_v60, 1 }
  0x4a   :  { %2400 = vmatprep.subr.bf16.mxu0 %v2831_v0  ;;  %2436 = vmatprep.subr.bf16.mxu1 %v2831_v0 }
  0x4b   :  { %2345 = vmatmul.mubr.bf16.gmra.mrb[12].mxu0 %v134_v24  ;;  %2381 = vmatmul.mubr.bf16.gmra.mrb[12].mxu1 %v3017_v49  ;;  %v586_v49 = vsel %vm579_vm4, %v583_v62, %v585_v6  ;;  %v587_v24 = vrot.slane %v1991_v18, 3  ;;  %v419_v60 = vsel %vm410_vm3, %v416_v5, %v418_v22  ;;  %v1309_v18 = vshrl.u32 %v3385_v9, 16 }
  0x4c   :  { %2348 = vmatprep.mubr.msk.bf16.mxu0 %vm2832_vm0, %v2831_v0  ;;  %2384 = vmatprep.mubr.msk.bf16.mxu1 %vm2832_vm0, %v2831_v0 }
  0x4d   :  { %2401 = vmatpush3.bf16.msra.mxu0 %v2744_v25  ;;  %2437 = vmatpush3.bf16.msra.mxu1 %v2745_v26  ;;  %v2761_v25 = vld [vmem:[%s3565_s1 + $0x128] sm:$0xff]   ;;  %v588_v27 = vsel %vm579_vm4, %v585_v6, %v587_v24  ;;  %v2792_v6 = vld [vmem:[%s3565_s1 + $0x200] sm:$0xff]  }
  0x4e   :  { %2402 = vmatprep.subr.bf16.mxu0 %v2831_v0  ;;  %2438 = vmatprep.subr.bf16.mxu1 %v2831_v0  ;;  %v2762_v26 = vld [vmem:[%s3565_s1 + $0x168] sm:$0xff]  }
  0x51   :  { %2403 = vmatpush3.bf16.msra.mxu0 %v2746_v28  ;;  %2439 = vmatpush3.bf16.msra.mxu1 %v2747_v35  ;;  %v2763_v28 = vld [vmem:[%s3565_s1 + $0x130] sm:$0xff]   ;;  %v749_v35 = vshll.u32 %v3128_v44, 16 }
  0x52   :  { %2460 = vmatprep.subr.bf16.mxu0 %v2831_v0  ;;  %2496 = vmatprep.subr.bf16.mxu1 %v2831_v0 }
  0x53   :  { %2349 = vmatmul.mubr.bf16.gmra.mrb[16].mxu0 %v137_v36  ;;  %2385 = vmatmul.mubr.bf16.gmra.mrb[16].mxu1 %v1940_v39  ;;  %v2765_v36 = vld [vmem:[%s3565_s1 + $0x138] sm:$0xff]   ;;  %v751_v45 = vrot.slane %v749_v35, 4 }
  0x54   :  { %2404 = vmatprep.mubr.msk.bf16.mxu0 %vm2832_vm0, %v2831_v0  ;;  %2440 = vmatprep.mubr.msk.bf16.mxu1 %vm2832_vm0, %v2831_v0  ;;  %v2766_v39 = vld [vmem:[%s3565_s1 + $0x178] sm:$0xff]  }
  0x55   :  { %v752_v44 = vor.u32 %v751_v45, %v748_v43 }
  0x57   :  { %v756_v46 = vsel %vm744_vm2, %v752_v44, %v2975_v33  ;;  %v2771_v33 = vld [vmem:[%s3565_s1 + $0x188] sm:$0xff]  }
  0x5b   :  { %2405 = vmatmul.mubr.bf16.vlgmr.msra.gmra.mrb[20].mxu0 %v413_v56  ;;  %2441 = vmatmul.mubr.bf16.vlgmr.msra.gmra.mrb[20].mxu1 %v582_v57  ;;  %v1283_v56 = vshrl.u32 %v2070_v51, 16  ;;  %v1286_v57 = vshll.u32 %v2070_v51, 16  ;;  %v1482_v51 = vrot.slane %v3336_v52, 3 }
  0x5c   :  { %2408 = vmatprep.mubr.msk.bf16.mxu0 %vm2832_vm0, %v2831_v0  ;;  %2444 = vmatprep.mubr.msk.bf16.mxu1 %vm2832_vm0, %v2831_v0 }
  0x5d   :  { %2461 = vmatpush3.bf16.msra.mxu0 %v2750_v58  ;;  %2497 = vmatpush3.bf16.msra.mxu1 %v2751_v59  ;;  %v1294_v58 = vshll.u32 %v3336_v52, 16  ;;  %v1288_v59 = vrot.slane %v1286_v57, 3 }
  0x5e   :  { %2462 = vmatprep.subr.bf16.mxu0 %v2831_v0  ;;  %2498 = vmatprep.subr.bf16.mxu1 %v2831_v0 }
  0x5f   :  { %v1296_v62 = vrot.slane %v1294_v58, 3 }
  0x61   :  { %2463 = vmatpush3.bf16.msra.mxu0 %v2752_v63  ;;  %2499 = vmatpush3.bf16.msra.mxu1 %v2753_v1  ;;  %v3366_v63 = vld [vmem:[%s3564_s0 + $0x14] sm:$0xff]   ;;  %v1118_v1 = vrot.slane %v3336_v52, 2 }
  0x62   :  { %2464 = vmatprep.subr.bf16.mxu0 %v2831_v0  ;;  %2500 = vmatprep.subr.bf16.mxu1 %v2831_v0 }
  0x63   :  { %2409 = vmatmul.mubr.bf16.gmra.mrb[24].mxu0 %v415_v2  ;;  %2445 = vmatmul.mubr.bf16.gmra.mrb[24].mxu1 %v584_v3 }
  0x64   :  { %2412 = vmatprep.mubr.msk.bf16.mxu0 %vm2832_vm0, %v2831_v0  ;;  %2448 = vmatprep.mubr.msk.bf16.mxu1 %vm2832_vm0, %v2831_v0 }
  0x65   :  { %2465 = vmatpush3.bf16.msra.mxu0 %v2754_v38  ;;  %2501 = vmatpush3.bf16.msra.mxu1 %v2755_v4  ;;  %v1300_v38 = vshrl.u32 %v3366_v63, 16  ;;  %v1303_v4 = vshll.u32 %v3366_v63, 16 }
  0x66   :  { %2466 = vmatprep.subr.bf16.mxu0 %v2831_v0  ;;  %2502 = vmatprep.subr.bf16.mxu1 %v2831_v0 }
  0x69   :  { %2467 = vmatpush3.bf16.msra.mxu0 %v2756_v7  ;;  %2503 = vmatpush3.bf16.msra.mxu1 %v2757_v8  ;;  %v1302_v7 = vrot.slane %v1300_v38, 2  ;;  %v1305_v8 = vrot.slane %v1303_v4, 3 }
  0x6a   :  { %2468 = vmatprep.subr.bf16.mxu0 %v2831_v0  ;;  %2504 = vmatprep.subr.bf16.mxu1 %v2831_v0 }
  0x6b   :  { %2413 = vmatmul.mubr.bf16.gmra.mrb[28].mxu0 %v417_v10  ;;  %2449 = vmatmul.mubr.bf16.gmra.mrb[28].mxu1 %v586_v49  ;;  %v1120_v10 = vrot.slane %v3366_v63, 2  ;;  %v1306_v49 = vor.u32 %v1305_v8, %v1302_v7 }
  0x6c   :  { %2416 = vmatprep.mubr.msk.bf16.mxu0 %vm2832_vm0, %v2831_v0  ;;  %2452 = vmatprep.mubr.msk.bf16.mxu1 %vm2832_vm0, %v2831_v0 }
  0x6d   :  { %2469 = vmatpush3.bf16.msra.mxu0 %v2758_v11  ;;  %2505 = vmatpush3.bf16.msra.mxu1 %v2760_v21  ;;  %v2793_v11 = vld [vmem:[%s3565_s1 + $0x208] sm:$0xff]   ;;  %v1312_v21 = vshll.u32 %v3385_v9, 16  ;;  %v1123_v44 = vsel %vm1116_vm5, %v1120_v10, %v1122_v30 }
  0x6e   :  { %2470 = vmatprep.subr.bf16.mxu0 %v2831_v0  ;;  %2506 = vmatprep.subr.bf16.mxu1 %v2831_v0 }
  0x71   :  { %2471 = vmatpush3.bf16.msra.mxu0 %v2761_v25  ;;  %2507 = vmatpush3.bf16.msra.mxu1 %v2762_v26  ;;  %v1121_v25 = vsel %vm1116_vm5, %v1118_v1, %v1120_v10 }
  0x72   :  { %2472 = vmatprep.subr.bf16.mxu0 %v2831_v0  ;;  %2508 = vmatprep.subr.bf16.mxu1 %v2831_v0 }
  0x73   :  { %2417 = vmatmul.mubr.bf16.gmra.mrb[32].mxu0 %v419_v60  ;;  %2453 = vmatmul.mubr.bf16.gmra.mrb[32].mxu1 %v588_v27  ;;  %v2795_v60 = vld [vmem:[%s3565_s1 + $0x210] sm:$0xff]   ;;  %v1311_v27 = vrot.slane %v1309_v18, 2 }
  0x74   :  { %2420 = vmatprep.mubr.msk.bf16.mxu0 %vm2832_vm0, %v2831_v0  ;;  %2456 = vmatprep.mubr.msk.bf16.mxu1 %vm2832_vm0, %v2831_v0 }
  0x75   :  { %2473 = vmatpush3.bf16.msra.mxu0 %v2763_v28  ;;  %2509 = vmatpush3.bf16.msra.mxu1 %v2764_v29  ;;  %v1314_v28 = vrot.slane %v1312_v21, 3 }
  0x76   :  { %2474 = vmatprep.subr.bf16.mxu0 %v2831_v0  ;;  %2510 = vmatprep.subr.bf16.mxu1 %v2831_v0 }
  0x77   :  { %v1315_v35 = vor.u32 %v1314_v28, %v1311_v27 }
  0x79   :  { %2475 = vmatpush3.bf16.msra.mxu0 %v2765_v36  ;;  %2511 = vmatpush3.bf16.msra.mxu1 %v2766_v39  ;;  %v2796_v36 = vld [vmem:[%s3565_s1 + $0x218] sm:$0xff]   ;;  %v1073_v39 = vld [vmem:[%s3564_s0 + $0x28] sm:$0x3] }
  0x7a   :  { %2532 = vmatprep.subr.bf16.mxu0 %v2831_v0  ;;  %2568 = vmatprep.subr.bf16.mxu1 %v2831_v0 }
  0x7b   :  { %2421 = vmatmul.mubr.bf16.gmra.mrb[36].mxu0 %v418_v22  ;;  %2457 = vmatmul.mubr.bf16.gmra.mrb[36].mxu1 %v587_v24  ;;  %v1072_v22 = vld [vmem:[%s3564_s0 + $0x24] sm:$0xf]  ;;  %v1260_v24 = vld [vmem:[%s3564_s0 + $0x28] sm:$0x7] }
  0x7c   :  { %2476 = vmatprep.mubr.msk.bf16.mxu0 %vm2832_vm0, %v2831_v0  ;;  %2512 = vmatprep.mubr.msk.bf16.mxu1 %vm2832_vm0, %v2831_v0  ;;  %v3409_v29 = vcombine.low %v1072_v22, %v1260_v24 }
  0x7e   :  { %v1318_v43 = vshrl.u32 %v3409_v29, 16  ;;  %v1321_v45 = vshll.u32 %v3409_v29, 16  ;;  %v1488_v57 = vrot.slane %v3409_v29, 3 }
  0x83   :  { %2477 = vmatmul.mubr.bf16.vlgmr.msra.gmra.mrb[40].mxu0 %v756_v46  ;;  %2513 = vmatmul.mubr.bf16.vlgmr.msra.gmra.mrb[40].mxu1 %v2041_v17  ;;  %v2776_v17 = vld [vmem:[%s3565_s1 + $0x198] sm:$0xff]   ;;  %v2074_v46 = vcombine.low %v1072_v22, %v1073_v39 }
  0x84   :  { %2480 = vmatprep.mubr.msk.bf16.mxu0 %vm2832_vm0, %v2831_v0  ;;  %2516 = vmatprep.mubr.msk.bf16.mxu1 %vm2832_vm0, %v2831_v0 }
  0x85   :  { %2533 = vmatpush3.bf16.msra.mxu0 %v2768_v47  ;;  %2569 = vmatpush3.bf16.msra.mxu1 %v2770_v48  ;;  %v1316_v47 = vsel %vm1281_vm6, %v1306_v49, %v1315_v35  ;;  %v2799_v48 = vld [vmem:[%s3565_s1 + $0x220] sm:$0xff]  }
  0x86   :  { %2534 = vmatprep.subr.bf16.mxu0 %v2831_v0  ;;  %2570 = vmatprep.subr.bf16.mxu1 %v2831_v0 }
  0x89   :  { %2535 = vmatpush3.bf16.msra.mxu0 %v2771_v33  ;;  %2571 = vmatpush3.bf16.msra.mxu1 %v2772_v50  ;;  %v1320_v33 = vrot.slane %v1318_v43, 2  ;;  %v1323_v50 = vrot.slane %v1321_v45, 3 }
  0x8a   :  { %2536 = vmatprep.subr.bf16.mxu0 %v2831_v0  ;;  %2572 = vmatprep.subr.bf16.mxu1 %v2831_v0 }
  0x8b   :  { %2481 = vmatmul.mubr.bf16.gmra.mrb[44].mxu0 %v3075_v15  ;;  %2517 = vmatmul.mubr.bf16.gmra.mrb[44].mxu1 %v2042_v20  ;;  %v2777_v15 = vld [vmem:[%s3565_s1 + $0x1d8] sm:$0xff]   ;;  %v2782_v20 = vld [vmem:[%s3565_s1 + $0x1a8] sm:$0xff]  }
  0x8c   :  { %2484 = vmatprep.mubr.msk.bf16.mxu0 %vm2832_vm0, %v2831_v0  ;;  %2520 = vmatprep.mubr.msk.bf16.mxu1 %vm2832_vm0, %v2831_v0 }
  0x8d   :  { %2537 = vmatpush3.bf16.msra.mxu0 %v2773_v12  ;;  %2573 = vmatpush3.bf16.msra.mxu1 %v2775_v13  ;;  %v1124_v12 = vrot.slane %v2074_v46, 2  ;;  %v1324_v13 = vor.u32 %v1323_v50, %v1320_v33 }
  0x8e   :  { %2538 = vmatprep.subr.bf16.mxu0 %v2831_v0  ;;  %2574 = vmatprep.subr.bf16.mxu1 %v2831_v0 }
  0x91   :  { %2539 = vmatpush3.bf16.msra.mxu0 %v2776_v17  ;;  %2575 = vmatpush3.bf16.msra.mxu1 %v2777_v15  ;;  %v2800_v17 = vld [vmem:[%s3565_s1 + $0x228] sm:$0xff]   ;;  %v1125_v15 = vsel %vm1116_vm5, %v1122_v30, %v1124_v12 }
  0x92   :  { %2540 = vmatprep.subr.bf16.mxu0 %v2831_v0  ;;  %2576 = vmatprep.subr.bf16.mxu1 %v2831_v0 }
  0x93   :  { %2485 = vmatmul.mubr.bf16.gmra.mrb[48].mxu0 %v3087_v23  ;;  %2521 = vmatmul.mubr.bf16.gmra.mrb[48].mxu1 %v2043_v34  ;;  %v2783_v23 = vld [vmem:[%s3565_s1 + $0x1e8] sm:$0xff]   ;;  %v2784_v34 = vld [vmem:[%s3565_s1 + $0x1b0] sm:$0xff]  }
  0x94   :  { %2488 = vmatprep.mubr.msk.bf16.mxu0 %vm2832_vm0, %v2831_v0  ;;  %2524 = vmatprep.mubr.msk.bf16.mxu1 %vm2832_vm0, %v2831_v0 }
  0x95   :  { %2541 = vmatpush3.bf16.msra.mxu0 %v2779_v14  ;;  %2577 = vmatpush3.bf16.msra.mxu1 %v2781_v16  ;;  %v1325_v14 = vsel %vm1281_vm6, %v1315_v35, %v1324_v13  ;;  %v2801_v16 = vld [vmem:[%s3565_s1 + $0x230] sm:$0xff]  }
  0x96   :  { %2542 = vmatprep.subr.bf16.mxu0 %v2831_v0  ;;  %2578 = vmatprep.subr.bf16.mxu1 %v2831_v0 }
  0x99   :  { %2543 = vmatpush3.bf16.msra.mxu0 %v2782_v20  ;;  %2579 = vmatpush3.bf16.msra.mxu1 %v2783_v23  ;;  %v2802_v20 = vld [vmem:[%s3565_s1 + $0x238] sm:$0xff]   ;;  %v1460_v23 = vld [vmem:[%s3564_s0 + $0x4] sm:$0x8] }
  0x9a   :  { %2544 = vmatprep.subr.bf16.mxu0 %v2831_v0  ;;  %2580 = vmatprep.subr.bf16.mxu1 %v2831_v0  ;;  %v2124_v31 = vcombine.low %v1460_v23, %v3326_v32  ;;  %v1484_v32 = vrot.slane %v3366_v63, 3 }
  0x9b   :  { %2489 = vmatmul.mubr.bf16.gmra.mrb[52].mxu0 %v3146_v19  ;;  %2525 = vmatmul.mubr.bf16.gmra.mrb[52].mxu1 %v2044_v42  ;;  %v1291_v19 = vshrl.u32 %v3336_v52, 16  ;;  %v1285_v42 = vrot.slane %v1283_v56, 2  ;;  %v1486_v56 = vrot.slane %v3385_v9, 3 }
  0x9c   :  { %2492 = vmatprep.mubr.msk.bf16.mxu0 %vm2832_vm0, %v2831_v0  ;;  %2528 = vmatprep.mubr.msk.bf16.mxu1 %vm2832_vm0, %v2831_v0 }
  0x9d   :  { %2545 = vmatpush3.bf16.msra.mxu0 %v2784_v34  ;;  %2581 = vmatpush3.bf16.msra.mxu1 %v2786_v53  ;;  %v1293_v61 = vrot.slane %v1291_v19, 2  ;;  %v1289_v2 = vor.u32 %v1288_v59, %v1285_v42  ;;  %v1481_v34 = vrot.slane %v2124_v31, 3  ;;  %v1487_v52 = vsel %vm579_vm4, %v1484_v32, %v1486_v56 }
  0x9e   :  { %2546 = vmatprep.subr.bf16.mxu0 %v2831_v0  ;;  %2582 = vmatprep.subr.bf16.mxu1 %v2831_v0  ;;  %v1489_v19 = vsel %vm579_vm4, %v1486_v56, %v1488_v57  ;;  %v2833_v31 = vmov 0.0|0.0  }
  0x9f   :  { %v1297_v3 = vor.u32 %v1296_v62, %v1293_v61  ;;  %v1483_v53 = vsel %vm579_vm4, %v1481_v34, %v1482_v51 }
  0xa1   :  { %2547 = vmatpush3.bf16.msra.mxu0 %v2787_v54  ;;  %2583 = vmatpush3.bf16.msra.mxu1 %v2788_v40  ;;  %v1298_v5 = vsel %vm1281_vm6, %v1289_v2, %v1297_v3  ;;  %v1307_v26 = vsel %vm1281_vm6, %v1297_v3, %v1306_v49  ;;  %v1485_v54 = vsel %vm579_vm4, %v1482_v51, %v1484_v32 }
  0xa2   :  { %2604 = vmatprep.subr.bf16.mxu0 %v2831_v0  ;;  %2682 = vmatprep.subr.bf16.mxu1 %v2833_v31 }
  0xa3   :  { %2493 = vmatmul.mubr.bf16.gmra.mrb[56].mxu0 %v3141_v55  ;;  %2529 = vmatmul.mubr.bf16.gmra.mrb[56].mxu1 %v2045_v41  ;;  %v1119_v55 = vsel %vm1116_vm5, %v1117_v37, %v1118_v1 }
  0xa4   :  { %2548 = vmatprep.mubr.msk.bf16.mxu0 %vm2832_vm0, %v2831_v0  ;;  %2584 = vmatprep.mubr.msk.bf16.mxu1 %vm2832_vm0, %v2831_v0 }
  0xab   :  { %2549 = vmatmul.mubr.bf16.vlgmr.msra.gmra.mrb[60].mxu0 %v1119_v55  ;;  %2585 = vmatmul.mubr.bf16.vlgmr.msra.gmra.mrb[60].mxu1 %v1298_v5 }
  0xac   :  { %2552 = vmatprep.mubr.msk.bf16.mxu0 %vm2832_vm0, %v2831_v0  ;;  %2588 = vmatprep.mubr.msk.bf16.mxu1 %vm2832_vm0, %v2831_v0 }
  0xad   :  { %2605 = vmatpush3.bf16.msra.mxu0 %v2792_v6 }
  0xae   :  { %2606 = vmatprep.subr.bf16.mxu0 %v2831_v0 }
  0xb1   :  { %2607 = vmatpush3.bf16.msra.mxu0 %v2793_v11 }
  0xb2   :  { %2608 = vmatprep.subr.bf16.mxu0 %v2831_v0 }
  0xb3   :  { %2553 = vmatmul.mubr.bf16.gmra.mrb[64].mxu0 %v1121_v25  ;;  %2589 = vmatmul.mubr.bf16.gmra.mrb[64].mxu1 %v1307_v26 }
  0xb4   :  { %2556 = vmatprep.mubr.msk.bf16.mxu0 %vm2832_vm0, %v2831_v0  ;;  %2592 = vmatprep.mubr.msk.bf16.mxu1 %vm2832_vm0, %v2831_v0 }
  0xb5   :  { %2609 = vmatpush3.bf16.msra.mxu0 %v2795_v60 }
  0xb6   :  { %2610 = vmatprep.subr.bf16.mxu0 %v2831_v0 }
  0xb9   :  { %2611 = vmatpush3.bf16.msra.mxu0 %v2796_v36 }
  0xba   :  { %2612 = vmatprep.subr.bf16.mxu0 %v2831_v0 }
  0xbb   :  { %2557 = vmatmul.mubr.bf16.gmra.mrb[68].mxu0 %v1123_v44  ;;  %2593 = vmatmul.mubr.bf16.gmra.mrb[68].mxu1 %v1316_v47 }
  0xbc   :  { %2560 = vmatprep.mubr.msk.bf16.mxu0 %vm2832_vm0, %v2831_v0  ;;  %2596 = vmatprep.mubr.msk.bf16.mxu1 %vm2832_vm0, %v2831_v0 }
  0xbd   :  { %2613 = vmatpush3.bf16.msra.mxu0 %v2799_v48 }
  0xbe   :  { %2614 = vmatprep.subr.bf16.mxu0 %v2831_v0 }
  0xc1   :  { %2615 = vmatpush3.bf16.msra.mxu0 %v2800_v17 }
  0xc2   :  { %2616 = vmatprep.subr.bf16.mxu0 %v2831_v0 }
  0xc3   :  { %2561 = vmatmul.mubr.bf16.gmra.mrb[72].mxu0 %v1125_v15  ;;  %2597 = vmatmul.mubr.bf16.gmra.mrb[72].mxu1 %v1325_v14 }
  0xc4   :  { %2564 = vmatprep.mubr.msk.bf16.mxu0 %vm2832_vm0, %v2831_v0  ;;  %2600 = vmatprep.mubr.msk.bf16.mxu1 %vm2832_vm0, %v2831_v0 }
  0xc5   :  { %2617 = vmatpush3.bf16.msra.mxu0 %v2801_v16 }
  0xc6   :  { %2618 = vmatprep.subr.bf16.mxu0 %v2831_v0 }
  0xc9   :  { %2619 = vmatpush3.bf16.msra.mxu0 %v2802_v20 }
  0xcb   :  { %2565 = vmatmul.mubr.bf16.gmra.mrb[76].mxu0 %v1124_v12  ;;  %2601 = vmatmul.mubr.bf16.gmra.mrb[76].mxu1 %v1324_v13 }
  0xcc   :  { %2620 = vmatprep.mubr.msk.bf16.mxu0 %vm2832_vm0, %v2831_v0  ;;  %2658 = vmatprep.mubr.msk.f32.mxu1 %vm2832_vm0, %v2831_v0 }
  0xd3   :  { %2621 = vmatmul.mubr.bf16.vlgmr.msra.gmra.mrb[80].mxu0 %v1483_v53 }
  0xd4   :  { %2624 = vmatprep.mubr.msk.bf16.mxu0 %vm2832_vm0, %v2831_v0 }
  0xdb   :  { %2625 = vmatmul.mubr.bf16.gmra.mrb[84].mxu0 %v1485_v54 }
  0xdc   :  { %2628 = vmatprep.mubr.msk.bf16.mxu0 %vm2832_vm0, %v2831_v0 }
  0xe3   :  { %2629 = vmatmul.mubr.bf16.gmra.mrb[88].mxu0 %v1487_v52 }
  0xe4   :  { %2632 = vmatprep.mubr.msk.bf16.mxu0 %vm2832_vm0, %v2831_v0 }
  0xeb   :  { %2633 = vmatmul.mubr.bf16.gmra.mrb[92].mxu0 %v1489_v19 }
  0xec   :  { %2636 = vmatprep.mubr.msk.bf16.mxu0 %vm2832_vm0, %v2831_v0 }
  0xf3   :  { %2637 = vmatmul.mubr.bf16.gmra.mrb[96].mxu0 %v1488_v57 }
 0x106   :  { %v225_v58 = vpop.f32.mrb[0].mxu0  ;;  %v351_v40 = vpop.f32.mrb[0].mxu1 }
 0x107   :  { %v2334_v41 = vpop.f32.mrb[1].mxu0  ;;  %v352_v42 = vadd.f32 %v351_v40, %v225_v58  ;;  %v2370_v59 = vpop.f32.mrb[1].mxu1 }
 0x108   :  { %v228_v61 = vpop.f32.mrb[2].mxu0  ;;  %v354_v62 = vpop.f32.mrb[2].mxu1 }
 0x109   :  { %v2335_v63 = vpop.f32.mrb[3].mxu0  ;;  %v355_v37 = vadd.f32 %v354_v62, %v228_v61  ;;  %v2371_v1 = vpop.f32.mrb[3].mxu1 }
 0x10e   :  { %v233_v2 = vpop.f32.mrb[4].mxu0  ;;  %v359_v3 = vpop.f32.mrb[4].mxu1 }
 0x10f   :  { %v2338_v38 = vpop.f32.mrb[5].mxu0  ;;  %v360_v4 = vadd.f32 %v359_v3, %v233_v2  ;;  %v2374_v55 = vpop.f32.mrb[5].mxu1 }
 0x110   :  { %v236_v5 = vpop.f32.mrb[6].mxu0  ;;  %v362_v6 = vpop.f32.mrb[6].mxu1 }
 0x111   :  { %v2339_v7 = vpop.f32.mrb[7].mxu0  ;;  %v363_v8 = vadd.f32 %v362_v6, %v236_v5  ;;  %v2375_v9 = vpop.f32.mrb[7].mxu1 }
 0x116   :  { %v241_v10 = vpop.f32.mrb[8].mxu0  ;;  %v367_v49 = vpop.f32.mrb[8].mxu1 }
 0x117   :  { %v2342_v11 = vpop.f32.mrb[9].mxu0  ;;  %v368_v18 = vadd.f32 %v367_v49, %v241_v10  ;;  %v2378_v21 = vpop.f32.mrb[9].mxu1 }
 0x118   :  { %v244_v22 = vpop.f32.mrb[10].mxu0  ;;  %v370_v24 = vpop.f32.mrb[10].mxu1 }
 0x119   :  { %v2343_v25 = vpop.f32.mrb[11].mxu0  ;;  %v371_v26 = vadd.f32 %v370_v24, %v244_v22  ;;  %v2379_v60 = vpop.f32.mrb[11].mxu1 }
 0x11e   :  { %v249_v27 = vpop.f32.mrb[12].mxu0  ;;  %v375_v28 = vpop.f32.mrb[12].mxu1 }
 0x11f   :  { %v2346_v29 = vpop.f32.mrb[13].mxu0  ;;  %v376_v30 = vadd.f32 %v375_v28, %v249_v27  ;;  %v2382_v35 = vpop.f32.mrb[13].mxu1 }
 0x120   :  { %v252_v36 = vpop.f32.mrb[14].mxu0  ;;  %v378_v39 = vpop.f32.mrb[14].mxu1 }
 0x121   :  { %v2347_v43 = vpop.f32.mrb[15].mxu0  ;;  %v379_v45 = vadd.f32 %v378_v39, %v252_v36  ;;  %v2383_v44 = vpop.f32.mrb[15].mxu1 }
 0x126   :  { %v257_v46 = vpop.f32.mrb[16].mxu0  ;;  %v383_v47 = vpop.f32.mrb[16].mxu1 }
 0x127   :  { %v2350_v48 = vpop.f32.mrb[17].mxu0  ;;  %v384_v33 = vadd.f32 %v383_v47, %v257_v46  ;;  %v2386_v12 = vpop.f32.mrb[17].mxu1 }
 0x128   :  { %v260_v50 = vpop.f32.mrb[18].mxu0  ;;  %v386_v17 = vpop.f32.mrb[18].mxu1 }
 0x129   :  { %v2351_v13 = vpop.f32.mrb[19].mxu0  ;;  %v2387_v15 = vpop.f32.mrb[19].mxu1 }
 0x12e   :  { %v507_v14 = vpop.f32.mrb[20].mxu0  ;;  %v676_v23 = vpop.f32.mrb[20].mxu1 }
 0x12f   :  { %v545_v16 = vadd.f32 %v507_v14, %v352_v42  ;;  %v2406_v20 = vpop.f32.mrb[21].mxu0  ;;  %v2442_v51 = vpop.f32.mrb[21].mxu1 }
 0x130   :  { %v510_v34 = vpop.f32.mrb[22].mxu0  ;;  %v679_v56 = vpop.f32.mrb[22].mxu1 }
 0x131   :  { %v546_v53 = vadd.f32 %v510_v34, %v355_v37  ;;  %v714_v32 = vadd.f32 %v676_v23, %v545_v16  ;;  %v2407_v54 = vpop.f32.mrb[23].mxu0  ;;  %v2443_v52 = vpop.f32.mrb[23].mxu1 }
 0x133   :  { %v715_v57 = vadd.f32 %v679_v56, %v546_v53 }
 0x136   :  { %v515_v19 = vpop.f32.mrb[24].mxu0  ;;  %v684_v41 = vpop.f32.mrb[24].mxu1 }
 0x137   :  { %v547_v58 = vadd.f32 %v515_v19, %v360_v4  ;;  %v2410_v40 = vpop.f32.mrb[25].mxu0  ;;  %v2446_v61 = vpop.f32.mrb[25].mxu1 }
 0x138   :  { %v518_v59 = vpop.f32.mrb[26].mxu0  ;;  %v687_v1 = vpop.f32.mrb[26].mxu1 }
 0x139   :  { %v548_v42 = vadd.f32 %v518_v59, %v363_v8  ;;  %v716_v62 = vadd.f32 %v684_v41, %v547_v58  ;;  %v2411_v63 = vpop.f32.mrb[27].mxu0  ;;  %v2447_v2 = vpop.f32.mrb[27].mxu1 }
 0x13b   :  { %v717_v3 = vadd.f32 %v687_v1, %v548_v42 }
 0x13e   :  { %v523_v38 = vpop.f32.mrb[28].mxu0  ;;  %v692_v5 = vpop.f32.mrb[28].mxu1 }
 0x13f   :  { %v549_v55 = vadd.f32 %v523_v38, %v368_v18  ;;  %v2414_v37 = vpop.f32.mrb[29].mxu0  ;;  %v2450_v7 = vpop.f32.mrb[29].mxu1 }
 0x140   :  { %v526_v6 = vpop.f32.mrb[30].mxu0  ;;  %v695_v4 = vpop.f32.mrb[30].mxu1 }
 0x141   :  { %v550_v9 = vadd.f32 %v526_v6, %v371_v26  ;;  %v718_v10 = vadd.f32 %v692_v5, %v549_v55  ;;  %v2415_v49 = vpop.f32.mrb[31].mxu0  ;;  %v2451_v11 = vpop.f32.mrb[31].mxu1 }
 0x143   :  { %v719_v21 = vadd.f32 %v695_v4, %v550_v9 }
 0x146   :  { %v531_v22 = vpop.f32.mrb[32].mxu0  ;;  %v700_v25 = vpop.f32.mrb[32].mxu1 }
 0x147   :  { %v551_v24 = vadd.f32 %v531_v22, %v376_v30  ;;  %v2418_v8 = vpop.f32.mrb[33].mxu0  ;;  %v2454_v27 = vpop.f32.mrb[33].mxu1 }
 0x148   :  { %v534_v60 = vpop.f32.mrb[34].mxu0  ;;  %v703_v18 = vpop.f32.mrb[34].mxu1 }
 0x149   :  { %v552_v28 = vadd.f32 %v534_v60, %v379_v45  ;;  %v720_v29 = vadd.f32 %v700_v25, %v551_v24  ;;  %v2419_v35 = vpop.f32.mrb[35].mxu0  ;;  %v2455_v36 = vpop.f32.mrb[35].mxu1 }
 0x14b   :  { %v721_v39 = vadd.f32 %v703_v18, %v552_v28 }
 0x14e   :  { %v539_v43 = vpop.f32.mrb[36].mxu0  ;;  %v708_v46 = vpop.f32.mrb[36].mxu1 }
 0x14f   :  { %v553_v44 = vadd.f32 %v539_v43, %v384_v33  ;;  %v2422_v26 = vpop.f32.mrb[37].mxu0  ;;  %v2458_v48 = vpop.f32.mrb[37].mxu1 }
 0x150   :  { %v542_v47 = vpop.f32.mrb[38].mxu0  ;;  %v711_v13 = vpop.f32.mrb[38].mxu1 }
 0x151   :  { %v722_v50 = vadd.f32 %v708_v46, %v553_v44  ;;  %v2423_v12 = vpop.f32.mrb[39].mxu0  ;;  %v2459_v30 = vpop.f32.mrb[39].mxu1 }
 0x156   :  { %v861_v17 = vpop.f32.mrb[40].mxu0  ;;  %v1017_v16 = vpop.f32.mrb[40].mxu1 }
 0x157   :  { %v899_v15 = vadd.f32 %v861_v17, %v714_v32  ;;  %v2478_v14 = vpop.f32.mrb[41].mxu0  ;;  %v2514_v20 = vpop.f32.mrb[41].mxu1 }
 0x158   :  { %v864_v45 = vpop.f32.mrb[42].mxu0  ;;  %v1020_v53 = vpop.f32.mrb[42].mxu1 }
 0x159   :  { %v900_v23 = vadd.f32 %v864_v45, %v715_v57  ;;  %v1055_v34 = vadd.f32 %v1017_v16, %v899_v15  ;;  %v2479_v51 = vpop.f32.mrb[43].mxu0  ;;  %v2515_v54 = vpop.f32.mrb[43].mxu1 }
 0x15b   :  { %v1056_v33 = vadd.f32 %v1020_v53, %v900_v23 }
 0x15e   :  { %v869_v56 = vpop.f32.mrb[44].mxu0  ;;  %v1025_v58 = vpop.f32.mrb[44].mxu1 }
 0x15f   :  { %v901_v52 = vadd.f32 %v869_v56, %v716_v62  ;;  %v2482_v19 = vpop.f32.mrb[45].mxu0  ;;  %v2518_v41 = vpop.f32.mrb[45].mxu1 }
 0x160   :  { %v872_v40 = vpop.f32.mrb[46].mxu0  ;;  %v1028_v32 = vpop.f32.mrb[46].mxu1 }
 0x161   :  { %v902_v59 = vadd.f32 %v872_v40, %v717_v3  ;;  %v1057_v61 = vadd.f32 %v1025_v58, %v901_v52  ;;  %v2483_v42 = vpop.f32.mrb[47].mxu0  ;;  %v2519_v63 = vpop.f32.mrb[47].mxu1 }
 0x163   :  { %v1058_v1 = vadd.f32 %v1028_v32, %v902_v59 }
 0x166   :  { %v877_v2 = vpop.f32.mrb[48].mxu0  ;;  %v1033_v55 = vpop.f32.mrb[48].mxu1 }
 0x167   :  { %v903_v38 = vadd.f32 %v877_v2, %v718_v10  ;;  %v2486_v57 = vpop.f32.mrb[49].mxu0  ;;  %v2522_v5 = vpop.f32.mrb[49].mxu1 }
 0x168   :  { %v880_v37 = vpop.f32.mrb[50].mxu0  ;;  %v1036_v62 = vpop.f32.mrb[50].mxu1 }
 0x169   :  { %v904_v6 = vadd.f32 %v880_v37, %v719_v21  ;;  %v1059_v7 = vadd.f32 %v1033_v55, %v903_v38  ;;  %v2487_v9 = vpop.f32.mrb[51].mxu0  ;;  %v2523_v49 = vpop.f32.mrb[51].mxu1 }
 0x16b   :  { %v1060_v4 = vadd.f32 %v1036_v62, %v904_v6 }
 0x16e   :  { %v885_v11 = vpop.f32.mrb[52].mxu0  ;;  %v1041_v24 = vpop.f32.mrb[52].mxu1 }
 0x16f   :  { %v905_v22 = vadd.f32 %v885_v11, %v720_v29  ;;  %v2490_v3 = vpop.f32.mrb[53].mxu0  ;;  %v2526_v25 = vpop.f32.mrb[53].mxu1 }
 0x170   :  { %v888_v8 = vpop.f32.mrb[54].mxu0  ;;  %v1044_v10 = vpop.f32.mrb[54].mxu1 }
 0x171   :  { %v906_v60 = vadd.f32 %v888_v8, %v721_v39  ;;  %v1061_v27 = vadd.f32 %v1041_v24, %v905_v22  ;;  %v2491_v28 = vpop.f32.mrb[55].mxu0  ;;  %v2527_v35 = vpop.f32.mrb[55].mxu1 }
 0x173   :  { %v1062_v18 = vadd.f32 %v1044_v10, %v906_v60 }
 0x176   :  { %v893_v36 = vpop.f32.mrb[56].mxu0  ;;  %v1049_v44 = vpop.f32.mrb[56].mxu1 }
 0x177   :  { %v907_v43 = vadd.f32 %v893_v36, %v722_v50  ;;  %v2494_v21 = vpop.f32.mrb[57].mxu0  ;;  %v2530_v46 = vpop.f32.mrb[57].mxu1 }
 0x178   :  { %v896_v26 = vpop.f32.mrb[58].mxu0  ;;  %v1052_v12 = vpop.f32.mrb[58].mxu1 }
 0x179   :  { %v1063_v47 = vadd.f32 %v1049_v44, %v907_v43  ;;  %v2495_v48 = vpop.f32.mrb[59].mxu0  ;;  %v2531_v29 = vpop.f32.mrb[59].mxu1 }
 0x17e   :  { %v1213_v13 = vpop.f32.mrb[60].mxu0  ;;  %v1413_v15 = vpop.f32.mrb[60].mxu1 }
 0x17f   :  { %v1251_v30 = vadd.f32 %v1213_v13, %v1055_v34  ;;  %v2550_v17 = vpop.f32.mrb[61].mxu0  ;;  %v2586_v14 = vpop.f32.mrb[61].mxu1 }
 0x180   :  { %v1216_v39 = vpop.f32.mrb[62].mxu0  ;;  %v1416_v23 = vpop.f32.mrb[62].mxu1 }
 0x181   :  { %v1252_v16 = vadd.f32 %v1216_v39, %v1056_v33  ;;  %v1451_v45 = vadd.f32 %v1413_v15, %v1251_v30  ;;  %v2551_v20 = vpop.f32.mrb[63].mxu0  ;;  %v2587_v51 = vpop.f32.mrb[63].mxu1  ;;  %v2133_v30 = vld [vmem:[#allocation2] ss:$0 sm:$0xff] }
 0x183   :  { %v1452_v50 = vadd.f32 %v1416_v23, %v1252_v16 }
 0x186   :  { %v1221_v53 = vpop.f32.mrb[64].mxu0  ;;  %v1421_v52 = vpop.f32.mrb[64].mxu1 }
 0x187   :  { %v1253_v54 = vadd.f32 %v1221_v53, %v1057_v61  ;;  %v2554_v56 = vpop.f32.mrb[65].mxu0  ;;  %v2590_v58 = vpop.f32.mrb[65].mxu1 }
 0x188   :  { %v1224_v19 = vpop.f32.mrb[66].mxu0  ;;  %v1424_v34 = vpop.f32.mrb[66].mxu1 }
 0x189   :  { %v1254_v40 = vadd.f32 %v1224_v19, %v1058_v1  ;;  %v1453_v41 = vadd.f32 %v1421_v52, %v1253_v54  ;;  %v2555_v59 = vpop.f32.mrb[67].mxu0  ;;  %v2591_v42 = vpop.f32.mrb[67].mxu1 }
 0x18b   :  { %v1454_v32 = vadd.f32 %v1424_v34, %v1254_v40 }
 0x18e   :  { %v1229_v63 = vpop.f32.mrb[68].mxu0  ;;  %v1429_v38 = vpop.f32.mrb[68].mxu1 }
 0x18f   :  { %v1255_v2 = vadd.f32 %v1229_v63, %v1059_v7  ;;  %v2558_v33 = vpop.f32.mrb[69].mxu0  ;;  %v2594_v55 = vpop.f32.mrb[69].mxu1 }
 0x190   :  { %v1232_v57 = vpop.f32.mrb[70].mxu0  ;;  %v1432_v61 = vpop.f32.mrb[70].mxu1 }
 0x191   :  { %v1256_v37 = vadd.f32 %v1232_v57, %v1060_v4  ;;  %v1455_v5 = vadd.f32 %v1429_v38, %v1255_v2  ;;  %v2559_v6 = vpop.f32.mrb[71].mxu0  ;;  %v2595_v9 = vpop.f32.mrb[71].mxu1 }
 0x193   :  { %v1456_v62 = vadd.f32 %v1432_v61, %v1256_v37 }
 0x196   :  { %v1237_v49 = vpop.f32.mrb[72].mxu0  ;;  %v1437_v22 = vpop.f32.mrb[72].mxu1 }
 0x197   :  { %v1257_v11 = vadd.f32 %v1237_v49, %v1061_v27  ;;  %v2562_v1 = vpop.f32.mrb[73].mxu0  ;;  %v2598_v24 = vpop.f32.mrb[73].mxu1 }
 0x198   :  { %v1240_v3 = vpop.f32.mrb[74].mxu0  ;;  %v1440_v7 = vpop.f32.mrb[74].mxu1  ;;  %v1638_v24 = vld [vmem:[%s3567_s3] sm:$0x1] }
 0x199   :  { %v1258_v8 = vadd.f32 %v1240_v3, %v1062_v18  ;;  %v1457_v25 = vadd.f32 %v1437_v22, %v1257_v11  ;;  %v2563_v60 = vpop.f32.mrb[75].mxu0  ;;  %v2599_v28 = vpop.f32.mrb[75].mxu1 }
 0x19b   :  { %v1458_v10 = vadd.f32 %v1440_v7, %v1258_v8 }
 0x19e   :  { %v1245_v35 = vpop.f32.mrb[76].mxu0  ;;  %v1445_v43 = vpop.f32.mrb[76].mxu1 }
 0x19f   :  { %v1259_v36 = vadd.f32 %v1245_v35, %v1063_v47  ;;  %v2566_v4 = vpop.f32.mrb[77].mxu0  ;;  %v2602_v44 = vpop.f32.mrb[77].mxu1 }
 0x1a0   :  { %v1248_v21 = vpop.f32.mrb[78].mxu0  ;;  %v1448_v48 = vpop.f32.mrb[78].mxu1 }
 0x1a1   :  { %v1459_v26 = vadd.f32 %v1445_v43, %v1259_v36  ;;  %v2567_v46 = vpop.f32.mrb[79].mxu0  ;;  %v2603_v27 = vpop.f32.mrb[79].mxu1 }
 0x1a2   :  { %v1795_v27 = vlaneseq }
 0x1a6   :  { %v1577_v12 = vpop.f32.mrb[80].mxu0 }
 0x1a7   :  { %v1615_v29 = vadd.f32 %v1577_v12, %v1451_v45  ;;  %v2622_v13 = vpop.f32.mrb[81].mxu0 }
 0x1a8   :  { %v1580_v18 = vpop.f32.mrb[82].mxu0 }
 0x1a9   :  { %v1616_v17 = vadd.f32 %v1580_v18, %v1452_v50  ;;  %v2623_v15 = vpop.f32.mrb[83].mxu0  ;;  %v3479_v39 = vadd.f32 %v2133_v30, %v1615_v29 }
 0x1ab   :  { %v3481_v14 = vadd.f32 %v2133_v30, %v1616_v17  ;;  %v1713_v1 = vmul.f32 %v3479_v39, %v3479_v39 }
 0x1ad   :  { %v2683_v47 = vpack.c.bf16 %v3481_v14, %v3479_v39  ;;  %v1714_v9 = vmul.f32 %v3481_v14, %v3481_v14 }
 0x1ae   :  { %v1585_v16 = vpop.f32.mrb[84].mxu0 }
 0x1af   :  { %v1617_v20 = vadd.f32 %v1585_v16, %v1453_v41  ;;  %v2626_v23 = vpop.f32.mrb[85].mxu0  ;;  %2684 = vmatpush3.bf16.msra.mxu1 %v2683_v47 }
 0x1b0   :  { %v1588_v51 = vpop.f32.mrb[86].mxu0  ;;  %2685 = vmatprep.subr.bf16.mxu1 %v2833_v31 }
 0x1b1   :  { %v1618_v45 = vadd.f32 %v1588_v51, %v1454_v32  ;;  %v2627_v53 = vpop.f32.mrb[87].mxu0  ;;  %v3486_v54 = vadd.f32 %v2133_v30, %v1617_v20 }
 0x1b3   :  { %v3488_v50 = vadd.f32 %v2133_v30, %v1618_v45  ;;  %v1715_v60 = vmul.f32 %v3486_v54, %v3486_v54 }
 0x1b5   :  { %v2686_v56 = vpack.c.bf16 %v3488_v50, %v3486_v54  ;;  %v1716_v8 = vmul.f32 %v3488_v50, %v3488_v50 }
 0x1b6   :  { %v1593_v52 = vpop.f32.mrb[88].mxu0 }
 0x1b7   :  { %v1619_v19 = vadd.f32 %v1593_v52, %v1455_v5  ;;  %v2630_v58 = vpop.f32.mrb[89].mxu0  ;;  %2687 = vmatpush3.bf16.msra.mxu1 %v2686_v56  ;;  %v2698_v28 = vpack.c.bf16 %v1716_v8, %v1715_v60 }
 0x1b8   :  { %v1596_v40 = vpop.f32.mrb[90].mxu0  ;;  %2688 = vmatprep.subr.bf16.mxu1 %v2833_v31 }
 0x1b9   :  { %v1620_v41 = vadd.f32 %v1596_v40, %v1456_v62  ;;  %v2631_v59 = vpop.f32.mrb[91].mxu0  ;;  %v3493_v34 = vadd.f32 %v2133_v30, %v1619_v19  ;;  %v2136_v19 = vld [vmem:[#allocation2 + $0x1] ss:$0 sm:$0xff] }
 0x1bb   :  { %v3495_v42 = vadd.f32 %v2133_v30, %v1620_v41 }
 0x1bd   :  { %v2689_v32 = vpack.c.bf16 %v3495_v42, %v3493_v34  ;;  %v1718_v7 = vmul.f32 %v3495_v42, %v3495_v42 }
 0x1be   :  { %v1601_v63 = vpop.f32.mrb[92].mxu0 }
 0x1bf   :  { %v1621_v2 = vadd.f32 %v1601_v63, %v1457_v25  ;;  %v2634_v33 = vpop.f32.mrb[93].mxu0  ;;  %2690 = vmatpush3.bf16.msra.mxu1 %v2689_v32  ;;  %v2695_v25 = vpack.c.bf16 %v1714_v9, %v1713_v1  ;;  %v2137_v32 = vld [vmem:[#allocation2 + $0x2] ss:$0 sm:$0xff] }
 0x1c0   :  { %v1604_v38 = vpop.f32.mrb[94].mxu0  ;;  %2691 = vmatprep.subr.bf16.mxu1 %v2833_v31 }
 0x1c1   :  { %v1622_v57 = vadd.f32 %v1604_v38, %v1458_v10  ;;  %v2635_v55 = vpop.f32.mrb[95].mxu0  ;;  %v3500_v37 = vadd.f32 %v2133_v30, %v1621_v2  ;;  %v1717_v10 = vmul.f32 %v3493_v34, %v3493_v34 }
 0x1c3   :  { %v3502_v5 = vadd.f32 %v2133_v30, %v1622_v57  ;;  %v2701_v36 = vpack.c.bf16 %v1718_v7, %v1717_v10  ;;  %v1719_v4 = vmul.f32 %v3500_v37, %v3500_v37 }
 0x1c5   :  { %v2692_v6 = vpack.c.bf16 %v3502_v5, %v3500_v37  ;;  %v1720_v35 = vmul.f32 %v3502_v5, %v3502_v5 }
 0x1c6   :  { %v1609_v61 = vpop.f32.mrb[96].mxu0 }
 0x1c7   :  { %v1623_v62 = vadd.f32 %v1609_v61, %v1459_v26  ;;  %2693 = vmatpush3.bf16.msra.mxu1 %v2692_v6  ;;  %v2638_v49 = vpop.f32.mrb[97].mxu0  ;;  %v2704_v43 = vpack.c.bf16 %v1720_v35, %v1719_v4 }
 0x1c8   :  { %v1612_v11 = vpop.f32.mrb[98].mxu0  ;;  %2656 = vmatprep.subr.mxu1 %v2831_v0 }
 0x1c9   :  { %v3511_v22 = vadd.f32 %v2133_v30, %v1623_v62  ;;  %v2639_v3 = vpop.f32.mrb[99].mxu0  ;;  %v1796_v30 = vshrl.u32 %v1795_v27, 7 }
 0x1cb   :  { %2657 = vmatpush3.msra.mxu1 %v3511_v22  ;;  %v1721_v21 = vmul.f32 %v3511_v22, %v3511_v22  ;;  %v1797_v18 = vsub.s32 0, %v1796_v30 }
 0x1cc   :  { %2659 = vmatmul.mubr.msk.f32.vlgmr.msra.gmra.mrb[80].mxu1 %vm1639_vm7, %v1638_v24  ;;  %2694 = vmatprep.subr.bf16.mxu1 %v2833_v31 }
 0x1cd   :  { %2696 = vmatpush3.bf16.msra.mxu1 %v2695_v25  ;;  %2679 = vmatprep.mubr.msk.f32.mxu1 %vm2832_vm0, %v2831_v0 }
 0x1ce   :  { %2697 = vmatprep.subr.bf16.mxu1 %v2833_v31 }
 0x1d1   :  { %2699 = vmatpush3.bf16.msra.mxu1 %v2698_v28 }
 0x1d2   :  { %2700 = vmatprep.subr.bf16.mxu1 %v2833_v31 }
 0x1d5   :  { %2702 = vmatpush3.bf16.msra.mxu1 %v2701_v36 }
 0x1d6   :  { %2703 = vmatprep.subr.bf16.mxu1 %v2833_v31 }
 0x1d9   :  { %2705 = vmatpush3.bf16.msra.mxu1 %v2704_v43 }
 0x1da   :  { %2677 = vmatprep.subr.mxu1 %v2831_v0 }
 0x1dd   :  { %2678 = vmatpush3.msra.mxu1 %v1721_v21 }
 0x1de   :  { %2680 = vmatmul.mubr.msk.f32.vlgmr.msra.gmra.mrb[82].mxu1 %vm1639_vm7, %v1638_v24 }
 0x29f   :  { %v1709_v44 = vpop.f32.mrb[80].mxu1 }
 0x2a0   :  { %v2660_v26 = vpop.f32.mrb[81].mxu1  ;;  %v1792_v46 = vmul.f32 %v1709_v44, %v1709_v44  ;;  %v1798_v17 = vrot.slane %v1709_v44, %v1797_v18 }
 0x2a2   :  { %v1799_v15 = vsub.f32 %v3479_v39, %v1798_v17  ;;  %v1800_v47 = vsub.f32 %v3481_v14, %v1798_v17  ;;  %v1801_v16 = vsub.f32 %v3486_v54, %v1798_v17  ;;  %v1802_v20 = vsub.f32 %v3488_v50, %v1798_v17 }
 0x2a3   :  { %v1803_v23 = vsub.f32 %v3493_v34, %v1798_v17  ;;  %v1804_v45 = vsub.f32 %v3495_v42, %v1798_v17  ;;  %v1805_v53 = vsub.f32 %v3500_v37, %v1798_v17  ;;  %v1806_v56 = vsub.f32 %v3502_v5, %v1798_v17 }
 0x2a4   :  { %v1807_v52 = vsub.f32 %v3511_v22, %v1798_v17 }
 0x2b1   :  { %v1788_v48 = vpop.f32.mrb[82].mxu1 }
 0x2b2   :  { %v1793_v12 = vsub.f32 %v1788_v48, %v1792_v46  ;;  %v2681_v29 = vpop.f32.mrb[83].mxu1 }
 0x2b4   :  { %v1794_v13 = vmax.f32 %v1793_v12, 0.0 }
 0x2b6   :  { %v1808_v31 = vadd.f32 1e-05, %v1794_v13 }
 0x2b8   :  { %2804 = vrsqrt.f32 %v1808_v31 }
 0x2c2   :  { %v2805_v0 = vpop.eup %2804 }
 0x2c3   :  { %v1813_v51 = vrot.slane %v2805_v0, %v1797_v18 }
 0x2c5   :  { %v1814_v58 = vmul.f32 %v1813_v51, %v1799_v15  ;;  %v1815_v39 = vmul.f32 %v1813_v51, %v1800_v47  ;;  %v1816_v40 = vmul.f32 %v1813_v51, %v1801_v16  ;;  %v1817_v14 = vmul.f32 %v1813_v51, %v1802_v20 }
 0x2c6   :  { %v1818_v41 = vmul.f32 %v1813_v51, %v1803_v23  ;;  %v1819_v54 = vmul.f32 %v1813_v51, %v1804_v45  ;;  %v1820_v59 = vmul.f32 %v1813_v51, %v1805_v53  ;;  %v1821_v50 = vmul.f32 %v1813_v51, %v1806_v56 }
 0x2c7   :  { %v1822_v34 = vmul.f32 %v1813_v51, %v1807_v52  ;;  %v1828_v63 = vmul.f32 %v2136_v19, %v1814_v58  ;;  %v1829_v2 = vmul.f32 %v2136_v19, %v1815_v39  ;;  %v1830_v42 = vmul.f32 %v2136_v19, %v1816_v40 }
 0x2c8   :  { %v1831_v33 = vmul.f32 %v2136_v19, %v1817_v14  ;;  %v1832_v38 = vmul.f32 %v2136_v19, %v1818_v41  ;;  %v1833_v57 = vmul.f32 %v2136_v19, %v1819_v54  ;;  %v1834_v55 = vmul.f32 %v2136_v19, %v1820_v59 }
 0x2c9   :  { %v1835_v37 = vmul.f32 %v2136_v19, %v1821_v50  ;;  %v1836_v5 = vmul.f32 %v2136_v19, %v1822_v34  ;;  %v1842_v6 = vadd.f32 %v2137_v32, %v1828_v63  ;;  %v1843_v61 = vadd.f32 %v2137_v32, %v1829_v2 }
 0x2ca   :  { %v1844_v9 = vadd.f32 %v2137_v32, %v1830_v42  ;;  %v1845_v62 = vadd.f32 %v2137_v32, %v1831_v33  ;;  %v1846_v49 = vadd.f32 %v2137_v32, %v1832_v38  ;;  %v1847_v11 = vadd.f32 %v2137_v32, %v1833_v57 }
 0x2cb   :  { %v1848_v1 = vadd.f32 %v2137_v32, %v1834_v55  ;;  %v1849_v22 = vadd.f32 %v2137_v32, %v1835_v37  ;;  %v1850_v3 = vadd.f32 %v2137_v32, %v1836_v5  ;;  %v1851_v24 = vmax.f32 %v1842_v6, 0.0 }
 0x2cc   :  { %v1852_v8 = vmax.f32 %v1843_v61, 0.0  ;;  %v1853_v25 = vmax.f32 %v1844_v9, 0.0  ;;  %v1854_v60 = vmax.f32 %v1845_v62, 0.0  ;;  %v1855_v7 = vmax.f32 %v1846_v49, 0.0 }
 0x2cd   :  { %v1856_v28 = vmax.f32 %v1847_v11, 0.0  ;;  %v1857_v10 = vmax.f32 %v1848_v1, 0.0  ;;  %v1858_v35 = vmax.f32 %v1849_v22, 0.0  ;;  %v1859_v36 = vmax.f32 %v1850_v3, 0.0 }
 0x2ce   :  { %v2159_v4 = vpack.c.bf16 %v1852_v8, %v1851_v24  ;;  %v2164_v43 = vpack.c.bf16 %v1854_v60, %v1853_v25 }
 0x2cf   :  { %v2155_v21 = vpack.c.bf16 %v1859_v36, %v1859_v36  ;;  %v2169_v44 = vpack.c.bf16 %v1856_v28, %v1855_v7  ;;  %v2174_v26 = vpack.c.bf16 %v1858_v35, %v1857_v10 }
 0x2d0   :  { %2160 = vst [vmem:[%s3568_s4] sm:$0xff] %v2159_v4   ;;  %2176 = vst [vmem:[%s3568_s4 + $0x8] sm:$0xff] %v2164_v43  }
 0x2d1   :  { %2177 = vst [vmem:[%s3568_s4 + $0x10] sm:$0xff] %v2169_v44   ;;  %2178 = vst [vmem:[%s3568_s4 + $0x18] sm:$0xff] %v2174_v26  }
 0x2d2   :  { %1905 = vst [vmem:[%s3568_s4 + $0x20] sm:$0xf] %v2155_v21 }
 0x2d3   :  { %1910 = vsyncpa [#allocation3], 1 }

// kernel: cnn_autoencoder_forward.16
= control target key start
LH: loop header
LB: loop body
LE: loop exit
PB: predicated region body
PF: predicated region fallthrough
CT: control target
= control target key end

     0   :  { %vm60_vm0 = vsmask.f32 7424  ;;  %vm422_vm1 = vsmask.f32 6400  ;;  %vm296_vm2 = vcmask 1046528   ;;  %vm562_vm3 = vcmask 1045504   ;;  %s2175_s1 = inlined_call_operand.vmem [shape: bf16[9,128,128], index: 1, kind: input, shape index: {}]   ;;  %s2176_s0 = inlined_call_operand.vmem [shape: bf16[26,128], index: 0, kind: input, shape index: {}]   ;;  %s2177_s2 = inlined_call_operand.vmem [shape: f32[3,128], index: 2, kind: input, shape index: {}]   ;;  %s2178_s3 = inlined_call_operand.vmem [shape: bf16[18,128], index: 3, kind: output, shape index: {}]  }
   0x1   :  { %v1743_v0 = vld [vmem:[%s2175_s1 + $0x40] sm:$0xff]   ;;  %v1745_v2 = vld [vmem:[%s2175_s1 + $0x48] sm:$0xff]   ;;  %v1747_v4 = vld [vmem:[%s2175_s1 + $0x50] sm:$0xff]   ;;  %vm688_vm4 = vsmask.f32 5376  ;;  %vm828_vm5 = vcmask 1044480  }
   0x2   :  { %v1744_v1 = vld [vmem:[%s2175_s1] sm:$0xff]   ;;  %1563 = vmatprep.subr.bf16.mxu0 %v1743_v0  ;;  %v1746_v3 = vld [vmem:[%s2175_s1 + $0x8] sm:$0xff]   ;;  %v1748_v5 = vld [vmem:[%s2175_s1 + $0x10] sm:$0xff]   ;;  %vm964_vm6 = vsmask.f32 4352 }
   0x3   :  { %1583 = vmatprep.subr.bf16.mxu1 %v1744_v1  ;;  %1564 = vmatpush3.bf16.msra.mxu0 %v1743_v0  ;;  %v1749_v6 = vld [vmem:[%s2175_s1 + $0x58] sm:$0xff]   ;;  %v1751_v8 = vld [vmem:[%s2175_s1 + $0x60] sm:$0xff]   ;;  %v1753_v10 = vld [vmem:[%s2175_s1 + $0x68] sm:$0xff]  }
   0x4   :  { %1584 = vmatpush3.bf16.msra.mxu1 %v1744_v1  ;;  %1565 = vmatprep.subr.bf16.mxu0 %v1745_v2  ;;  %v1750_v7 = vld [vmem:[%s2175_s1 + $0x18] sm:$0xff]   ;;  %v1752_v9 = vld [vmem:[%s2175_s1 + $0x20] sm:$0xff]   ;;  %v1754_v13 = vld [vmem:[%s2175_s1 + $0x28] sm:$0xff]  }
   0x5   :  { %1585 = vmatprep.subr.bf16.mxu1 %v1746_v3  ;;  %v15_v11 = vld [vmem:[%s2176_s0] sm:$0xf]  ;;  %v1898_v12 = vld [vmem:[%s2176_s0 + $0x4] sm:$0xf]  ;;  %v1755_v16 = vld [vmem:[%s2175_s1 + $0x70] sm:$0xff]  }
   0x6   :  { %v1265_v14 = vcombine.low %v15_v11, %v1898_v12  ;;  %v1907_v15 = vld [vmem:[%s2176_s0 + $0x8] ss:$0 sps:$4 sm:$0x33]   ;;  %v1756_v20 = vld [vmem:[%s2175_s1 + $0x30] sm:$0xff]   ;;  %v1757_v24 = vld [vmem:[%s2175_s1 + $0x78] sm:$0xff]  }
   0x7   :  { %1566 = vmatpush3.bf16.msra.mxu0 %v1745_v2  ;;  %v69_v19 = vshll.u32 %v1907_v15, 16  ;;  %v1758_v25 = vld [vmem:[%s2175_s1 + $0x38] sm:$0xff]   ;;  %v73_v27 = vshrl.u32 %v1907_v15, 16  ;;  %v1762_v28 = vld [vmem:[%s2175_s1 + $0x80] sm:$0xff]   ;;  %v1764_v32 = vld [vmem:[%s2175_s1 + $0x88] sm:$0xff]   ;;  %v298_v36 = vrot.slane %v1907_v15, 1 }
   0x8   :  { %1586 = vmatpush3.bf16.msra.mxu1 %v1746_v3  ;;  %1567 = vmatprep.subr.bf16.mxu0 %v1747_v4  ;;  %v62_v17 = vshrl.u32 %v1265_v14, 16  ;;  %v64_v18 = vshll.u32 %v1265_v14, 16  ;;  %v1761_v29 = vld [vmem:[%s2176_s0 + $0x8] ss:$0 sps:$4 sm:$0x11]   ;;  %v1763_v30 = vld [vmem:[%s2175_s1 + $0xc0] sm:$0xff]  }
   0x9   :  { %1587 = vmatprep.subr.bf16.mxu1 %v1748_v5  ;;  %1599 = vmatprep.mubr.bf16.mxu1 %v1265_v14  ;;  %v71_v22 = vrot.slane %v69_v19, 1  ;;  %v1765_v33 = vld [vmem:[%s2175_s1 + $0xc8] sm:$0xff]   ;;  %v275_v34 = vld [vmem:[%s2176_s0] sm:$0xe]  ;;  %v1766_v37 = vld [vmem:[%s2175_s1 + $0x90] sm:$0xff]  }
   0xa   :  { %v66_v21 = vrot.slane %v64_v18, 1  ;;  %v1300_v35 = vcombine.low %v275_v34, %v1898_v12  ;;  %v1950_v38 = vld [vmem:[%s2176_s0 + $0x8] ss:$0 sps:$4 sm:$0x77]   ;;  %v1767_v39 = vld [vmem:[%s2175_s1 + $0xd0] sm:$0xff]   ;;  %v1768_v48 = vld [vmem:[%s2175_s1 + $0x98] sm:$0xff]  }
   0xb   :  { %1568 = vmatpush3.bf16.msra.mxu0 %v1747_v4  ;;  %v75_v31 = vor.u32 %v73_v27, %v71_v22  ;;  %v432_v43 = vshrl.u32 %v1950_v38, 16  ;;  %v435_v44 = vshll.u32 %v1950_v38, 16  ;;  %v1769_v49 = vld [vmem:[%s2175_s1 + $0xd8] sm:$0xff]   ;;  %v1770_v54 = vld [vmem:[%s2175_s1 + $0xa0] sm:$0xff]   ;;  %v1772_v57 = vld [vmem:[%s2175_s1 + $0xa8] sm:$0xff]   ;;  %v564_v14 = vrot.slane %v1950_v38, 2 }
   0xc   :  { %1588 = vmatpush3.bf16.msra.mxu1 %v1748_v5  ;;  %1569 = vmatprep.subr.bf16.mxu0 %v1749_v6  ;;  %v67_v23 = vor.u32 %v66_v21, %v62_v17  ;;  %v297_v40 = vrot.slane %v1300_v35, 1  ;;  %v424_v41 = vshrl.u32 %v1300_v35, 16  ;;  %v427_v42 = vshll.u32 %v1300_v35, 16  ;;  %v1771_v56 = vld [vmem:[%s2175_s1 + $0xe0] sm:$0xff]   ;;  %v1773_v58 = vld [vmem:[%s2175_s1 + $0xe8] sm:$0xff]   ;;  %v1774_v59 = vld [vmem:[%s2175_s1 + $0xb0] sm:$0xff]  }
   0xd   :  { %1589 = vmatprep.subr.bf16.mxu1 %v1750_v7  ;;  %v434_v50 = vrot.slane %v432_v43, 1  ;;  %v437_v51 = vrot.slane %v435_v44, 2  ;;  %v541_v60 = vld [vmem:[%s2176_s0] sm:$0xc]  ;;  %v1775_v61 = vld [vmem:[%s2175_s1 + $0xf0] sm:$0xff]   ;;  %v1776_v0 = vld [vmem:[%s2175_s1 + $0xb8] sm:$0xff]  }
   0xe   :  { %v72_v26 = vsel %vm60_vm0, %v67_v23, %v71_v22  ;;  %v299_v45 = vsel %vm296_vm2, %v297_v40, %v298_v36  ;;  %v426_v46 = vrot.slane %v424_v41, 1  ;;  %v429_v47 = vrot.slane %v427_v42, 2  ;;  %v1991_v63 = vld [vmem:[%s2176_s0 + $0x8] ss:$0 sps:$4 sm:$0xff]   ;;  %v1777_v5 = vld [vmem:[%s2175_s1 + $0xf8] sm:$0xff]   ;;  %v1781_v11 = vld [vmem:[%s2175_s1 + $0x140] sm:$0xff]  }
   0xf   :  { %1570 = vmatpush3.bf16.msra.mxu0 %v1749_v6  ;;  %1579 = vmatprep.mubr.bf16.mxu0 %v72_v26  ;;  %v438_v53 = vor.u32 %v437_v51, %v434_v50  ;;  %v1350_v62 = vcombine.low %v541_v60, %v1898_v12  ;;  %v698_v3 = vshrl.u32 %v1991_v63, 16  ;;  %v701_v4 = vshll.u32 %v1991_v63, 16  ;;  %v1783_v19 = vld [vmem:[%s2175_s1 + $0x148] sm:$0xff]   ;;  %v1784_v22 = vld [vmem:[%s2175_s1 + $0x110] sm:$0xff]   ;;  %v807_v15 = vld [vmem:[%s2176_s0] sm:$0x8] }
  0x10   :  { %1590 = vmatpush3.bf16.msra.mxu1 %v1750_v7  ;;  %1571 = vmatprep.subr.bf16.mxu0 %v1751_v8  ;;  %v430_v52 = vor.u32 %v429_v47, %v426_v46  ;;  %v1785_v23 = vld [vmem:[%s2175_s1 + $0x150] sm:$0xff]   ;;  %v1787_v26 = vld [vmem:[%s2175_s1 + $0x158] sm:$0xff]   ;;  %v1788_v27 = vld [vmem:[%s2175_s1 + $0x120] sm:$0xff]  }
  0x11   :  { %1591 = vmatprep.subr.bf16.mxu1 %v1752_v9  ;;  %v690_v1 = vshrl.u32 %v1350_v62, 16  ;;  %v693_v2 = vshll.u32 %v1350_v62, 16  ;;  %v1794_v43 = vld [vmem:[%s2175_s1 + $0x138] sm:$0xff]   ;;  %v1799_v50 = vld [vmem:[%s2175_s1 + $0x1c0] sm:$0xff]   ;;  %v1803_v60 = vld [vmem:[%s2175_s1 + $0x1d0] sm:$0xff]  }
  0x12   :  { %v439_v55 = vsel %vm422_vm1, %v430_v52, %v438_v53  ;;  %v1795_v44 = vld [vmem:[%s2175_s1 + $0x178] sm:$0xff]   ;;  %v830_v52 = vrot.slane %v1991_v63, 3  ;;  %v1821_v63 = vld [vmem:[%s2175_s1 + $0x220] sm:$0xff]  }
  0x13   :  { %1572 = vmatpush3.bf16.msra.mxu0 %v1751_v8  ;;  %v692_v6 = vrot.slane %v690_v1, 2  ;;  %v695_v7 = vrot.slane %v693_v2, 3  ;;  %v700_v8 = vrot.slane %v698_v3, 2  ;;  %v1804_v38 = vld [vmem:[%s2175_s1 + $0x198] sm:$0xff]   ;;  %v1808_v1 = vld [vmem:[%s2175_s1 + $0x1a8] sm:$0xff]   ;;  %v1810_v3 = vld [vmem:[%s2175_s1 + $0x1b0] sm:$0xff]  }
  0x14   :  { %1592 = vmatpush3.bf16.msra.mxu1 %v1752_v9  ;;  %1573 = vmatprep.subr.bf16.mxu0 %v1753_v10  ;;  %v703_v9 = vrot.slane %v701_v4, 3  ;;  %v1809_v2 = vld [vmem:[%s2175_s1 + $0x1e8] sm:$0xff]   ;;  %v1811_v4 = vld [vmem:[%s2175_s1 + $0x1f0] sm:$0xff]  }
  0x15   :  { %1593 = vmatprep.subr.bf16.mxu1 %v1754_v13  ;;  %v696_v17 = vor.u32 %v695_v7, %v692_v6  ;;  %v1813_v6 = vld [vmem:[%s2175_s1 + $0x1f8] sm:$0xff]   ;;  %v1815_v7 = vld [vmem:[%s2175_s1 + $0x200] sm:$0xff]  }
  0x16   :  { %v2011_v18 = vor.u32 %v703_v9, %v700_v8  ;;  %v1818_v8 = vld [vmem:[%s2175_s1 + $0x208] sm:$0xff]  }
  0x17   :  { %1574 = vmatpush3.bf16.msra.mxu0 %v1753_v10  ;;  %v1779_v10 = vld [vmem:[%s2175_s1 + $0x100] sm:$0xff]  }
  0x18   :  { %1594 = vmatpush3.bf16.msra.mxu1 %v1754_v13  ;;  %1575 = vmatprep.subr.bf16.mxu0 %v1755_v16  ;;  %v563_v13 = vrot.slane %v1350_v62, 2  ;;  %v705_v21 = vsel %vm688_vm4, %v696_v17, %v2011_v18  ;;  %v1806_v62 = vld [vmem:[%s2175_s1 + $0x1a0] sm:$0xff]  }
  0x19   :  { %1595 = vmatprep.subr.bf16.mxu1 %v1756_v20 }
  0x1b   :  { %1576 = vmatpush3.bf16.msra.mxu0 %v1755_v16  ;;  %v1782_v16 = vld [vmem:[%s2175_s1 + $0x108] sm:$0xff]  }
  0x1c   :  { %1596 = vmatpush3.bf16.msra.mxu1 %v1756_v20  ;;  %1577 = vmatprep.subr.bf16.mxu0 %v1757_v24  ;;  %v565_v20 = vsel %vm562_vm3, %v563_v13, %v564_v14  ;;  %v1822_v13 = vld [vmem:[%s2175_s1 + $0x228] sm:$0xff]  }
  0x1d   :  { %1597 = vmatprep.subr.bf16.mxu1 %v1758_v25 }
  0x1f   :  { %1578 = vmatpush3.bf16.msra.mxu0 %v1757_v24  ;;  %v1786_v24 = vld [vmem:[%s2175_s1 + $0x118] sm:$0xff]  }
  0x20   :  { %1598 = vmatpush3.bf16.msra.mxu1 %v1758_v25  ;;  %1603 = vmatprep.subr.bf16.mxu0 %v1762_v28  ;;  %v1400_v25 = vcombine.low %v807_v15, %v1898_v12  ;;  %v1790_v12 = vld [vmem:[%s2175_s1 + $0x128] sm:$0xff]  }
  0x21   :  { %1623 = vmatprep.subr.bf16.mxu1 %v1763_v30 }
  0x22   :  { %1580 = vmatmul.mubr.bf16.vlgmr.msra.gmra.mrb[0].mxu0 %v75_v31  ;;  %v2057_v31 = vld [vmem:[%s2176_s0 + $0x8] sm:$0xf]  ;;  %v829_v51 = vrot.slane %v1400_v25, 3 }
  0x23   :  { %1600 = vmatmul.mubr.bf16.vlgmr.msra.gmra.mrb[0].mxu1 %v1761_v29  ;;  %1604 = vmatpush3.bf16.msra.mxu0 %v1762_v28  ;;  %v1789_v28 = vld [vmem:[%s2175_s1 + $0x160] sm:$0xff]  }
  0x24   :  { %1624 = vmatpush3.bf16.msra.mxu1 %v1763_v30  ;;  %1605 = vmatprep.subr.bf16.mxu0 %v1764_v32  ;;  %v933_v29 = vld [vmem:[%s2176_s0] sm:$0x8]  ;;  %v2052_v30 = vld [vmem:[%s2176_s0 + $0x4] sm:$0xf] }
  0x25   :  { %1625 = vmatprep.subr.bf16.mxu1 %v1765_v33  ;;  %1619 = vmatprep.mubr.bf16.mxu0 %v299_v45  ;;  %v1425_v34 = vcombine.low %v933_v29, %v2052_v30  ;;  %v1451_v9 = vcombine.low %v2052_v30, %v2057_v31 }
  0x26   :  { %1639 = vmatprep.mubr.bf16.mxu1 %v439_v55  ;;  %v1800_v55 = vld [vmem:[%s2175_s1 + $0x188] sm:$0xff]  }
  0x27   :  { %1606 = vmatpush3.bf16.msra.mxu0 %v1764_v32  ;;  %v2062_v32 = vld [vmem:[%s2176_s0 + $0xc] sm:$0x1]  ;;  %v969_v40 = vshll.u32 %v1425_v34, 16 }
  0x28   :  { %1626 = vmatpush3.bf16.msra.mxu1 %v1765_v33  ;;  %1607 = vmatprep.subr.bf16.mxu0 %v1766_v37  ;;  %v1791_v33 = vld [vmem:[%s2175_s1 + $0x168] sm:$0xff]   ;;  %v1426_v35 = vcombine.low %v2057_v31, %v2062_v32  ;;  %v1452_v17 = vcombine.low %v2062_v32, %v2062_v32 }
  0x29   :  { %1627 = vmatprep.subr.bf16.mxu1 %v1767_v39  ;;  %v971_v46 = vrot.slane %v969_v40, 4 }
  0x2a   :  { %v974_v41 = vshrl.u32 %v1426_v35, 16  ;;  %v977_v42 = vshll.u32 %v1426_v35, 16 }
  0x2b   :  { %1608 = vmatpush3.bf16.msra.mxu0 %v1766_v37  ;;  %v1793_v37 = vld [vmem:[%s2175_s1 + $0x170] sm:$0xff]  }
  0x2c   :  { %1628 = vmatpush3.bf16.msra.mxu1 %v1767_v39  ;;  %1609 = vmatprep.subr.bf16.mxu0 %v1768_v48  ;;  %v966_v39 = vshrl.u32 %v1425_v34, 16  ;;  %v976_v47 = vrot.slane %v974_v41, 3 }
  0x2d   :  { %1629 = vmatprep.subr.bf16.mxu1 %v1769_v49 }
  0x2e   :  { %v968_v45 = vrot.slane %v966_v39, 3 }
  0x2f   :  { %1610 = vmatpush3.bf16.msra.mxu0 %v1768_v48  ;;  %v979_v48 = vrot.slane %v977_v42, 4 }
  0x30   :  { %1630 = vmatpush3.bf16.msra.mxu1 %v1769_v49  ;;  %1611 = vmatprep.subr.bf16.mxu0 %v1770_v54  ;;  %v1797_v49 = vld [vmem:[%s2175_s1 + $0x180] sm:$0xff]  }
  0x31   :  { %1631 = vmatprep.subr.bf16.mxu1 %v1771_v56 }
  0x33   :  { %1612 = vmatpush3.bf16.msra.mxu0 %v1770_v54  ;;  %v980_v54 = vor.u32 %v979_v48, %v976_v47 }
  0x34   :  { %1632 = vmatpush3.bf16.msra.mxu1 %v1771_v56  ;;  %1613 = vmatprep.subr.bf16.mxu0 %v1772_v57  ;;  %v1801_v56 = vld [vmem:[%s2175_s1 + $0x1c8] sm:$0xff]  }
  0x35   :  { %1633 = vmatprep.subr.bf16.mxu1 %v1773_v58 }
  0x37   :  { %1614 = vmatpush3.bf16.msra.mxu0 %v1772_v57  ;;  %v831_v57 = vsel %vm828_vm5, %v829_v51, %v830_v52 }
  0x38   :  { %1634 = vmatpush3.bf16.msra.mxu1 %v1773_v58  ;;  %1615 = vmatprep.subr.bf16.mxu0 %v1774_v59 }
  0x39   :  { %1635 = vmatprep.subr.bf16.mxu1 %v1775_v61 }
  0x3b   :  { %1616 = vmatpush3.bf16.msra.mxu0 %v1774_v59  ;;  %v1802_v59 = vld [vmem:[%s2175_s1 + $0x190] sm:$0xff]  }
  0x3c   :  { %1636 = vmatpush3.bf16.msra.mxu1 %v1775_v61  ;;  %1617 = vmatprep.subr.bf16.mxu0 %v1776_v0  ;;  %v1805_v61 = vld [vmem:[%s2175_s1 + $0x1d8] sm:$0xff]  }
  0x3d   :  { %1637 = vmatprep.subr.bf16.mxu1 %v1777_v5 }
  0x3f   :  { %1618 = vmatpush3.bf16.msra.mxu0 %v1776_v0  ;;  %v1807_v0 = vld [vmem:[%s2175_s1 + $0x1e0] sm:$0xff]  }
  0x40   :  { %1638 = vmatpush3.bf16.msra.mxu1 %v1777_v5  ;;  %1643 = vmatprep.subr.bf16.mxu0 %v1779_v10  ;;  %v1812_v5 = vld [vmem:[%s2175_s1 + $0x1b8] sm:$0xff]  }
  0x41   :  { %1663 = vmatprep.subr.bf16.mxu1 %v1781_v11 }
  0x42   :  { %1620 = vmatmul.mubr.bf16.vlgmr.msra.gmra.mrb[4].mxu0 %v298_v36  ;;  %v1792_v36 = vld [vmem:[%s2175_s1 + $0x130] sm:$0xff]  }
  0x43   :  { %1644 = vmatpush3.bf16.msra.mxu0 %v1779_v10  ;;  %1640 = vmatmul.mubr.bf16.vlgmr.msra.gmra.mrb[4].mxu1 %v438_v53  ;;  %v972_v53 = vor.u32 %v971_v46, %v968_v45  ;;  %v1819_v10 = vld [vmem:[%s2175_s1 + $0x210] sm:$0xff]  }
  0x44   :  { %1664 = vmatpush3.bf16.msra.mxu1 %v1781_v11  ;;  %1645 = vmatprep.subr.bf16.mxu0 %v1782_v16  ;;  %v1820_v11 = vld [vmem:[%s2175_s1 + $0x218] sm:$0xff]  }
  0x45   :  { %1665 = vmatprep.subr.bf16.mxu1 %v1783_v19  ;;  %1659 = vmatprep.mubr.bf16.mxu0 %v565_v20  ;;  %v981_v58 = vsel %vm964_vm6, %v972_v53, %v980_v54 }
  0x46   :  { %1679 = vmatprep.mubr.bf16.mxu1 %v705_v21 }
  0x47   :  { %1646 = vmatpush3.bf16.msra.mxu0 %v1782_v16  ;;  %v1824_v16 = vld [vmem:[%s2175_s1 + $0x238] sm:$0xff]  }
  0x48   :  { %1666 = vmatpush3.bf16.msra.mxu1 %v1783_v19  ;;  %1647 = vmatprep.subr.bf16.mxu0 %v1784_v22 }
  0x49   :  { %1667 = vmatprep.subr.bf16.mxu1 %v1785_v23 }
  0x4b   :  { %1648 = vmatpush3.bf16.msra.mxu0 %v1784_v22 }
  0x4c   :  { %1668 = vmatpush3.bf16.msra.mxu1 %v1785_v23  ;;  %1649 = vmatprep.subr.bf16.mxu0 %v1786_v24 }
  0x4d   :  { %1669 = vmatprep.subr.bf16.mxu1 %v1787_v26 }
  0x4f   :  { %1650 = vmatpush3.bf16.msra.mxu0 %v1786_v24 }
  0x50   :  { %1670 = vmatpush3.bf16.msra.mxu1 %v1787_v26  ;;  %1651 = vmatprep.subr.bf16.mxu0 %v1788_v27 }
  0x51   :  { %1671 = vmatprep.subr.bf16.mxu1 %v1789_v28 }
  0x53   :  { %1652 = vmatpush3.bf16.msra.mxu0 %v1788_v27 }
  0x54   :  { %1672 = vmatpush3.bf16.msra.mxu1 %v1789_v28  ;;  %1653 = vmatprep.subr.bf16.mxu0 %v1790_v12 }
  0x55   :  { %1673 = vmatprep.subr.bf16.mxu1 %v1791_v33 }
  0x57   :  { %1654 = vmatpush3.bf16.msra.mxu0 %v1790_v12 }
  0x58   :  { %1674 = vmatpush3.bf16.msra.mxu1 %v1791_v33  ;;  %1655 = vmatprep.subr.bf16.mxu0 %v1792_v36 }
  0x59   :  { %1675 = vmatprep.subr.bf16.mxu1 %v1793_v37 }
  0x5b   :  { %1656 = vmatpush3.bf16.msra.mxu0 %v1792_v36 }
  0x5c   :  { %1676 = vmatpush3.bf16.msra.mxu1 %v1793_v37  ;;  %1657 = vmatprep.subr.bf16.mxu0 %v1794_v43 }
  0x5d   :  { %1677 = vmatprep.subr.bf16.mxu1 %v1795_v44 }
  0x5f   :  { %1658 = vmatpush3.bf16.msra.mxu0 %v1794_v43 }
  0x60   :  { %1678 = vmatpush3.bf16.msra.mxu1 %v1795_v44  ;;  %1683 = vmatprep.subr.bf16.mxu0 %v1797_v49 }
  0x61   :  { %1703 = vmatprep.subr.bf16.mxu1 %v1799_v50 }
  0x62   :  { %1660 = vmatmul.mubr.bf16.vlgmr.msra.gmra.mrb[8].mxu0 %v564_v14  ;;  %v1823_v14 = vld [vmem:[%s2175_s1 + $0x230] sm:$0xff]  }
  0x63   :  { %1684 = vmatpush3.bf16.msra.mxu0 %v1797_v49  ;;  %1680 = vmatmul.mubr.bf16.vlgmr.msra.gmra.mrb[8].mxu1 %v2011_v18 }
  0x64   :  { %1704 = vmatpush3.bf16.msra.mxu1 %v1799_v50  ;;  %1685 = vmatprep.subr.bf16.mxu0 %v1800_v55 }
  0x65   :  { %1705 = vmatprep.subr.bf16.mxu1 %v1801_v56  ;;  %1699 = vmatprep.mubr.bf16.mxu0 %v831_v57 }
  0x66   :  { %1719 = vmatprep.mubr.bf16.mxu1 %v981_v58 }
  0x67   :  { %1686 = vmatpush3.bf16.msra.mxu0 %v1800_v55 }
  0x68   :  { %1706 = vmatpush3.bf16.msra.mxu1 %v1801_v56  ;;  %1687 = vmatprep.subr.bf16.mxu0 %v1802_v59 }
  0x69   :  { %1707 = vmatprep.subr.bf16.mxu1 %v1803_v60 }
  0x6b   :  { %1688 = vmatpush3.bf16.msra.mxu0 %v1802_v59 }
  0x6c   :  { %1708 = vmatpush3.bf16.msra.mxu1 %v1803_v60  ;;  %1689 = vmatprep.subr.bf16.mxu0 %v1804_v38 }
  0x6d   :  { %1709 = vmatprep.subr.bf16.mxu1 %v1805_v61 }
  0x6f   :  { %1690 = vmatpush3.bf16.msra.mxu0 %v1804_v38 }
  0x70   :  { %1710 = vmatpush3.bf16.msra.mxu1 %v1805_v61  ;;  %1691 = vmatprep.subr.bf16.mxu0 %v1806_v62 }
  0x71   :  { %1711 = vmatprep.subr.bf16.mxu1 %v1807_v0 }
  0x73   :  { %1692 = vmatpush3.bf16.msra.mxu0 %v1806_v62 }
  0x74   :  { %1712 = vmatpush3.bf16.msra.mxu1 %v1807_v0  ;;  %1693 = vmatprep.subr.bf16.mxu0 %v1808_v1 }
  0x75   :  { %1713 = vmatprep.subr.bf16.mxu1 %v1809_v2 }
  0x77   :  { %1694 = vmatpush3.bf16.msra.mxu0 %v1808_v1 }
  0x78   :  { %1714 = vmatpush3.bf16.msra.mxu1 %v1809_v2  ;;  %1695 = vmatprep.subr.bf16.mxu0 %v1810_v3 }
  0x79   :  { %1715 = vmatprep.subr.bf16.mxu1 %v1811_v4 }
  0x7b   :  { %1696 = vmatpush3.bf16.msra.mxu0 %v1810_v3 }
  0x7c   :  { %1716 = vmatpush3.bf16.msra.mxu1 %v1811_v4  ;;  %1697 = vmatprep.subr.bf16.mxu0 %v1812_v5 }
  0x7d   :  { %1717 = vmatprep.subr.bf16.mxu1 %v1813_v6 }
  0x7f   :  { %1698 = vmatpush3.bf16.msra.mxu0 %v1812_v5 }
  0x80   :  { %1718 = vmatpush3.bf16.msra.mxu1 %v1813_v6  ;;  %1723 = vmatprep.subr.bf16.mxu0 %v1815_v7 }
  0x82   :  { %1700 = vmatmul.mubr.bf16.vlgmr.msra.gmra.mrb[12].mxu0 %v830_v52 }
  0x83   :  { %1724 = vmatpush3.bf16.msra.mxu0 %v1815_v7  ;;  %1720 = vmatmul.mubr.bf16.vlgmr.msra.gmra.mrb[12].mxu1 %v980_v54  ;;  %v1461_v7 = vld [vmem:[%s2177_s2] ss:$0 sm:$0xff] }
  0x84   :  { %1725 = vmatprep.subr.bf16.mxu0 %v1818_v8  ;;  %1739 = vmatprep.mubr.bf16.mxu0 %v1451_v9 }
  0x87   :  { %1726 = vmatpush3.bf16.msra.mxu0 %v1818_v8 }
  0x88   :  { %1727 = vmatprep.subr.bf16.mxu0 %v1819_v10 }
  0x8b   :  { %1728 = vmatpush3.bf16.msra.mxu0 %v1819_v10 }
  0x8c   :  { %1729 = vmatprep.subr.bf16.mxu0 %v1820_v11 }
  0x8f   :  { %1730 = vmatpush3.bf16.msra.mxu0 %v1820_v11 }
  0x90   :  { %1731 = vmatprep.subr.bf16.mxu0 %v1821_v63 }
  0x93   :  { %1732 = vmatpush3.bf16.msra.mxu0 %v1821_v63 }
  0x94   :  { %1733 = vmatprep.subr.bf16.mxu0 %v1822_v13 }
  0x97   :  { %1734 = vmatpush3.bf16.msra.mxu0 %v1822_v13 }
  0x98   :  { %1735 = vmatprep.subr.bf16.mxu0 %v1823_v14 }
  0x9b   :  { %1736 = vmatpush3.bf16.msra.mxu0 %v1823_v14 }
  0x9c   :  { %1737 = vmatprep.subr.bf16.mxu0 %v1824_v16 }
  0x9f   :  { %1738 = vmatpush3.bf16.msra.mxu0 %v1824_v16 }
  0xa2   :  { %1740 = vmatmul.mubr.bf16.vlgmr.msra.gmra.mrb[16].mxu0 %v1452_v17 }
  0xf5   :  { %v1581_v18 = vpop.f32.mrb[0].mxu0 }
  0xf6   :  { %v1601_v19 = vpop.f32.mrb[0].mxu1  ;;  %v160_v20 = vpop.f32.mrb[1].mxu0 }
  0xf7   :  { %v270_v21 = vadd.f32 %v1601_v19, %v1581_v18  ;;  %v261_v22 = vpop.f32.mrb[1].mxu1  ;;  %v1582_v23 = vpop.f32.mrb[2].mxu0 }
  0xf8   :  { %v262_v15 = vadd.f32 %v261_v22, %v160_v20  ;;  %v1602_v24 = vpop.f32.mrb[2].mxu1  ;;  %v163_v25 = vpop.f32.mrb[3].mxu0 }
  0xf9   :  { %v264_v26 = vpop.f32.mrb[3].mxu1 }
  0xfa   :  { %v265_v27 = vadd.f32 %v264_v26, %v163_v25 }
 0x115   :  { %v1621_v28 = vpop.f32.mrb[4].mxu0 }
 0x116   :  { %v400_v12 = vadd.f32 %v1621_v28, %v270_v21  ;;  %v384_v29 = vpop.f32.mrb[5].mxu0  ;;  %v1641_v30 = vpop.f32.mrb[4].mxu1 }
 0x117   :  { %v398_v31 = vadd.f32 %v384_v29, %v262_v15  ;;  %v1622_v33 = vpop.f32.mrb[6].mxu0  ;;  %v524_v32 = vpop.f32.mrb[5].mxu1 }
 0x118   :  { %v540_v34 = vadd.f32 %v1641_v30, %v400_v12  ;;  %v387_v35 = vpop.f32.mrb[7].mxu0  ;;  %v1642_v36 = vpop.f32.mrb[6].mxu1 }
 0x119   :  { %v399_v37 = vadd.f32 %v387_v35, %v265_v27  ;;  %v538_v39 = vadd.f32 %v524_v32, %v398_v31  ;;  %v527_v40 = vpop.f32.mrb[7].mxu1 }
 0x11b   :  { %v539_v41 = vadd.f32 %v527_v40, %v399_v37 }
 0x135   :  { %v1661_v42 = vpop.f32.mrb[8].mxu0 }
 0x136   :  { %v666_v43 = vadd.f32 %v1661_v42, %v540_v34  ;;  %v650_v44 = vpop.f32.mrb[9].mxu0  ;;  %v1681_v45 = vpop.f32.mrb[8].mxu1 }
 0x137   :  { %v664_v46 = vadd.f32 %v650_v44, %v538_v39  ;;  %v1662_v47 = vpop.f32.mrb[10].mxu0  ;;  %v790_v48 = vpop.f32.mrb[9].mxu1 }
 0x138   :  { %v806_v49 = vadd.f32 %v1681_v45, %v666_v43  ;;  %v653_v50 = vpop.f32.mrb[11].mxu0  ;;  %v1682_v51 = vpop.f32.mrb[10].mxu1 }
 0x139   :  { %v665_v52 = vadd.f32 %v653_v50, %v539_v41  ;;  %v804_v53 = vadd.f32 %v790_v48, %v664_v46  ;;  %v793_v54 = vpop.f32.mrb[11].mxu1 }
 0x13b   :  { %v805_v55 = vadd.f32 %v793_v54, %v665_v52 }
 0x155   :  { %v1701_v56 = vpop.f32.mrb[12].mxu0 }
 0x156   :  { %v932_v57 = vadd.f32 %v1701_v56, %v806_v49  ;;  %v916_v58 = vpop.f32.mrb[13].mxu0  ;;  %v1721_v59 = vpop.f32.mrb[12].mxu1 }
 0x157   :  { %v930_v60 = vadd.f32 %v916_v58, %v804_v53  ;;  %v1702_v38 = vpop.f32.mrb[14].mxu0  ;;  %v1066_v61 = vpop.f32.mrb[13].mxu1 }
 0x158   :  { %v1082_v62 = vadd.f32 %v1721_v59, %v932_v57  ;;  %v919_v0 = vpop.f32.mrb[15].mxu0  ;;  %v1722_v1 = vpop.f32.mrb[14].mxu1 }
 0x159   :  { %v931_v2 = vadd.f32 %v919_v0, %v805_v55  ;;  %v1080_v3 = vadd.f32 %v1066_v61, %v930_v60  ;;  %v1069_v4 = vpop.f32.mrb[15].mxu1 }
 0x15b   :  { %v1081_v5 = vadd.f32 %v1069_v4, %v931_v2 }
 0x175   :  { %v1741_v6 = vpop.f32.mrb[16].mxu0 }
 0x176   :  { %v1202_v8 = vadd.f32 %v1741_v6, %v1082_v62  ;;  %v1186_v9 = vpop.f32.mrb[17].mxu0 }
 0x177   :  { %v1200_v10 = vadd.f32 %v1186_v9, %v1080_v3  ;;  %v1742_v11 = vpop.f32.mrb[18].mxu0 }
 0x178   :  { %v1210_v63 = vadd.f32 %v1461_v7, %v1202_v8  ;;  %v1189_v13 = vpop.f32.mrb[19].mxu0 }
 0x179   :  { %v1208_v14 = vadd.f32 %v1461_v7, %v1200_v10  ;;  %v1201_v16 = vadd.f32 %v1189_v13, %v1081_v5 }
 0x17a   :  { %v1213_v17 = vsub.f32 0.0, %v1210_v63 }
 0x17b   :  { %v1211_v18 = vsub.f32 0.0, %v1208_v14  ;;  %v1209_v19 = vadd.f32 %v1461_v7, %v1201_v16 }
 0x17c   :  { %v1218_v20 = vmul.f32 1.442695, %v1213_v17 }
 0x17d   :  { %v1214_v21 = vmul.f32 1.442695, %v1211_v18  ;;  %v1212_v22 = vsub.f32 0.0, %v1209_v19 }
 0x17e   :  { %1827 = vpow2.f32 %v1218_v20 }
 0x17f   :  { %1829 = vpow2.f32 %v1214_v21  ;;  %v1216_v23 = vmul.f32 1.442695, %v1212_v22 }
 0x181   :  { %1831 = vpow2.f32 %v1216_v23 }
 0x188   :  { %v1828_v15 = vpop.eup %1827 }
 0x189   :  { %v1830_v24 = vpop.eup %1829  ;;  %v1222_v25 = vadd.f32 1.0, %v1828_v15 }
 0x18a   :  { %v1220_v26 = vadd.f32 1.0, %v1830_v24 }
 0x18b   :  { %v1832_v27 = vpop.eup %1831  ;;  %1833 = vrcp.f32 %v1222_v25 }
 0x18c   :  { %v1221_v28 = vadd.f32 1.0, %v1832_v27  ;;  %1835 = vrcp.f32 %v1220_v26 }
 0x18e   :  { %1837 = vrcp.f32 %v1221_v28 }
 0x195   :  { %v1834_v12 = vpop.eup %1833 }
 0x196   :  { %v1467_v29 = vpack.c.bf16 %v1834_v12, %v1834_v12  ;;  %v1836_v30 = vpop.eup %1835 }
 0x198   :  { %v1838_v31 = vpop.eup %1837  ;;  %1244 = vst [vmem:[%s2178_s3 + $0x8] sm:$0x1] %v1467_v29 }
 0x199   :  { %v1471_v33 = vpack.c.bf16 %v1838_v31, %v1836_v30 }
 0x19b   :  { %1472 = vst [vmem:[%s2178_s3] sm:$0xff] %v1471_v33  }

// kernel: cnn_autoencoder_forward.15
= control target key start
LH: loop header
LB: loop body
LE: loop exit
PB: predicated region body
PF: predicated region fallthrough
CT: control target
= control target key end

     0   :  { %9 = vsyncpa [#allocation3], 0  ;;  %s2086_s15 = smov [#allocation2]   ;;  %s2451_s0 = inlined_call_operand.vmem [shape: bf16[26,128], index: 0, kind: input, shape index: {}]   ;;  %s2452_s1 = inlined_call_operand.vmem [shape: bf16[9,128,128], index: 1, kind: input, shape index: {}]   ;;  %s2453_s2 = inlined_call_operand.hbm [shape: f32[3,128], index: 2, kind: input, shape index: {}]   ;;  %s2454_s3 = inlined_call_operand.vmem [shape: f32[1,18], index: 3, kind: input, shape index: {}]   ;;  %s2455_s4 = inlined_call_operand.vmem [shape: bf16[18,128], index: 4, kind: output, shape index: {}]  }
   0x1   :  { %s20_s16 = sshll.u32 %s2086_s15, 4  ;;  %s2062_s19 = scalar_lea.hbm %s2453_s2, 64  ;;  %s21_s16 = int_to_ptr.vmem [resolvable:$true] %s20_s16 }
   0x2   :  { %p2063_p0 = scmp.ne.s32.totalorder %s2453_s2, %s2062_s19  ;;  %p2066_p1 = scmp.lt.u32.totalorder %s2062_s19, %s2453_s2 }
   0x4   :  { %p2068_p2 = pnand %p2066_p1, %p2063_p0 }
   0x6   :  { %2071 = shalt.err (!%p2068_p2)
}
   0x7   :  { %s2072_s24 = scalar_lea.vmem %s21_s16, 64  ;;  %p2077_p4 = scmp.lt.s32.totalorder %s21_s16, %s21_s16 }
   0x8   :  { %p2073_p3 = scmp.ne.s32.totalorder %s21_s16, %s2072_s24  ;;  %p2078_p5 = scmp.lt.s32.totalorder %s2072_s24, %s2072_s24 }
   0xa   :  { %p2079_p6 = por %p2078_p5, %p2077_p4 }
   0xc   :  { %p2080_p7 = pnand %p2079_p6, %p2073_p3 }
   0xe   :  { %2083 = shalt.err (!%p2080_p7)
}
   0xf   :  { %23 = dma.hbm_to_vmem [thread:$0]  %s2453_s2, 64, %s21_s16, [#allocation3]  }
  0x10   :  { %2084 = dma.done.wait [#allocation3], 64  }
  0x11   :  { %2085 = vsyncadd [#allocation3], 4294967232  ;;  %v1976_v0 = vld [vmem:[%s2452_s1 + $0x40] sm:$0xff]   ;;  %v1978_v2 = vld [vmem:[%s2452_s1 + $0x48] sm:$0xff]   ;;  %vm75_vm0 = vsmask.f32 7424 }
  0x12   :  { %v1977_v1 = vld [vmem:[%s2452_s1] sm:$0xff]   ;;  %1768 = vmatprep.subr.bf16.mxu0 %v1976_v0  ;;  %v1979_v3 = vld [vmem:[%s2452_s1 + $0x8] sm:$0xff]   ;;  %v1980_v4 = vld [vmem:[%s2452_s1 + $0x50] sm:$0xff]   ;;  %vm437_vm1 = vsmask.f32 6400  ;;  %vm311_vm2 = vcmask 1046528  }
  0x13   :  { %1788 = vmatprep.subr.bf16.mxu1 %v1977_v1  ;;  %1769 = vmatpush3.bf16.msra.mxu0 %v1976_v0  ;;  %v1981_v5 = vld [vmem:[%s2452_s1 + $0x10] sm:$0xff]   ;;  %v1982_v6 = vld [vmem:[%s2452_s1 + $0x58] sm:$0xff]   ;;  %v1984_v8 = vld [vmem:[%s2452_s1 + $0x60] sm:$0xff]   ;;  %vm577_vm3 = vcmask 1045504   ;;  %vm703_vm4 = vsmask.f32 5376 }
  0x14   :  { %1789 = vmatpush3.bf16.msra.mxu1 %v1977_v1  ;;  %1770 = vmatprep.subr.bf16.mxu0 %v1978_v2  ;;  %v1983_v7 = vld [vmem:[%s2452_s1 + $0x18] sm:$0xff]   ;;  %v1985_v9 = vld [vmem:[%s2452_s1 + $0x20] sm:$0xff]   ;;  %v1986_v10 = vld [vmem:[%s2452_s1 + $0x68] sm:$0xff]   ;;  %vm843_vm5 = vcmask 1044480   ;;  %vm979_vm6 = vsmask.f32 4352 }
  0x15   :  { %1790 = vmatprep.subr.bf16.mxu1 %v1979_v3  ;;  %v30_v11 = vld [vmem:[%s2451_s0] sm:$0xf]  ;;  %v2166_v12 = vld [vmem:[%s2451_s0 + $0x4] sm:$0xf]  ;;  %v1987_v13 = vld [vmem:[%s2452_s1 + $0x28] sm:$0xff]   ;;  %vm2088_vm7 = vmmov 0  }
  0x16   :  { %v1456_v14 = vcombine.low %v30_v11, %v2166_v12  ;;  %v2175_v15 = vld [vmem:[%s2451_s0 + $0x8] ss:$0 sps:$4 sm:$0x33]   ;;  %v1988_v16 = vld [vmem:[%s2452_s1 + $0x70] sm:$0xff]   ;;  %v1990_v24 = vld [vmem:[%s2452_s1 + $0x78] sm:$0xff]   ;;  %vm1231_vm8 = vcmask 1041408  }
  0x17   :  { %1771 = vmatpush3.bf16.msra.mxu0 %v1978_v2  ;;  %v84_v19 = vshll.u32 %v2175_v15, 16  ;;  %v1989_v20 = vld [vmem:[%s2452_s1 + $0x30] sm:$0xff]   ;;  %v1991_v25 = vld [vmem:[%s2452_s1 + $0x38] sm:$0xff]   ;;  %v88_v27 = vshrl.u32 %v2175_v15, 16  ;;  %v1995_v28 = vld [vmem:[%s2452_s1 + $0x80] sm:$0xff]   ;;  %v313_v36 = vrot.slane %v2175_v15, 1 }
  0x18   :  { %1791 = vmatpush3.bf16.msra.mxu1 %v1979_v3  ;;  %1772 = vmatprep.subr.bf16.mxu0 %v1980_v4  ;;  %v77_v17 = vshrl.u32 %v1456_v14, 16  ;;  %v79_v18 = vshll.u32 %v1456_v14, 16  ;;  %v1994_v29 = vld [vmem:[%s2451_s0 + $0x8] ss:$0 sps:$4 sm:$0x11]   ;;  %v1996_v30 = vld [vmem:[%s2452_s1 + $0xc0] sm:$0xff]  }
  0x19   :  { %1792 = vmatprep.subr.bf16.mxu1 %v1981_v5  ;;  %1804 = vmatprep.mubr.bf16.mxu1 %v1456_v14  ;;  %v86_v22 = vrot.slane %v84_v19, 1  ;;  %v1997_v32 = vld [vmem:[%s2452_s1 + $0x88] sm:$0xff]   ;;  %v290_v34 = vld [vmem:[%s2451_s0] sm:$0xe]  ;;  %v1999_v37 = vld [vmem:[%s2452_s1 + $0x90] sm:$0xff]   ;;  %vm1227_vm9 = vcmask 146432  }
  0x1a   :  { %v81_v21 = vrot.slane %v79_v18, 1  ;;  %v1998_v33 = vld [vmem:[%s2452_s1 + $0xc8] sm:$0xff]   ;;  %v1491_v35 = vcombine.low %v290_v34, %v2166_v12  ;;  %v2000_v39 = vld [vmem:[%s2452_s1 + $0xd0] sm:$0xff]   ;;  %v2001_v48 = vld [vmem:[%s2452_s1 + $0x98] sm:$0xff]  }
  0x1b   :  { %1773 = vmatpush3.bf16.msra.mxu0 %v1980_v4  ;;  %v90_v31 = vor.u32 %v88_v27, %v86_v22  ;;  %v2218_v38 = vld [vmem:[%s2451_s0 + $0x8] ss:$0 sps:$4 sm:$0x77]   ;;  %v2002_v49 = vld [vmem:[%s2452_s1 + $0xd8] sm:$0xff]   ;;  %v2003_v54 = vld [vmem:[%s2452_s1 + $0xa0] sm:$0xff]  }
  0x1c   :  { %1793 = vmatpush3.bf16.msra.mxu1 %v1981_v5  ;;  %1774 = vmatprep.subr.bf16.mxu0 %v1982_v6  ;;  %v82_v23 = vor.u32 %v81_v21, %v77_v17  ;;  %v312_v40 = vrot.slane %v1491_v35, 1  ;;  %v439_v41 = vshrl.u32 %v1491_v35, 16  ;;  %v442_v42 = vshll.u32 %v1491_v35, 16  ;;  %v2004_v56 = vld [vmem:[%s2452_s1 + $0xe0] sm:$0xff]   ;;  %v2005_v57 = vld [vmem:[%s2452_s1 + $0xa8] sm:$0xff]   ;;  %v2007_v59 = vld [vmem:[%s2452_s1 + $0xb0] sm:$0xff]  }
  0x1d   :  { %1794 = vmatprep.subr.bf16.mxu1 %v1983_v7  ;;  %v447_v43 = vshrl.u32 %v2218_v38, 16  ;;  %v450_v44 = vshll.u32 %v2218_v38, 16  ;;  %v2006_v58 = vld [vmem:[%s2452_s1 + $0xe8] sm:$0xff]   ;;  %v556_v60 = vld [vmem:[%s2451_s0] sm:$0xc]  ;;  %v2008_v61 = vld [vmem:[%s2452_s1 + $0xf0] sm:$0xff]  }
  0x1e   :  { %v87_v26 = vsel %vm75_vm0, %v82_v23, %v86_v22  ;;  %v314_v45 = vsel %vm311_vm2, %v312_v40, %v313_v36  ;;  %v441_v46 = vrot.slane %v439_v41, 1  ;;  %v444_v47 = vrot.slane %v442_v42, 2  ;;  %v2259_v63 = vld [vmem:[%s2451_s0 + $0x8] ss:$0 sps:$4 sm:$0xff]   ;;  %v2009_v0 = vld [vmem:[%s2452_s1 + $0xb8] sm:$0xff]   ;;  %v2014_v11 = vld [vmem:[%s2452_s1 + $0x140] sm:$0xff]  }
  0x1f   :  { %1775 = vmatpush3.bf16.msra.mxu0 %v1982_v6  ;;  %1784 = vmatprep.mubr.bf16.mxu0 %v87_v26  ;;  %v449_v50 = vrot.slane %v447_v43, 1  ;;  %v452_v51 = vrot.slane %v450_v44, 2  ;;  %v1541_v62 = vcombine.low %v556_v60, %v2166_v12  ;;  %v713_v3 = vshrl.u32 %v2259_v63, 16  ;;  %v2010_v5 = vld [vmem:[%s2452_s1 + $0xf8] sm:$0xff]   ;;  %v2015_v18 = vld [vmem:[%s2452_s1 + $0x108] sm:$0xff]   ;;  %v2017_v22 = vld [vmem:[%s2452_s1 + $0x110] sm:$0xff]  }
  0x20   :  { %1795 = vmatpush3.bf16.msra.mxu1 %v1983_v7  ;;  %1776 = vmatprep.subr.bf16.mxu0 %v1984_v8  ;;  %v445_v52 = vor.u32 %v444_v47, %v441_v46  ;;  %v716_v4 = vshll.u32 %v2259_v63, 16  ;;  %v579_v14 = vrot.slane %v2218_v38, 2  ;;  %v2016_v19 = vld [vmem:[%s2452_s1 + $0x148] sm:$0xff]   ;;  %v2018_v23 = vld [vmem:[%s2452_s1 + $0x150] sm:$0xff]   ;;  %v2019_v15 = vld [vmem:[%s2452_s1 + $0x118] sm:$0xff]  }
  0x21   :  { %1796 = vmatprep.subr.bf16.mxu1 %v1985_v9  ;;  %v453_v53 = vor.u32 %v452_v51, %v449_v50  ;;  %v705_v1 = vshrl.u32 %v1541_v62, 16  ;;  %v708_v2 = vshll.u32 %v1541_v62, 16  ;;  %v2022_v26 = vld [vmem:[%s2452_s1 + $0x160] sm:$0xff]   ;;  %v2023_v27 = vld [vmem:[%s2452_s1 + $0x128] sm:$0xff]   ;;  %v2025_v35 = vld [vmem:[%s2452_s1 + $0x130] sm:$0xff]  }
  0x22   :  { %v2027_v43 = vld [vmem:[%s2452_s1 + $0x138] sm:$0xff]   ;;  %v2030_v50 = vld [vmem:[%s2452_s1 + $0x180] sm:$0xff]   ;;  %v2036_v60 = vld [vmem:[%s2452_s1 + $0x1d0] sm:$0xff]  }
  0x23   :  { %1777 = vmatpush3.bf16.msra.mxu0 %v1984_v8  ;;  %v454_v55 = vsel %vm437_vm1, %v445_v52, %v453_v53  ;;  %v707_v6 = vrot.slane %v705_v1, 2  ;;  %v710_v7 = vrot.slane %v708_v2, 3  ;;  %v715_v8 = vrot.slane %v713_v3, 2  ;;  %v2028_v44 = vld [vmem:[%s2452_s1 + $0x178] sm:$0xff]   ;;  %v2032_v51 = vld [vmem:[%s2452_s1 + $0x1c0] sm:$0xff]   ;;  %v2041_v1 = vld [vmem:[%s2452_s1 + $0x1a8] sm:$0xff]  }
  0x24   :  { %1797 = vmatpush3.bf16.msra.mxu1 %v1985_v9  ;;  %1778 = vmatprep.subr.bf16.mxu0 %v1986_v10  ;;  %v718_v9 = vrot.slane %v716_v4, 3  ;;  %v2037_v38 = vld [vmem:[%s2452_s1 + $0x198] sm:$0xff]   ;;  %v2042_v2 = vld [vmem:[%s2452_s1 + $0x1e8] sm:$0xff]   ;;  %v2043_v3 = vld [vmem:[%s2452_s1 + $0x1b0] sm:$0xff]  }
  0x25   :  { %1798 = vmatprep.subr.bf16.mxu1 %v1987_v13  ;;  %v2044_v4 = vld [vmem:[%s2452_s1 + $0x1f0] sm:$0xff]  }
  0x26   :  { %v2276_v17 = vor.u32 %v718_v9, %v715_v8  ;;  %v2051_v8 = vld [vmem:[%s2452_s1 + $0x208] sm:$0xff]  }
  0x27   :  { %1779 = vmatpush3.bf16.msra.mxu0 %v1986_v10  ;;  %v2012_v10 = vld [vmem:[%s2452_s1 + $0x100] sm:$0xff]  }
  0x28   :  { %1799 = vmatpush3.bf16.msra.mxu1 %v1987_v13  ;;  %1780 = vmatprep.subr.bf16.mxu0 %v1988_v16  ;;  %v578_v13 = vrot.slane %v1541_v62, 2  ;;  %v2039_v62 = vld [vmem:[%s2452_s1 + $0x1a0] sm:$0xff]  }
  0x29   :  { %1800 = vmatprep.subr.bf16.mxu1 %v1989_v20 }
  0x2b   :  { %1781 = vmatpush3.bf16.msra.mxu0 %v1988_v16  ;;  %v711_v16 = vor.u32 %v710_v7, %v707_v6  ;;  %v2046_v6 = vld [vmem:[%s2452_s1 + $0x1f8] sm:$0xff]   ;;  %v2048_v7 = vld [vmem:[%s2452_s1 + $0x200] sm:$0xff]  }
  0x2c   :  { %1801 = vmatpush3.bf16.msra.mxu1 %v1989_v20  ;;  %1782 = vmatprep.subr.bf16.mxu0 %v1990_v24  ;;  %v580_v20 = vsel %vm577_vm3, %v578_v13, %v579_v14  ;;  %v2055_v13 = vld [vmem:[%s2452_s1 + $0x228] sm:$0xff]  }
  0x2d   :  { %1802 = vmatprep.subr.bf16.mxu1 %v1991_v25  ;;  %v720_v21 = vsel %vm703_vm4, %v711_v16, %v2276_v17  ;;  %v2057_v16 = vld [vmem:[%s2452_s1 + $0x238] sm:$0xff]  }
  0x2f   :  { %1783 = vmatpush3.bf16.msra.mxu0 %v1990_v24  ;;  %v2020_v24 = vld [vmem:[%s2452_s1 + $0x158] sm:$0xff]  }
  0x30   :  { %1803 = vmatpush3.bf16.msra.mxu1 %v1991_v25  ;;  %1808 = vmatprep.subr.bf16.mxu0 %v1995_v28  ;;  %v2021_v25 = vld [vmem:[%s2452_s1 + $0x120] sm:$0xff]  }
  0x31   :  { %1828 = vmatprep.subr.bf16.mxu1 %v1996_v30 }
  0x32   :  { %1785 = vmatmul.mubr.bf16.vlgmr.msra.gmra.mrb[0].mxu0 %v90_v31  ;;  %v2326_v31 = vld [vmem:[%s2451_s0 + $0xc] sm:$0x1] }
  0x33   :  { %1805 = vmatmul.mubr.bf16.vlgmr.msra.gmra.mrb[0].mxu1 %v1994_v29  ;;  %1809 = vmatpush3.bf16.msra.mxu0 %v1995_v28  ;;  %v948_v28 = vld [vmem:[%s2451_s0] sm:$0x8]  ;;  %v2316_v29 = vld [vmem:[%s2451_s0 + $0x4] sm:$0xf] }
  0x34   :  { %1829 = vmatpush3.bf16.msra.mxu1 %v1996_v30  ;;  %1810 = vmatprep.subr.bf16.mxu0 %v1997_v32  ;;  %v2321_v30 = vld [vmem:[%s2451_s0 + $0x8] sm:$0xf] }
  0x35   :  { %1830 = vmatprep.subr.bf16.mxu1 %v1998_v33  ;;  %1824 = vmatprep.mubr.bf16.mxu0 %v314_v45  ;;  %v1617_v34 = vcombine.low %v2321_v30, %v2326_v31  ;;  %v1642_v9 = vcombine.low %v2316_v29, %v2321_v30 }
  0x36   :  { %1844 = vmatprep.mubr.bf16.mxu1 %v454_v55  ;;  %v2033_v55 = vld [vmem:[%s2452_s1 + $0x188] sm:$0xff]  }
  0x37   :  { %1811 = vmatpush3.bf16.msra.mxu0 %v1997_v32  ;;  %v2024_v32 = vld [vmem:[%s2452_s1 + $0x168] sm:$0xff]   ;;  %v989_v41 = vshrl.u32 %v1617_v34, 16  ;;  %v992_v42 = vshll.u32 %v1617_v34, 16 }
  0x38   :  { %1831 = vmatpush3.bf16.msra.mxu1 %v1998_v33  ;;  %1812 = vmatprep.subr.bf16.mxu0 %v1999_v37  ;;  %v1616_v33 = vcombine.low %v948_v28, %v2316_v29  ;;  %v2087_v28 = vmov 0.0|0.0   ;;  %v2089_v29 = vmov 0.0  }
  0x39   :  { %1832 = vmatprep.subr.bf16.mxu1 %v2000_v39 }
  0x3a   :  { %v984_v40 = vshll.u32 %v1616_v33, 16 }
  0x3b   :  { %1813 = vmatpush3.bf16.msra.mxu0 %v1999_v37  ;;  %v822_v37 = vld [vmem:[%s2451_s0] sm:$0x8] }
  0x3c   :  { %1833 = vmatpush3.bf16.msra.mxu1 %v2000_v39  ;;  %1814 = vmatprep.subr.bf16.mxu0 %v2001_v48  ;;  %v981_v39 = vshrl.u32 %v1616_v33, 16  ;;  %v1591_v45 = vcombine.low %v822_v37, %v2166_v12  ;;  %v986_v47 = vrot.slane %v984_v40, 4 }
  0x3d   :  { %1834 = vmatprep.subr.bf16.mxu1 %v2002_v49 }
  0x3e   :  { %v983_v46 = vrot.slane %v981_v39, 3  ;;  %v844_v52 = vrot.slane %v1591_v45, 3 }
  0x3f   :  { %1815 = vmatpush3.bf16.msra.mxu0 %v2001_v48  ;;  %v991_v48 = vrot.slane %v989_v41, 3 }
  0x40   :  { %1835 = vmatpush3.bf16.msra.mxu1 %v2002_v49  ;;  %1816 = vmatprep.subr.bf16.mxu0 %v2003_v54  ;;  %v994_v49 = vrot.slane %v992_v42, 4  ;;  %v987_v12 = vor.u32 %v986_v47, %v983_v46 }
  0x41   :  { %1836 = vmatprep.subr.bf16.mxu1 %v2004_v56 }
  0x43   :  { %1817 = vmatpush3.bf16.msra.mxu0 %v2003_v54  ;;  %v995_v54 = vor.u32 %v994_v49, %v991_v48 }
  0x44   :  { %1837 = vmatpush3.bf16.msra.mxu1 %v2004_v56  ;;  %1818 = vmatprep.subr.bf16.mxu0 %v2005_v57  ;;  %v2034_v56 = vld [vmem:[%s2452_s1 + $0x1c8] sm:$0xff]  }
  0x45   :  { %1838 = vmatprep.subr.bf16.mxu1 %v2006_v58 }
  0x47   :  { %1819 = vmatpush3.bf16.msra.mxu0 %v2005_v57 }
  0x48   :  { %1839 = vmatpush3.bf16.msra.mxu1 %v2006_v58  ;;  %1820 = vmatprep.subr.bf16.mxu0 %v2007_v59  ;;  %v996_v58 = vsel %vm979_vm6, %v987_v12, %v995_v54 }
  0x49   :  { %1840 = vmatprep.subr.bf16.mxu1 %v2008_v61 }
  0x4b   :  { %1821 = vmatpush3.bf16.msra.mxu0 %v2007_v59  ;;  %v2035_v59 = vld [vmem:[%s2452_s1 + $0x190] sm:$0xff]  }
  0x4c   :  { %1841 = vmatpush3.bf16.msra.mxu1 %v2008_v61  ;;  %1822 = vmatprep.subr.bf16.mxu0 %v2009_v0  ;;  %v2038_v61 = vld [vmem:[%s2452_s1 + $0x1d8] sm:$0xff]  }
  0x4d   :  { %1842 = vmatprep.subr.bf16.mxu1 %v2010_v5 }
  0x4f   :  { %1823 = vmatpush3.bf16.msra.mxu0 %v2009_v0  ;;  %v2040_v0 = vld [vmem:[%s2452_s1 + $0x1e0] sm:$0xff]  }
  0x50   :  { %1843 = vmatpush3.bf16.msra.mxu1 %v2010_v5  ;;  %1848 = vmatprep.subr.bf16.mxu0 %v2012_v10  ;;  %v2045_v5 = vld [vmem:[%s2452_s1 + $0x1b8] sm:$0xff]  }
  0x51   :  { %1868 = vmatprep.subr.bf16.mxu1 %v2014_v11 }
  0x52   :  { %1825 = vmatmul.mubr.bf16.vlgmr.msra.gmra.mrb[4].mxu0 %v313_v36  ;;  %v2026_v36 = vld [vmem:[%s2452_s1 + $0x170] sm:$0xff]  }
  0x53   :  { %1849 = vmatpush3.bf16.msra.mxu0 %v2012_v10  ;;  %1845 = vmatmul.mubr.bf16.vlgmr.msra.gmra.mrb[4].mxu1 %v453_v53  ;;  %v845_v53 = vrot.slane %v2259_v63, 3  ;;  %v2052_v10 = vld [vmem:[%s2452_s1 + $0x210] sm:$0xff]   ;;  %v2054_v63 = vld [vmem:[%s2452_s1 + $0x220] sm:$0xff]  }
  0x54   :  { %1869 = vmatpush3.bf16.msra.mxu1 %v2014_v11  ;;  %1850 = vmatprep.subr.bf16.mxu0 %v2015_v18  ;;  %v2053_v11 = vld [vmem:[%s2452_s1 + $0x218] sm:$0xff]  }
  0x55   :  { %1870 = vmatprep.subr.bf16.mxu1 %v2016_v19  ;;  %1864 = vmatprep.mubr.bf16.mxu0 %v580_v20  ;;  %v846_v57 = vsel %vm843_vm5, %v844_v52, %v845_v53 }
  0x56   :  { %1884 = vmatprep.mubr.bf16.mxu1 %v720_v21 }
  0x57   :  { %1851 = vmatpush3.bf16.msra.mxu0 %v2015_v18 }
  0x58   :  { %1871 = vmatpush3.bf16.msra.mxu1 %v2016_v19  ;;  %1852 = vmatprep.subr.bf16.mxu0 %v2017_v22 }
  0x59   :  { %1872 = vmatprep.subr.bf16.mxu1 %v2018_v23 }
  0x5b   :  { %1853 = vmatpush3.bf16.msra.mxu0 %v2017_v22 }
  0x5c   :  { %1873 = vmatpush3.bf16.msra.mxu1 %v2018_v23  ;;  %1854 = vmatprep.subr.bf16.mxu0 %v2019_v15 }
  0x5d   :  { %1874 = vmatprep.subr.bf16.mxu1 %v2020_v24 }
  0x5f   :  { %1855 = vmatpush3.bf16.msra.mxu0 %v2019_v15 }
  0x60   :  { %1875 = vmatpush3.bf16.msra.mxu1 %v2020_v24  ;;  %1856 = vmatprep.subr.bf16.mxu0 %v2021_v25 }
  0x61   :  { %1876 = vmatprep.subr.bf16.mxu1 %v2022_v26 }
  0x63   :  { %1857 = vmatpush3.bf16.msra.mxu0 %v2021_v25 }
  0x64   :  { %1877 = vmatpush3.bf16.msra.mxu1 %v2022_v26  ;;  %1858 = vmatprep.subr.bf16.mxu0 %v2023_v27 }
  0x65   :  { %1878 = vmatprep.subr.bf16.mxu1 %v2024_v32 }
  0x67   :  { %1859 = vmatpush3.bf16.msra.mxu0 %v2023_v27 }
  0x68   :  { %1879 = vmatpush3.bf16.msra.mxu1 %v2024_v32  ;;  %1860 = vmatprep.subr.bf16.mxu0 %v2025_v35 }
  0x69   :  { %1880 = vmatprep.subr.bf16.mxu1 %v2026_v36 }
  0x6b   :  { %1861 = vmatpush3.bf16.msra.mxu0 %v2025_v35 }
  0x6c   :  { %1881 = vmatpush3.bf16.msra.mxu1 %v2026_v36  ;;  %1862 = vmatprep.subr.bf16.mxu0 %v2027_v43 }
  0x6d   :  { %1882 = vmatprep.subr.bf16.mxu1 %v2028_v44 }
  0x6f   :  { %1863 = vmatpush3.bf16.msra.mxu0 %v2027_v43 }
  0x70   :  { %1883 = vmatpush3.bf16.msra.mxu1 %v2028_v44  ;;  %1888 = vmatprep.subr.bf16.mxu0 %v2030_v50 }
  0x71   :  { %1908 = vmatprep.subr.bf16.mxu1 %v2032_v51 }
  0x72   :  { %1865 = vmatmul.mubr.bf16.vlgmr.msra.gmra.mrb[8].mxu0 %v579_v14  ;;  %v2056_v14 = vld [vmem:[%s2452_s1 + $0x230] sm:$0xff]  }
  0x73   :  { %1889 = vmatpush3.bf16.msra.mxu0 %v2030_v50  ;;  %1885 = vmatmul.mubr.bf16.vlgmr.msra.gmra.mrb[8].mxu1 %v2276_v17  ;;  %v1643_v17 = vcombine.low %v2326_v31, %v2326_v31 }
  0x74   :  { %1909 = vmatpush3.bf16.msra.mxu1 %v2032_v51  ;;  %1890 = vmatprep.subr.bf16.mxu0 %v2033_v55 }
  0x75   :  { %1910 = vmatprep.subr.bf16.mxu1 %v2034_v56  ;;  %1904 = vmatprep.mubr.bf16.mxu0 %v846_v57 }
  0x76   :  { %1924 = vmatprep.mubr.bf16.mxu1 %v996_v58 }
  0x77   :  { %1891 = vmatpush3.bf16.msra.mxu0 %v2033_v55 }
  0x78   :  { %1911 = vmatpush3.bf16.msra.mxu1 %v2034_v56  ;;  %1892 = vmatprep.subr.bf16.mxu0 %v2035_v59 }
  0x79   :  { %1912 = vmatprep.subr.bf16.mxu1 %v2036_v60 }
  0x7b   :  { %1893 = vmatpush3.bf16.msra.mxu0 %v2035_v59 }
  0x7c   :  { %1913 = vmatpush3.bf16.msra.mxu1 %v2036_v60  ;;  %1894 = vmatprep.subr.bf16.mxu0 %v2037_v38 }
  0x7d   :  { %1914 = vmatprep.subr.bf16.mxu1 %v2038_v61 }
  0x7f   :  { %1895 = vmatpush3.bf16.msra.mxu0 %v2037_v38 }
  0x80   :  { %1915 = vmatpush3.bf16.msra.mxu1 %v2038_v61  ;;  %1896 = vmatprep.subr.bf16.mxu0 %v2039_v62 }
  0x81   :  { %1916 = vmatprep.subr.bf16.mxu1 %v2040_v0 }
  0x83   :  { %1897 = vmatpush3.bf16.msra.mxu0 %v2039_v62 }
  0x84   :  { %1917 = vmatpush3.bf16.msra.mxu1 %v2040_v0  ;;  %1898 = vmatprep.subr.bf16.mxu0 %v2041_v1 }
  0x85   :  { %1918 = vmatprep.subr.bf16.mxu1 %v2042_v2 }
  0x87   :  { %1899 = vmatpush3.bf16.msra.mxu0 %v2041_v1 }
  0x88   :  { %1919 = vmatpush3.bf16.msra.mxu1 %v2042_v2  ;;  %1900 = vmatprep.subr.bf16.mxu0 %v2043_v3 }
  0x89   :  { %1920 = vmatprep.subr.bf16.mxu1 %v2044_v4 }
  0x8b   :  { %1901 = vmatpush3.bf16.msra.mxu0 %v2043_v3 }
  0x8c   :  { %1921 = vmatpush3.bf16.msra.mxu1 %v2044_v4  ;;  %1902 = vmatprep.subr.bf16.mxu0 %v2045_v5 }
  0x8d   :  { %1922 = vmatprep.subr.bf16.mxu1 %v2046_v6 }
  0x8f   :  { %1903 = vmatpush3.bf16.msra.mxu0 %v2045_v5 }
  0x90   :  { %1923 = vmatpush3.bf16.msra.mxu1 %v2046_v6  ;;  %1928 = vmatprep.subr.bf16.mxu0 %v2048_v7 }
  0x91   :  { %1966 = vmatprep.subr.bf16.mxu1 %v2087_v28 }
  0x92   :  { %1905 = vmatmul.mubr.bf16.vlgmr.msra.gmra.mrb[12].mxu0 %v845_v53 }
  0x93   :  { %1929 = vmatpush3.bf16.msra.mxu0 %v2048_v7  ;;  %1925 = vmatmul.mubr.bf16.vlgmr.msra.gmra.mrb[12].mxu1 %v995_v54 }
  0x94   :  { %1930 = vmatprep.subr.bf16.mxu0 %v2051_v8  ;;  %1944 = vmatprep.mubr.bf16.mxu0 %v1642_v9 }
  0x95   :  { %1954 = vmatprep.mubr.msk.f32.mxu1 %vm2088_vm7, %v2089_v29 }
  0x97   :  { %1931 = vmatpush3.bf16.msra.mxu0 %v2051_v8 }
  0x98   :  { %1932 = vmatprep.subr.bf16.mxu0 %v2052_v10 }
  0x9b   :  { %1933 = vmatpush3.bf16.msra.mxu0 %v2052_v10 }
  0x9c   :  { %1934 = vmatprep.subr.bf16.mxu0 %v2053_v11 }
  0x9f   :  { %1935 = vmatpush3.bf16.msra.mxu0 %v2053_v11 }
  0xa0   :  { %1936 = vmatprep.subr.bf16.mxu0 %v2054_v63 }
  0xa3   :  { %1937 = vmatpush3.bf16.msra.mxu0 %v2054_v63 }
  0xa4   :  { %1938 = vmatprep.subr.bf16.mxu0 %v2055_v13 }
  0xa7   :  { %1939 = vmatpush3.bf16.msra.mxu0 %v2055_v13  ;;  %v1652_v13 = vld [vmem:[#allocation2] ss:$0 sm:$0xff] }
  0xa8   :  { %1940 = vmatprep.subr.bf16.mxu0 %v2056_v14 }
  0xab   :  { %1941 = vmatpush3.bf16.msra.mxu0 %v2056_v14 }
  0xac   :  { %1942 = vmatprep.subr.bf16.mxu0 %v2057_v16 }
  0xaf   :  { %1943 = vmatpush3.bf16.msra.mxu0 %v2057_v16 }
  0xb2   :  { %1945 = vmatmul.mubr.bf16.vlgmr.msra.gmra.mrb[16].mxu0 %v1643_v17 }
 0x105   :  { %v1786_v18 = vpop.f32.mrb[0].mxu0 }
 0x106   :  { %v1806_v19 = vpop.f32.mrb[0].mxu1  ;;  %v175_v20 = vpop.f32.mrb[1].mxu0 }
 0x107   :  { %v285_v21 = vadd.f32 %v1806_v19, %v1786_v18  ;;  %v276_v22 = vpop.f32.mrb[1].mxu1  ;;  %v1787_v23 = vpop.f32.mrb[2].mxu0 }
 0x108   :  { %v277_v15 = vadd.f32 %v276_v22, %v175_v20  ;;  %v1807_v24 = vpop.f32.mrb[2].mxu1  ;;  %v178_v25 = vpop.f32.mrb[3].mxu0  ;;  %v1226_v23 = vld [vmem:[%s2454_s3] sm:$0x1] }
 0x109   :  { %v279_v26 = vpop.f32.mrb[3].mxu1 }
 0x10a   :  { %v280_v27 = vadd.f32 %v279_v26, %v178_v25 }
 0x125   :  { %v1826_v30 = vpop.f32.mrb[4].mxu0 }
 0x126   :  { %v415_v31 = vadd.f32 %v1826_v30, %v285_v21  ;;  %v399_v32 = vpop.f32.mrb[5].mxu0  ;;  %v1846_v33 = vpop.f32.mrb[4].mxu1 }
 0x127   :  { %v413_v34 = vadd.f32 %v399_v32, %v277_v15  ;;  %v1827_v35 = vpop.f32.mrb[6].mxu0  ;;  %v539_v36 = vpop.f32.mrb[5].mxu1 }
 0x128   :  { %v555_v37 = vadd.f32 %v1846_v33, %v415_v31  ;;  %v402_v39 = vpop.f32.mrb[7].mxu0  ;;  %v1847_v40 = vpop.f32.mrb[6].mxu1  ;;  %v1384_v33 = vlaneseq }
 0x129   :  { %v414_v41 = vadd.f32 %v402_v39, %v280_v27  ;;  %v553_v42 = vadd.f32 %v539_v36, %v413_v34  ;;  %v542_v43 = vpop.f32.mrb[7].mxu1 }
 0x12a   :  { %v1385_v36 = vshrl.u32 %v1384_v33, 7 }
 0x12b   :  { %v554_v44 = vadd.f32 %v542_v43, %v414_v41  ;;  %v1657_v43 = vld [vmem:[#allocation2 + $0x1] ss:$0 sm:$0xff] }
 0x145   :  { %v1866_v45 = vpop.f32.mrb[8].mxu0 }
 0x146   :  { %v681_v46 = vadd.f32 %v1866_v45, %v555_v37  ;;  %v665_v47 = vpop.f32.mrb[9].mxu0  ;;  %v1886_v48 = vpop.f32.mrb[8].mxu1 }
 0x147   :  { %v679_v49 = vadd.f32 %v665_v47, %v553_v42  ;;  %v1867_v50 = vpop.f32.mrb[10].mxu0  ;;  %v805_v51 = vpop.f32.mrb[9].mxu1  ;;  %v1658_v47 = vld [vmem:[#allocation2 + $0x2] ss:$0 sm:$0xff] }
 0x148   :  { %v821_v52 = vadd.f32 %v1886_v48, %v681_v46  ;;  %v668_v53 = vpop.f32.mrb[11].mxu0  ;;  %v1887_v12 = vpop.f32.mrb[10].mxu1 }
 0x149   :  { %v680_v54 = vadd.f32 %v668_v53, %v554_v44  ;;  %v819_v55 = vadd.f32 %v805_v51, %v679_v49  ;;  %v808_v56 = vpop.f32.mrb[11].mxu1 }
 0x14b   :  { %v820_v57 = vadd.f32 %v808_v56, %v680_v54 }
 0x165   :  { %v1906_v58 = vpop.f32.mrb[12].mxu0 }
 0x166   :  { %v947_v59 = vadd.f32 %v1906_v58, %v821_v52  ;;  %v931_v60 = vpop.f32.mrb[13].mxu0  ;;  %v1926_v38 = vpop.f32.mrb[12].mxu1 }
 0x167   :  { %v945_v61 = vadd.f32 %v931_v60, %v819_v55  ;;  %v1907_v62 = vpop.f32.mrb[14].mxu0  ;;  %v1081_v0 = vpop.f32.mrb[13].mxu1 }
 0x168   :  { %v1097_v1 = vadd.f32 %v1926_v38, %v947_v59  ;;  %v934_v2 = vpop.f32.mrb[15].mxu0  ;;  %v1927_v3 = vpop.f32.mrb[14].mxu1 }
 0x169   :  { %v946_v4 = vadd.f32 %v934_v2, %v820_v57  ;;  %v1095_v5 = vadd.f32 %v1081_v0, %v945_v61  ;;  %v1084_v6 = vpop.f32.mrb[15].mxu1 }
 0x16b   :  { %v1096_v7 = vadd.f32 %v1084_v6, %v946_v4 }
 0x185   :  { %v1946_v8 = vpop.f32.mrb[16].mxu0 }
 0x186   :  { %v1217_v9 = vadd.f32 %v1946_v8, %v1097_v1  ;;  %v1201_v10 = vpop.f32.mrb[17].mxu0 }
 0x187   :  { %v1215_v11 = vadd.f32 %v1201_v10, %v1095_v5  ;;  %v1947_v63 = vpop.f32.mrb[18].mxu0 }
 0x188   :  { %v1204_v14 = vpop.f32.mrb[19].mxu0  ;;  %v1225_v21 = vadd.f32 %v1652_v13, %v1217_v9 }
 0x189   :  { %v1216_v16 = vadd.f32 %v1204_v14, %v1096_v7  ;;  %v1223_v17 = vadd.f32 %v1652_v13, %v1215_v11 }
 0x18a   :  { %v1307_v24 = vmul.f32 %v1225_v21, %v1225_v21 }
 0x18b   :  { %v1224_v18 = vadd.f32 %v1652_v13, %v1216_v16  ;;  %v1305_v22 = vmul.f32 %v1223_v17, %v1223_v17 }
 0x18d   :  { %v1967_v19 = vpack.c.bf16 %v1224_v18, %v1223_v17  ;;  %v1306_v20 = vmul.f32 %v1224_v18, %v1224_v18 }
 0x18f   :  { %1968 = vmatpush3.bf16.msra.mxu1 %v1967_v19  ;;  %v1970_v15 = vpack.c.bf16 %v1306_v20, %v1305_v22 }
 0x190   :  { %1952 = vmatprep.subr.mxu1 %v2089_v29 }
 0x193   :  { %1953 = vmatpush3.msk.msra.mxu1 %vm1231_vm8, %v1225_v21 }
 0x194   :  { %1955 = vmatmul.mubr.msk.f32.vlgmr.msra.gmra.mrb[16].mxu1 %vm1227_vm9, %v1226_v23  ;;  %1969 = vmatprep.subr.bf16.mxu1 %v2087_v28  ;;  %v1386_v28 = vsub.s32 0, %v1385_v36 }
 0x195   :  { %1971 = vmatpush3.bf16.msra.mxu1 %v1970_v15  ;;  %1963 = vmatprep.mubr.msk.f32.mxu1 %vm2088_vm7, %v2089_v29 }
 0x196   :  { %1961 = vmatprep.subr.mxu1 %v2089_v29 }
 0x199   :  { %1962 = vmatpush3.msk.msra.mxu1 %vm1231_vm8, %v1307_v24 }
 0x19a   :  { %1964 = vmatmul.mubr.msk.f32.vlgmr.msra.gmra.mrb[18].mxu1 %vm1227_vm9, %v1226_v23 }
 0x267   :  { %v1301_v25 = vpop.f32.mrb[16].mxu1 }
 0x268   :  { %v1956_v26 = vpop.f32.mrb[17].mxu1  ;;  %v1381_v27 = vmul.f32 %v1301_v25, %v1301_v25  ;;  %v1387_v37 = vrot.slane %v1301_v25, %v1386_v28 }
 0x26a   :  { %v1388_v40 = vsub.f32 %v1223_v17, %v1387_v37  ;;  %v1389_v41 = vsub.f32 %v1224_v18, %v1387_v37  ;;  %v1390_v29 = vsub.f32 %v1225_v21, %v1387_v37 }
 0x26d   :  { %v1377_v30 = vpop.f32.mrb[18].mxu1 }
 0x26e   :  { %v1382_v31 = vsub.f32 %v1377_v30, %v1381_v27  ;;  %v1965_v32 = vpop.f32.mrb[19].mxu1 }
 0x270   :  { %v1383_v34 = vmax.f32 %v1382_v31, 0.0 }
 0x272   :  { %v1391_v35 = vadd.f32 1e-05, %v1383_v34 }
 0x274   :  { %2060 = vrsqrt.f32 %v1391_v35 }
 0x27e   :  { %v2061_v39 = vpop.eup %2060 }
 0x27f   :  { %v1396_v42 = vrot.slane %v2061_v39, %v1386_v28 }
 0x281   :  { %v1397_v44 = vmul.f32 %v1396_v42, %v1388_v40  ;;  %v1398_v45 = vmul.f32 %v1396_v42, %v1389_v41  ;;  %v1399_v46 = vmul.f32 %v1396_v42, %v1390_v29 }
 0x283   :  { %v1405_v48 = vmul.f32 %v1657_v43, %v1397_v44  ;;  %v1406_v49 = vmul.f32 %v1657_v43, %v1398_v45  ;;  %v1407_v50 = vmul.f32 %v1657_v43, %v1399_v46 }
 0x285   :  { %v1413_v51 = vadd.f32 %v1658_v47, %v1405_v48  ;;  %v1414_v52 = vadd.f32 %v1658_v47, %v1406_v49  ;;  %v1415_v53 = vadd.f32 %v1658_v47, %v1407_v50 }
 0x287   :  { %v1416_v12 = vmax.f32 %v1413_v51, 0.0  ;;  %v1417_v54 = vmax.f32 %v1414_v52, 0.0  ;;  %v1418_v55 = vmax.f32 %v1415_v53, 0.0 }
 0x289   :  { %v1664_v56 = vpack.c.bf16 %v1418_v55, %v1418_v55  ;;  %v1668_v57 = vpack.c.bf16 %v1417_v54, %v1416_v12 }
 0x28b   :  { %1669 = vst [vmem:[%s2455_s4] sm:$0xff] %v1668_v57   ;;  %1434 = vst [vmem:[%s2455_s4 + $0x8] sm:$0x1] %v1664_v56 }
 0x28c   :  { %1439 = vsyncpa [#allocation3], 1 }

// kernel: cnn_autoencoder_forward.17
= control target key start
LH: loop header
LB: loop body
LE: loop exit
PB: predicated region body
PF: predicated region fallthrough
CT: control target
= control target key end

     0   :  { %vm63_vm0 = vsmask.f32 7424  ;;  %vm425_vm1 = vsmask.f32 6400  ;;  %vm299_vm2 = vcmask 1046528   ;;  %vm565_vm3 = vcmask 1045504   ;;  %s2409_s1 = inlined_call_operand.vmem [shape: bf16[9,128,128], index: 1, kind: input, shape index: {}]   ;;  %s2410_s0 = inlined_call_operand.vmem [shape: bf16[26,128], index: 0, kind: input, shape index: {}]   ;;  %s2411_s2 = inlined_call_operand.vmem [shape: f32[3,128], index: 2, kind: input, shape index: {}]   ;;  %s2412_s3 = inlined_call_operand.vmem [shape: f32[1,18], index: 3, kind: input, shape index: {}]   ;;  %s2413_s4 = inlined_call_operand.vmem [shape: bf16[18,128], index: 4, kind: output, shape index: {}]  }
   0x1   :  { %v1962_v0 = vld [vmem:[%s2409_s1 + $0x40] sm:$0xff]   ;;  %v1964_v2 = vld [vmem:[%s2409_s1 + $0x48] sm:$0xff]   ;;  %v1966_v4 = vld [vmem:[%s2409_s1 + $0x50] sm:$0xff]   ;;  %vm691_vm4 = vsmask.f32 5376  ;;  %vm831_vm5 = vcmask 1044480  }
   0x2   :  { %v1963_v1 = vld [vmem:[%s2409_s1] sm:$0xff]   ;;  %1755 = vmatprep.subr.bf16.mxu0 %v1962_v0  ;;  %v1965_v3 = vld [vmem:[%s2409_s1 + $0x8] sm:$0xff]   ;;  %v1967_v5 = vld [vmem:[%s2409_s1 + $0x10] sm:$0xff]   ;;  %vm967_vm6 = vsmask.f32 4352  ;;  %vm2049_vm7 = vmmov 0  }
   0x3   :  { %1775 = vmatprep.subr.bf16.mxu1 %v1963_v1  ;;  %1756 = vmatpush3.bf16.msra.mxu0 %v1962_v0  ;;  %v1968_v6 = vld [vmem:[%s2409_s1 + $0x58] sm:$0xff]   ;;  %v1970_v8 = vld [vmem:[%s2409_s1 + $0x60] sm:$0xff]   ;;  %v1972_v10 = vld [vmem:[%s2409_s1 + $0x68] sm:$0xff]   ;;  %vm1219_vm8 = vcmask 1041408   ;;  %vm1215_vm9 = vcmask 146432  }
   0x4   :  { %1776 = vmatpush3.bf16.msra.mxu1 %v1963_v1  ;;  %1757 = vmatprep.subr.bf16.mxu0 %v1964_v2  ;;  %v1969_v7 = vld [vmem:[%s2409_s1 + $0x18] sm:$0xff]   ;;  %v1971_v9 = vld [vmem:[%s2409_s1 + $0x20] sm:$0xff]   ;;  %v1973_v13 = vld [vmem:[%s2409_s1 + $0x28] sm:$0xff]  }
   0x5   :  { %1777 = vmatprep.subr.bf16.mxu1 %v1965_v3  ;;  %v18_v11 = vld [vmem:[%s2410_s0] sm:$0xf]  ;;  %v2115_v12 = vld [vmem:[%s2410_s0 + $0x4] sm:$0xf]  ;;  %v1974_v16 = vld [vmem:[%s2409_s1 + $0x70] sm:$0xff]  }
   0x6   :  { %v1443_v14 = vcombine.low %v18_v11, %v2115_v12  ;;  %v2124_v15 = vld [vmem:[%s2410_s0 + $0x8] ss:$0 sps:$4 sm:$0x33]   ;;  %v1975_v20 = vld [vmem:[%s2409_s1 + $0x30] sm:$0xff]   ;;  %v1976_v24 = vld [vmem:[%s2409_s1 + $0x78] sm:$0xff]  }
   0x7   :  { %1758 = vmatpush3.bf16.msra.mxu0 %v1964_v2  ;;  %v72_v19 = vshll.u32 %v2124_v15, 16  ;;  %v1977_v25 = vld [vmem:[%s2409_s1 + $0x38] sm:$0xff]   ;;  %v76_v27 = vshrl.u32 %v2124_v15, 16  ;;  %v1981_v28 = vld [vmem:[%s2409_s1 + $0x80] sm:$0xff]   ;;  %v1983_v32 = vld [vmem:[%s2409_s1 + $0x88] sm:$0xff]   ;;  %v301_v36 = vrot.slane %v2124_v15, 1 }
   0x8   :  { %1778 = vmatpush3.bf16.msra.mxu1 %v1965_v3  ;;  %1759 = vmatprep.subr.bf16.mxu0 %v1966_v4  ;;  %v65_v17 = vshrl.u32 %v1443_v14, 16  ;;  %v67_v18 = vshll.u32 %v1443_v14, 16  ;;  %v1980_v29 = vld [vmem:[%s2410_s0 + $0x8] ss:$0 sps:$4 sm:$0x11]   ;;  %v1982_v30 = vld [vmem:[%s2409_s1 + $0xc0] sm:$0xff]  }
   0x9   :  { %1779 = vmatprep.subr.bf16.mxu1 %v1967_v5  ;;  %1791 = vmatprep.mubr.bf16.mxu1 %v1443_v14  ;;  %v74_v22 = vrot.slane %v72_v19, 1  ;;  %v1984_v33 = vld [vmem:[%s2409_s1 + $0xc8] sm:$0xff]   ;;  %v278_v34 = vld [vmem:[%s2410_s0] sm:$0xe]  ;;  %v1985_v37 = vld [vmem:[%s2409_s1 + $0x90] sm:$0xff]  }
   0xa   :  { %v69_v21 = vrot.slane %v67_v18, 1  ;;  %v1478_v35 = vcombine.low %v278_v34, %v2115_v12  ;;  %v2167_v38 = vld [vmem:[%s2410_s0 + $0x8] ss:$0 sps:$4 sm:$0x77]   ;;  %v1986_v39 = vld [vmem:[%s2409_s1 + $0xd0] sm:$0xff]   ;;  %v1987_v48 = vld [vmem:[%s2409_s1 + $0x98] sm:$0xff]  }
   0xb   :  { %1760 = vmatpush3.bf16.msra.mxu0 %v1966_v4  ;;  %v78_v31 = vor.u32 %v76_v27, %v74_v22  ;;  %v435_v43 = vshrl.u32 %v2167_v38, 16  ;;  %v438_v44 = vshll.u32 %v2167_v38, 16  ;;  %v1988_v49 = vld [vmem:[%s2409_s1 + $0xd8] sm:$0xff]   ;;  %v1989_v54 = vld [vmem:[%s2409_s1 + $0xa0] sm:$0xff]   ;;  %v1991_v57 = vld [vmem:[%s2409_s1 + $0xa8] sm:$0xff]   ;;  %v567_v14 = vrot.slane %v2167_v38, 2 }
   0xc   :  { %1780 = vmatpush3.bf16.msra.mxu1 %v1967_v5  ;;  %1761 = vmatprep.subr.bf16.mxu0 %v1968_v6  ;;  %v70_v23 = vor.u32 %v69_v21, %v65_v17  ;;  %v300_v40 = vrot.slane %v1478_v35, 1  ;;  %v427_v41 = vshrl.u32 %v1478_v35, 16  ;;  %v430_v42 = vshll.u32 %v1478_v35, 16  ;;  %v1990_v56 = vld [vmem:[%s2409_s1 + $0xe0] sm:$0xff]   ;;  %v1992_v58 = vld [vmem:[%s2409_s1 + $0xe8] sm:$0xff]   ;;  %v1993_v59 = vld [vmem:[%s2409_s1 + $0xb0] sm:$0xff]  }
   0xd   :  { %1781 = vmatprep.subr.bf16.mxu1 %v1969_v7  ;;  %v437_v50 = vrot.slane %v435_v43, 1  ;;  %v440_v51 = vrot.slane %v438_v44, 2  ;;  %v544_v60 = vld [vmem:[%s2410_s0] sm:$0xc]  ;;  %v1994_v61 = vld [vmem:[%s2409_s1 + $0xf0] sm:$0xff]   ;;  %v1995_v0 = vld [vmem:[%s2409_s1 + $0xb8] sm:$0xff]  }
   0xe   :  { %v75_v26 = vsel %vm63_vm0, %v70_v23, %v74_v22  ;;  %v302_v45 = vsel %vm299_vm2, %v300_v40, %v301_v36  ;;  %v429_v46 = vrot.slane %v427_v41, 1  ;;  %v432_v47 = vrot.slane %v430_v42, 2  ;;  %v2208_v63 = vld [vmem:[%s2410_s0 + $0x8] ss:$0 sps:$4 sm:$0xff]   ;;  %v1996_v5 = vld [vmem:[%s2409_s1 + $0xf8] sm:$0xff]   ;;  %v2000_v11 = vld [vmem:[%s2409_s1 + $0x140] sm:$0xff]  }
   0xf   :  { %1762 = vmatpush3.bf16.msra.mxu0 %v1968_v6  ;;  %1771 = vmatprep.mubr.bf16.mxu0 %v75_v26  ;;  %v441_v53 = vor.u32 %v440_v51, %v437_v50  ;;  %v1528_v62 = vcombine.low %v544_v60, %v2115_v12  ;;  %v701_v3 = vshrl.u32 %v2208_v63, 16  ;;  %v704_v4 = vshll.u32 %v2208_v63, 16  ;;  %v2002_v19 = vld [vmem:[%s2409_s1 + $0x148] sm:$0xff]   ;;  %v2003_v22 = vld [vmem:[%s2409_s1 + $0x110] sm:$0xff]   ;;  %v810_v15 = vld [vmem:[%s2410_s0] sm:$0x8] }
  0x10   :  { %1782 = vmatpush3.bf16.msra.mxu1 %v1969_v7  ;;  %1763 = vmatprep.subr.bf16.mxu0 %v1970_v8  ;;  %v433_v52 = vor.u32 %v432_v47, %v429_v46  ;;  %v2004_v23 = vld [vmem:[%s2409_s1 + $0x150] sm:$0xff]   ;;  %v2006_v26 = vld [vmem:[%s2409_s1 + $0x158] sm:$0xff]   ;;  %v2007_v27 = vld [vmem:[%s2409_s1 + $0x120] sm:$0xff]  }
  0x11   :  { %1783 = vmatprep.subr.bf16.mxu1 %v1971_v9  ;;  %v693_v1 = vshrl.u32 %v1528_v62, 16  ;;  %v696_v2 = vshll.u32 %v1528_v62, 16  ;;  %v2013_v43 = vld [vmem:[%s2409_s1 + $0x138] sm:$0xff]   ;;  %v2018_v50 = vld [vmem:[%s2409_s1 + $0x1c0] sm:$0xff]   ;;  %v2022_v60 = vld [vmem:[%s2409_s1 + $0x1d0] sm:$0xff]  }
  0x12   :  { %v442_v55 = vsel %vm425_vm1, %v433_v52, %v441_v53  ;;  %v2014_v44 = vld [vmem:[%s2409_s1 + $0x178] sm:$0xff]   ;;  %v833_v52 = vrot.slane %v2208_v63, 3  ;;  %v2040_v63 = vld [vmem:[%s2409_s1 + $0x220] sm:$0xff]  }
  0x13   :  { %1764 = vmatpush3.bf16.msra.mxu0 %v1970_v8  ;;  %v695_v6 = vrot.slane %v693_v1, 2  ;;  %v698_v7 = vrot.slane %v696_v2, 3  ;;  %v703_v8 = vrot.slane %v701_v3, 2  ;;  %v2023_v38 = vld [vmem:[%s2409_s1 + $0x198] sm:$0xff]   ;;  %v2027_v1 = vld [vmem:[%s2409_s1 + $0x1a8] sm:$0xff]   ;;  %v2029_v3 = vld [vmem:[%s2409_s1 + $0x1b0] sm:$0xff]  }
  0x14   :  { %1784 = vmatpush3.bf16.msra.mxu1 %v1971_v9  ;;  %1765 = vmatprep.subr.bf16.mxu0 %v1972_v10  ;;  %v706_v9 = vrot.slane %v704_v4, 3  ;;  %v2028_v2 = vld [vmem:[%s2409_s1 + $0x1e8] sm:$0xff]   ;;  %v2030_v4 = vld [vmem:[%s2409_s1 + $0x1f0] sm:$0xff]  }
  0x15   :  { %1785 = vmatprep.subr.bf16.mxu1 %v1973_v13  ;;  %v699_v17 = vor.u32 %v698_v7, %v695_v6  ;;  %v2032_v6 = vld [vmem:[%s2409_s1 + $0x1f8] sm:$0xff]   ;;  %v2034_v7 = vld [vmem:[%s2409_s1 + $0x200] sm:$0xff]  }
  0x16   :  { %v2228_v18 = vor.u32 %v706_v9, %v703_v8  ;;  %v2037_v8 = vld [vmem:[%s2409_s1 + $0x208] sm:$0xff]  }
  0x17   :  { %1766 = vmatpush3.bf16.msra.mxu0 %v1972_v10  ;;  %v1998_v10 = vld [vmem:[%s2409_s1 + $0x100] sm:$0xff]  }
  0x18   :  { %1786 = vmatpush3.bf16.msra.mxu1 %v1973_v13  ;;  %1767 = vmatprep.subr.bf16.mxu0 %v1974_v16  ;;  %v566_v13 = vrot.slane %v1528_v62, 2  ;;  %v708_v21 = vsel %vm691_vm4, %v699_v17, %v2228_v18  ;;  %v2025_v62 = vld [vmem:[%s2409_s1 + $0x1a0] sm:$0xff]  }
  0x19   :  { %1787 = vmatprep.subr.bf16.mxu1 %v1975_v20 }
  0x1b   :  { %1768 = vmatpush3.bf16.msra.mxu0 %v1974_v16  ;;  %v2001_v16 = vld [vmem:[%s2409_s1 + $0x108] sm:$0xff]  }
  0x1c   :  { %1788 = vmatpush3.bf16.msra.mxu1 %v1975_v20  ;;  %1769 = vmatprep.subr.bf16.mxu0 %v1976_v24  ;;  %v568_v20 = vsel %vm565_vm3, %v566_v13, %v567_v14  ;;  %v2041_v13 = vld [vmem:[%s2409_s1 + $0x228] sm:$0xff]  }
  0x1d   :  { %1789 = vmatprep.subr.bf16.mxu1 %v1977_v25 }
  0x1f   :  { %1770 = vmatpush3.bf16.msra.mxu0 %v1976_v24  ;;  %v2005_v24 = vld [vmem:[%s2409_s1 + $0x118] sm:$0xff]  }
  0x20   :  { %1790 = vmatpush3.bf16.msra.mxu1 %v1977_v25  ;;  %1795 = vmatprep.subr.bf16.mxu0 %v1981_v28  ;;  %v1578_v25 = vcombine.low %v810_v15, %v2115_v12  ;;  %v2009_v12 = vld [vmem:[%s2409_s1 + $0x128] sm:$0xff]  }
  0x21   :  { %1815 = vmatprep.subr.bf16.mxu1 %v1982_v30 }
  0x22   :  { %1772 = vmatmul.mubr.bf16.vlgmr.msra.gmra.mrb[0].mxu0 %v78_v31  ;;  %v2274_v31 = vld [vmem:[%s2410_s0 + $0x8] sm:$0xf]  ;;  %v832_v51 = vrot.slane %v1578_v25, 3 }
  0x23   :  { %1792 = vmatmul.mubr.bf16.vlgmr.msra.gmra.mrb[0].mxu1 %v1980_v29  ;;  %1796 = vmatpush3.bf16.msra.mxu0 %v1981_v28  ;;  %v2008_v28 = vld [vmem:[%s2409_s1 + $0x160] sm:$0xff]  }
  0x24   :  { %1816 = vmatpush3.bf16.msra.mxu1 %v1982_v30  ;;  %1797 = vmatprep.subr.bf16.mxu0 %v1983_v32  ;;  %v936_v29 = vld [vmem:[%s2410_s0] sm:$0x8]  ;;  %v2269_v30 = vld [vmem:[%s2410_s0 + $0x4] sm:$0xf] }
  0x25   :  { %1817 = vmatprep.subr.bf16.mxu1 %v1984_v33  ;;  %1811 = vmatprep.mubr.bf16.mxu0 %v302_v45  ;;  %v1603_v34 = vcombine.low %v936_v29, %v2269_v30  ;;  %v1629_v9 = vcombine.low %v2269_v30, %v2274_v31 }
  0x26   :  { %1831 = vmatprep.mubr.bf16.mxu1 %v442_v55  ;;  %v2019_v55 = vld [vmem:[%s2409_s1 + $0x188] sm:$0xff]  }
  0x27   :  { %1798 = vmatpush3.bf16.msra.mxu0 %v1983_v32  ;;  %v2279_v32 = vld [vmem:[%s2410_s0 + $0xc] sm:$0x1]  ;;  %v972_v40 = vshll.u32 %v1603_v34, 16 }
  0x28   :  { %1818 = vmatpush3.bf16.msra.mxu1 %v1984_v33  ;;  %1799 = vmatprep.subr.bf16.mxu0 %v1985_v37  ;;  %v2010_v33 = vld [vmem:[%s2409_s1 + $0x168] sm:$0xff]   ;;  %v1604_v35 = vcombine.low %v2274_v31, %v2279_v32  ;;  %v1630_v17 = vcombine.low %v2279_v32, %v2279_v32 }
  0x29   :  { %1819 = vmatprep.subr.bf16.mxu1 %v1986_v39  ;;  %v974_v46 = vrot.slane %v972_v40, 4 }
  0x2a   :  { %v977_v41 = vshrl.u32 %v1604_v35, 16  ;;  %v980_v42 = vshll.u32 %v1604_v35, 16 }
  0x2b   :  { %1800 = vmatpush3.bf16.msra.mxu0 %v1985_v37  ;;  %v2012_v37 = vld [vmem:[%s2409_s1 + $0x170] sm:$0xff]  }
  0x2c   :  { %1820 = vmatpush3.bf16.msra.mxu1 %v1986_v39  ;;  %1801 = vmatprep.subr.bf16.mxu0 %v1987_v48  ;;  %v969_v39 = vshrl.u32 %v1603_v34, 16  ;;  %v979_v47 = vrot.slane %v977_v41, 3 }
  0x2d   :  { %1821 = vmatprep.subr.bf16.mxu1 %v1988_v49 }
  0x2e   :  { %v971_v45 = vrot.slane %v969_v39, 3 }
  0x2f   :  { %1802 = vmatpush3.bf16.msra.mxu0 %v1987_v48  ;;  %v982_v48 = vrot.slane %v980_v42, 4 }
  0x30   :  { %1822 = vmatpush3.bf16.msra.mxu1 %v1988_v49  ;;  %1803 = vmatprep.subr.bf16.mxu0 %v1989_v54  ;;  %v2016_v49 = vld [vmem:[%s2409_s1 + $0x180] sm:$0xff]  }
  0x31   :  { %1823 = vmatprep.subr.bf16.mxu1 %v1990_v56 }
  0x33   :  { %1804 = vmatpush3.bf16.msra.mxu0 %v1989_v54  ;;  %v983_v54 = vor.u32 %v982_v48, %v979_v47 }
  0x34   :  { %1824 = vmatpush3.bf16.msra.mxu1 %v1990_v56  ;;  %1805 = vmatprep.subr.bf16.mxu0 %v1991_v57  ;;  %v2020_v56 = vld [vmem:[%s2409_s1 + $0x1c8] sm:$0xff]  }
  0x35   :  { %1825 = vmatprep.subr.bf16.mxu1 %v1992_v58 }
  0x37   :  { %1806 = vmatpush3.bf16.msra.mxu0 %v1991_v57  ;;  %v834_v57 = vsel %vm831_vm5, %v832_v51, %v833_v52 }
  0x38   :  { %1826 = vmatpush3.bf16.msra.mxu1 %v1992_v58  ;;  %1807 = vmatprep.subr.bf16.mxu0 %v1993_v59 }
  0x39   :  { %1827 = vmatprep.subr.bf16.mxu1 %v1994_v61 }
  0x3b   :  { %1808 = vmatpush3.bf16.msra.mxu0 %v1993_v59  ;;  %v2021_v59 = vld [vmem:[%s2409_s1 + $0x190] sm:$0xff]  }
  0x3c   :  { %1828 = vmatpush3.bf16.msra.mxu1 %v1994_v61  ;;  %1809 = vmatprep.subr.bf16.mxu0 %v1995_v0  ;;  %v2024_v61 = vld [vmem:[%s2409_s1 + $0x1d8] sm:$0xff]  }
  0x3d   :  { %1829 = vmatprep.subr.bf16.mxu1 %v1996_v5 }
  0x3f   :  { %1810 = vmatpush3.bf16.msra.mxu0 %v1995_v0  ;;  %v2026_v0 = vld [vmem:[%s2409_s1 + $0x1e0] sm:$0xff]  }
  0x40   :  { %1830 = vmatpush3.bf16.msra.mxu1 %v1996_v5  ;;  %1835 = vmatprep.subr.bf16.mxu0 %v1998_v10  ;;  %v2031_v5 = vld [vmem:[%s2409_s1 + $0x1b8] sm:$0xff]  }
  0x41   :  { %1855 = vmatprep.subr.bf16.mxu1 %v2000_v11 }
  0x42   :  { %1812 = vmatmul.mubr.bf16.vlgmr.msra.gmra.mrb[4].mxu0 %v301_v36  ;;  %v2011_v36 = vld [vmem:[%s2409_s1 + $0x130] sm:$0xff]  }
  0x43   :  { %1836 = vmatpush3.bf16.msra.mxu0 %v1998_v10  ;;  %1832 = vmatmul.mubr.bf16.vlgmr.msra.gmra.mrb[4].mxu1 %v441_v53  ;;  %v975_v53 = vor.u32 %v974_v46, %v971_v45  ;;  %v2038_v10 = vld [vmem:[%s2409_s1 + $0x210] sm:$0xff]  }
  0x44   :  { %1856 = vmatpush3.bf16.msra.mxu1 %v2000_v11  ;;  %1837 = vmatprep.subr.bf16.mxu0 %v2001_v16  ;;  %v2039_v11 = vld [vmem:[%s2409_s1 + $0x218] sm:$0xff]  }
  0x45   :  { %1857 = vmatprep.subr.bf16.mxu1 %v2002_v19  ;;  %1851 = vmatprep.mubr.bf16.mxu0 %v568_v20  ;;  %v984_v58 = vsel %vm967_vm6, %v975_v53, %v983_v54 }
  0x46   :  { %1871 = vmatprep.mubr.bf16.mxu1 %v708_v21 }
  0x47   :  { %1838 = vmatpush3.bf16.msra.mxu0 %v2001_v16  ;;  %v2043_v16 = vld [vmem:[%s2409_s1 + $0x238] sm:$0xff]  }
  0x48   :  { %1858 = vmatpush3.bf16.msra.mxu1 %v2002_v19  ;;  %1839 = vmatprep.subr.bf16.mxu0 %v2003_v22 }
  0x49   :  { %1859 = vmatprep.subr.bf16.mxu1 %v2004_v23 }
  0x4b   :  { %1840 = vmatpush3.bf16.msra.mxu0 %v2003_v22 }
  0x4c   :  { %1860 = vmatpush3.bf16.msra.mxu1 %v2004_v23  ;;  %1841 = vmatprep.subr.bf16.mxu0 %v2005_v24 }
  0x4d   :  { %1861 = vmatprep.subr.bf16.mxu1 %v2006_v26 }
  0x4f   :  { %1842 = vmatpush3.bf16.msra.mxu0 %v2005_v24 }
  0x50   :  { %1862 = vmatpush3.bf16.msra.mxu1 %v2006_v26  ;;  %1843 = vmatprep.subr.bf16.mxu0 %v2007_v27 }
  0x51   :  { %1863 = vmatprep.subr.bf16.mxu1 %v2008_v28 }
  0x53   :  { %1844 = vmatpush3.bf16.msra.mxu0 %v2007_v27 }
  0x54   :  { %1864 = vmatpush3.bf16.msra.mxu1 %v2008_v28  ;;  %1845 = vmatprep.subr.bf16.mxu0 %v2009_v12  ;;  %v2048_v28 = vmov 0.0|0.0  }
  0x55   :  { %1865 = vmatprep.subr.bf16.mxu1 %v2010_v33 }
  0x57   :  { %1846 = vmatpush3.bf16.msra.mxu0 %v2009_v12  ;;  %v2050_v12 = vmov 0.0  }
  0x58   :  { %1866 = vmatpush3.bf16.msra.mxu1 %v2010_v33  ;;  %1847 = vmatprep.subr.bf16.mxu0 %v2011_v36 }
  0x59   :  { %1867 = vmatprep.subr.bf16.mxu1 %v2012_v37 }
  0x5b   :  { %1848 = vmatpush3.bf16.msra.mxu0 %v2011_v36 }
  0x5c   :  { %1868 = vmatpush3.bf16.msra.mxu1 %v2012_v37  ;;  %1849 = vmatprep.subr.bf16.mxu0 %v2013_v43 }
  0x5d   :  { %1869 = vmatprep.subr.bf16.mxu1 %v2014_v44 }
  0x5f   :  { %1850 = vmatpush3.bf16.msra.mxu0 %v2013_v43 }
  0x60   :  { %1870 = vmatpush3.bf16.msra.mxu1 %v2014_v44  ;;  %1875 = vmatprep.subr.bf16.mxu0 %v2016_v49 }
  0x61   :  { %1895 = vmatprep.subr.bf16.mxu1 %v2018_v50 }
  0x62   :  { %1852 = vmatmul.mubr.bf16.vlgmr.msra.gmra.mrb[8].mxu0 %v567_v14  ;;  %v2042_v14 = vld [vmem:[%s2409_s1 + $0x230] sm:$0xff]  }
  0x63   :  { %1876 = vmatpush3.bf16.msra.mxu0 %v2016_v49  ;;  %1872 = vmatmul.mubr.bf16.vlgmr.msra.gmra.mrb[8].mxu1 %v2228_v18 }
  0x64   :  { %1896 = vmatpush3.bf16.msra.mxu1 %v2018_v50  ;;  %1877 = vmatprep.subr.bf16.mxu0 %v2019_v55 }
  0x65   :  { %1897 = vmatprep.subr.bf16.mxu1 %v2020_v56  ;;  %1891 = vmatprep.mubr.bf16.mxu0 %v834_v57 }
  0x66   :  { %1911 = vmatprep.mubr.bf16.mxu1 %v984_v58 }
  0x67   :  { %1878 = vmatpush3.bf16.msra.mxu0 %v2019_v55 }
  0x68   :  { %1898 = vmatpush3.bf16.msra.mxu1 %v2020_v56  ;;  %1879 = vmatprep.subr.bf16.mxu0 %v2021_v59 }
  0x69   :  { %1899 = vmatprep.subr.bf16.mxu1 %v2022_v60 }
  0x6b   :  { %1880 = vmatpush3.bf16.msra.mxu0 %v2021_v59 }
  0x6c   :  { %1900 = vmatpush3.bf16.msra.mxu1 %v2022_v60  ;;  %1881 = vmatprep.subr.bf16.mxu0 %v2023_v38 }
  0x6d   :  { %1901 = vmatprep.subr.bf16.mxu1 %v2024_v61 }
  0x6f   :  { %1882 = vmatpush3.bf16.msra.mxu0 %v2023_v38 }
  0x70   :  { %1902 = vmatpush3.bf16.msra.mxu1 %v2024_v61  ;;  %1883 = vmatprep.subr.bf16.mxu0 %v2025_v62 }
  0x71   :  { %1903 = vmatprep.subr.bf16.mxu1 %v2026_v0 }
  0x73   :  { %1884 = vmatpush3.bf16.msra.mxu0 %v2025_v62 }
  0x74   :  { %1904 = vmatpush3.bf16.msra.mxu1 %v2026_v0  ;;  %1885 = vmatprep.subr.bf16.mxu0 %v2027_v1 }
  0x75   :  { %1905 = vmatprep.subr.bf16.mxu1 %v2028_v2 }
  0x77   :  { %1886 = vmatpush3.bf16.msra.mxu0 %v2027_v1 }
  0x78   :  { %1906 = vmatpush3.bf16.msra.mxu1 %v2028_v2  ;;  %1887 = vmatprep.subr.bf16.mxu0 %v2029_v3 }
  0x79   :  { %1907 = vmatprep.subr.bf16.mxu1 %v2030_v4 }
  0x7b   :  { %1888 = vmatpush3.bf16.msra.mxu0 %v2029_v3 }
  0x7c   :  { %1908 = vmatpush3.bf16.msra.mxu1 %v2030_v4  ;;  %1889 = vmatprep.subr.bf16.mxu0 %v2031_v5 }
  0x7d   :  { %1909 = vmatprep.subr.bf16.mxu1 %v2032_v6 }
  0x7f   :  { %1890 = vmatpush3.bf16.msra.mxu0 %v2031_v5 }
  0x80   :  { %1910 = vmatpush3.bf16.msra.mxu1 %v2032_v6  ;;  %1915 = vmatprep.subr.bf16.mxu0 %v2034_v7 }
  0x81   :  { %1953 = vmatprep.subr.bf16.mxu1 %v2048_v28 }
  0x82   :  { %1892 = vmatmul.mubr.bf16.vlgmr.msra.gmra.mrb[12].mxu0 %v833_v52 }
  0x83   :  { %1916 = vmatpush3.bf16.msra.mxu0 %v2034_v7  ;;  %1912 = vmatmul.mubr.bf16.vlgmr.msra.gmra.mrb[12].mxu1 %v983_v54 }
  0x84   :  { %1917 = vmatprep.subr.bf16.mxu0 %v2037_v8  ;;  %1931 = vmatprep.mubr.bf16.mxu0 %v1629_v9 }
  0x85   :  { %1941 = vmatprep.mubr.msk.f32.mxu1 %vm2049_vm7, %v2050_v12 }
  0x87   :  { %1918 = vmatpush3.bf16.msra.mxu0 %v2037_v8 }
  0x88   :  { %1919 = vmatprep.subr.bf16.mxu0 %v2038_v10 }
  0x8b   :  { %1920 = vmatpush3.bf16.msra.mxu0 %v2038_v10 }
  0x8c   :  { %1921 = vmatprep.subr.bf16.mxu0 %v2039_v11 }
  0x8f   :  { %1922 = vmatpush3.bf16.msra.mxu0 %v2039_v11 }
  0x90   :  { %1923 = vmatprep.subr.bf16.mxu0 %v2040_v63 }
  0x93   :  { %1924 = vmatpush3.bf16.msra.mxu0 %v2040_v63 }
  0x94   :  { %1925 = vmatprep.subr.bf16.mxu0 %v2041_v13 }
  0x97   :  { %1926 = vmatpush3.bf16.msra.mxu0 %v2041_v13  ;;  %v1639_v13 = vld [vmem:[%s2411_s2] ss:$0 sm:$0xff] }
  0x98   :  { %1927 = vmatprep.subr.bf16.mxu0 %v2042_v14 }
  0x9b   :  { %1928 = vmatpush3.bf16.msra.mxu0 %v2042_v14 }
  0x9c   :  { %1929 = vmatprep.subr.bf16.mxu0 %v2043_v16 }
  0x9f   :  { %1930 = vmatpush3.bf16.msra.mxu0 %v2043_v16 }
  0xa2   :  { %1932 = vmatmul.mubr.bf16.vlgmr.msra.gmra.mrb[16].mxu0 %v1630_v17 }
  0xf5   :  { %v1773_v18 = vpop.f32.mrb[0].mxu0 }
  0xf6   :  { %v1793_v19 = vpop.f32.mrb[0].mxu1  ;;  %v163_v20 = vpop.f32.mrb[1].mxu0 }
  0xf7   :  { %v273_v21 = vadd.f32 %v1793_v19, %v1773_v18  ;;  %v264_v22 = vpop.f32.mrb[1].mxu1  ;;  %v1774_v23 = vpop.f32.mrb[2].mxu0 }
  0xf8   :  { %v265_v15 = vadd.f32 %v264_v22, %v163_v20  ;;  %v1794_v24 = vpop.f32.mrb[2].mxu1  ;;  %v166_v25 = vpop.f32.mrb[3].mxu0  ;;  %v1214_v23 = vld [vmem:[%s2412_s3] sm:$0x1] }
  0xf9   :  { %v267_v26 = vpop.f32.mrb[3].mxu1 }
  0xfa   :  { %v268_v27 = vadd.f32 %v267_v26, %v166_v25 }
 0x115   :  { %v1813_v29 = vpop.f32.mrb[4].mxu0 }
 0x116   :  { %v403_v30 = vadd.f32 %v1813_v29, %v273_v21  ;;  %v387_v31 = vpop.f32.mrb[5].mxu0  ;;  %v1833_v32 = vpop.f32.mrb[4].mxu1 }
 0x117   :  { %v401_v33 = vadd.f32 %v387_v31, %v265_v15  ;;  %v1814_v34 = vpop.f32.mrb[6].mxu0  ;;  %v527_v35 = vpop.f32.mrb[5].mxu1 }
 0x118   :  { %v543_v36 = vadd.f32 %v1833_v32, %v403_v30  ;;  %v390_v37 = vpop.f32.mrb[7].mxu0  ;;  %v1834_v39 = vpop.f32.mrb[6].mxu1  ;;  %v1372_v32 = vlaneseq }
 0x119   :  { %v402_v40 = vadd.f32 %v390_v37, %v268_v27  ;;  %v541_v41 = vadd.f32 %v527_v35, %v401_v33  ;;  %v530_v42 = vpop.f32.mrb[7].mxu1 }
 0x11a   :  { %v1373_v35 = vshrl.u32 %v1372_v32, 7 }
 0x11b   :  { %v542_v43 = vadd.f32 %v530_v42, %v402_v40  ;;  %v1644_v42 = vld [vmem:[%s2411_s2 + $0x1] ss:$0 sm:$0xff] }
 0x135   :  { %v1853_v44 = vpop.f32.mrb[8].mxu0 }
 0x136   :  { %v669_v45 = vadd.f32 %v1853_v44, %v543_v36  ;;  %v653_v46 = vpop.f32.mrb[9].mxu0  ;;  %v1873_v47 = vpop.f32.mrb[8].mxu1 }
 0x137   :  { %v667_v48 = vadd.f32 %v653_v46, %v541_v41  ;;  %v1854_v49 = vpop.f32.mrb[10].mxu0  ;;  %v793_v50 = vpop.f32.mrb[9].mxu1  ;;  %v1645_v46 = vld [vmem:[%s2411_s2 + $0x2] ss:$0 sm:$0xff] }
 0x138   :  { %v809_v51 = vadd.f32 %v1873_v47, %v669_v45  ;;  %v656_v52 = vpop.f32.mrb[11].mxu0  ;;  %v1874_v53 = vpop.f32.mrb[10].mxu1 }
 0x139   :  { %v668_v54 = vadd.f32 %v656_v52, %v542_v43  ;;  %v807_v55 = vadd.f32 %v793_v50, %v667_v48  ;;  %v796_v56 = vpop.f32.mrb[11].mxu1 }
 0x13b   :  { %v808_v57 = vadd.f32 %v796_v56, %v668_v54 }
 0x155   :  { %v1893_v58 = vpop.f32.mrb[12].mxu0 }
 0x156   :  { %v935_v59 = vadd.f32 %v1893_v58, %v809_v51  ;;  %v919_v60 = vpop.f32.mrb[13].mxu0  ;;  %v1913_v38 = vpop.f32.mrb[12].mxu1 }
 0x157   :  { %v933_v61 = vadd.f32 %v919_v60, %v807_v55  ;;  %v1894_v62 = vpop.f32.mrb[14].mxu0  ;;  %v1069_v0 = vpop.f32.mrb[13].mxu1 }
 0x158   :  { %v1085_v1 = vadd.f32 %v1913_v38, %v935_v59  ;;  %v922_v2 = vpop.f32.mrb[15].mxu0  ;;  %v1914_v3 = vpop.f32.mrb[14].mxu1 }
 0x159   :  { %v934_v4 = vadd.f32 %v922_v2, %v808_v57  ;;  %v1083_v5 = vadd.f32 %v1069_v0, %v933_v61  ;;  %v1072_v6 = vpop.f32.mrb[15].mxu1 }
 0x15b   :  { %v1084_v7 = vadd.f32 %v1072_v6, %v934_v4 }
 0x175   :  { %v1933_v8 = vpop.f32.mrb[16].mxu0 }
 0x176   :  { %v1205_v9 = vadd.f32 %v1933_v8, %v1085_v1  ;;  %v1189_v10 = vpop.f32.mrb[17].mxu0 }
 0x177   :  { %v1203_v11 = vadd.f32 %v1189_v10, %v1083_v5  ;;  %v1934_v63 = vpop.f32.mrb[18].mxu0 }
 0x178   :  { %v1192_v14 = vpop.f32.mrb[19].mxu0  ;;  %v1213_v21 = vadd.f32 %v1639_v13, %v1205_v9 }
 0x179   :  { %v1204_v16 = vadd.f32 %v1192_v14, %v1084_v7  ;;  %v1211_v17 = vadd.f32 %v1639_v13, %v1203_v11 }
 0x17a   :  { %v1295_v24 = vmul.f32 %v1213_v21, %v1213_v21 }
 0x17b   :  { %v1212_v18 = vadd.f32 %v1639_v13, %v1204_v16  ;;  %v1293_v22 = vmul.f32 %v1211_v17, %v1211_v17 }
 0x17d   :  { %v1954_v19 = vpack.c.bf16 %v1212_v18, %v1211_v17  ;;  %v1294_v20 = vmul.f32 %v1212_v18, %v1212_v18 }
 0x17f   :  { %1955 = vmatpush3.bf16.msra.mxu1 %v1954_v19  ;;  %v1957_v15 = vpack.c.bf16 %v1294_v20, %v1293_v22 }
 0x180   :  { %1939 = vmatprep.subr.mxu1 %v2050_v12 }
 0x183   :  { %1940 = vmatpush3.msk.msra.mxu1 %vm1219_vm8, %v1213_v21 }
 0x184   :  { %1942 = vmatmul.mubr.msk.f32.vlgmr.msra.gmra.mrb[16].mxu1 %vm1215_vm9, %v1214_v23  ;;  %1956 = vmatprep.subr.bf16.mxu1 %v2048_v28  ;;  %v1374_v28 = vsub.s32 0, %v1373_v35 }
 0x185   :  { %1958 = vmatpush3.bf16.msra.mxu1 %v1957_v15  ;;  %1950 = vmatprep.mubr.msk.f32.mxu1 %vm2049_vm7, %v2050_v12 }
 0x186   :  { %1948 = vmatprep.subr.mxu1 %v2050_v12 }
 0x189   :  { %1949 = vmatpush3.msk.msra.mxu1 %vm1219_vm8, %v1295_v24 }
 0x18a   :  { %1951 = vmatmul.mubr.msk.f32.vlgmr.msra.gmra.mrb[18].mxu1 %vm1215_vm9, %v1214_v23 }
 0x257   :  { %v1289_v25 = vpop.f32.mrb[16].mxu1 }
 0x258   :  { %v1943_v26 = vpop.f32.mrb[17].mxu1  ;;  %v1369_v27 = vmul.f32 %v1289_v25, %v1289_v25  ;;  %v1375_v36 = vrot.slane %v1289_v25, %v1374_v28 }
 0x25a   :  { %v1376_v39 = vsub.f32 %v1211_v17, %v1375_v36  ;;  %v1377_v40 = vsub.f32 %v1212_v18, %v1375_v36  ;;  %v1378_v12 = vsub.f32 %v1213_v21, %v1375_v36 }
 0x25d   :  { %v1365_v29 = vpop.f32.mrb[18].mxu1 }
 0x25e   :  { %v1370_v30 = vsub.f32 %v1365_v29, %v1369_v27  ;;  %v1952_v31 = vpop.f32.mrb[19].mxu1 }
 0x260   :  { %v1371_v33 = vmax.f32 %v1370_v30, 0.0 }
 0x262   :  { %v1379_v34 = vadd.f32 1e-05, %v1371_v33 }
 0x264   :  { %2046 = vrsqrt.f32 %v1379_v34 }
 0x26e   :  { %v2047_v37 = vpop.eup %2046 }
 0x26f   :  { %v1384_v41 = vrot.slane %v2047_v37, %v1374_v28 }
 0x271   :  { %v1385_v43 = vmul.f32 %v1384_v41, %v1376_v39  ;;  %v1386_v44 = vmul.f32 %v1384_v41, %v1377_v40  ;;  %v1387_v45 = vmul.f32 %v1384_v41, %v1378_v12 }
 0x273   :  { %v1393_v47 = vmul.f32 %v1644_v42, %v1385_v43  ;;  %v1394_v48 = vmul.f32 %v1644_v42, %v1386_v44  ;;  %v1395_v49 = vmul.f32 %v1644_v42, %v1387_v45 }
 0x275   :  { %v1401_v50 = vadd.f32 %v1645_v46, %v1393_v47  ;;  %v1402_v51 = vadd.f32 %v1645_v46, %v1394_v48  ;;  %v1403_v52 = vadd.f32 %v1645_v46, %v1395_v49 }
 0x277   :  { %v1404_v53 = vmax.f32 %v1401_v50, 0.0  ;;  %v1405_v54 = vmax.f32 %v1402_v51, 0.0  ;;  %v1406_v55 = vmax.f32 %v1403_v52, 0.0 }
 0x279   :  { %v1651_v56 = vpack.c.bf16 %v1406_v55, %v1406_v55  ;;  %v1655_v57 = vpack.c.bf16 %v1405_v54, %v1404_v53 }
 0x27b   :  { %1656 = vst [vmem:[%s2413_s4] sm:$0xff] %v1655_v57   ;;  %1422 = vst [vmem:[%s2413_s4 + $0x8] sm:$0x1] %v1651_v56 }

// kernel: cnn_autoencoder_forward.20
= control target key start
LH: loop header
LB: loop body
LE: loop exit
PB: predicated region body
PF: predicated region fallthrough
CT: control target
= control target key end

     0   :  { %s167_s0 = inlined_call_operand.vmem [shape: bf16[32,128], index: 0, kind: input, shape index: {}]   ;;  %s168_s1 = inlined_call_operand.vmem [shape: f32[2,128], index: 1, kind: input, shape index: {}]   ;;  %s169_s2 = inlined_call_operand.vmem [shape: bf16[32,128], index: 2, kind: output, shape index: {}]  }
   0x1   :  { %v113_v0 = vld [vmem:[%s167_s0] sm:$0xff]   ;;  %v130_v1 = vld [vmem:[%s167_s0 + $0x8] sm:$0xff]  }
   0x2   :  { %v114_v2 = vunpack.c.l.bf16 %v113_v0  ;;  %v115_v3 = vunpack.c.h.bf16 %v113_v0  ;;  %v118_v4 = vunpack.c.l.bf16 %v130_v1  ;;  %v119_v5 = vunpack.c.h.bf16 %v130_v1  ;;  %v102_v39 = vld [vmem:[%s168_s1] ss:$0 sm:$0xff]  ;;  %v103_v44 = vld [vmem:[%s168_s1 + $0x1] ss:$0 sm:$0xff] }
   0x4   :  { %v19_v6 = vadd.f32 %v115_v3, %v114_v2  ;;  %v29_v7 = vmul.f32 %v114_v2, %v114_v2  ;;  %v30_v8 = vmul.f32 %v115_v3, %v115_v3  ;;  %v31_v9 = vmul.f32 %v118_v4, %v118_v4 }
   0x5   :  { %v32_v11 = vmul.f32 %v119_v5, %v119_v5 }
   0x6   :  { %v20_v10 = vadd.f32 %v118_v4, %v19_v6  ;;  %v33_v12 = vadd.f32 %v30_v8, %v29_v7 }
   0x8   :  { %v21_v13 = vadd.f32 %v119_v5, %v20_v10  ;;  %v34_v14 = vadd.f32 %v33_v12, %v31_v9 }
   0xa   :  { %v22_v15 = vrot.slane %v21_v13, 4  ;;  %v35_v16 = vadd.f32 %v34_v14, %v32_v11 }
   0xc   :  { %v23_v17 = vadd.f32 %v22_v15, %v21_v13  ;;  %v36_v18 = vrot.slane %v35_v16, 4 }
   0xe   :  { %v24_v19 = vrot.slane %v23_v17, 2  ;;  %v37_v20 = vadd.f32 %v36_v18, %v35_v16 }
  0x10   :  { %v25_v21 = vadd.f32 %v24_v19, %v23_v17  ;;  %v38_v22 = vrot.slane %v37_v20, 2 }
  0x12   :  { %v26_v23 = vrot.slane %v25_v21, 1  ;;  %v39_v24 = vadd.f32 %v38_v22, %v37_v20 }
  0x14   :  { %v27_v25 = vadd.f32 %v26_v23, %v25_v21  ;;  %v40_v26 = vrot.slane %v39_v24, 1 }
  0x16   :  { %v28_v27 = vmul.f32 0.03125, %v27_v25  ;;  %v41_v28 = vadd.f32 %v40_v26, %v39_v24 }
  0x18   :  { %v42_v29 = vmul.f32 0.03125, %v41_v28  ;;  %v43_v30 = vmul.f32 %v28_v27, %v28_v27  ;;  %v46_v34 = vsub.f32 %v114_v2, %v28_v27  ;;  %v47_v35 = vsub.f32 %v115_v3, %v28_v27 }
  0x19   :  { %v48_v36 = vsub.f32 %v118_v4, %v28_v27  ;;  %v49_v37 = vsub.f32 %v119_v5, %v28_v27 }
  0x1a   :  { %v44_v31 = vsub.f32 %v42_v29, %v43_v30 }
  0x1c   :  { %v45_v32 = vmax.f32 %v44_v31, 0.0 }
  0x1e   :  { %v50_v33 = vadd.f32 1e-05, %v45_v32 }
  0x20   :  { %132 = vrsqrt.f32 %v50_v33 }
  0x2a   :  { %v133_v38 = vpop.eup %132 }
  0x2b   :  { %v52_v40 = vmul.f32 %v133_v38, %v46_v34  ;;  %v53_v41 = vmul.f32 %v133_v38, %v47_v35  ;;  %v54_v42 = vmul.f32 %v133_v38, %v48_v36  ;;  %v55_v43 = vmul.f32 %v133_v38, %v49_v37 }
  0x2d   :  { %v61_v45 = vmul.f32 %v102_v39, %v52_v40  ;;  %v62_v46 = vmul.f32 %v102_v39, %v53_v41  ;;  %v63_v47 = vmul.f32 %v102_v39, %v54_v42  ;;  %v64_v48 = vmul.f32 %v102_v39, %v55_v43 }
  0x2f   :  { %v70_v49 = vadd.f32 %v103_v44, %v61_v45  ;;  %v71_v50 = vadd.f32 %v103_v44, %v62_v46  ;;  %v72_v51 = vadd.f32 %v103_v44, %v63_v47  ;;  %v73_v52 = vadd.f32 %v103_v44, %v64_v48 }
  0x31   :  { %v74_v53 = vmax.f32 %v70_v49, 0.0  ;;  %v75_v54 = vmax.f32 %v71_v50, 0.0  ;;  %v76_v55 = vmax.f32 %v72_v51, 0.0  ;;  %v77_v56 = vmax.f32 %v73_v52, 0.0 }
  0x33   :  { %v123_v57 = vpack.c.bf16 %v75_v54, %v74_v53  ;;  %v128_v58 = vpack.c.bf16 %v77_v56, %v76_v55 }
  0x35   :  { %124 = vst [vmem:[%s169_s2] sm:$0xff] %v123_v57   ;;  %131 = vst [vmem:[%s169_s2 + $0x8] sm:$0xff] %v128_v58  }

// kernel: cnn_autoencoder_forward.19
= control target key start
LH: loop header
LB: loop body
LE: loop exit
PB: predicated region body
PF: predicated region fallthrough
CT: control target
= control target key end

     0   :  { %v2414_v1 = vmov 0   ;;  %s3072_s1 = inlined_call_operand.vmem [shape: bf16[4,128,768], index: 1, kind: input, shape index: {}]   ;;  %s3073_s0 = inlined_call_operand.vmem [shape: bf16[11,128], index: 0, kind: input, shape index: {}]   ;;  %s3074_s2 = inlined_call_operand.vmem [shape: f32[1,768], index: 2, kind: input, shape index: {}]   ;;  %s3075_s3 = inlined_call_operand.vmem [shape: bf16[8,768], index: 3, kind: output, shape index: {}]  }
   0x1   :  { %v2123_v0 = vld [vmem:[%s3072_s1 + $0x184] ss:$24 sps:$4 sm:$0xff]   ;;  %399 = vmatprep.mubr.bf16.mxu0 %v2414_v1  ;;  %440 = vmatprep.mubr.bf16.mxu1 %v2414_v1  ;;  %v2127_v3 = vld [vmem:[%s3072_s1 + $0x180] ss:$24 sps:$4 sm:$0xff]   ;;  %v2129_v5 = vld [vmem:[%s3072_s1 + $0x1b4] ss:$24 sps:$4 sm:$0xff]  }
   0x2   :  { %v2125_v2 = vld [vmem:[%s3072_s1 + $0x18c] ss:$24 sps:$4 sm:$0xff]   ;;  %367 = vmatprep.subr.bf16.mxu0 %v2123_v0  ;;  %v2128_v4 = vld [vmem:[%s3072_s1 + $0x188] ss:$24 sps:$4 sm:$0xff]   ;;  %v2131_v6 = vld [vmem:[%s3072_s1 + $0x1bc] ss:$24 sps:$4 sm:$0xff]  }
   0x3   :  { %408 = vmatprep.subr.bf16.mxu1 %v2125_v2  ;;  %368 = vmatpush1.bf16.msra.mxu0 %v2127_v3  ;;  %v2133_v7 = vld [vmem:[%s3072_s1 + $0x1b0] ss:$24 sps:$4 sm:$0xff]   ;;  %v2135_v9 = vld [vmem:[%s3072_s1 + $0x1e4] ss:$24 sps:$4 sm:$0xff]   ;;  %v2139_v11 = vld [vmem:[%s3072_s1 + $0x1e0] ss:$24 sps:$4 sm:$0xff]  }
   0x4   :  { %409 = vmatpush1.bf16.msra.mxu1 %v2128_v4  ;;  %369 = vmatprep.subr.bf16.mxu0 %v2129_v5  ;;  %v2134_v8 = vld [vmem:[%s3072_s1 + $0x1b8] ss:$24 sps:$4 sm:$0xff]   ;;  %v2137_v10 = vld [vmem:[%s3072_s1 + $0x1ec] ss:$24 sps:$4 sm:$0xff]   ;;  %v2140_v12 = vld [vmem:[%s3072_s1 + $0x1e8] ss:$24 sps:$4 sm:$0xff]  }
   0x5   :  { %410 = vmatprep.subr.bf16.mxu1 %v2131_v6  ;;  %v2141_v13 = vld [vmem:[%s3072_s1 + $0x214] ss:$24 sps:$4 sm:$0xff]   ;;  %v2145_v15 = vld [vmem:[%s3072_s1 + $0x210] ss:$24 sps:$4 sm:$0xff]   ;;  %v2147_v17 = vld [vmem:[%s3072_s1 + $0x244] ss:$24 sps:$4 sm:$0xff]  }
   0x6   :  { %v2143_v14 = vld [vmem:[%s3072_s1 + $0x21c] ss:$24 sps:$4 sm:$0xff]   ;;  %v2146_v16 = vld [vmem:[%s3072_s1 + $0x218] ss:$24 sps:$4 sm:$0xff]   ;;  %v2149_v18 = vld [vmem:[%s3072_s1 + $0x24c] ss:$24 sps:$4 sm:$0xff]  }
   0x7   :  { %370 = vmatpush1.bf16.msra.mxu0 %v2133_v7  ;;  %v2151_v19 = vld [vmem:[%s3072_s1 + $0x240] ss:$24 sps:$4 sm:$0xff]   ;;  %v2153_v21 = vld [vmem:[%s3072_s1 + $0x274] ss:$24 sps:$4 sm:$0xff]   ;;  %v2157_v23 = vld [vmem:[%s3072_s1 + $0x270] ss:$24 sps:$4 sm:$0xff]  }
   0x8   :  { %411 = vmatpush1.bf16.msra.mxu1 %v2134_v8  ;;  %371 = vmatprep.subr.bf16.mxu0 %v2135_v9  ;;  %v2152_v20 = vld [vmem:[%s3072_s1 + $0x248] ss:$24 sps:$4 sm:$0xff]   ;;  %v2155_v22 = vld [vmem:[%s3072_s1 + $0x27c] ss:$24 sps:$4 sm:$0xff]   ;;  %v2158_v24 = vld [vmem:[%s3072_s1 + $0x278] ss:$24 sps:$4 sm:$0xff]  }
   0x9   :  { %412 = vmatprep.subr.bf16.mxu1 %v2137_v10  ;;  %v2159_v25 = vld [vmem:[%s3072_s1 + $0x2a4] ss:$24 sps:$4 sm:$0xff]   ;;  %v2518_v27 = vld [vmem:[%s3073_s0] sm:$0xf]  ;;  %v2165_v32 = vld [vmem:[%s3072_s1 + $0x2d4] ss:$24 sps:$4 sm:$0xff]  }
   0xa   :  { %v2161_v26 = vld [vmem:[%s3072_s1 + $0x2ac] ss:$24 sps:$4 sm:$0xff]   ;;  %v2163_v30 = vld [vmem:[%s3072_s1 + $0x2a0] ss:$24 sps:$4 sm:$0xff]   ;;  %v2167_v34 = vld [vmem:[%s3072_s1 + $0x2dc] ss:$24 sps:$4 sm:$0xff]  }
   0xb   :  { %372 = vmatpush1.bf16.msra.mxu0 %v2139_v11  ;;  %v2523_v28 = vld [vmem:[%s3073_s0 + $0x4] sm:$0x1]  ;;  %v2164_v31 = vld [vmem:[%s3072_s1 + $0x2a8] ss:$24 sps:$4 sm:$0xff]   ;;  %v2170_v38 = vld [vmem:[%s3072_s1 + $0x2d8] ss:$24 sps:$4 sm:$0xff]  }
   0xc   :  { %413 = vmatpush1.bf16.msra.mxu1 %v2140_v12  ;;  %373 = vmatprep.subr.bf16.mxu0 %v2141_v13  ;;  %v1825_v29 = vcombine.low %v2518_v27, %v2523_v28  ;;  %v2169_v35 = vld [vmem:[%s3072_s1 + $0x2d0] ss:$24 sps:$4 sm:$0xff]   ;;  %v2174_v39 = vld [vmem:[%s3072_s1 + $0x194] ss:$24 sps:$4 sm:$0xff]   ;;  %v2177_v40 = vld [vmem:[%s3072_s1 + $0x4] ss:$24 sps:$4 sm:$0xff]  }
   0xd   :  { %414 = vmatprep.subr.bf16.mxu1 %v2143_v14  ;;  %v2172_v42 = vld [vmem:[%s3072_s1 + $0x190] ss:$24 sps:$4 sm:$0xff]   ;;  %v2175_v43 = vld [vmem:[%s3072_s1] ss:$24 sps:$4 sm:$0xff]   ;;  %v2180_v44 = vld [vmem:[%s3072_s1 + $0x1c4] ss:$24 sps:$4 sm:$0xff]  }
   0xe   :  { %v122_v33 = vshll.u32 %v1825_v29, 16  ;;  %v120_v36 = vshrl.u32 %v1825_v29, 16  ;;  %v2183_v45 = vld [vmem:[%s3072_s1 + $0x34] ss:$24 sps:$4 sm:$0xff]   ;;  %v2178_v46 = vld [vmem:[%s3072_s1 + $0x1c0] ss:$24 sps:$4 sm:$0xff]  }
   0xf   :  { %374 = vmatpush1.bf16.msra.mxu0 %v2145_v15  ;;  %v2181_v47 = vld [vmem:[%s3072_s1 + $0x30] ss:$24 sps:$4 sm:$0xff]   ;;  %v2186_v48 = vld [vmem:[%s3072_s1 + $0x1f4] ss:$24 sps:$4 sm:$0xff]   ;;  %v2189_v49 = vld [vmem:[%s3072_s1 + $0x64] ss:$24 sps:$4 sm:$0xff]  }
  0x10   :  { %415 = vmatpush1.bf16.msra.mxu1 %v2146_v16  ;;  %375 = vmatprep.subr.bf16.mxu0 %v2147_v17  ;;  %v124_v37 = vrot.slane %v122_v33, 1  ;;  %v2184_v50 = vld [vmem:[%s3072_s1 + $0x1f0] ss:$24 sps:$4 sm:$0xff]   ;;  %v2187_v51 = vld [vmem:[%s3072_s1 + $0x60] ss:$24 sps:$4 sm:$0xff]  }
  0x11   :  { %416 = vmatprep.subr.bf16.mxu1 %v2149_v18  ;;  %v2192_v52 = vld [vmem:[%s3072_s1 + $0x224] ss:$24 sps:$4 sm:$0xff]   ;;  %v2195_v53 = vld [vmem:[%s3072_s1 + $0x94] ss:$24 sps:$4 sm:$0xff]   ;;  %v2190_v54 = vld [vmem:[%s3072_s1 + $0x220] ss:$24 sps:$4 sm:$0xff]  }
  0x12   :  { %v2551_v41 = vor.u32 %v124_v37, %v120_v36  ;;  %v2193_v55 = vld [vmem:[%s3072_s1 + $0x90] ss:$24 sps:$4 sm:$0xff]   ;;  %v2198_v56 = vld [vmem:[%s3072_s1 + $0x254] ss:$24 sps:$4 sm:$0xff]   ;;  %v2201_v57 = vld [vmem:[%s3072_s1 + $0xc4] ss:$24 sps:$4 sm:$0xff]  }
  0x13   :  { %376 = vmatpush1.bf16.msra.mxu0 %v2151_v19  ;;  %v2196_v58 = vld [vmem:[%s3072_s1 + $0x250] ss:$24 sps:$4 sm:$0xff]   ;;  %v2199_v59 = vld [vmem:[%s3072_s1 + $0xc0] ss:$24 sps:$4 sm:$0xff]   ;;  %v2204_v60 = vld [vmem:[%s3072_s1 + $0x284] ss:$24 sps:$4 sm:$0xff]  }
  0x14   :  { %417 = vmatpush1.bf16.msra.mxu1 %v2152_v20  ;;  %377 = vmatprep.subr.bf16.mxu0 %v2153_v21  ;;  %v2207_v61 = vld [vmem:[%s3072_s1 + $0xf4] ss:$24 sps:$4 sm:$0xff]   ;;  %v2202_v62 = vld [vmem:[%s3072_s1 + $0x280] ss:$24 sps:$4 sm:$0xff]   ;;  %v2205_v63 = vld [vmem:[%s3072_s1 + $0xf0] ss:$24 sps:$4 sm:$0xff]  }
  0x15   :  { %418 = vmatprep.subr.bf16.mxu1 %v2155_v22  ;;  %v2210_v0 = vld [vmem:[%s3072_s1 + $0x2b4] ss:$24 sps:$4 sm:$0xff]   ;;  %v2213_v2 = vld [vmem:[%s3072_s1 + $0x124] ss:$24 sps:$4 sm:$0xff]   ;;  %v2208_v3 = vld [vmem:[%s3072_s1 + $0x2b0] ss:$24 sps:$4 sm:$0xff]  }
  0x16   :  { %v2211_v4 = vld [vmem:[%s3072_s1 + $0x120] ss:$24 sps:$4 sm:$0xff]   ;;  %v2216_v5 = vld [vmem:[%s3072_s1 + $0x2e4] ss:$24 sps:$4 sm:$0xff]   ;;  %v2219_v6 = vld [vmem:[%s3072_s1 + $0x154] ss:$24 sps:$4 sm:$0xff]  }
  0x17   :  { %378 = vmatpush1.bf16.msra.mxu0 %v2157_v23  ;;  %v2214_v7 = vld [vmem:[%s3072_s1 + $0x2e0] ss:$24 sps:$4 sm:$0xff]   ;;  %v2217_v8 = vld [vmem:[%s3072_s1 + $0x150] ss:$24 sps:$4 sm:$0xff]   ;;  %v2222_v9 = vld [vmem:[%s3072_s1 + $0xc] ss:$24 sps:$4 sm:$0xff]  }
  0x18   :  { %419 = vmatpush1.bf16.msra.mxu1 %v2158_v24  ;;  %379 = vmatprep.subr.bf16.mxu0 %v2159_v25  ;;  %v2225_v10 = vld [vmem:[%s3072_s1 + $0x14] ss:$24 sps:$4 sm:$0xff]   ;;  %v2220_v11 = vld [vmem:[%s3072_s1 + $0x8] ss:$24 sps:$4 sm:$0xff]   ;;  %v2231_v14 = vld [vmem:[%s3072_s1 + $0x44] ss:$24 sps:$4 sm:$0xff]  }
  0x19   :  { %420 = vmatprep.subr.bf16.mxu1 %v2161_v26  ;;  %v2223_v12 = vld [vmem:[%s3072_s1 + $0x10] ss:$24 sps:$4 sm:$0xff]   ;;  %v2228_v13 = vld [vmem:[%s3072_s1 + $0x3c] ss:$24 sps:$4 sm:$0xff]   ;;  %v2229_v16 = vld [vmem:[%s3072_s1 + $0x40] ss:$24 sps:$4 sm:$0xff]  }
  0x1a   :  { %v2226_v15 = vld [vmem:[%s3072_s1 + $0x38] ss:$24 sps:$4 sm:$0xff]   ;;  %v2234_v17 = vld [vmem:[%s3072_s1 + $0x6c] ss:$24 sps:$4 sm:$0xff]   ;;  %v2232_v19 = vld [vmem:[%s3072_s1 + $0x68] ss:$24 sps:$4 sm:$0xff]  }
  0x1b   :  { %380 = vmatpush1.bf16.msra.mxu0 %v2163_v30  ;;  %v2237_v18 = vld [vmem:[%s3072_s1 + $0x74] ss:$24 sps:$4 sm:$0xff]   ;;  %v2235_v20 = vld [vmem:[%s3072_s1 + $0x70] ss:$24 sps:$4 sm:$0xff]   ;;  %v2243_v22 = vld [vmem:[%s3072_s1 + $0xa4] ss:$24 sps:$4 sm:$0xff]  }
  0x1c   :  { %421 = vmatpush1.bf16.msra.mxu1 %v2164_v31  ;;  %381 = vmatprep.subr.bf16.mxu0 %v2165_v32  ;;  %v2240_v21 = vld [vmem:[%s3072_s1 + $0x9c] ss:$24 sps:$4 sm:$0xff]   ;;  %v2238_v23 = vld [vmem:[%s3072_s1 + $0x98] ss:$24 sps:$4 sm:$0xff]   ;;  %v2246_v25 = vld [vmem:[%s3072_s1 + $0xcc] ss:$24 sps:$4 sm:$0xff]  }
  0x1d   :  { %422 = vmatprep.subr.bf16.mxu1 %v2167_v34  ;;  %v2241_v24 = vld [vmem:[%s3072_s1 + $0xa0] ss:$24 sps:$4 sm:$0xff]   ;;  %v2249_v26 = vld [vmem:[%s3072_s1 + $0xd4] ss:$24 sps:$4 sm:$0xff]   ;;  %v2247_v30 = vld [vmem:[%s3072_s1 + $0xd0] ss:$24 sps:$4 sm:$0xff]  }
  0x1e   :  { %v2244_v29 = vld [vmem:[%s3072_s1 + $0xc8] ss:$24 sps:$4 sm:$0xff]   ;;  %v2252_v31 = vld [vmem:[%s3072_s1 + $0xfc] ss:$24 sps:$4 sm:$0xff]   ;;  %v2250_v33 = vld [vmem:[%s3072_s1 + $0xf8] ss:$24 sps:$4 sm:$0xff]  }
  0x1f   :  { %382 = vmatpush1.bf16.msra.mxu0 %v2169_v35  ;;  %v2255_v32 = vld [vmem:[%s3072_s1 + $0x104] ss:$24 sps:$4 sm:$0xff]   ;;  %v2253_v34 = vld [vmem:[%s3072_s1 + $0x100] ss:$24 sps:$4 sm:$0xff]   ;;  %v2261_v36 = vld [vmem:[%s3072_s1 + $0x134] ss:$24 sps:$4 sm:$0xff]  }
  0x20   :  { %423 = vmatpush1.bf16.msra.mxu1 %v2170_v38  ;;  %449 = vmatprep.subr.bf16.mxu0 %v2174_v39  ;;  %v2258_v35 = vld [vmem:[%s3072_s1 + $0x12c] ss:$24 sps:$4 sm:$0xff]   ;;  %v2256_v37 = vld [vmem:[%s3072_s1 + $0x128] ss:$24 sps:$4 sm:$0xff]   ;;  %v2264_v39 = vld [vmem:[%s3072_s1 + $0x15c] ss:$24 sps:$4 sm:$0xff]  }
  0x21   :  { %730 = vmatprep.subr.bf16.mxu1 %v2177_v40  ;;  %v2259_v38 = vld [vmem:[%s3072_s1 + $0x130] ss:$24 sps:$4 sm:$0xff]   ;;  %v2267_v40 = vld [vmem:[%s3072_s1 + $0x164] ss:$24 sps:$4 sm:$0xff]  }
  0x22   :  { %400 = vmatmul.mubr.bf16.vlgmr.msra.gmra.mrb[0].mxu0 %v2551_v41 }
  0x23   :  { %441 = vmatmul.mubr.bf16.vlgmr.msra.gmra.mrb[0].mxu1 %v2551_v41  ;;  %450 = vmatpush1.bf16.msra.mxu0 %v2172_v42  ;;  %v2265_v42 = vld [vmem:[%s3072_s1 + $0x160] ss:$24 sps:$4 sm:$0xff]  }
  0x24   :  { %731 = vmatpush1.bf16.msra.mxu1 %v2175_v43  ;;  %451 = vmatprep.subr.bf16.mxu0 %v2180_v44  ;;  %v2270_v43 = vld [vmem:[%s3072_s1 + $0x304] ss:$24 sps:$4 sm:$0xff]  }
  0x25   :  { %732 = vmatprep.subr.bf16.mxu1 %v2183_v45  ;;  %481 = vmatprep.mubr.bf16.mxu0 %v2414_v1  ;;  %v2273_v44 = vld [vmem:[%s3072_s1 + $0x30c] ss:$24 sps:$4 sm:$0xff]   ;;  %v2268_v45 = vld [vmem:[%s3072_s1 + $0x300] ss:$24 sps:$4 sm:$0xff]  }
  0x26   :  { %762 = vmatprep.mubr.bf16.mxu1 %v2414_v1 }
  0x27   :  { %452 = vmatpush1.bf16.msra.mxu0 %v2178_v46  ;;  %v2271_v46 = vld [vmem:[%s3072_s1 + $0x308] ss:$24 sps:$4 sm:$0xff]  }
  0x28   :  { %733 = vmatpush1.bf16.msra.mxu1 %v2181_v47  ;;  %453 = vmatprep.subr.bf16.mxu0 %v2186_v48  ;;  %v2276_v47 = vld [vmem:[%s3072_s1 + $0x334] ss:$24 sps:$4 sm:$0xff]  }
  0x29   :  { %734 = vmatprep.subr.bf16.mxu1 %v2189_v49  ;;  %v2279_v48 = vld [vmem:[%s3072_s1 + $0x33c] ss:$24 sps:$4 sm:$0xff]   ;;  %v2274_v49 = vld [vmem:[%s3072_s1 + $0x330] ss:$24 sps:$4 sm:$0xff]  }
  0x2b   :  { %454 = vmatpush1.bf16.msra.mxu0 %v2184_v50  ;;  %v2277_v50 = vld [vmem:[%s3072_s1 + $0x338] ss:$24 sps:$4 sm:$0xff]  }
  0x2c   :  { %735 = vmatpush1.bf16.msra.mxu1 %v2187_v51  ;;  %455 = vmatprep.subr.bf16.mxu0 %v2192_v52  ;;  %v2282_v51 = vld [vmem:[%s3072_s1 + $0x364] ss:$24 sps:$4 sm:$0xff]   ;;  %v2280_v52 = vld [vmem:[%s3072_s1 + $0x360] ss:$24 sps:$4 sm:$0xff]  }
  0x2d   :  { %736 = vmatprep.subr.bf16.mxu1 %v2195_v53  ;;  %v2283_v53 = vld [vmem:[%s3072_s1 + $0x368] ss:$24 sps:$4 sm:$0xff]  }
  0x2f   :  { %456 = vmatpush1.bf16.msra.mxu0 %v2190_v54  ;;  %v2288_v54 = vld [vmem:[%s3072_s1 + $0x394] ss:$24 sps:$4 sm:$0xff]  }
  0x30   :  { %737 = vmatpush1.bf16.msra.mxu1 %v2193_v55  ;;  %457 = vmatprep.subr.bf16.mxu0 %v2198_v56  ;;  %v2291_v55 = vld [vmem:[%s3072_s1 + $0x39c] ss:$24 sps:$4 sm:$0xff]   ;;  %v2286_v56 = vld [vmem:[%s3072_s1 + $0x390] ss:$24 sps:$4 sm:$0xff]  }
  0x31   :  { %738 = vmatprep.subr.bf16.mxu1 %v2201_v57  ;;  %v2289_v57 = vld [vmem:[%s3072_s1 + $0x398] ss:$24 sps:$4 sm:$0xff]  }
  0x33   :  { %458 = vmatpush1.bf16.msra.mxu0 %v2196_v58  ;;  %v2294_v58 = vld [vmem:[%s3072_s1 + $0x3c4] ss:$24 sps:$4 sm:$0xff]  }
  0x34   :  { %739 = vmatpush1.bf16.msra.mxu1 %v2199_v59  ;;  %459 = vmatprep.subr.bf16.mxu0 %v2204_v60  ;;  %v2297_v59 = vld [vmem:[%s3072_s1 + $0x3cc] ss:$24 sps:$4 sm:$0xff]   ;;  %v2292_v60 = vld [vmem:[%s3072_s1 + $0x3c0] ss:$24 sps:$4 sm:$0xff]  }
  0x35   :  { %740 = vmatprep.subr.bf16.mxu1 %v2207_v61  ;;  %v2295_v61 = vld [vmem:[%s3072_s1 + $0x3c8] ss:$24 sps:$4 sm:$0xff]  }
  0x37   :  { %460 = vmatpush1.bf16.msra.mxu0 %v2202_v62  ;;  %v2300_v62 = vld [vmem:[%s3072_s1 + $0x3f4] ss:$24 sps:$4 sm:$0xff]  }
  0x38   :  { %741 = vmatpush1.bf16.msra.mxu1 %v2205_v63  ;;  %461 = vmatprep.subr.bf16.mxu0 %v2210_v0  ;;  %v2303_v63 = vld [vmem:[%s3072_s1 + $0x3fc] ss:$24 sps:$4 sm:$0xff]   ;;  %v2298_v0 = vld [vmem:[%s3072_s1 + $0x3f0] ss:$24 sps:$4 sm:$0xff]  }
  0x39   :  { %742 = vmatprep.subr.bf16.mxu1 %v2213_v2  ;;  %v2301_v2 = vld [vmem:[%s3072_s1 + $0x3f8] ss:$24 sps:$4 sm:$0xff]  }
  0x3b   :  { %462 = vmatpush1.bf16.msra.mxu0 %v2208_v3  ;;  %v2306_v3 = vld [vmem:[%s3072_s1 + $0x424] ss:$24 sps:$4 sm:$0xff]  }
  0x3c   :  { %743 = vmatpush1.bf16.msra.mxu1 %v2211_v4  ;;  %463 = vmatprep.subr.bf16.mxu0 %v2216_v5  ;;  %v2309_v4 = vld [vmem:[%s3072_s1 + $0x42c] ss:$24 sps:$4 sm:$0xff]   ;;  %v2304_v5 = vld [vmem:[%s3072_s1 + $0x420] ss:$24 sps:$4 sm:$0xff]  }
  0x3d   :  { %744 = vmatprep.subr.bf16.mxu1 %v2219_v6  ;;  %v2307_v6 = vld [vmem:[%s3072_s1 + $0x428] ss:$24 sps:$4 sm:$0xff]  }
  0x3f   :  { %464 = vmatpush1.bf16.msra.mxu0 %v2214_v7  ;;  %v853_v7 = vld [vmem:[%s3073_s0] sm:$0xe] }
  0x40   :  { %745 = vmatpush1.bf16.msra.mxu1 %v2217_v8  ;;  %771 = vmatprep.subr.bf16.mxu0 %v2222_v9  ;;  %v2312_v8 = vld [vmem:[%s3072_s1 + $0x454] ss:$24 sps:$4 sm:$0xff]  }
  0x41   :  { %812 = vmatprep.subr.bf16.mxu1 %v2225_v10  ;;  %v2315_v9 = vld [vmem:[%s3072_s1 + $0x45c] ss:$24 sps:$4 sm:$0xff]   ;;  %v2310_v10 = vld [vmem:[%s3072_s1 + $0x450] ss:$24 sps:$4 sm:$0xff]  }
  0x42   :  { %482 = vmatmul.mubr.bf16.vlgmr.msra.gmra.mrb[4].mxu0 %v2551_v41  ;;  %v2262_v41 = vld [vmem:[%s3072_s1 + $0x158] ss:$24 sps:$4 sm:$0xff]  }
  0x43   :  { %763 = vmatmul.mubr.bf16.vlgmr.msra.gmra.mrb[4].mxu1 %v2518_v27  ;;  %772 = vmatpush1.bf16.msra.mxu0 %v2220_v11  ;;  %v1970_v11 = vcombine.low %v853_v7, %v2523_v28  ;;  %v2318_v28 = vld [vmem:[%s3072_s1 + $0x310] ss:$24 sps:$4 sm:$0xff]  }
  0x44   :  { %813 = vmatpush1.bf16.msra.mxu1 %v2223_v12  ;;  %773 = vmatprep.subr.bf16.mxu0 %v2228_v13  ;;  %v2313_v12 = vld [vmem:[%s3072_s1 + $0x458] ss:$24 sps:$4 sm:$0xff]   ;;  %v2320_v13 = vld [vmem:[%s3072_s1 + $0x314] ss:$24 sps:$4 sm:$0xff]  }
  0x45   :  { %814 = vmatprep.subr.bf16.mxu1 %v2231_v14  ;;  %803 = vmatprep.mubr.bf16.mxu0 %v2414_v1  ;;  %v2323_v14 = vld [vmem:[%s3072_s1 + $0x484] ss:$24 sps:$4 sm:$0xff]  }
  0x46   :  { %844 = vmatprep.mubr.bf16.mxu1 %v2414_v1 }
  0x47   :  { %774 = vmatpush1.bf16.msra.mxu0 %v2226_v15  ;;  %v2857_v15 = vrot.slane %v1970_v11, 1  ;;  %v2396_v11 = vld [vmem:[%s3072_s1 + $0x578] ss:$24 sps:$4 sm:$0xff]  }
  0x48   :  { %815 = vmatpush1.bf16.msra.mxu1 %v2229_v16  ;;  %775 = vmatprep.subr.bf16.mxu0 %v2234_v17  ;;  %v2321_v16 = vld [vmem:[%s3072_s1 + $0x480] ss:$24 sps:$4 sm:$0xff]   ;;  %v2326_v17 = vld [vmem:[%s3072_s1 + $0x344] ss:$24 sps:$4 sm:$0xff]  }
  0x49   :  { %816 = vmatprep.subr.bf16.mxu1 %v2237_v18  ;;  %v2329_v18 = vld [vmem:[%s3072_s1 + $0x4b4] ss:$24 sps:$4 sm:$0xff]  }
  0x4b   :  { %776 = vmatpush1.bf16.msra.mxu0 %v2232_v19  ;;  %v2324_v19 = vld [vmem:[%s3072_s1 + $0x340] ss:$24 sps:$4 sm:$0xff]  }
  0x4c   :  { %817 = vmatpush1.bf16.msra.mxu1 %v2235_v20  ;;  %777 = vmatprep.subr.bf16.mxu0 %v2240_v21  ;;  %v2327_v20 = vld [vmem:[%s3072_s1 + $0x4b0] ss:$24 sps:$4 sm:$0xff]   ;;  %v2332_v21 = vld [vmem:[%s3072_s1 + $0x374] ss:$24 sps:$4 sm:$0xff]  }
  0x4d   :  { %818 = vmatprep.subr.bf16.mxu1 %v2243_v22  ;;  %v2335_v22 = vld [vmem:[%s3072_s1 + $0x4e4] ss:$24 sps:$4 sm:$0xff]  }
  0x4f   :  { %778 = vmatpush1.bf16.msra.mxu0 %v2238_v23  ;;  %v2330_v23 = vld [vmem:[%s3072_s1 + $0x370] ss:$24 sps:$4 sm:$0xff]  }
  0x50   :  { %819 = vmatpush1.bf16.msra.mxu1 %v2241_v24  ;;  %779 = vmatprep.subr.bf16.mxu0 %v2246_v25  ;;  %v2333_v24 = vld [vmem:[%s3072_s1 + $0x4e0] ss:$24 sps:$4 sm:$0xff]   ;;  %v2338_v25 = vld [vmem:[%s3072_s1 + $0x3a4] ss:$24 sps:$4 sm:$0xff]  }
  0x51   :  { %820 = vmatprep.subr.bf16.mxu1 %v2249_v26  ;;  %v2341_v26 = vld [vmem:[%s3072_s1 + $0x514] ss:$24 sps:$4 sm:$0xff]  }
  0x53   :  { %780 = vmatpush1.bf16.msra.mxu0 %v2244_v29  ;;  %v2336_v29 = vld [vmem:[%s3072_s1 + $0x3a0] ss:$24 sps:$4 sm:$0xff]  }
  0x54   :  { %821 = vmatpush1.bf16.msra.mxu1 %v2247_v30  ;;  %781 = vmatprep.subr.bf16.mxu0 %v2252_v31  ;;  %v2339_v30 = vld [vmem:[%s3072_s1 + $0x510] ss:$24 sps:$4 sm:$0xff]   ;;  %v2344_v31 = vld [vmem:[%s3072_s1 + $0x3d4] ss:$24 sps:$4 sm:$0xff]  }
  0x55   :  { %822 = vmatprep.subr.bf16.mxu1 %v2255_v32  ;;  %v2347_v32 = vld [vmem:[%s3072_s1 + $0x544] ss:$24 sps:$4 sm:$0xff]  }
  0x57   :  { %782 = vmatpush1.bf16.msra.mxu0 %v2250_v33  ;;  %v1277_v33 = vld [vmem:[%s3073_s0 + $0x4] sm:$0x3] }
  0x58   :  { %823 = vmatpush1.bf16.msra.mxu1 %v2253_v34  ;;  %783 = vmatprep.subr.bf16.mxu0 %v2258_v35  ;;  %v2342_v34 = vld [vmem:[%s3072_s1 + $0x3d0] ss:$24 sps:$4 sm:$0xff]   ;;  %v2345_v35 = vld [vmem:[%s3072_s1 + $0x540] ss:$24 sps:$4 sm:$0xff]  }
  0x59   :  { %824 = vmatprep.subr.bf16.mxu1 %v2261_v36  ;;  %v2350_v36 = vld [vmem:[%s3072_s1 + $0x404] ss:$24 sps:$4 sm:$0xff]  }
  0x5b   :  { %784 = vmatpush1.bf16.msra.mxu0 %v2256_v37  ;;  %v2353_v37 = vld [vmem:[%s3072_s1 + $0x574] ss:$24 sps:$4 sm:$0xff]  }
  0x5c   :  { %825 = vmatpush1.bf16.msra.mxu1 %v2259_v38  ;;  %785 = vmatprep.subr.bf16.mxu0 %v2264_v39  ;;  %v2067_v38 = vcombine.low %v853_v7, %v1277_v33  ;;  %v2348_v39 = vld [vmem:[%s3072_s1 + $0x400] ss:$24 sps:$4 sm:$0xff]  }
  0x5d   :  { %826 = vmatprep.subr.bf16.mxu1 %v2267_v40  ;;  %v2351_v40 = vld [vmem:[%s3072_s1 + $0x570] ss:$24 sps:$4 sm:$0xff]  }
  0x5e   :  { %v2390_v7 = vld [vmem:[%s3072_s1 + $0x548] ss:$24 sps:$4 sm:$0xff]  }
  0x5f   :  { %786 = vmatpush1.bf16.msra.mxu0 %v2262_v41  ;;  %v2356_v41 = vld [vmem:[%s3072_s1 + $0x434] ss:$24 sps:$4 sm:$0xff]  }
  0x60   :  { %827 = vmatpush1.bf16.msra.mxu1 %v2265_v42  ;;  %1148 = vmatprep.subr.bf16.mxu0 %v2270_v43  ;;  %v2359_v42 = vld [vmem:[%s3072_s1 + $0x5a4] ss:$24 sps:$4 sm:$0xff]   ;;  %v1331_v43 = vshrl.u32 %v2067_v38, 16 }
  0x61   :  { %1189 = vmatprep.subr.bf16.mxu1 %v2273_v44  ;;  %v1334_v44 = vshll.u32 %v2067_v38, 16 }
  0x62   :  { %804 = vmatmul.mubr.bf16.vlgmr.msra.gmra.mrb[8].mxu0 %v2518_v27 }
  0x63   :  { %845 = vmatmul.mubr.bf16.vlgmr.msra.gmra.mrb[8].mxu1 %v2518_v27  ;;  %1149 = vmatpush1.bf16.msra.mxu0 %v2268_v45  ;;  %v2285_v27 = vld [vmem:[%s3072_s1 + $0x36c] ss:$24 sps:$4 sm:$0xff]   ;;  %v2354_v45 = vld [vmem:[%s3072_s1 + $0x430] ss:$24 sps:$4 sm:$0xff]  }
  0x64   :  { %1190 = vmatpush1.bf16.msra.mxu1 %v2271_v46  ;;  %1150 = vmatprep.subr.bf16.mxu0 %v2276_v47  ;;  %v2357_v46 = vld [vmem:[%s3072_s1 + $0x5a0] ss:$24 sps:$4 sm:$0xff]   ;;  %v2362_v47 = vld [vmem:[%s3072_s1 + $0x464] ss:$24 sps:$4 sm:$0xff]  }
  0x65   :  { %1191 = vmatprep.subr.bf16.mxu1 %v2279_v48  ;;  %1180 = vmatprep.mubr.bf16.mxu0 %v2414_v1  ;;  %v2365_v48 = vld [vmem:[%s3072_s1 + $0x5d4] ss:$24 sps:$4 sm:$0xff]  }
  0x66   :  { %1221 = vmatprep.mubr.bf16.mxu1 %v2414_v1 }
  0x67   :  { %1151 = vmatpush1.bf16.msra.mxu0 %v2274_v49  ;;  %v1333_v49 = vrot.slane %v1331_v43, 1 }
  0x68   :  { %1192 = vmatpush1.bf16.msra.mxu1 %v2277_v50  ;;  %1152 = vmatprep.subr.bf16.mxu0 %v2282_v51  ;;  %v1336_v50 = vrot.slane %v1334_v44, 2  ;;  %v2360_v51 = vld [vmem:[%s3072_s1 + $0x460] ss:$24 sps:$4 sm:$0xff]  }
  0x69   :  { %1193 = vmatprep.subr.bf16.mxu1 %v2285_v27  ;;  %v2363_v27 = vld [vmem:[%s3072_s1 + $0x5d0] ss:$24 sps:$4 sm:$0xff]  }
  0x6b   :  { %1153 = vmatpush1.bf16.msra.mxu0 %v2280_v52  ;;  %v2368_v52 = vld [vmem:[%s3072_s1 + $0x48c] ss:$24 sps:$4 sm:$0xff]  }
  0x6c   :  { %1194 = vmatpush1.bf16.msra.mxu1 %v2283_v53  ;;  %1154 = vmatprep.subr.bf16.mxu0 %v2288_v54  ;;  %v2371_v53 = vld [vmem:[%s3072_s1 + $0x494] ss:$24 sps:$4 sm:$0xff]   ;;  %v2962_v54 = vor.u32 %v1336_v50, %v1333_v49 }
  0x6d   :  { %1195 = vmatprep.subr.bf16.mxu1 %v2291_v55  ;;  %v2366_v55 = vld [vmem:[%s3072_s1 + $0x488] ss:$24 sps:$4 sm:$0xff]  }
  0x6f   :  { %1155 = vmatpush1.bf16.msra.mxu0 %v2286_v56  ;;  %v2369_v56 = vld [vmem:[%s3072_s1 + $0x490] ss:$24 sps:$4 sm:$0xff]  }
  0x70   :  { %1196 = vmatpush1.bf16.msra.mxu1 %v2289_v57  ;;  %1156 = vmatprep.subr.bf16.mxu0 %v2294_v58  ;;  %v2374_v57 = vld [vmem:[%s3072_s1 + $0x4bc] ss:$24 sps:$4 sm:$0xff]  }
  0x71   :  { %1197 = vmatprep.subr.bf16.mxu1 %v2297_v59  ;;  %v2377_v58 = vld [vmem:[%s3072_s1 + $0x4c4] ss:$24 sps:$4 sm:$0xff]   ;;  %v2372_v59 = vld [vmem:[%s3072_s1 + $0x4b8] ss:$24 sps:$4 sm:$0xff]  }
  0x73   :  { %1157 = vmatpush1.bf16.msra.mxu0 %v2292_v60  ;;  %v2375_v60 = vld [vmem:[%s3072_s1 + $0x4c0] ss:$24 sps:$4 sm:$0xff]  }
  0x74   :  { %1198 = vmatpush1.bf16.msra.mxu1 %v2295_v61  ;;  %1158 = vmatprep.subr.bf16.mxu0 %v2300_v62  ;;  %v2380_v61 = vld [vmem:[%s3072_s1 + $0x4ec] ss:$24 sps:$4 sm:$0xff]  }
  0x75   :  { %1199 = vmatprep.subr.bf16.mxu1 %v2303_v63  ;;  %v2383_v62 = vld [vmem:[%s3072_s1 + $0x4f4] ss:$24 sps:$4 sm:$0xff]   ;;  %v2378_v63 = vld [vmem:[%s3072_s1 + $0x4e8] ss:$24 sps:$4 sm:$0xff]  }
  0x77   :  { %1159 = vmatpush1.bf16.msra.mxu0 %v2298_v0  ;;  %v2381_v0 = vld [vmem:[%s3072_s1 + $0x4f0] ss:$24 sps:$4 sm:$0xff]  }
  0x78   :  { %1200 = vmatpush1.bf16.msra.mxu1 %v2301_v2  ;;  %1160 = vmatprep.subr.bf16.mxu0 %v2306_v3  ;;  %v2386_v2 = vld [vmem:[%s3072_s1 + $0x51c] ss:$24 sps:$4 sm:$0xff]   ;;  %v2384_v3 = vld [vmem:[%s3072_s1 + $0x518] ss:$24 sps:$4 sm:$0xff]  }
  0x79   :  { %1201 = vmatprep.subr.bf16.mxu1 %v2309_v4  ;;  %v2387_v4 = vld [vmem:[%s3072_s1 + $0x520] ss:$24 sps:$4 sm:$0xff]  }
  0x7b   :  { %1161 = vmatpush1.bf16.msra.mxu0 %v2304_v5  ;;  %v2392_v5 = vld [vmem:[%s3072_s1 + $0x54c] ss:$24 sps:$4 sm:$0xff]  }
  0x7c   :  { %1202 = vmatpush1.bf16.msra.mxu1 %v2307_v6  ;;  %1162 = vmatprep.subr.bf16.mxu0 %v2312_v8  ;;  %v2395_v6 = vld [vmem:[%s3072_s1 + $0x554] ss:$24 sps:$4 sm:$0xff]   ;;  %v2393_v8 = vld [vmem:[%s3072_s1 + $0x550] ss:$24 sps:$4 sm:$0xff]  }
  0x7d   :  { %1203 = vmatprep.subr.bf16.mxu1 %v2315_v9  ;;  %v2398_v9 = vld [vmem:[%s3072_s1 + $0x57c] ss:$24 sps:$4 sm:$0xff]  }
  0x7f   :  { %1163 = vmatpush1.bf16.msra.mxu0 %v2310_v10  ;;  %v2401_v10 = vld [vmem:[%s3072_s1 + $0x584] ss:$24 sps:$4 sm:$0xff]  }
  0x80   :  { %1204 = vmatpush1.bf16.msra.mxu1 %v2313_v12  ;;  %1230 = vmatprep.subr.bf16.mxu0 %v2320_v13  ;;  %v2399_v12 = vld [vmem:[%s3072_s1 + $0x580] ss:$24 sps:$4 sm:$0xff]   ;;  %v2404_v13 = vld [vmem:[%s3072_s1 + $0x5ac] ss:$24 sps:$4 sm:$0xff]  }
  0x81   :  { %1579 = vmatprep.subr.bf16.mxu1 %v2323_v14  ;;  %v2407_v14 = vld [vmem:[%s3072_s1 + $0x5b4] ss:$24 sps:$4 sm:$0xff]  }
  0x82   :  { %1181 = vmatmul.mubr.bf16.vlgmr.msra.gmra.mrb[12].mxu0 %v2857_v15 }
  0x83   :  { %1222 = vmatmul.mubr.bf16.vlgmr.msra.gmra.mrb[12].mxu1 %v2857_v15  ;;  %1231 = vmatpush1.bf16.msra.mxu0 %v2318_v28  ;;  %v2405_v28 = vld [vmem:[%s3072_s1 + $0x5b0] ss:$24 sps:$4 sm:$0xff]  }
  0x84   :  { %1580 = vmatpush1.bf16.msra.mxu1 %v2321_v16  ;;  %1232 = vmatprep.subr.bf16.mxu0 %v2326_v17  ;;  %v2410_v16 = vld [vmem:[%s3072_s1 + $0x5dc] ss:$24 sps:$4 sm:$0xff]  }
  0x85   :  { %1581 = vmatprep.subr.bf16.mxu1 %v2329_v18  ;;  %1262 = vmatprep.mubr.bf16.mxu0 %v2414_v1  ;;  %v2413_v17 = vld [vmem:[%s3072_s1 + $0x5e4] ss:$24 sps:$4 sm:$0xff]   ;;  %v2408_v18 = vld [vmem:[%s3072_s1 + $0x5d8] ss:$24 sps:$4 sm:$0xff]  }
  0x86   :  { %1611 = vmatprep.mubr.bf16.mxu1 %v2414_v1 }
  0x87   :  { %1233 = vmatpush1.bf16.msra.mxu0 %v2324_v19  ;;  %v2411_v19 = vld [vmem:[%s3072_s1 + $0x5e0] ss:$24 sps:$4 sm:$0xff]  }
  0x88   :  { %1582 = vmatpush1.bf16.msra.mxu1 %v2327_v20  ;;  %1234 = vmatprep.subr.bf16.mxu0 %v2332_v21 }
  0x89   :  { %1583 = vmatprep.subr.bf16.mxu1 %v2335_v22 }
  0x8b   :  { %1235 = vmatpush1.bf16.msra.mxu0 %v2330_v23 }
  0x8c   :  { %1584 = vmatpush1.bf16.msra.mxu1 %v2333_v24  ;;  %1236 = vmatprep.subr.bf16.mxu0 %v2338_v25 }
  0x8d   :  { %1585 = vmatprep.subr.bf16.mxu1 %v2341_v26 }
  0x8f   :  { %1237 = vmatpush1.bf16.msra.mxu0 %v2336_v29 }
  0x90   :  { %1586 = vmatpush1.bf16.msra.mxu1 %v2339_v30  ;;  %1238 = vmatprep.subr.bf16.mxu0 %v2344_v31 }
  0x91   :  { %1587 = vmatprep.subr.bf16.mxu1 %v2347_v32 }
  0x93   :  { %1239 = vmatpush1.bf16.msra.mxu0 %v2342_v34 }
  0x94   :  { %1588 = vmatpush1.bf16.msra.mxu1 %v2345_v35  ;;  %1240 = vmatprep.subr.bf16.mxu0 %v2350_v36 }
  0x95   :  { %1589 = vmatprep.subr.bf16.mxu1 %v2353_v37 }
  0x97   :  { %1241 = vmatpush1.bf16.msra.mxu0 %v2348_v39 }
  0x98   :  { %1590 = vmatpush1.bf16.msra.mxu1 %v2351_v40  ;;  %1242 = vmatprep.subr.bf16.mxu0 %v2356_v41 }
  0x99   :  { %1591 = vmatprep.subr.bf16.mxu1 %v2359_v42 }
  0x9b   :  { %1243 = vmatpush1.bf16.msra.mxu0 %v2354_v45 }
  0x9c   :  { %1592 = vmatpush1.bf16.msra.mxu1 %v2357_v46  ;;  %1244 = vmatprep.subr.bf16.mxu0 %v2362_v47 }
  0x9d   :  { %1593 = vmatprep.subr.bf16.mxu1 %v2365_v48 }
  0x9f   :  { %1245 = vmatpush1.bf16.msra.mxu0 %v2360_v51 }
  0xa0   :  { %1594 = vmatpush1.bf16.msra.mxu1 %v2363_v27  ;;  %1620 = vmatprep.subr.bf16.mxu0 %v2368_v52 }
  0xa1   :  { %1661 = vmatprep.subr.bf16.mxu1 %v2371_v53 }
  0xa2   :  { %1263 = vmatmul.mubr.bf16.vlgmr.msra.gmra.mrb[16].mxu0 %v2857_v15  ;;  %v2402_v15 = vld [vmem:[%s3072_s1 + $0x5a8] ss:$24 sps:$4 sm:$0xff]  }
  0xa3   :  { %1612 = vmatmul.mubr.bf16.vlgmr.msra.gmra.mrb[16].mxu1 %v2962_v54  ;;  %1621 = vmatpush1.bf16.msra.mxu0 %v2366_v55 }
  0xa4   :  { %1662 = vmatpush1.bf16.msra.mxu1 %v2369_v56  ;;  %1622 = vmatprep.subr.bf16.mxu0 %v2374_v57 }
  0xa5   :  { %1663 = vmatprep.subr.bf16.mxu1 %v2377_v58  ;;  %1652 = vmatprep.mubr.bf16.mxu0 %v2414_v1 }
  0xa6   :  { %1693 = vmatprep.mubr.bf16.mxu1 %v2414_v1  ;;  %v2389_v1 = vld [vmem:[%s3072_s1 + $0x524] ss:$24 sps:$4 sm:$0xff]  }
  0xa7   :  { %1623 = vmatpush1.bf16.msra.mxu0 %v2372_v59 }
  0xa8   :  { %1664 = vmatpush1.bf16.msra.mxu1 %v2375_v60  ;;  %1624 = vmatprep.subr.bf16.mxu0 %v2380_v61 }
  0xa9   :  { %1665 = vmatprep.subr.bf16.mxu1 %v2383_v62 }
  0xab   :  { %1625 = vmatpush1.bf16.msra.mxu0 %v2378_v63  ;;  %v1710_v63 = vlaneseq }
  0xac   :  { %1666 = vmatpush1.bf16.msra.mxu1 %v2381_v0  ;;  %1626 = vmatprep.subr.bf16.mxu0 %v2386_v2 }
  0xad   :  { %1667 = vmatprep.subr.bf16.mxu1 %v2389_v1  ;;  %v1711_v0 = vshrl.u32 %v1710_v63, 7  ;;  %v1708_v1 = vld [vmem:[%s3074_s2] sm:$0x3f] }
  0xaf   :  { %1627 = vmatpush1.bf16.msra.mxu0 %v2384_v3  ;;  %v1712_v2 = vsub.s32 0, %v1711_v0  ;;  %v1716_v3 = vsub.s32 1, %v1711_v0 }
  0xb0   :  { %1668 = vmatpush1.bf16.msra.mxu1 %v2387_v4  ;;  %1628 = vmatprep.subr.bf16.mxu0 %v2392_v5 }
  0xb1   :  { %1669 = vmatprep.subr.bf16.mxu1 %v2395_v6  ;;  %v1713_v4 = vrot.slane %v1708_v1, %v1712_v2 }
  0xb3   :  { %1629 = vmatpush1.bf16.msra.mxu0 %v2390_v7  ;;  %v1717_v7 = vrot.slane %v1708_v1, %v1716_v3 }
  0xb4   :  { %1670 = vmatpush1.bf16.msra.mxu1 %v2393_v8  ;;  %1630 = vmatprep.subr.bf16.mxu0 %v2398_v9 }
  0xb5   :  { %1671 = vmatprep.subr.bf16.mxu1 %v2401_v10 }
  0xb7   :  { %1631 = vmatpush1.bf16.msra.mxu0 %v2396_v11 }
  0xb8   :  { %1672 = vmatpush1.bf16.msra.mxu1 %v2399_v12  ;;  %1632 = vmatprep.subr.bf16.mxu0 %v2404_v13 }
  0xb9   :  { %1673 = vmatprep.subr.bf16.mxu1 %v2407_v14 }
  0xbb   :  { %1633 = vmatpush1.bf16.msra.mxu0 %v2402_v15 }
  0xbc   :  { %1674 = vmatpush1.bf16.msra.mxu1 %v2405_v28  ;;  %1634 = vmatprep.subr.bf16.mxu0 %v2410_v16 }
  0xbd   :  { %1675 = vmatprep.subr.bf16.mxu1 %v2413_v17 }
  0xbf   :  { %1635 = vmatpush1.bf16.msra.mxu0 %v2408_v18 }
  0xc0   :  { %1676 = vmatpush1.bf16.msra.mxu1 %v2411_v19 }
  0xc2   :  { %1653 = vmatmul.mubr.bf16.vlgmr.msra.gmra.mrb[20].mxu0 %v2962_v54 }
  0xc3   :  { %1694 = vmatmul.mubr.bf16.vlgmr.msra.gmra.mrb[20].mxu1 %v2962_v54 }
  0xf5   :  { %v401_v20 = vpop.f32.mrb[0].mxu0 }
  0xf6   :  { %v442_v21 = vpop.f32.mrb[0].mxu1  ;;  %v403_v22 = vpop.f32.mrb[1].mxu0 }
  0xf7   :  { %v444_v23 = vpop.f32.mrb[1].mxu1  ;;  %v405_v24 = vpop.f32.mrb[2].mxu0 }
  0xf8   :  { %v446_v25 = vpop.f32.mrb[2].mxu1  ;;  %v406_v26 = vpop.f32.mrb[3].mxu0 }
  0xf9   :  { %v447_v29 = vpop.f32.mrb[3].mxu1 }
 0x115   :  { %v483_v30 = vpop.f32.mrb[4].mxu0 }
 0x116   :  { %v764_v31 = vpop.f32.mrb[4].mxu1  ;;  %v485_v33 = vpop.f32.mrb[5].mxu0 }
 0x117   :  { %v765_v32 = vadd.f32 %v764_v31, %v401_v20  ;;  %v766_v34 = vpop.f32.mrb[5].mxu1  ;;  %v487_v36 = vpop.f32.mrb[6].mxu0  ;;  %v1720_v20 = vsub.s32 2, %v1711_v0 }
 0x118   :  { %v767_v35 = vadd.f32 %v766_v34, %v403_v22  ;;  %v768_v37 = vpop.f32.mrb[6].mxu1  ;;  %v488_v38 = vpop.f32.mrb[7].mxu0  ;;  %v1724_v22 = vsub.s32 3, %v1711_v0 }
 0x119   :  { %v769_v39 = vpop.f32.mrb[7].mxu1  ;;  %v1721_v24 = vrot.slane %v1708_v1, %v1720_v20 }
 0x135   :  { %v805_v40 = vpop.f32.mrb[8].mxu0 }
 0x136   :  { %v846_v41 = vpop.f32.mrb[8].mxu1  ;;  %v806_v42 = vadd.f32 %v805_v40, %v442_v21  ;;  %v807_v44 = vpop.f32.mrb[9].mxu0  ;;  %v1728_v21 = vsub.s32 4, %v1711_v0 }
 0x137   :  { %v847_v43 = vadd.f32 %v846_v41, %v483_v30  ;;  %v848_v45 = vpop.f32.mrb[9].mxu1  ;;  %v808_v46 = vadd.f32 %v807_v44, %v444_v23  ;;  %v809_v48 = vpop.f32.mrb[10].mxu0  ;;  %v1732_v23 = vsub.s32 5, %v1711_v0  ;;  %v1725_v30 = vrot.slane %v1708_v1, %v1724_v22 }
 0x138   :  { %v849_v47 = vadd.f32 %v848_v45, %v485_v33  ;;  %v850_v49 = vpop.f32.mrb[10].mxu1  ;;  %v810_v50 = vpop.f32.mrb[11].mxu0  ;;  %v1729_v25 = vrot.slane %v1708_v1, %v1728_v21 }
 0x139   :  { %v851_v51 = vpop.f32.mrb[11].mxu1  ;;  %v1733_v31 = vrot.slane %v1708_v1, %v1732_v23 }
 0x155   :  { %v1182_v27 = vpop.f32.mrb[12].mxu0 }
 0x156   :  { %v1223_v52 = vpop.f32.mrb[12].mxu1  ;;  %v1271_v53 = vadd.f32 %v1182_v27, %v765_v32  ;;  %v1184_v55 = vpop.f32.mrb[13].mxu0 }
 0x157   :  { %v1273_v54 = vadd.f32 %v1223_v52, %v806_v42  ;;  %v1225_v56 = vpop.f32.mrb[13].mxu1  ;;  %v1272_v57 = vadd.f32 %v1184_v55, %v767_v35  ;;  %v1186_v59 = vpop.f32.mrb[14].mxu0 }
 0x158   :  { %v1274_v58 = vadd.f32 %v1225_v56, %v808_v46  ;;  %v1227_v60 = vpop.f32.mrb[14].mxu1  ;;  %v1187_v61 = vpop.f32.mrb[15].mxu0 }
 0x159   :  { %v1228_v62 = vpop.f32.mrb[15].mxu1 }
 0x175   :  { %v1264_v5 = vpop.f32.mrb[16].mxu0 }
 0x176   :  { %v1613_v6 = vpop.f32.mrb[16].mxu1  ;;  %v1275_v8 = vadd.f32 %v1264_v5, %v847_v43  ;;  %v1266_v10 = vpop.f32.mrb[17].mxu0 }
 0x177   :  { %v1702_v9 = vadd.f32 %v1613_v6, %v1271_v53  ;;  %v1615_v11 = vpop.f32.mrb[17].mxu1  ;;  %v1276_v12 = vadd.f32 %v1266_v10, %v849_v47  ;;  %v1268_v14 = vpop.f32.mrb[18].mxu0 }
 0x178   :  { %v1703_v13 = vadd.f32 %v1615_v11, %v1272_v57  ;;  %v1617_v15 = vpop.f32.mrb[18].mxu1  ;;  %v1269_v16 = vpop.f32.mrb[19].mxu0 }
 0x179   :  { %v1740_v28 = vadd.f32 %v1713_v4, %v1702_v9  ;;  %v1618_v17 = vpop.f32.mrb[19].mxu1 }
 0x17a   :  { %v1741_v18 = vadd.f32 %v1717_v7, %v1703_v13 }
 0x17c   :  { %v2119_v19 = vpack.c.bf16 %v1741_v18, %v1740_v28 }
 0x17e   :  { %1770 = vst [vmem:[%s3075_s3] sm:$0xff] %v2119_v19 }
 0x195   :  { %v1654_v26 = vpop.f32.mrb[20].mxu0 }
 0x196   :  { %v1695_v29 = vpop.f32.mrb[20].mxu1  ;;  %v1704_v32 = vadd.f32 %v1654_v26, %v1273_v54  ;;  %v1656_v34 = vpop.f32.mrb[21].mxu0 }
 0x197   :  { %v1706_v33 = vadd.f32 %v1695_v29, %v1275_v8  ;;  %v1697_v35 = vpop.f32.mrb[21].mxu1  ;;  %v1705_v36 = vadd.f32 %v1656_v34, %v1274_v58  ;;  %v1658_v38 = vpop.f32.mrb[22].mxu0 }
 0x198   :  { %v1707_v37 = vadd.f32 %v1697_v35, %v1276_v12  ;;  %v1699_v39 = vpop.f32.mrb[22].mxu1  ;;  %v1742_v40 = vadd.f32 %v1721_v24, %v1704_v32  ;;  %v1659_v42 = vpop.f32.mrb[23].mxu0 }
 0x199   :  { %v1744_v41 = vadd.f32 %v1729_v25, %v1706_v33  ;;  %v1700_v43 = vpop.f32.mrb[23].mxu1  ;;  %v1743_v44 = vadd.f32 %v1725_v30, %v1705_v36 }
 0x19a   :  { %v1745_v45 = vadd.f32 %v1733_v31, %v1707_v37 }
 0x19b   :  { %v2120_v46 = vpack.c.bf16 %v1743_v44, %v1742_v40 }
 0x19c   :  { %v2121_v47 = vpack.c.bf16 %v1745_v45, %v1744_v41 }
 0x19d   :  { %1771 = vst [vmem:[%s3075_s3 + $0x8] sm:$0xff] %v2120_v46 }
 0x19e   :  { %1772 = vst [vmem:[%s3075_s3 + $0x10] sm:$0xff] %v2121_v47 }

// kernel: cnn_autoencoder_forward.22
= control target key start
LH: loop header
LB: loop body
LE: loop exit
PB: predicated region body
PF: predicated region fallthrough
CT: control target
= control target key end

     0   :  { %s625_s0 = inlined_call_operand.vmem [shape: bf16[128,128], index: 0, kind: input, shape index: {}]   ;;  %s626_s1 = inlined_call_operand.vmem [shape: f32[2,128], index: 1, kind: input, shape index: {}]   ;;  %s627_s2 = inlined_call_operand.vmem [shape: bf16[128,128], index: 2, kind: output, shape index: {}]  }
   0x1   :  { %v317_v0 = vld [vmem:[%s625_s0] sm:$0xff]   ;;  %v388_v1 = vld [vmem:[%s625_s0 + $0x8] sm:$0xff]   ;;  %v389_v5 = vld [vmem:[%s625_s0 + $0x10] sm:$0xff]  }
   0x2   :  { %v425_v2 = vunpack.c.l.bf16 %v317_v0  ;;  %v427_v3 = vunpack.c.h.bf16 %v317_v0  ;;  %v429_v4 = vunpack.c.l.bf16 %v388_v1  ;;  %v434_v6 = vunpack.c.h.bf16 %v388_v1  ;;  %v390_v13 = vld [vmem:[%s625_s0 + $0x18] sm:$0xff]   ;;  %v391_v22 = vld [vmem:[%s625_s0 + $0x20] sm:$0xff]   ;;  %v392_v31 = vld [vmem:[%s625_s0 + $0x28] sm:$0xff]  }
   0x3   :  { %v442_v10 = vunpack.c.l.bf16 %v389_v5  ;;  %v450_v14 = vunpack.c.h.bf16 %v389_v5  ;;  %v455_v18 = vunpack.c.l.bf16 %v390_v13  ;;  %v463_v23 = vunpack.c.h.bf16 %v390_v13  ;;  %v393_v40 = vld [vmem:[%s625_s0 + $0x30] sm:$0xff]   ;;  %v394_v49 = vld [vmem:[%s625_s0 + $0x38] sm:$0xff]  }
   0x4   :  { %v43_v7 = vadd.f32 %v427_v3, %v425_v2  ;;  %v65_v8 = vmul.f32 %v425_v2, %v425_v2  ;;  %v66_v9 = vmul.f32 %v427_v3, %v427_v3  ;;  %v67_v12 = vmul.f32 %v429_v4, %v429_v4 }
   0x5   :  { %v68_v16 = vmul.f32 %v434_v6, %v434_v6  ;;  %v69_v20 = vmul.f32 %v442_v10, %v442_v10  ;;  %v70_v25 = vmul.f32 %v450_v14, %v450_v14  ;;  %v468_v27 = vunpack.c.l.bf16 %v391_v22 }
   0x6   :  { %v44_v11 = vadd.f32 %v429_v4, %v43_v7  ;;  %v81_v17 = vadd.f32 %v66_v9, %v65_v8  ;;  %v71_v29 = vmul.f32 %v455_v18, %v455_v18  ;;  %v476_v32 = vunpack.c.h.bf16 %v391_v22 }
   0x7   :  { %v72_v34 = vmul.f32 %v463_v23, %v463_v23  ;;  %v481_v36 = vunpack.c.l.bf16 %v392_v31  ;;  %v73_v38 = vmul.f32 %v468_v27, %v468_v27  ;;  %v489_v41 = vunpack.c.h.bf16 %v392_v31 }
   0x8   :  { %v45_v15 = vadd.f32 %v434_v6, %v44_v11  ;;  %v82_v21 = vadd.f32 %v81_v17, %v67_v12  ;;  %v74_v43 = vmul.f32 %v476_v32, %v476_v32  ;;  %v494_v45 = vunpack.c.l.bf16 %v393_v40 }
   0x9   :  { %v75_v47 = vmul.f32 %v481_v36, %v481_v36  ;;  %v502_v50 = vunpack.c.h.bf16 %v393_v40  ;;  %v76_v52 = vmul.f32 %v489_v41, %v489_v41  ;;  %v507_v54 = vunpack.c.l.bf16 %v394_v49 }
   0xa   :  { %v46_v19 = vadd.f32 %v442_v10, %v45_v15  ;;  %v83_v26 = vadd.f32 %v82_v21, %v68_v16  ;;  %v77_v56 = vmul.f32 %v494_v45, %v494_v45  ;;  %v512_v58 = vunpack.c.h.bf16 %v394_v49 }
   0xb   :  { %v78_v60 = vmul.f32 %v502_v50, %v502_v50  ;;  %v79_v63 = vmul.f32 %v507_v54, %v507_v54 }
   0xc   :  { %v47_v24 = vadd.f32 %v450_v14, %v46_v19  ;;  %v84_v30 = vadd.f32 %v83_v26, %v69_v20  ;;  %v80_v5 = vmul.f32 %v512_v58, %v512_v58 }
   0xe   :  { %v48_v28 = vadd.f32 %v455_v18, %v47_v24  ;;  %v85_v35 = vadd.f32 %v84_v30, %v70_v25 }
  0x10   :  { %v49_v33 = vadd.f32 %v463_v23, %v48_v28  ;;  %v86_v39 = vadd.f32 %v85_v35, %v71_v29 }
  0x12   :  { %v50_v37 = vadd.f32 %v468_v27, %v49_v33  ;;  %v87_v44 = vadd.f32 %v86_v39, %v72_v34 }
  0x14   :  { %v51_v42 = vadd.f32 %v476_v32, %v50_v37  ;;  %v88_v48 = vadd.f32 %v87_v44, %v73_v38 }
  0x16   :  { %v52_v46 = vadd.f32 %v481_v36, %v51_v42  ;;  %v89_v53 = vadd.f32 %v88_v48, %v74_v43 }
  0x18   :  { %v53_v51 = vadd.f32 %v489_v41, %v52_v46  ;;  %v90_v57 = vadd.f32 %v89_v53, %v75_v47  ;;  %v567_v47 = vld [vmem:[%s626_s1 + $0x1] ss:$0 sm:$0xff] }
  0x1a   :  { %v54_v55 = vadd.f32 %v494_v45, %v53_v51  ;;  %v91_v61 = vadd.f32 %v90_v57, %v76_v52 }
  0x1c   :  { %v55_v59 = vadd.f32 %v502_v50, %v54_v55  ;;  %v92_v0 = vadd.f32 %v91_v61, %v77_v56 }
  0x1e   :  { %v56_v62 = vadd.f32 %v507_v54, %v55_v59  ;;  %v93_v7 = vadd.f32 %v92_v0, %v78_v60 }
  0x20   :  { %v57_v1 = vadd.f32 %v512_v58, %v56_v62  ;;  %v94_v9 = vadd.f32 %v93_v7, %v79_v63 }
  0x22   :  { %v58_v8 = vrot.slane %v57_v1, 4  ;;  %v95_v12 = vadd.f32 %v94_v9, %v80_v5 }
  0x24   :  { %v59_v11 = vadd.f32 %v58_v8, %v57_v1  ;;  %v96_v15 = vrot.slane %v95_v12, 4 }
  0x26   :  { %v60_v13 = vrot.slane %v59_v11, 2  ;;  %v97_v17 = vadd.f32 %v96_v15, %v95_v12 }
  0x28   :  { %v61_v16 = vadd.f32 %v60_v13, %v59_v11  ;;  %v98_v20 = vrot.slane %v97_v17, 2 }
  0x2a   :  { %v62_v19 = vrot.slane %v61_v16, 1  ;;  %v99_v22 = vadd.f32 %v98_v20, %v97_v17 }
  0x2c   :  { %v63_v21 = vadd.f32 %v62_v19, %v61_v16  ;;  %v100_v25 = vrot.slane %v99_v22, 1 }
  0x2e   :  { %v523_v24 = vmul.f32 0.0078125, %v63_v21  ;;  %v101_v26 = vadd.f32 %v100_v25, %v99_v22 }
  0x30   :  { %v103_v28 = vmul.f32 %v523_v24, %v523_v24  ;;  %v102_v29 = vmul.f32 0.0078125, %v101_v26  ;;  %v106_v34 = vsub.f32 %v425_v2, %v523_v24  ;;  %v107_v35 = vsub.f32 %v427_v3, %v523_v24 }
  0x31   :  { %v108_v37 = vsub.f32 %v429_v4, %v523_v24  ;;  %v109_v38 = vsub.f32 %v434_v6, %v523_v24  ;;  %v110_v39 = vsub.f32 %v442_v10, %v523_v24  ;;  %v111_v40 = vsub.f32 %v450_v14, %v523_v24  ;;  %v554_v14 = vld [vmem:[%s626_s1] ss:$0 sm:$0xff] }
  0x32   :  { %v104_v30 = vsub.f32 %v102_v29, %v103_v28  ;;  %v112_v42 = vsub.f32 %v455_v18, %v523_v24  ;;  %v113_v2 = vsub.f32 %v463_v23, %v523_v24  ;;  %v114_v3 = vsub.f32 %v468_v27, %v523_v24 }
  0x33   :  { %v115_v4 = vsub.f32 %v476_v32, %v523_v24  ;;  %v116_v6 = vsub.f32 %v481_v36, %v523_v24  ;;  %v117_v10 = vsub.f32 %v489_v41, %v523_v24  ;;  %v118_v18 = vsub.f32 %v494_v45, %v523_v24 }
  0x34   :  { %v105_v31 = vmax.f32 %v104_v30, 0.0  ;;  %v119_v23 = vsub.f32 %v502_v50, %v523_v24  ;;  %v120_v27 = vsub.f32 %v507_v54, %v523_v24  ;;  %v121_v32 = vsub.f32 %v512_v58, %v523_v24 }
  0x36   :  { %v122_v33 = vadd.f32 1e-05, %v105_v31 }
  0x38   :  { %402 = vrsqrt.f32 %v122_v33 }
  0x42   :  { %v403_v43 = vpop.eup %402 }
  0x43   :  { %v124_v36 = vmul.f32 %v403_v43, %v106_v34  ;;  %v125_v41 = vmul.f32 %v403_v43, %v107_v35  ;;  %v126_v44 = vmul.f32 %v403_v43, %v108_v37  ;;  %v127_v46 = vmul.f32 %v403_v43, %v109_v38 }
  0x44   :  { %v128_v48 = vmul.f32 %v403_v43, %v110_v39  ;;  %v129_v45 = vmul.f32 %v403_v43, %v111_v40  ;;  %v130_v49 = vmul.f32 %v403_v43, %v112_v42  ;;  %v131_v51 = vmul.f32 %v403_v43, %v113_v2 }
  0x45   :  { %v145_v50 = vmul.f32 %v554_v14, %v124_v36  ;;  %v146_v52 = vmul.f32 %v554_v14, %v125_v41  ;;  %v147_v53 = vmul.f32 %v554_v14, %v126_v44  ;;  %v148_v54 = vmul.f32 %v554_v14, %v127_v46 }
  0x46   :  { %v149_v55 = vmul.f32 %v554_v14, %v128_v48  ;;  %v150_v56 = vmul.f32 %v554_v14, %v129_v45  ;;  %v151_v57 = vmul.f32 %v554_v14, %v130_v49  ;;  %v152_v58 = vmul.f32 %v554_v14, %v131_v51 }
  0x47   :  { %v166_v59 = vadd.f32 %v567_v47, %v145_v50  ;;  %v167_v60 = vadd.f32 %v567_v47, %v146_v52  ;;  %v168_v61 = vadd.f32 %v567_v47, %v147_v53  ;;  %v169_v62 = vadd.f32 %v567_v47, %v148_v54 }
  0x48   :  { %v170_v63 = vadd.f32 %v567_v47, %v149_v55  ;;  %v171_v0 = vadd.f32 %v567_v47, %v150_v56  ;;  %v172_v1 = vadd.f32 %v567_v47, %v151_v57  ;;  %v173_v5 = vadd.f32 %v567_v47, %v152_v58 }
  0x49   :  { %v182_v7 = vmax.f32 %v166_v59, 0.0  ;;  %v183_v8 = vmax.f32 %v167_v60, 0.0  ;;  %v184_v9 = vmax.f32 %v168_v61, 0.0  ;;  %v185_v11 = vmax.f32 %v169_v62, 0.0 }
  0x4a   :  { %v186_v12 = vmax.f32 %v170_v63, 0.0  ;;  %v187_v13 = vmax.f32 %v171_v0, 0.0  ;;  %v188_v15 = vmax.f32 %v172_v1, 0.0  ;;  %v189_v16 = vmax.f32 %v173_v5, 0.0 }
  0x4b   :  { %v351_v17 = vpack.c.bf16 %v183_v8, %v182_v7  ;;  %v356_v19 = vpack.c.bf16 %v185_v11, %v184_v9  ;;  %v132_v20 = vmul.f32 %v403_v43, %v114_v3  ;;  %v133_v21 = vmul.f32 %v403_v43, %v115_v4 }
  0x4c   :  { %v361_v22 = vpack.c.bf16 %v187_v13, %v186_v12  ;;  %v366_v24 = vpack.c.bf16 %v189_v16, %v188_v15  ;;  %v134_v25 = vmul.f32 %v403_v43, %v116_v6  ;;  %v135_v26 = vmul.f32 %v403_v43, %v117_v10 }
  0x4d   :  { %352 = vst [vmem:[%s627_s2] sm:$0xff] %v351_v17   ;;  %395 = vst [vmem:[%s627_s2 + $0x8] sm:$0xff] %v356_v19   ;;  %v153_v28 = vmul.f32 %v554_v14, %v132_v20  ;;  %v154_v29 = vmul.f32 %v554_v14, %v133_v21  ;;  %v136_v30 = vmul.f32 %v403_v43, %v118_v18 }
  0x4e   :  { %v137_v31 = vmul.f32 %v403_v43, %v119_v23  ;;  %396 = vst [vmem:[%s627_s2 + $0x10] sm:$0xff] %v361_v22   ;;  %397 = vst [vmem:[%s627_s2 + $0x18] sm:$0xff] %v366_v24   ;;  %v155_v33 = vmul.f32 %v554_v14, %v134_v25  ;;  %v156_v34 = vmul.f32 %v554_v14, %v135_v26 }
  0x4f   :  { %v138_v35 = vmul.f32 %v403_v43, %v120_v27  ;;  %v139_v37 = vmul.f32 %v403_v43, %v121_v32  ;;  %v174_v38 = vadd.f32 %v567_v47, %v153_v28  ;;  %v175_v39 = vadd.f32 %v567_v47, %v154_v29 }
  0x50   :  { %v157_v40 = vmul.f32 %v554_v14, %v136_v30  ;;  %v158_v42 = vmul.f32 %v554_v14, %v137_v31  ;;  %v176_v2 = vadd.f32 %v567_v47, %v155_v33  ;;  %v177_v3 = vadd.f32 %v567_v47, %v156_v34 }
  0x51   :  { %v159_v4 = vmul.f32 %v554_v14, %v138_v35  ;;  %v160_v6 = vmul.f32 %v554_v14, %v139_v37  ;;  %v190_v10 = vmax.f32 %v174_v38, 0.0  ;;  %v191_v18 = vmax.f32 %v175_v39, 0.0 }
  0x52   :  { %v178_v43 = vadd.f32 %v567_v47, %v157_v40  ;;  %v179_v23 = vadd.f32 %v567_v47, %v158_v42  ;;  %v192_v27 = vmax.f32 %v176_v2, 0.0  ;;  %v193_v32 = vmax.f32 %v177_v3, 0.0 }
  0x53   :  { %v180_v36 = vadd.f32 %v567_v47, %v159_v4  ;;  %v181_v41 = vadd.f32 %v567_v47, %v160_v6  ;;  %v371_v44 = vpack.c.bf16 %v191_v18, %v190_v10 }
  0x54   :  { %v194_v46 = vmax.f32 %v178_v43, 0.0  ;;  %v195_v48 = vmax.f32 %v179_v23, 0.0  ;;  %v376_v45 = vpack.c.bf16 %v193_v32, %v192_v27 }
  0x55   :  { %v196_v49 = vmax.f32 %v180_v36, 0.0  ;;  %v197_v51 = vmax.f32 %v181_v41, 0.0  ;;  %398 = vst [vmem:[%s627_s2 + $0x20] sm:$0xff] %v371_v44  }
  0x56   :  { %v381_v14 = vpack.c.bf16 %v195_v48, %v194_v46  ;;  %399 = vst [vmem:[%s627_s2 + $0x28] sm:$0xff] %v376_v45  }
  0x57   :  { %v386_v50 = vpack.c.bf16 %v197_v51, %v196_v49 }
  0x58   :  { %400 = vst [vmem:[%s627_s2 + $0x30] sm:$0xff] %v381_v14  }
  0x59   :  { %401 = vst [vmem:[%s627_s2 + $0x38] sm:$0xff] %v386_v50  }

// kernel: cnn_autoencoder_forward.23
= control target key start
LH: loop header
LB: loop body
LE: loop exit
PB: predicated region body
PF: predicated region fallthrough
CT: control target
= control target key end

     0   :  { %s68_s0 = inlined_call_operand.vmem [shape: f32[1,128], index: 0, kind: input, shape index: {}]   ;;  %s69_s1 = inlined_call_operand.vmem [shape: s32[1,128], index: 1, kind: input, shape index: {}]   ;;  %s70_s2 = inlined_call_operand.vmem [shape: f32[4,1,128], index: 2, kind: output, shape index: {}]  }
   0x1   :  { %v11_v0 = vld [vmem:[%s68_s0] sm:$0x1] }
   0x2   :  { %v12_v1 = vld [vmem:[%s69_s1] sm:$0x1] }
   0x3   :  { %vm13_vm0 = vcmp.eq.s32.totalorder %v12_v1, 0  ;;  %vm16_vm1 = vcmp.eq.s32.totalorder %v12_v1, 1  ;;  %vm20_vm2 = vcmp.eq.s32.totalorder %v12_v1, 2  ;;  %vm24_vm3 = vcmp.eq.s32.totalorder %v12_v1, 3 }
   0x4   :  { %v14_v2 = vsel %vm13_vm0, %v11_v0, 0.0  ;;  %v17_v3 = vsel %vm16_vm1, %v11_v0, 0.0  ;;  %v21_v4 = vsel %vm20_vm2, %v11_v0, 0.0  ;;  %v25_v5 = vsel %vm24_vm3, %v11_v0, 0.0 }
   0x5   :  { %15 = vst [vmem:[%s70_s2] sm:$0x1] %v14_v2  ;;  %32 = vst [vmem:[%s70_s2 + $0x1] sm:$0x1] %v17_v3 }
   0x6   :  { %33 = vst [vmem:[%s70_s2 + $0x2] sm:$0x1] %v21_v4  ;;  %34 = vst [vmem:[%s70_s2 + $0x3] sm:$0x1] %v25_v5 }

// kernel: cnn_autoencoder_forward.21
= control target key start
LH: loop header
LB: loop body
LE: loop exit
PB: predicated region body
PF: predicated region fallthrough
CT: control target
= control target key end

     0   :  { %v2492_v0 = vmov 0.0   ;;  %vm2493_vm0 = vmmov 0   ;;  %vm83_vm1 = vsmask.f32 7424  ;;  %vm729_vm2 = vsmask.f32 4352  ;;  %s3154_s1 = inlined_call_operand.vmem [shape: bf16[9,128,128], index: 1, kind: input, shape index: {}]   ;;  %s3155_s0 = inlined_call_operand.vmem [shape: bf16[86,128], index: 0, kind: input, shape index: {}]   ;;  %s3156_s2 = inlined_call_operand.vmem [shape: f32[1,128], index: 2, kind: input, shape index: {}]   ;;  %s3157_s3 = inlined_call_operand.vmem [shape: bf16[72,128], index: 3, kind: output, shape index: {}]  }
   0x1   :  { %2056 = vmatprep.subr.bf16.mxu0 %v2492_v0  ;;  %2092 = vmatprep.subr.bf16.mxu1 %v2492_v0  ;;  %v2398_v1 = vld [vmem:[%s3154_s1 + $0x40] sm:$0xff]   ;;  %v2400_v3 = vld [vmem:[%s3154_s1 + $0x48] sm:$0xff]   ;;  %v2402_v5 = vld [vmem:[%s3154_s1 + $0x50] sm:$0xff]   ;;  %vm395_vm3 = vcmask 1046528   ;;  %vm564_vm4 = vcmask 1044480   ;;  %vm1101_vm5 = vcmask 1045504  }
   0x2   :  { %v2399_v2 = vld [vmem:[%s3154_s1] sm:$0xff]   ;;  %2072 = vmatprep.mubr.msk.bf16.mxu0 %vm2493_vm0, %v2492_v0  ;;  %2108 = vmatprep.mubr.msk.bf16.mxu1 %vm2493_vm0, %v2492_v0  ;;  %v2401_v4 = vld [vmem:[%s3154_s1 + $0x8] sm:$0xff]   ;;  %v2403_v6 = vld [vmem:[%s3154_s1 + $0x10] sm:$0xff]   ;;  %vm1266_vm6 = vsmask.f32 5376 }
   0x3   :  { %2057 = vmatpush3.bf16.msra.mxu0 %v2398_v1  ;;  %2093 = vmatpush3.bf16.msra.mxu1 %v2399_v2  ;;  %v2404_v7 = vld [vmem:[%s3154_s1 + $0x58] sm:$0xff]   ;;  %v2406_v9 = vld [vmem:[%s3154_s1 + $0x60] sm:$0xff]   ;;  %v2569_v13 = vld [vmem:[%s3155_s0 + $0x8] sm:$0xf] }
   0x4   :  { %2058 = vmatprep.subr.bf16.mxu0 %v2492_v0  ;;  %2094 = vmatprep.subr.bf16.mxu1 %v2492_v0  ;;  %v2405_v8 = vld [vmem:[%s3154_s1 + $0x18] sm:$0xff]   ;;  %v2407_v10 = vld [vmem:[%s3154_s1 + $0x20] sm:$0xff]   ;;  %v2574_v14 = vld [vmem:[%s3155_s0 + $0xc] sm:$0xf] }
   0x5   :  { %v15_v11 = vld [vmem:[%s3155_s0] sm:$0xf]  ;;  %v2564_v12 = vld [vmem:[%s3155_s0 + $0x4] sm:$0xf]  ;;  %v2408_v17 = vld [vmem:[%s3154_s1 + $0x68] sm:$0xff]   ;;  %v2584_v18 = vcombine.low %v2569_v13, %v2574_v14 }
   0x6   :  { %v1691_v15 = vcombine.low %v15_v11, %v2564_v12  ;;  %v1805_v16 = vcombine.low %v2564_v12, %v2569_v13  ;;  %v2409_v19 = vld [vmem:[%s3154_s1 + $0x28] sm:$0xff]   ;;  %v2593_v21 = vld [vmem:[%s3155_s0 + $0x10] sm:$0xf]  ;;  %v2606_v26 = vld [vmem:[%s3155_s0 + $0x14] sm:$0xf] }
   0x7   :  { %2059 = vmatpush3.bf16.msra.mxu0 %v2400_v3  ;;  %2095 = vmatpush3.bf16.msra.mxu1 %v2401_v4  ;;  %v2410_v22 = vld [vmem:[%s3154_s1 + $0x70] sm:$0xff]   ;;  %v92_v23 = vshll.u32 %v2584_v18, 16  ;;  %v96_v24 = vshrl.u32 %v2584_v18, 16  ;;  %v1806_v25 = vcombine.low %v2574_v14, %v2593_v21  ;;  %v2616_v32 = vld [vmem:[%s3155_s0 + $0x18] sm:$0xf]  ;;  %v2622_v34 = vcombine.low %v2593_v21, %v2606_v26  ;;  %v2416_v42 = vld [vmem:[%s3154_s1 + $0x80] sm:$0xff]  }
   0x8   :  { %2060 = vmatprep.subr.bf16.mxu0 %v2492_v0  ;;  %2096 = vmatprep.subr.bf16.mxu1 %v2492_v0  ;;  %v87_v20 = vshll.u32 %v1691_v15, 16  ;;  %v85_v27 = vshrl.u32 %v1691_v15, 16  ;;  %v2411_v31 = vld [vmem:[%s3154_s1 + $0x30] sm:$0xff]   ;;  %v1807_v35 = vcombine.low %v2606_v26, %v2616_v32  ;;  %v2412_v36 = vld [vmem:[%s3154_s1 + $0x78] sm:$0xff]   ;;  %v2642_v41 = vld [vmem:[%s3155_s0 + $0x20] sm:$0xf] }
   0x9   :  { %v739_v29 = vrot.slane %v92_v23, 4  ;;  %v738_v30 = vrot.slane %v96_v24, 3  ;;  %v94_v38 = vrot.slane %v92_v23, 1  ;;  %v2413_v39 = vld [vmem:[%s3154_s1 + $0x38] sm:$0xff]   ;;  %v100_v43 = vshll.u32 %v2622_v34, 16  ;;  %v2419_v46 = vld [vmem:[%s3154_s1 + $0xc0] sm:$0xff]  }
   0xa   :  { %v89_v28 = vrot.slane %v87_v20, 1  ;;  %v2637_v40 = vld [vmem:[%s3155_s0 + $0x1c] sm:$0xf]  ;;  %v2417_v47 = vld [vmem:[%s3154_s1 + $0x88] sm:$0xff]   ;;  %v2420_v52 = vld [vmem:[%s3154_s1 + $0x90] sm:$0xff]   ;;  %v104_v54 = vshrl.u32 %v2622_v34, 16 }
   0xb   :  { %2061 = vmatpush3.bf16.msra.mxu0 %v2402_v5  ;;  %2097 = vmatpush3.bf16.msra.mxu1 %v2403_v6  ;;  %v2618_v33 = vor.u32 %v739_v29, %v738_v30  ;;  %v1808_v44 = vcombine.low %v2637_v40, %v2642_v41  ;;  %v98_v48 = vor.u32 %v96_v24, %v94_v38  ;;  %v102_v49 = vrot.slane %v100_v43, 1  ;;  %v2421_v51 = vld [vmem:[%s3154_s1 + $0xc8] sm:$0xff]   ;;  %v40_v56 = vld [vmem:[%s3155_s0 + $0x24] sm:$0x1]  ;;  %v2424_v57 = vld [vmem:[%s3154_s1 + $0xd0] sm:$0xff]  }
   0xc   :  { %2062 = vmatprep.subr.bf16.mxu0 %v2492_v0  ;;  %2098 = vmatprep.subr.bf16.mxu1 %v2492_v0  ;;  %v90_v37 = vor.u32 %v89_v28, %v85_v27  ;;  %v2661_v50 = vcombine.low %v2616_v32, %v2637_v40  ;;  %v2423_v60 = vld [vmem:[%s3154_s1 + $0x98] sm:$0xff]   ;;  %v2691_v61 = vcombine.low %v2642_v41, %v40_v56  ;;  %v742_v1 = vrot.slane %v104_v54, 3  ;;  %v2425_v3 = vld [vmem:[%s3154_s1 + $0xa0] sm:$0xff]   ;;  %v2431_v24 = vld [vmem:[%s3154_s1 + $0xb0] sm:$0xff]  }
   0xd   :  { %v103_v53 = vsel %vm83_vm1, %v98_v48, %v102_v49  ;;  %v106_v58 = vor.u32 %v104_v54, %v102_v49  ;;  %v2426_v62 = vld [vmem:[%s3154_s1 + $0xd8] sm:$0xff]   ;;  %v743_v5 = vrot.slane %v100_v43, 4  ;;  %v2433_v27 = vld [vmem:[%s3154_s1 + $0xf0] sm:$0xff]   ;;  %v397_v49 = vrot.slane %v2584_v18, 1  ;;  %v2465_v14 = vld [vmem:[%s3154_s1 + $0x1a0] sm:$0xff]  }
   0xe   :  { %v95_v45 = vsel %vm83_vm1, %v90_v37, %v94_v38  ;;  %v108_v55 = vshll.u32 %v2661_v50, 16  ;;  %v112_v63 = vshrl.u32 %v2661_v50, 16  ;;  %v116_v4 = vshll.u32 %v2691_v61, 16  ;;  %v2434_v29 = vld [vmem:[%s3154_s1 + $0xb8] sm:$0xff]   ;;  %v2464_v13 = vld [vmem:[%s3154_s1 + $0x1d0] sm:$0xff]   ;;  %v2469_v21 = vld [vmem:[%s3154_s1 + $0x1e0] sm:$0xff]  }
   0xf   :  { %2063 = vmatpush3.bf16.msra.mxu0 %v2404_v7  ;;  %2099 = vmatpush3.bf16.msra.mxu1 %v2405_v8  ;;  %v2428_v7 = vld [vmem:[%s3154_s1 + $0xe0] sm:$0xff]   ;;  %v744_v8 = vor.u32 %v743_v5, %v742_v1  ;;  %v120_v28 = vshrl.u32 %v2691_v61, 16  ;;  %v2435_v30 = vld [vmem:[%s3154_s1 + $0xf8] sm:$0xff]   ;;  %v1704_v38 = vcombine.low %v2642_v41, %v2642_v41  ;;  %v2442_v1 = vld [vmem:[%s3154_s1 + $0x148] sm:$0xff]   ;;  %v401_v5 = vrot.slane %v2661_v50, 1 }
  0x10   :  { %2064 = vmatprep.subr.bf16.mxu0 %v2492_v0  ;;  %2100 = vmatprep.subr.bf16.mxu1 %v2492_v0  ;;  %v110_v59 = vrot.slane %v108_v55, 1  ;;  %v746_v6 = vrot.slane %v112_v63, 3  ;;  %v118_v11 = vrot.slane %v116_v4, 1  ;;  %v1049_v26 = vld [vmem:[%s3155_s0 + $0x4] sm:$0xc]  ;;  %v2476_v40 = vld [vmem:[%s3154_s1 + $0x1f8] sm:$0xff]  }
  0x11   :  { %v2969_v32 = vld [vmem:[%s3155_s0 + $0x8] sm:$0xf] }
  0x12   :  { %v111_v2 = vsel %vm83_vm1, %v106_v58, %v110_v59  ;;  %v122_v37 = vor.u32 %v120_v28, %v118_v11 }
  0x13   :  { %2065 = vmatpush3.bf16.msra.mxu0 %v2406_v9  ;;  %2101 = vmatpush3.bf16.msra.mxu1 %v2407_v10  ;;  %v747_v9 = vrot.slane %v108_v55, 4  ;;  %v114_v10 = vor.u32 %v112_v63, %v110_v59  ;;  %v568_v63 = vrot.slane %v2622_v34, 3 }
  0x14   :  { %2066 = vmatprep.subr.bf16.mxu0 %v2492_v0  ;;  %2102 = vmatprep.subr.bf16.mxu1 %v2492_v0 }
  0x15   :  { %v119_v20 = vsel %vm83_vm1, %v114_v10, %v118_v11  ;;  %v2445_v10 = vld [vmem:[%s3154_s1 + $0x120] sm:$0xff]  }
  0x17   :  { %2067 = vmatpush3.bf16.msra.mxu0 %v2408_v17  ;;  %2103 = vmatpush3.bf16.msra.mxu1 %v2409_v19  ;;  %v748_v17 = vor.u32 %v747_v9, %v746_v6  ;;  %v2430_v19 = vld [vmem:[%s3154_s1 + $0xe8] sm:$0xff]   ;;  %v570_v6 = vrot.slane %v2661_v50, 3  ;;  %v540_v9 = vld [vmem:[%s3155_s0 + $0x24] sm:$0x7] }
  0x18   :  { %2068 = vmatprep.subr.bf16.mxu0 %v2492_v0  ;;  %2104 = vmatprep.subr.bf16.mxu1 %v2492_v0 }
  0x19   :  { %v2732_v23 = vsel %vm729_vm2, %v744_v8, %v748_v17  ;;  %v571_v11 = vsel %vm564_vm4, %v568_v63, %v570_v6 }
  0x1b   :  { %2069 = vmatpush3.bf16.msra.mxu0 %v2410_v22  ;;  %2105 = vmatpush3.bf16.msra.mxu1 %v2411_v31  ;;  %v2729_v22 = vsel %vm729_vm2, %v2618_v33, %v744_v8  ;;  %v374_v31 = vld [vmem:[%s3155_s0] sm:$0xe]  ;;  %v2446_v8 = vld [vmem:[%s3154_s1 + $0x158] sm:$0xff]  }
  0x1c   :  { %2070 = vmatprep.subr.bf16.mxu0 %v2492_v0  ;;  %2106 = vmatprep.subr.bf16.mxu1 %v2492_v0 }
  0x1f   :  { %2071 = vmatpush3.bf16.msra.mxu0 %v2412_v36  ;;  %2107 = vmatpush3.bf16.msra.mxu1 %v2413_v39  ;;  %v539_v36 = vld [vmem:[%s3155_s0] sm:$0x8]  ;;  %v1729_v39 = vcombine.low %v374_v31, %v2564_v12 }
  0x20   :  { %2128 = vmatprep.subr.bf16.mxu0 %v2492_v0  ;;  %2164 = vmatprep.subr.bf16.mxu1 %v2492_v0  ;;  %v2771_v43 = vcombine.low %v539_v36, %v2564_v12  ;;  %v2460_v12 = vld [vmem:[%s3154_s1 + $0x190] sm:$0xff]  }
  0x21   :  { %v396_v48 = vrot.slane %v1729_v39, 1 }
  0x22   :  { %2073 = vmatmul.mubr.bf16.vlgmr.msra.gmra.mrb[0].mxu0 %v95_v45  ;;  %2109 = vmatmul.mubr.bf16.vlgmr.msra.gmra.mrb[0].mxu1 %v1691_v15  ;;  %v2429_v15 = vld [vmem:[%s3154_s1 + $0xa8] sm:$0xff]   ;;  %v731_v31 = vshrl.u32 %v2771_v43, 16  ;;  %v734_v36 = vshll.u32 %v2771_v43, 16 }
  0x23   :  { %2129 = vmatpush3.bf16.msra.mxu0 %v2416_v42  ;;  %2076 = vmatprep.mubr.msk.bf16.mxu0 %vm2493_vm0, %v2492_v0  ;;  %v2768_v42 = vld [vmem:[%s3155_s0 + $0x24] sm:$0xf]  ;;  %v398_v56 = vsel %vm395_vm3, %v396_v48, %v397_v49 }
  0x24   :  { %2130 = vmatprep.subr.bf16.mxu0 %v2492_v0  ;;  %2112 = vmatprep.mubr.msk.bf16.mxu1 %vm2493_vm0, %v2492_v0  ;;  %v1780_v45 = vcombine.low %v2642_v41, %v2768_v42  ;;  %v733_v39 = vrot.slane %v731_v31, 3  ;;  %v2459_v48 = vld [vmem:[%s3154_s1 + $0x1c0] sm:$0xff]  }
  0x25   :  { %2165 = vmatpush3.bf16.msra.mxu1 %v2419_v46 }
  0x26   :  { %2166 = vmatprep.subr.bf16.mxu1 %v2492_v0  ;;  %v751_v46 = vshrl.u32 %v1780_v45, 16 }
  0x27   :  { %2131 = vmatpush3.bf16.msra.mxu0 %v2417_v47  ;;  %v754_v47 = vshll.u32 %v1780_v45, 16  ;;  %v736_v45 = vrot.slane %v734_v36, 4  ;;  %v2484_v36 = vld [vmem:[%s3154_s1 + $0x218] sm:$0xff]  }
  0x28   :  { %2132 = vmatprep.subr.bf16.mxu0 %v2492_v0 }
  0x29   :  { %2167 = vmatpush3.bf16.msra.mxu1 %v2421_v51  ;;  %v565_v51 = vrot.slane %v2771_v43, 3  ;;  %v756_v54 = vrot.slane %v754_v47, 4  ;;  %v737_v43 = vor.u32 %v736_v45, %v733_v39  ;;  %v2456_v47 = vld [vmem:[%s3154_s1 + $0x180] sm:$0xff]  }
  0x2a   :  { %2077 = vmatmul.mubr.bf16.gmra.mrb[4].mxu0 %v103_v53  ;;  %2168 = vmatprep.subr.bf16.mxu1 %v2492_v0  ;;  %v753_v53 = vrot.slane %v751_v46, 3 }
  0x2b   :  { %2113 = vmatmul.mubr.bf16.gmra.mrb[4].mxu1 %v2584_v18  ;;  %2133 = vmatpush3.bf16.msra.mxu0 %v2420_v52  ;;  %v566_v52 = vrot.slane %v2584_v18, 3  ;;  %v2440_v18 = vld [vmem:[%s3154_s1 + $0x140] sm:$0xff]   ;;  %v741_v46 = vsel %vm729_vm2, %v737_v43, %v2618_v33  ;;  %v2461_v33 = vld [vmem:[%s3154_s1 + $0x1c8] sm:$0xff]  }
  0x2c   :  { %2080 = vmatprep.mubr.msk.bf16.mxu0 %vm2493_vm0, %v2492_v0  ;;  %2116 = vmatprep.mubr.msk.bf16.mxu1 %vm2493_vm0, %v2492_v0  ;;  %v2784_v55 = vor.u32 %v756_v54, %v753_v53  ;;  %v2474_v53 = vld [vmem:[%s3154_s1 + $0x1f0] sm:$0xff]   ;;  %v2475_v54 = vld [vmem:[%s3154_s1 + $0x1b8] sm:$0xff]  }
  0x2d   :  { %2134 = vmatprep.subr.bf16.mxu0 %v2492_v0  ;;  %2169 = vmatpush3.bf16.msra.mxu1 %v2424_v57  ;;  %v2438_v57 = vld [vmem:[%s3154_s1 + $0x100] sm:$0xff]   ;;  %v567_v58 = vsel %vm564_vm4, %v565_v51, %v566_v52  ;;  %v569_v4 = vsel %vm564_vm4, %v566_v52, %v568_v63  ;;  %v1834_v51 = vcombine.low %v1049_v26, %v2969_v32  ;;  %v2980_v52 = vld [vmem:[%s3155_s0 + $0xc] sm:$0xff]   ;;  %v3009_v63 = vld [vmem:[%s3155_s0 + $0x14] sm:$0xff]  }
  0x2e   :  { %2170 = vmatprep.subr.bf16.mxu1 %v2492_v0  ;;  %v2793_v59 = vsel %vm729_vm2, %v748_v17, %v2784_v55  ;;  %v2448_v17 = vld [vmem:[%s3154_s1 + $0x160] sm:$0xff]  }
  0x2f   :  { %2135 = vmatpush3.bf16.msra.mxu0 %v2423_v60  ;;  %v2439_v60 = vld [vmem:[%s3154_s1 + $0x108] sm:$0xff]  }
  0x30   :  { %2136 = vmatprep.subr.bf16.mxu0 %v2492_v0 }
  0x31   :  { %2171 = vmatpush3.bf16.msra.mxu1 %v2426_v62  ;;  %v399_v62 = vrot.slane %v2622_v34, 1 }
  0x32   :  { %2081 = vmatmul.mubr.bf16.gmra.mrb[8].mxu0 %v111_v2  ;;  %2172 = vmatprep.subr.bf16.mxu1 %v2492_v0 }
  0x33   :  { %2117 = vmatmul.mubr.bf16.gmra.mrb[8].mxu1 %v2622_v34  ;;  %2137 = vmatpush3.bf16.msra.mxu0 %v2425_v3  ;;  %v400_v2 = vsel %vm395_vm3, %v397_v49, %v399_v62  ;;  %v2441_v3 = vld [vmem:[%s3154_s1 + $0x110] sm:$0xff]   ;;  %v2457_v49 = vld [vmem:[%s3154_s1 + $0x188] sm:$0xff]  }
  0x34   :  { %2084 = vmatprep.mubr.msk.bf16.mxu0 %vm2493_vm0, %v2492_v0  ;;  %2120 = vmatprep.mubr.msk.bf16.mxu1 %vm2493_vm0, %v2492_v0  ;;  %v2444_v34 = vld [vmem:[%s3154_s1 + $0x150] sm:$0xff]  }
  0x35   :  { %2138 = vmatprep.subr.bf16.mxu0 %v2492_v0  ;;  %2173 = vmatpush3.bf16.msra.mxu1 %v2428_v7  ;;  %v2443_v7 = vld [vmem:[%s3154_s1 + $0x118] sm:$0xff]  }
  0x36   :  { %2174 = vmatprep.subr.bf16.mxu1 %v2492_v0 }
  0x37   :  { %2139 = vmatpush3.bf16.msra.mxu0 %v2429_v15  ;;  %v1755_v15 = vcombine.low %v2642_v41, %v540_v9  ;;  %v1809_v41 = vcombine.low %v2768_v42, %v2768_v42  ;;  %v1102_v42 = vrot.slane %v1834_v51, 2  ;;  %v3029_v9 = vld [vmem:[%s3155_s0 + $0x1c] sm:$0xff]  }
  0x38   :  { %2140 = vmatprep.subr.bf16.mxu0 %v2492_v0  ;;  %v1107_v31 = vrot.slane %v3029_v9, 2 }
  0x39   :  { %2175 = vmatpush3.bf16.msra.mxu1 %v2430_v19  ;;  %v403_v19 = vrot.slane %v2691_v61, 1 }
  0x3a   :  { %2085 = vmatmul.mubr.bf16.gmra.mrb[12].mxu0 %v119_v20  ;;  %2176 = vmatprep.subr.bf16.mxu1 %v2492_v0  ;;  %v2449_v20 = vld [vmem:[%s3154_s1 + $0x128] sm:$0xff]  }
  0x3b   :  { %2121 = vmatmul.mubr.bf16.gmra.mrb[12].mxu1 %v2661_v50  ;;  %2088 = vmatprep.mubr.msk.bf16.mxu0 %vm2493_vm0, %v2492_v0  ;;  %v402_v50 = vsel %vm395_vm3, %v399_v62, %v401_v5  ;;  %v404_v61 = vsel %vm395_vm3, %v401_v5, %v403_v19  ;;  %v2479_v5 = vld [vmem:[%s3154_s1 + $0x200] sm:$0xff]  }
  0x3c   :  { %2124 = vmatprep.mubr.msk.bf16.mxu1 %vm2493_vm0, %v2492_v0  ;;  %2141 = vmatpush3.bf16.msra.mxu0 %v2431_v24  ;;  %v572_v24 = vrot.slane %v1755_v15, 3  ;;  %v1294_v15 = vshrl.u32 %v3029_v9, 16 }
  0x3d   :  { %2177 = vmatpush3.bf16.msra.mxu1 %v2433_v27  ;;  %2142 = vmatprep.subr.bf16.mxu0 %v2492_v0  ;;  %v2450_v27 = vld [vmem:[%s3154_s1 + $0x168] sm:$0xff]  }
  0x3e   :  { %2178 = vmatprep.subr.bf16.mxu1 %v2492_v0  ;;  %v573_v28 = vsel %vm564_vm4, %v570_v6, %v572_v24 }
  0x40   :  { %2143 = vmatpush3.bf16.msra.mxu0 %v2434_v29  ;;  %v2451_v29 = vld [vmem:[%s3154_s1 + $0x130] sm:$0xff]  }
  0x41   :  { %2179 = vmatpush3.bf16.msra.mxu1 %v2435_v30  ;;  %2200 = vmatprep.subr.bf16.mxu0 %v2492_v0  ;;  %v2452_v30 = vld [vmem:[%s3154_s1 + $0x170] sm:$0xff]  }
  0x42   :  { %2089 = vmatmul.mubr.bf16.gmra.mrb[16].mxu0 %v122_v37  ;;  %2236 = vmatprep.subr.bf16.mxu1 %v2492_v0  ;;  %v2453_v37 = vld [vmem:[%s3154_s1 + $0x138] sm:$0xff]  }
  0x43   :  { %2125 = vmatmul.mubr.bf16.gmra.mrb[16].mxu1 %v1704_v38  ;;  %2144 = vmatprep.mubr.msk.bf16.mxu0 %vm2493_vm0, %v2492_v0  ;;  %v2454_v38 = vld [vmem:[%s3154_s1 + $0x178] sm:$0xff]  }
  0x44   :  { %2180 = vmatprep.mubr.msk.bf16.mxu1 %vm2493_vm0, %v2492_v0 }
  0x4a   :  { %2145 = vmatmul.mubr.bf16.vlgmr.msra.gmra.mrb[20].mxu0 %v398_v56  ;;  %v1268_v56 = vshrl.u32 %v1834_v51, 16 }
  0x4b   :  { %2181 = vmatmul.mubr.bf16.vlgmr.msra.gmra.mrb[20].mxu1 %v567_v58  ;;  %2201 = vmatpush3.bf16.msra.mxu0 %v2438_v57  ;;  %v1271_v57 = vshll.u32 %v1834_v51, 16  ;;  %v1276_v58 = vshrl.u32 %v2980_v52, 16  ;;  %v1467_v51 = vrot.slane %v2980_v52, 3 }
  0x4c   :  { %2202 = vmatprep.subr.bf16.mxu0 %v2492_v0  ;;  %2148 = vmatprep.mubr.msk.bf16.mxu0 %vm2493_vm0, %v2492_v0 }
  0x4d   :  { %2184 = vmatprep.mubr.msk.bf16.mxu1 %vm2493_vm0, %v2492_v0  ;;  %2237 = vmatpush3.bf16.msra.mxu1 %v2440_v18  ;;  %v1273_v18 = vrot.slane %v1271_v57, 3  ;;  %v1469_v57 = vrot.slane %v3009_v63, 3 }
  0x4e   :  { %2238 = vmatprep.subr.bf16.mxu1 %v2492_v0 }
  0x4f   :  { %2203 = vmatpush3.bf16.msra.mxu0 %v2439_v60  ;;  %v1278_v60 = vrot.slane %v1276_v58, 2 }
  0x50   :  { %2204 = vmatprep.subr.bf16.mxu0 %v2492_v0 }
  0x51   :  { %2239 = vmatpush3.bf16.msra.mxu1 %v2442_v1  ;;  %v1103_v1 = vrot.slane %v2980_v52, 2 }
  0x52   :  { %2149 = vmatmul.mubr.bf16.gmra.mrb[24].mxu0 %v400_v2  ;;  %2240 = vmatprep.subr.bf16.mxu1 %v2492_v0 }
  0x53   :  { %2185 = vmatmul.mubr.bf16.gmra.mrb[24].mxu1 %v569_v4  ;;  %2205 = vmatpush3.bf16.msra.mxu0 %v2441_v3  ;;  %v1285_v4 = vshrl.u32 %v3009_v63, 16 }
  0x54   :  { %2152 = vmatprep.mubr.msk.bf16.mxu0 %vm2493_vm0, %v2492_v0  ;;  %2188 = vmatprep.mubr.msk.bf16.mxu1 %vm2493_vm0, %v2492_v0 }
  0x55   :  { %2206 = vmatprep.subr.bf16.mxu0 %v2492_v0  ;;  %2241 = vmatpush3.bf16.msra.mxu1 %v2444_v34  ;;  %v1288_v34 = vshll.u32 %v3009_v63, 16 }
  0x56   :  { %2242 = vmatprep.subr.bf16.mxu1 %v2492_v0 }
  0x57   :  { %2207 = vmatpush3.bf16.msra.mxu0 %v2443_v7  ;;  %v1287_v7 = vrot.slane %v1285_v4, 2 }
  0x58   :  { %2208 = vmatprep.subr.bf16.mxu0 %v2492_v0 }
  0x59   :  { %2243 = vmatpush3.bf16.msra.mxu1 %v2446_v8  ;;  %v1290_v8 = vrot.slane %v1288_v34, 3 }
  0x5a   :  { %2153 = vmatmul.mubr.bf16.gmra.mrb[28].mxu0 %v402_v50  ;;  %2244 = vmatprep.subr.bf16.mxu1 %v2492_v0  ;;  %v2480_v50 = vld [vmem:[%s3154_s1 + $0x208] sm:$0xff]  }
  0x5b   :  { %2189 = vmatmul.mubr.bf16.gmra.mrb[28].mxu1 %v571_v11  ;;  %2209 = vmatpush3.bf16.msra.mxu0 %v2445_v10  ;;  %v1105_v10 = vrot.slane %v3009_v63, 2  ;;  %v1291_v11 = vor.u32 %v1290_v8, %v1287_v7 }
  0x5c   :  { %2156 = vmatprep.mubr.msk.bf16.mxu0 %vm2493_vm0, %v2492_v0  ;;  %2192 = vmatprep.mubr.msk.bf16.mxu1 %vm2493_vm0, %v2492_v0 }
  0x5d   :  { %2210 = vmatprep.subr.bf16.mxu0 %v2492_v0  ;;  %2245 = vmatpush3.bf16.msra.mxu1 %v2448_v17  ;;  %v1297_v17 = vshll.u32 %v3029_v9, 16  ;;  %v1108_v43 = vsel %vm1101_vm5, %v1105_v10, %v1107_v31 }
  0x5e   :  { %2246 = vmatprep.subr.bf16.mxu1 %v2492_v0 }
  0x5f   :  { %2211 = vmatpush3.bf16.msra.mxu0 %v2449_v20  ;;  %v1245_v20 = vld [vmem:[%s3155_s0 + $0x28] sm:$0x7] }
  0x60   :  { %2212 = vmatprep.subr.bf16.mxu0 %v2492_v0 }
  0x61   :  { %2247 = vmatpush3.bf16.msra.mxu1 %v2450_v27  ;;  %v2482_v27 = vld [vmem:[%s3154_s1 + $0x210] sm:$0xff]  }
  0x62   :  { %2157 = vmatmul.mubr.bf16.gmra.mrb[32].mxu0 %v404_v61  ;;  %2248 = vmatprep.subr.bf16.mxu1 %v2492_v0 }
  0x63   :  { %2193 = vmatmul.mubr.bf16.gmra.mrb[32].mxu1 %v573_v28  ;;  %2160 = vmatprep.mubr.msk.bf16.mxu0 %vm2493_vm0, %v2492_v0  ;;  %v1296_v28 = vrot.slane %v1294_v15, 2 }
  0x64   :  { %2196 = vmatprep.mubr.msk.bf16.mxu1 %vm2493_vm0, %v2492_v0  ;;  %2213 = vmatpush3.bf16.msra.mxu0 %v2451_v29  ;;  %v1299_v29 = vrot.slane %v1297_v17, 3 }
  0x65   :  { %2249 = vmatpush3.bf16.msra.mxu1 %v2452_v30  ;;  %2214 = vmatprep.subr.bf16.mxu0 %v2492_v0 }
  0x66   :  { %2250 = vmatprep.subr.bf16.mxu1 %v2492_v0 }
  0x68   :  { %2215 = vmatpush3.bf16.msra.mxu0 %v2453_v37  ;;  %v1300_v37 = vor.u32 %v1299_v29, %v1296_v28 }
  0x69   :  { %2251 = vmatpush3.bf16.msra.mxu1 %v2454_v38  ;;  %2272 = vmatprep.subr.bf16.mxu0 %v2492_v0  ;;  %v1058_v38 = vld [vmem:[%s3155_s0 + $0x28] sm:$0x3] }
  0x6a   :  { %2161 = vmatmul.mubr.bf16.gmra.mrb[36].mxu0 %v403_v19  ;;  %2308 = vmatprep.subr.bf16.mxu1 %v2492_v0  ;;  %v1057_v19 = vld [vmem:[%s3155_s0 + $0x24] sm:$0xf] }
  0x6b   :  { %2197 = vmatmul.mubr.bf16.gmra.mrb[36].mxu1 %v572_v24  ;;  %2216 = vmatprep.mubr.msk.bf16.mxu0 %vm2493_vm0, %v2492_v0  ;;  %v1106_v24 = vsel %vm1101_vm5, %v1103_v1, %v1105_v10  ;;  %v3055_v30 = vcombine.low %v1057_v19, %v1245_v20 }
  0x6c   :  { %2252 = vmatprep.mubr.msk.bf16.mxu1 %vm2493_vm0, %v2492_v0 }
  0x6d   :  { %v1303_v39 = vshrl.u32 %v3055_v30, 16  ;;  %v1306_v45 = vshll.u32 %v3055_v30, 16 }
  0x72   :  { %2217 = vmatmul.mubr.bf16.vlgmr.msra.gmra.mrb[40].mxu0 %v741_v46  ;;  %v2485_v46 = vld [vmem:[%s3154_s1 + $0x220] sm:$0xff]  }
  0x73   :  { %2253 = vmatmul.mubr.bf16.vlgmr.msra.gmra.mrb[40].mxu1 %v1805_v16  ;;  %2273 = vmatpush3.bf16.msra.mxu0 %v2456_v47  ;;  %v2463_v16 = vld [vmem:[%s3154_s1 + $0x198] sm:$0xff]   ;;  %v1838_v47 = vcombine.low %v1057_v19, %v1058_v38 }
  0x74   :  { %2274 = vmatprep.subr.bf16.mxu0 %v2492_v0  ;;  %2220 = vmatprep.mubr.msk.bf16.mxu0 %vm2493_vm0, %v2492_v0 }
  0x75   :  { %2256 = vmatprep.mubr.msk.bf16.mxu1 %vm2493_vm0, %v2492_v0  ;;  %2309 = vmatpush3.bf16.msra.mxu1 %v2459_v48  ;;  %v1301_v48 = vsel %vm1266_vm6, %v1291_v11, %v1300_v37 }
  0x76   :  { %2310 = vmatprep.subr.bf16.mxu1 %v2492_v0 }
  0x77   :  { %2275 = vmatpush3.bf16.msra.mxu0 %v2457_v49  ;;  %v1305_v49 = vrot.slane %v1303_v39, 2 }
  0x78   :  { %2276 = vmatprep.subr.bf16.mxu0 %v2492_v0 }
  0x79   :  { %2311 = vmatpush3.bf16.msra.mxu1 %v2461_v33  ;;  %v1308_v33 = vrot.slane %v1306_v45, 3 }
  0x7a   :  { %2221 = vmatmul.mubr.bf16.gmra.mrb[44].mxu0 %v2729_v22  ;;  %2312 = vmatprep.subr.bf16.mxu1 %v2492_v0  ;;  %v2466_v22 = vld [vmem:[%s3154_s1 + $0x1d8] sm:$0xff]  }
  0x7b   :  { %2257 = vmatmul.mubr.bf16.gmra.mrb[44].mxu1 %v1806_v25  ;;  %2277 = vmatpush3.bf16.msra.mxu0 %v2460_v12  ;;  %v2470_v25 = vld [vmem:[%s3154_s1 + $0x1a8] sm:$0xff]   ;;  %v1109_v12 = vrot.slane %v1838_v47, 2 }
  0x7c   :  { %2224 = vmatprep.mubr.msk.bf16.mxu0 %vm2493_vm0, %v2492_v0  ;;  %2260 = vmatprep.mubr.msk.bf16.mxu1 %vm2493_vm0, %v2492_v0 }
  0x7d   :  { %2278 = vmatprep.subr.bf16.mxu0 %v2492_v0  ;;  %2313 = vmatpush3.bf16.msra.mxu1 %v2464_v13  ;;  %v2488_v13 = vld [vmem:[%s3154_s1 + $0x228] sm:$0xff]  }
  0x7e   :  { %2314 = vmatprep.subr.bf16.mxu1 %v2492_v0 }
  0x7f   :  { %2279 = vmatpush3.bf16.msra.mxu0 %v2463_v16  ;;  %v1309_v16 = vor.u32 %v1308_v33, %v1305_v49 }
  0x80   :  { %2280 = vmatprep.subr.bf16.mxu0 %v2492_v0 }
  0x81   :  { %2315 = vmatpush3.bf16.msra.mxu1 %v2466_v22  ;;  %v1110_v22 = vsel %vm1101_vm5, %v1107_v31, %v1109_v12 }
  0x82   :  { %2225 = vmatmul.mubr.bf16.gmra.mrb[48].mxu0 %v2732_v23  ;;  %2316 = vmatprep.subr.bf16.mxu1 %v2492_v0  ;;  %v2471_v23 = vld [vmem:[%s3154_s1 + $0x1e8] sm:$0xff]  }
  0x83   :  { %2261 = vmatmul.mubr.bf16.gmra.mrb[48].mxu1 %v1807_v35  ;;  %2281 = vmatpush3.bf16.msra.mxu0 %v2465_v14  ;;  %v2472_v35 = vld [vmem:[%s3154_s1 + $0x1b0] sm:$0xff]   ;;  %v1310_v14 = vsel %vm1266_vm6, %v1300_v37, %v1309_v16 }
  0x84   :  { %2228 = vmatprep.mubr.msk.bf16.mxu0 %vm2493_vm0, %v2492_v0  ;;  %2264 = vmatprep.mubr.msk.bf16.mxu1 %vm2493_vm0, %v2492_v0 }
  0x85   :  { %2282 = vmatprep.subr.bf16.mxu0 %v2492_v0  ;;  %2317 = vmatpush3.bf16.msra.mxu1 %v2469_v21  ;;  %v2489_v21 = vld [vmem:[%s3154_s1 + $0x230] sm:$0xff]  }
  0x86   :  { %2318 = vmatprep.subr.bf16.mxu1 %v2492_v0 }
  0x87   :  { %2283 = vmatpush3.bf16.msra.mxu0 %v2470_v25  ;;  %v2490_v25 = vld [vmem:[%s3154_s1 + $0x238] sm:$0xff]  }
  0x88   :  { %2284 = vmatprep.subr.bf16.mxu0 %v2492_v0 }
  0x89   :  { %2319 = vmatpush3.bf16.msra.mxu1 %v2471_v23  ;;  %v1445_v23 = vld [vmem:[%s3155_s0 + $0x4] sm:$0x8] }
  0x8a   :  { %2229 = vmatmul.mubr.bf16.gmra.mrb[52].mxu0 %v2793_v59  ;;  %2320 = vmatprep.subr.bf16.mxu1 %v2492_v0  ;;  %v1279_v59 = vshll.u32 %v2980_v52, 16  ;;  %v1888_v26 = vcombine.low %v1445_v23, %v2969_v32  ;;  %v1470_v52 = vsel %vm564_vm4, %v1467_v51, %v1469_v57 }
  0x8b   :  { %2265 = vmatmul.mubr.bf16.gmra.mrb[52].mxu1 %v1808_v44  ;;  %2232 = vmatprep.mubr.msk.bf16.mxu0 %vm2493_vm0, %v2492_v0  ;;  %v1270_v44 = vrot.slane %v1268_v56, 2 }
  0x8c   :  { %2268 = vmatprep.mubr.msk.bf16.mxu1 %vm2493_vm0, %v2492_v0  ;;  %2285 = vmatpush3.bf16.msra.mxu0 %v2472_v35  ;;  %v1281_v62 = vrot.slane %v1279_v59, 3  ;;  %v1466_v35 = vrot.slane %v1888_v26, 3 }
  0x8d   :  { %2321 = vmatpush3.bf16.msra.mxu1 %v2474_v53  ;;  %2286 = vmatprep.subr.bf16.mxu0 %v2492_v0  ;;  %v1274_v2 = vor.u32 %v1273_v18, %v1270_v44  ;;  %v1471_v53 = vrot.slane %v3029_v9, 3 }
  0x8e   :  { %2322 = vmatprep.subr.bf16.mxu1 %v2492_v0  ;;  %v1282_v3 = vor.u32 %v1281_v62, %v1278_v60  ;;  %v1468_v56 = vsel %vm564_vm4, %v1466_v35, %v1467_v51 }
  0x8f   :  { %v1472_v58 = vsel %vm564_vm4, %v1469_v57, %v1471_v53 }
  0x90   :  { %2287 = vmatpush3.bf16.msra.mxu0 %v2475_v54  ;;  %v1283_v6 = vsel %vm1266_vm6, %v1274_v2, %v1282_v3  ;;  %v1292_v61 = vsel %vm1266_vm6, %v1282_v3, %v1291_v11  ;;  %v1473_v54 = vrot.slane %v3055_v30, 3 }
  0x91   :  { %2323 = vmatpush3.bf16.msra.mxu1 %v2476_v40  ;;  %2344 = vmatprep.subr.bf16.mxu0 %v2492_v0 }
  0x92   :  { %2233 = vmatmul.mubr.bf16.gmra.mrb[56].mxu0 %v2784_v55  ;;  %2380 = vmatprep.subr.bf16.mxu1 %v2492_v0  ;;  %v1104_v55 = vsel %vm1101_vm5, %v1102_v42, %v1103_v1  ;;  %v1474_v32 = vsel %vm564_vm4, %v1471_v53, %v1473_v54 }
  0x93   :  { %2269 = vmatmul.mubr.bf16.gmra.mrb[56].mxu1 %v1809_v41  ;;  %2288 = vmatprep.mubr.msk.bf16.mxu0 %vm2493_vm0, %v2492_v0 }
  0x94   :  { %2324 = vmatprep.mubr.msk.bf16.mxu1 %vm2493_vm0, %v2492_v0 }
  0x9a   :  { %2289 = vmatmul.mubr.bf16.vlgmr.msra.gmra.mrb[60].mxu0 %v1104_v55 }
  0x9b   :  { %2325 = vmatmul.mubr.bf16.vlgmr.msra.gmra.mrb[60].mxu1 %v1283_v6  ;;  %2345 = vmatpush3.bf16.msra.mxu0 %v2479_v5 }
  0x9c   :  { %2346 = vmatprep.subr.bf16.mxu0 %v2492_v0  ;;  %2292 = vmatprep.mubr.msk.bf16.mxu0 %vm2493_vm0, %v2492_v0 }
  0x9d   :  { %2328 = vmatprep.mubr.msk.bf16.mxu1 %vm2493_vm0, %v2492_v0  ;;  %2388 = vmatpush3.bf16.msra.mxu1 %v2479_v5 }
  0x9e   :  { %2381 = vmatprep.subr.bf16.mxu1 %v2492_v0 }
  0x9f   :  { %2347 = vmatpush3.bf16.msra.mxu0 %v2480_v50 }
  0xa0   :  { %2348 = vmatprep.subr.bf16.mxu0 %v2492_v0 }
  0xa1   :  { %2389 = vmatpush3.bf16.msra.mxu1 %v2480_v50 }
  0xa2   :  { %2293 = vmatmul.mubr.bf16.gmra.mrb[64].mxu0 %v1106_v24  ;;  %2382 = vmatprep.subr.bf16.mxu1 %v2492_v0 }
  0xa3   :  { %2329 = vmatmul.mubr.bf16.gmra.mrb[64].mxu1 %v1292_v61  ;;  %2349 = vmatpush3.bf16.msra.mxu0 %v2482_v27 }
  0xa4   :  { %2296 = vmatprep.mubr.msk.bf16.mxu0 %vm2493_vm0, %v2492_v0  ;;  %2332 = vmatprep.mubr.msk.bf16.mxu1 %vm2493_vm0, %v2492_v0 }
  0xa5   :  { %2350 = vmatprep.subr.bf16.mxu0 %v2492_v0  ;;  %2390 = vmatpush3.bf16.msra.mxu1 %v2482_v27 }
  0xa6   :  { %2383 = vmatprep.subr.bf16.mxu1 %v2492_v0 }
  0xa7   :  { %2351 = vmatpush3.bf16.msra.mxu0 %v2484_v36 }
  0xa8   :  { %2352 = vmatprep.subr.bf16.mxu0 %v2492_v0 }
  0xa9   :  { %2391 = vmatpush3.bf16.msra.mxu1 %v2484_v36 }
  0xaa   :  { %2297 = vmatmul.mubr.bf16.gmra.mrb[68].mxu0 %v1108_v43  ;;  %2384 = vmatprep.subr.bf16.mxu1 %v2492_v0 }
  0xab   :  { %2333 = vmatmul.mubr.bf16.gmra.mrb[68].mxu1 %v1301_v48  ;;  %2353 = vmatpush3.bf16.msra.mxu0 %v2485_v46 }
  0xac   :  { %2300 = vmatprep.mubr.msk.bf16.mxu0 %vm2493_vm0, %v2492_v0  ;;  %2336 = vmatprep.mubr.msk.bf16.mxu1 %vm2493_vm0, %v2492_v0 }
  0xad   :  { %2392 = vmatpush3.bf16.msra.mxu1 %v2485_v46  ;;  %2354 = vmatprep.subr.bf16.mxu0 %v2492_v0 }
  0xae   :  { %2385 = vmatprep.subr.bf16.mxu1 %v2492_v0 }
  0xaf   :  { %2355 = vmatpush3.bf16.msra.mxu0 %v2488_v13 }
  0xb0   :  { %2356 = vmatprep.subr.bf16.mxu0 %v2492_v0 }
  0xb1   :  { %2393 = vmatpush3.bf16.msra.mxu1 %v2488_v13 }
  0xb2   :  { %2301 = vmatmul.mubr.bf16.gmra.mrb[72].mxu0 %v1110_v22  ;;  %2386 = vmatprep.subr.bf16.mxu1 %v2492_v0 }
  0xb3   :  { %2337 = vmatmul.mubr.bf16.gmra.mrb[72].mxu1 %v1310_v14  ;;  %2304 = vmatprep.mubr.msk.bf16.mxu0 %vm2493_vm0, %v2492_v0 }
  0xb4   :  { %2340 = vmatprep.mubr.msk.bf16.mxu1 %vm2493_vm0, %v2492_v0  ;;  %2357 = vmatpush3.bf16.msra.mxu0 %v2489_v21 }
  0xb5   :  { %2394 = vmatpush3.bf16.msra.mxu1 %v2489_v21  ;;  %2358 = vmatprep.subr.bf16.mxu0 %v2492_v0 }
  0xb6   :  { %2387 = vmatprep.subr.bf16.mxu1 %v2492_v0 }
  0xb8   :  { %2359 = vmatpush3.bf16.msra.mxu0 %v2490_v25 }
  0xb9   :  { %2395 = vmatpush3.bf16.msra.mxu1 %v2490_v25 }
  0xba   :  { %2305 = vmatmul.mubr.bf16.gmra.mrb[76].mxu0 %v1109_v12 }
  0xbb   :  { %2341 = vmatmul.mubr.bf16.gmra.mrb[76].mxu1 %v1309_v16  ;;  %2360 = vmatprep.mubr.msk.bf16.mxu0 %vm2493_vm0, %v2492_v0 }
  0xbc   :  { %2372 = vmatprep.mubr.msk.bf16.mxu1 %vm2493_vm0, %v2492_v0 }
  0xc2   :  { %2361 = vmatmul.mubr.bf16.vlgmr.msra.gmra.mrb[80].mxu0 %v1468_v56 }
  0xc3   :  { %2373 = vmatmul.mubr.bf16.vlgmr.msra.gmra.mrb[80].mxu1 %v1474_v32  ;;  %2364 = vmatprep.mubr.msk.bf16.mxu0 %vm2493_vm0, %v2492_v0 }
  0xc4   :  { %2376 = vmatprep.mubr.msk.bf16.mxu1 %vm2493_vm0, %v2492_v0 }
  0xca   :  { %2365 = vmatmul.mubr.bf16.gmra.mrb[84].mxu0 %v1470_v52 }
  0xcb   :  { %2377 = vmatmul.mubr.bf16.gmra.mrb[84].mxu1 %v1473_v54  ;;  %2368 = vmatprep.mubr.msk.bf16.mxu0 %vm2493_vm0, %v2492_v0 }
  0xd2   :  { %2369 = vmatmul.mubr.bf16.gmra.mrb[88].mxu0 %v1472_v58 }
  0xf5   :  { %v210_v59 = vpop.f32.mrb[0].mxu0  ;;  %v336_v40 = vpop.f32.mrb[0].mxu1 }
  0xf6   :  { %v2074_v41 = vpop.f32.mrb[1].mxu0  ;;  %v337_v44 = vadd.f32 %v336_v40, %v210_v59  ;;  %v2110_v18 = vpop.f32.mrb[1].mxu1 }
  0xf7   :  { %v213_v60 = vpop.f32.mrb[2].mxu0  ;;  %v339_v62 = vpop.f32.mrb[2].mxu1 }
  0xf8   :  { %v2075_v63 = vpop.f32.mrb[3].mxu0  ;;  %v340_v42 = vadd.f32 %v339_v62, %v213_v60  ;;  %v2111_v1 = vpop.f32.mrb[3].mxu1 }
  0xfd   :  { %v218_v2 = vpop.f32.mrb[4].mxu0 }
  0xfe   :  { %v344_v3 = vpop.f32.mrb[4].mxu1  ;;  %v2078_v4 = vpop.f32.mrb[5].mxu0 }
  0xff   :  { %v345_v34 = vadd.f32 %v344_v3, %v218_v2  ;;  %v2114_v55 = vpop.f32.mrb[5].mxu1  ;;  %v221_v5 = vpop.f32.mrb[6].mxu0 }
 0x100   :  { %v347_v0 = vpop.f32.mrb[6].mxu1  ;;  %v2079_v6 = vpop.f32.mrb[7].mxu0 }
 0x101   :  { %v348_v7 = vadd.f32 %v347_v0, %v221_v5  ;;  %v2115_v8 = vpop.f32.mrb[7].mxu1 }
 0x105   :  { %v226_v9 = vpop.f32.mrb[8].mxu0 }
 0x106   :  { %v352_v50 = vpop.f32.mrb[8].mxu1  ;;  %v2082_v10 = vpop.f32.mrb[9].mxu0 }
 0x107   :  { %v353_v11 = vadd.f32 %v352_v50, %v226_v9  ;;  %v2118_v15 = vpop.f32.mrb[9].mxu1  ;;  %v229_v17 = vpop.f32.mrb[10].mxu0 }
 0x108   :  { %v355_v19 = vpop.f32.mrb[10].mxu1  ;;  %v2083_v20 = vpop.f32.mrb[11].mxu0 }
 0x109   :  { %v356_v24 = vadd.f32 %v355_v19, %v229_v17  ;;  %v2119_v27 = vpop.f32.mrb[11].mxu1 }
 0x10d   :  { %v234_v61 = vpop.f32.mrb[12].mxu0 }
 0x10e   :  { %v360_v28 = vpop.f32.mrb[12].mxu1  ;;  %v2086_v29 = vpop.f32.mrb[13].mxu0 }
 0x10f   :  { %v361_v30 = vadd.f32 %v360_v28, %v234_v61  ;;  %v2122_v31 = vpop.f32.mrb[13].mxu1  ;;  %v237_v36 = vpop.f32.mrb[14].mxu0 }
 0x110   :  { %v363_v37 = vpop.f32.mrb[14].mxu1  ;;  %v2087_v38 = vpop.f32.mrb[15].mxu0 }
 0x111   :  { %v364_v39 = vadd.f32 %v363_v37, %v237_v36  ;;  %v2123_v45 = vpop.f32.mrb[15].mxu1 }
 0x115   :  { %v242_v43 = vpop.f32.mrb[16].mxu0 }
 0x116   :  { %v2090_v46 = vpop.f32.mrb[17].mxu0  ;;  %v368_v47 = vpop.f32.mrb[16].mxu1 }
 0x117   :  { %v369_v48 = vadd.f32 %v368_v47, %v242_v43  ;;  %v245_v49 = vpop.f32.mrb[18].mxu0  ;;  %v2126_v33 = vpop.f32.mrb[17].mxu1 }
 0x118   :  { %v2091_v12 = vpop.f32.mrb[19].mxu0  ;;  %v371_v13 = vpop.f32.mrb[18].mxu1 }
 0x119   :  { %v2127_v16 = vpop.f32.mrb[19].mxu1 }
 0x11d   :  { %v492_v22 = vpop.f32.mrb[20].mxu0 }
 0x11e   :  { %v530_v14 = vadd.f32 %v492_v22, %v337_v44  ;;  %v2146_v21 = vpop.f32.mrb[21].mxu0  ;;  %v661_v25 = vpop.f32.mrb[20].mxu1 }
 0x11f   :  { %v495_v23 = vpop.f32.mrb[22].mxu0  ;;  %v2182_v26 = vpop.f32.mrb[21].mxu1 }
 0x120   :  { %v531_v35 = vadd.f32 %v495_v23, %v340_v42  ;;  %v699_v51 = vadd.f32 %v661_v25, %v530_v14  ;;  %v2147_v53 = vpop.f32.mrb[23].mxu0  ;;  %v664_v54 = vpop.f32.mrb[22].mxu1 }
 0x121   :  { %v2183_v56 = vpop.f32.mrb[23].mxu1 }
 0x122   :  { %v700_v32 = vadd.f32 %v664_v54, %v531_v35 }
 0x125   :  { %v500_v57 = vpop.f32.mrb[24].mxu0 }
 0x126   :  { %v532_v52 = vadd.f32 %v500_v57, %v345_v34  ;;  %v2150_v58 = vpop.f32.mrb[25].mxu0  ;;  %v669_v59 = vpop.f32.mrb[24].mxu1 }
 0x127   :  { %v503_v40 = vpop.f32.mrb[26].mxu0  ;;  %v2186_v41 = vpop.f32.mrb[25].mxu1 }
 0x128   :  { %v533_v18 = vadd.f32 %v503_v40, %v348_v7  ;;  %v701_v60 = vadd.f32 %v669_v59, %v532_v52  ;;  %v2151_v62 = vpop.f32.mrb[27].mxu0  ;;  %v672_v44 = vpop.f32.mrb[26].mxu1 }
 0x129   :  { %v2187_v63 = vpop.f32.mrb[27].mxu1 }
 0x12a   :  { %v702_v1 = vadd.f32 %v672_v44, %v533_v18 }
 0x12d   :  { %v508_v2 = vpop.f32.mrb[28].mxu0 }
 0x12e   :  { %v534_v3 = vadd.f32 %v508_v2, %v353_v11  ;;  %v2154_v42 = vpop.f32.mrb[29].mxu0  ;;  %v677_v4 = vpop.f32.mrb[28].mxu1 }
 0x12f   :  { %v511_v55 = vpop.f32.mrb[30].mxu0  ;;  %v2190_v5 = vpop.f32.mrb[29].mxu1 }
 0x130   :  { %v535_v0 = vadd.f32 %v511_v55, %v356_v24  ;;  %v703_v6 = vadd.f32 %v677_v4, %v534_v3  ;;  %v2155_v8 = vpop.f32.mrb[31].mxu0  ;;  %v680_v34 = vpop.f32.mrb[30].mxu1 }
 0x131   :  { %v2191_v9 = vpop.f32.mrb[31].mxu1 }
 0x132   :  { %v704_v50 = vadd.f32 %v680_v34, %v535_v0 }
 0x135   :  { %v516_v10 = vpop.f32.mrb[32].mxu0 }
 0x136   :  { %v536_v15 = vadd.f32 %v516_v10, %v361_v30  ;;  %v2158_v7 = vpop.f32.mrb[33].mxu0  ;;  %v685_v17 = vpop.f32.mrb[32].mxu1 }
 0x137   :  { %v519_v19 = vpop.f32.mrb[34].mxu0  ;;  %v2194_v20 = vpop.f32.mrb[33].mxu1 }
 0x138   :  { %v537_v27 = vadd.f32 %v519_v19, %v364_v39  ;;  %v705_v61 = vadd.f32 %v685_v17, %v536_v15  ;;  %v2159_v28 = vpop.f32.mrb[35].mxu0  ;;  %v688_v11 = vpop.f32.mrb[34].mxu1 }
 0x139   :  { %v2195_v29 = vpop.f32.mrb[35].mxu1 }
 0x13a   :  { %v706_v31 = vadd.f32 %v688_v11, %v537_v27 }
 0x13d   :  { %v524_v36 = vpop.f32.mrb[36].mxu0 }
 0x13e   :  { %v538_v37 = vadd.f32 %v524_v36, %v369_v48  ;;  %v2162_v24 = vpop.f32.mrb[37].mxu0  ;;  %v693_v38 = vpop.f32.mrb[36].mxu1 }
 0x13f   :  { %v527_v45 = vpop.f32.mrb[38].mxu0  ;;  %v2198_v43 = vpop.f32.mrb[37].mxu1 }
 0x140   :  { %v707_v46 = vadd.f32 %v693_v38, %v538_v37  ;;  %v2163_v47 = vpop.f32.mrb[39].mxu0  ;;  %v696_v49 = vpop.f32.mrb[38].mxu1 }
 0x141   :  { %v2199_v30 = vpop.f32.mrb[39].mxu1 }
 0x145   :  { %v846_v33 = vpop.f32.mrb[40].mxu0 }
 0x146   :  { %v884_v12 = vadd.f32 %v846_v33, %v699_v51  ;;  %v2218_v13 = vpop.f32.mrb[41].mxu0  ;;  %v1002_v16 = vpop.f32.mrb[40].mxu1 }
 0x147   :  { %v849_v39 = vpop.f32.mrb[42].mxu0  ;;  %v2254_v22 = vpop.f32.mrb[41].mxu1 }
 0x148   :  { %v885_v14 = vadd.f32 %v849_v39, %v700_v32  ;;  %v1040_v21 = vadd.f32 %v1002_v16, %v884_v12  ;;  %v2219_v25 = vpop.f32.mrb[43].mxu0  ;;  %v1005_v23 = vpop.f32.mrb[42].mxu1 }
 0x149   :  { %v2255_v26 = vpop.f32.mrb[43].mxu1 }
 0x14a   :  { %v1041_v48 = vadd.f32 %v1005_v23, %v885_v14 }
 0x14d   :  { %v854_v35 = vpop.f32.mrb[44].mxu0 }
 0x14e   :  { %v886_v53 = vadd.f32 %v854_v35, %v701_v60  ;;  %v2222_v54 = vpop.f32.mrb[45].mxu0  ;;  %v1010_v56 = vpop.f32.mrb[44].mxu1 }
 0x14f   :  { %v857_v57 = vpop.f32.mrb[46].mxu0  ;;  %v2258_v52 = vpop.f32.mrb[45].mxu1 }
 0x150   :  { %v887_v58 = vadd.f32 %v857_v57, %v702_v1  ;;  %v1042_v59 = vadd.f32 %v1010_v56, %v886_v53  ;;  %v2223_v40 = vpop.f32.mrb[47].mxu0  ;;  %v1013_v51 = vpop.f32.mrb[46].mxu1 }
 0x151   :  { %v2259_v41 = vpop.f32.mrb[47].mxu1 }
 0x152   :  { %v1043_v18 = vadd.f32 %v1013_v51, %v887_v58 }
 0x155   :  { %v862_v62 = vpop.f32.mrb[48].mxu0 }
 0x156   :  { %v888_v44 = vadd.f32 %v862_v62, %v703_v6  ;;  %v2226_v32 = vpop.f32.mrb[49].mxu0  ;;  %v1018_v63 = vpop.f32.mrb[48].mxu1 }
 0x157   :  { %v865_v2 = vpop.f32.mrb[50].mxu0  ;;  %v2262_v3 = vpop.f32.mrb[49].mxu1 }
 0x158   :  { %v889_v42 = vadd.f32 %v865_v2, %v704_v50  ;;  %v1044_v4 = vadd.f32 %v1018_v63, %v888_v44  ;;  %v2227_v55 = vpop.f32.mrb[51].mxu0  ;;  %v1021_v60 = vpop.f32.mrb[50].mxu1 }
 0x159   :  { %v2263_v5 = vpop.f32.mrb[51].mxu1 }
 0x15a   :  { %v1045_v0 = vadd.f32 %v1021_v60, %v889_v42 }
 0x15d   :  { %v870_v8 = vpop.f32.mrb[52].mxu0 }
 0x15e   :  { %v890_v34 = vadd.f32 %v870_v8, %v705_v61  ;;  %v2230_v1 = vpop.f32.mrb[53].mxu0  ;;  %v1026_v9 = vpop.f32.mrb[52].mxu1 }
 0x15f   :  { %v873_v10 = vpop.f32.mrb[54].mxu0  ;;  %v2266_v15 = vpop.f32.mrb[53].mxu1 }
 0x160   :  { %v891_v7 = vadd.f32 %v873_v10, %v706_v31  ;;  %v1046_v17 = vadd.f32 %v1026_v9, %v890_v34  ;;  %v2231_v19 = vpop.f32.mrb[55].mxu0  ;;  %v1029_v6 = vpop.f32.mrb[54].mxu1 }
 0x161   :  { %v2267_v20 = vpop.f32.mrb[55].mxu1 }
 0x162   :  { %v1047_v27 = vadd.f32 %v1029_v6, %v891_v7 }
 0x165   :  { %v878_v28 = vpop.f32.mrb[56].mxu0 }
 0x166   :  { %v892_v11 = vadd.f32 %v878_v28, %v707_v46  ;;  %v2234_v50 = vpop.f32.mrb[57].mxu0  ;;  %v1034_v29 = vpop.f32.mrb[56].mxu1 }
 0x167   :  { %v881_v36 = vpop.f32.mrb[58].mxu0  ;;  %v2270_v37 = vpop.f32.mrb[57].mxu1 }
 0x168   :  { %v1048_v24 = vadd.f32 %v1034_v29, %v892_v11  ;;  %v2235_v38 = vpop.f32.mrb[59].mxu0  ;;  %v1037_v45 = vpop.f32.mrb[58].mxu1 }
 0x169   :  { %v2271_v61 = vpop.f32.mrb[59].mxu1 }
 0x16d   :  { %v1198_v43 = vpop.f32.mrb[60].mxu0 }
 0x16e   :  { %v1236_v47 = vadd.f32 %v1198_v43, %v1040_v21  ;;  %v2290_v49 = vpop.f32.mrb[61].mxu0  ;;  %v1398_v30 = vpop.f32.mrb[60].mxu1 }
 0x16f   :  { %v1201_v31 = vpop.f32.mrb[62].mxu0  ;;  %v2326_v33 = vpop.f32.mrb[61].mxu1 }
 0x170   :  { %v1237_v12 = vadd.f32 %v1201_v31, %v1041_v48  ;;  %v1436_v13 = vadd.f32 %v1398_v30, %v1236_v47  ;;  %v2291_v16 = vpop.f32.mrb[63].mxu0  ;;  %v1401_v39 = vpop.f32.mrb[62].mxu1 }
 0x171   :  { %v2327_v22 = vpop.f32.mrb[63].mxu1 }
 0x172   :  { %v1437_v46 = vadd.f32 %v1401_v39, %v1237_v12 }
 0x175   :  { %v1206_v14 = vpop.f32.mrb[64].mxu0 }
 0x176   :  { %v1238_v25 = vadd.f32 %v1206_v14, %v1042_v59  ;;  %v2294_v23 = vpop.f32.mrb[65].mxu0  ;;  %v1406_v26 = vpop.f32.mrb[64].mxu1 }
 0x177   :  { %v1209_v35 = vpop.f32.mrb[66].mxu0  ;;  %v2330_v53 = vpop.f32.mrb[65].mxu1 }
 0x178   :  { %v1239_v54 = vadd.f32 %v1209_v35, %v1043_v18  ;;  %v1438_v56 = vadd.f32 %v1406_v26, %v1238_v25  ;;  %v2295_v57 = vpop.f32.mrb[67].mxu0  ;;  %v1409_v21 = vpop.f32.mrb[66].mxu1 }
 0x179   :  { %v2331_v52 = vpop.f32.mrb[67].mxu1 }
 0x17a   :  { %v3127_v58 = vadd.f32 %v1409_v21, %v1239_v54 }
 0x17d   :  { %v1214_v40 = vpop.f32.mrb[68].mxu0 }
 0x17e   :  { %v1240_v48 = vadd.f32 %v1214_v40, %v1044_v4  ;;  %v2298_v51 = vpop.f32.mrb[69].mxu0  ;;  %v1414_v41 = vpop.f32.mrb[68].mxu1 }
 0x17f   :  { %v1217_v62 = vpop.f32.mrb[70].mxu0  ;;  %v2334_v44 = vpop.f32.mrb[69].mxu1 }
 0x180   :  { %v1241_v32 = vadd.f32 %v1217_v62, %v1045_v0  ;;  %v3129_v63 = vadd.f32 %v1414_v41, %v1240_v48  ;;  %v2299_v59 = vpop.f32.mrb[71].mxu0  ;;  %v1417_v2 = vpop.f32.mrb[70].mxu1 }
 0x181   :  { %v2335_v3 = vpop.f32.mrb[71].mxu1 }
 0x182   :  { %v3131_v42 = vadd.f32 %v1417_v2, %v1241_v32 }
 0x185   :  { %v1222_v18 = vpop.f32.mrb[72].mxu0 }
 0x186   :  { %v1242_v55 = vadd.f32 %v1222_v18, %v1046_v17  ;;  %v2302_v60 = vpop.f32.mrb[73].mxu0  ;;  %v1422_v5 = vpop.f32.mrb[72].mxu1 }
 0x187   :  { %v1225_v8 = vpop.f32.mrb[74].mxu0  ;;  %v2338_v34 = vpop.f32.mrb[73].mxu1 }
 0x188   :  { %v1243_v1 = vadd.f32 %v1225_v8, %v1047_v27  ;;  %v1442_v4 = vadd.f32 %v1422_v5, %v1242_v55  ;;  %v2303_v9 = vpop.f32.mrb[75].mxu0  ;;  %v1425_v10 = vpop.f32.mrb[74].mxu1  ;;  %v1897_v27 = vld [vmem:[%s3156_s2] ss:$0 sm:$0xff] }
 0x189   :  { %v2339_v15 = vpop.f32.mrb[75].mxu1 }
 0x18a   :  { %v1443_v7 = vadd.f32 %v1425_v10, %v1243_v1 }
 0x18d   :  { %v1230_v0 = vpop.f32.mrb[76].mxu0 }
 0x18e   :  { %v1244_v19 = vadd.f32 %v1230_v0, %v1048_v24  ;;  %v2306_v6 = vpop.f32.mrb[77].mxu0  ;;  %v1430_v20 = vpop.f32.mrb[76].mxu1 }
 0x18f   :  { %v1233_v28 = vpop.f32.mrb[78].mxu0  ;;  %v2342_v11 = vpop.f32.mrb[77].mxu1 }
 0x190   :  { %v1444_v50 = vadd.f32 %v1430_v20, %v1244_v19  ;;  %v2307_v29 = vpop.f32.mrb[79].mxu0  ;;  %v1433_v36 = vpop.f32.mrb[78].mxu1 }
 0x191   :  { %v2343_v17 = vpop.f32.mrb[79].mxu1 }
 0x195   :  { %v1562_v37 = vpop.f32.mrb[80].mxu0 }
 0x196   :  { %v1600_v38 = vadd.f32 %v1562_v37, %v1436_v13  ;;  %v1586_v45 = vpop.f32.mrb[80].mxu1  ;;  %v2362_v61 = vpop.f32.mrb[81].mxu0 }
 0x197   :  { %v1606_v43 = vadd.f32 %v1586_v45, %v1442_v4  ;;  %v2374_v47 = vpop.f32.mrb[81].mxu1  ;;  %v1565_v49 = vpop.f32.mrb[82].mxu0 }
 0x198   :  { %v1601_v24 = vadd.f32 %v1565_v49, %v1437_v46  ;;  %v1589_v30 = vpop.f32.mrb[82].mxu1  ;;  %v2363_v31 = vpop.f32.mrb[83].mxu0  ;;  %v1616_v16 = vadd.f32 %v1897_v27, %v1600_v38 }
 0x199   :  { %v1607_v33 = vadd.f32 %v1589_v30, %v1443_v7  ;;  %v2375_v12 = vpop.f32.mrb[83].mxu1  ;;  %v1622_v22 = vadd.f32 %v1897_v27, %v1606_v43 }
 0x19a   :  { %v1617_v39 = vadd.f32 %v1897_v27, %v1601_v24 }
 0x19b   :  { %v1623_v14 = vadd.f32 %v1897_v27, %v1607_v33 }
 0x19c   :  { %v1919_v25 = vpack.c.bf16 %v1617_v39, %v1616_v16 }
 0x19d   :  { %v1934_v13 = vpack.c.bf16 %v1623_v14, %v1622_v22  ;;  %v1570_v23 = vpop.f32.mrb[84].mxu0 }
 0x19e   :  { %1920 = vst [vmem:[%s3157_s3] sm:$0xff] %v1919_v25   ;;  %v1602_v26 = vadd.f32 %v1570_v23, %v1438_v56  ;;  %v1594_v35 = vpop.f32.mrb[84].mxu1  ;;  %v2366_v53 = vpop.f32.mrb[85].mxu0 }
 0x19f   :  { %1938 = vst [vmem:[%s3157_s3 + $0x18] sm:$0xff] %v1934_v13   ;;  %v1608_v46 = vadd.f32 %v1594_v35, %v1444_v50  ;;  %v1573_v54 = vpop.f32.mrb[86].mxu0  ;;  %v2378_v57 = vpop.f32.mrb[85].mxu1 }
 0x1a0   :  { %v1603_v21 = vadd.f32 %v1573_v54, %v3127_v58  ;;  %v2367_v52 = vpop.f32.mrb[87].mxu0  ;;  %v1597_v40 = vpop.f32.mrb[86].mxu1  ;;  %v1618_v41 = vadd.f32 %v1897_v27, %v1602_v26 }
 0x1a1   :  { %v1624_v48 = vadd.f32 %v1897_v27, %v1608_v46  ;;  %v2379_v51 = vpop.f32.mrb[87].mxu1 }
 0x1a2   :  { %v1619_v62 = vadd.f32 %v1897_v27, %v1603_v21 }
 0x1a3   :  { %v1915_v44 = vpack.c.bf16 %v1624_v48, %v1624_v48 }
 0x1a4   :  { %v1924_v32 = vpack.c.bf16 %v1619_v62, %v1618_v41 }
 0x1a5   :  { %1670 = vst [vmem:[%s3157_s3 + $0x20] sm:$0xf] %v1915_v44  ;;  %v1578_v56 = vpop.f32.mrb[88].mxu0 }
 0x1a6   :  { %1936 = vst [vmem:[%s3157_s3 + $0x8] sm:$0xff] %v1924_v32   ;;  %v1604_v59 = vadd.f32 %v1578_v56, %v3129_v63  ;;  %v2370_v58 = vpop.f32.mrb[89].mxu0 }
 0x1a7   :  { %v1581_v2 = vpop.f32.mrb[90].mxu0 }
 0x1a8   :  { %v1605_v3 = vadd.f32 %v1581_v2, %v3131_v42  ;;  %v2371_v18 = vpop.f32.mrb[91].mxu0  ;;  %v1620_v55 = vadd.f32 %v1897_v27, %v1604_v59 }
 0x1aa   :  { %v1621_v60 = vadd.f32 %v1897_v27, %v1605_v3 }
 0x1ac   :  { %v1929_v5 = vpack.c.bf16 %v1621_v60, %v1620_v55 }
 0x1ae   :  { %1937 = vst [vmem:[%s3157_s3 + $0x10] sm:$0xff] %v1929_v5  }

</bundles_post_ra>
